<compile_context>
chip_gen: v7x
topology: tpu7x:2x2x1
jax: 0.10.0
libtpu: 0.0.40
codegen_flags: <defaults>
</compile_context>

<pallas_src>
import functools

import jax
import jax.numpy as jnp
from jax.experimental import pallas as pl
from jax.experimental.pallas import tpu as pltpu


# ----------------------------------------------------------------------------
# Kernel 1: x-path conv  (non-recurrent, one grid step per frame t)
#   out[t] = bias + sum_{dy,dx} x_pad[t, :, dy:dy+H, dx:dx+W, :] @ W_x[dy,dx]
# ----------------------------------------------------------------------------
def _xpath_conv_kernel(xpad_ref, wx_ref, b_ref, out_ref, *, kh, kw, H, W):
    # xpad_ref : (B, H+2ph, W+2pw, Cin)
    # wx_ref   : (kh*kw, Cin, 4*Chid)
    # b_ref    : (1, 4*Chid)
    # out_ref  : (B*H*W, 4*Chid)
    B = xpad_ref.shape[0]
    Cin = xpad_ref.shape[3]
    M, N = out_ref.shape

    out_ref[...] = jnp.broadcast_to(b_ref[...], (M, N))
    for dy in range(kh):
        for dx in range(kw):
            patch = xpad_ref[:, dy:dy + H, dx:dx + W, :]          # (B, H, W, Cin)
            out_ref[...] += jnp.dot(patch.reshape(M, Cin),
                                    wx_ref[dy * kw + dx],
                                    preferred_element_type=jnp.float32)


# ----------------------------------------------------------------------------
# Kernel 2: the recurrence.  grid=(B, T); h/c carried in VMEM scratch over T.
# ----------------------------------------------------------------------------
def _convlstm_recurrent_kernel(xc_ref, wh_ref, hseq_ref, clast_ref,
                               hpad_ref, c_ref, acc_ref,
                               *, kh, kw, H, W, Chid, ph, pw):
    # xc_ref    : (H*W, 4*Chid)   precomputed x-path (incl. bias) for (b, t)
    # wh_ref    : (kh*kw, Chid, 4*Chid)  h-path conv weights (VMEM-resident)
    # hseq_ref  : (H, W, Chid)    h_t output block
    # clast_ref : (H, W, Chid)    last cell state output block (per b)
    # hpad_ref  : (H+2ph, W+2pw, Chid)  padded h state (scratch, carried)
    # c_ref     : (H*W, Chid)     cell state (scratch, carried)
    # acc_ref   : (H*W, 4*Chid)   conv accumulator (scratch)
    t = pl.program_id(1)

    @pl.when(t == 0)
    def _init():
        hpad_ref[...] = jnp.zeros_like(hpad_ref)
        c_ref[...] = jnp.zeros_like(c_ref)

    # conv over h ("same" padding) as kh*kw shifted MXU matmuls, accumulated
    # in VMEM on top of the precomputed x-path contribution.
    acc_ref[...] = xc_ref[...]
    for dy in range(kh):
        for dx in range(kw):
            patch = hpad_ref[dy:dy + H, dx:dx + W, :]             # (H, W, Chid)
            acc_ref[...] += jnp.dot(patch.reshape(H * W, Chid),
                                    wh_ref[dy * kw + dx],
                                    preferred_element_type=jnp.float32)

    # Gate order matches torch.split(combined_conv, hidden_dim, dim=1): i,f,o,g.
    cc = acc_ref[...]                                             # (H*W, 4*Chid)
    lane = jax.lax.broadcasted_iota(jnp.int32, cc.shape, 1)
    act = jnp.where(lane < 3 * Chid, jax.nn.sigmoid(cc), jnp.tanh(cc))
    i = act[:, 0:Chid]
    f = act[:, Chid:2 * Chid]
    o = act[:, 2 * Chid:3 * Chid]
    g = act[:, 3 * Chid:4 * Chid]

    c_next = f * c_ref[...] + i * g                               # (H*W, Chid)
    h_next = o * jnp.tanh(c_next)

    # Carry state in VMEM scratch (interior of the padded h buffer).
    c_ref[...] = c_next
    hpad_ref[ph:ph + H, pw:pw + W, :] = h_next.reshape(H, W, Chid)

    # Outputs.  clast's block index only depends on b, so it is written back to
    # HBM once per b (after the last t) with the final cell state.
    hseq_ref[...] = h_next.reshape(H, W, Chid)
    clast_ref[...] = c_next.reshape(H, W, Chid)


# ----------------------------------------------------------------------------
# One ConvLSTM layer: x-path precompute + fused recurrence.
# ----------------------------------------------------------------------------
def _convlstm_layer(x_tbhwc, w_x, w_h, bias, kernel_size, Chid):
    T, B, H, W, Cin = x_tbhwc.shape
    kh, kw = kernel_size
    # Shifted-window "same" conv assumes odd kernels (matches padding=k//2).
    assert kh % 2 == 1 and kw % 2 == 1, "ConvLSTM Pallas kernel assumes odd kernel sizes"
    ph, pw = kh // 2, kw // 2
    Hp, Wp = H + 2 * ph, W + 2 * pw
    HW = H * W
    Ch4 = 4 * Chid

    # Pad the input channel dim to a multiple of 8 (zero weights -> no effect)
    # so the MXU contraction dim is sublane-aligned.
    cpad = (-Cin) % 8
    if cpad:
        x_in = jnp.pad(x_tbhwc, ((0, 0), (0, 0), (0, 0), (0, 0), (0, cpad)))
        w_x_p = jnp.pad(w_x, ((0, 0), (0, cpad), (0, 0)))
    else:
        x_in, w_x_p = x_tbhwc, w_x
    Cin_k = Cin + cpad

    # ---- x-path: conv_x(x_t) + bias for all T (one kernel, T-parallel grid) ----
    xpad = jnp.pad(x_in, ((0, 0), (0, 0), (ph, ph), (pw, pw), (0, 0)))
    xconv = pl.pallas_call(
        functools.partial(_xpath_conv_kernel, kh=kh, kw=kw, H=H, W=W),
        grid=(T,),
        in_specs=[
            pl.BlockSpec((None, B, Hp, Wp, Cin_k), lambda t: (t, 0, 0, 0, 0)),
            pl.BlockSpec((kh * kw, Cin_k, Ch4), lambda t: (0, 0, 0)),
            pl.BlockSpec((1, Ch4), lambda t: (0, 0)),
        ],
        out_specs=pl.BlockSpec((None, B * HW, Ch4), lambda t: (t, 0, 0)),
        out_shape=jax.ShapeDtypeStruct((T, B * HW, Ch4), jnp.float32),
        compiler_params=pltpu.CompilerParams(dimension_semantics=("parallel",)),
    )(xpad, w_x_p, bias)

    # ---- recurrence: one kernel over grid (B, T); h/c live in VMEM scratch ----
    hseq, c_last = pl.pallas_call(
        functools.partial(_convlstm_recurrent_kernel, kh=kh, kw=kw, H=H, W=W,
                          Chid=Chid, ph=ph, pw=pw),
        grid=(B, T),
        in_specs=[
            pl.BlockSpec((None, HW, Ch4), lambda b, t: (t, b, 0)),
            pl.BlockSpec((kh * kw, Chid, Ch4), lambda b, t: (0, 0, 0)),
        ],
        out_specs=(
            pl.BlockSpec((None, None, H, W, Chid), lambda b, t: (t, b, 0, 0, 0)),
            pl.BlockSpec((None, H, W, Chid), lambda b, t: (b, 0, 0, 0)),
        ),
        out_shape=(
            jax.ShapeDtypeStruct((T, B, H, W, Chid), jnp.float32),
            jax.ShapeDtypeStruct((B, H, W, Chid), jnp.float32),
        ),
        scratch_shapes=[
            pltpu.VMEM((Hp, Wp, Chid), jnp.float32),   # padded h carry
            pltpu.VMEM((HW, Chid), jnp.float32),       # c carry
            pltpu.VMEM((HW, Ch4), jnp.float32),        # conv accumulator
        ],
        compiler_params=pltpu.CompilerParams(
            dimension_semantics=("parallel", "arbitrary")),
    )(xconv, w_h)

    return hseq, c_last                                # (T,B,H,W,Chid), (B,H,W,Chid)


# ----------------------------------------------------------------------------
# ConvLSTM forward (multi-layer) — glue in plain JAX
# ----------------------------------------------------------------------------
def convlstm_forward(input_tensor, params, hidden_channels, kernel_sizes,
                     batch_first=False, return_all_layers=False):
    """input_tensor: (t,b,c,h,w) if not batch_first else (b,t,c,h,w); NCHW frames."""
    if batch_first:
        x = jnp.transpose(input_tensor, (1, 0, 3, 4, 2))   # -> (t,b,h,w,c)
    else:
        x = jnp.transpose(input_tensor, (0, 1, 3, 4, 2))   # -> (t,b,h,w,c)

    layer_output_list = []
    last_state_list = []
    cur = x
    for li, (w_x, w_h, b) in enumerate(params):
        hseq, c_last = _convlstm_layer(cur, w_x, w_h, b,
                                       kernel_sizes[li], hidden_channels[li])
        cur = hseq
        layer_output_list.append(hseq)
        last_state_list.append((hseq[-1], c_last))

    if not return_all_layers:
        layer_output_list = layer_output_list[-1:]
        last_state_list = last_state_list[-1:]

    # internal (T,B,H,W,C) -> PyTorch (B,T,C,H,W) / (B,C,H,W)
    layer_output_list = [jnp.transpose(o, (1, 0, 4, 2, 3)) for o in layer_output_list]
    last_state_list = [(jnp.transpose(hh, (0, 3, 1, 2)),
                        jnp.transpose(cc, (0, 3, 1, 2)))
                       for (hh, cc) in last_state_list]
    return layer_output_list, last_state_list


# ----------------------------------------------------------------------------
# Deterministic parameter construction (mirrors nn.Conv2d shapes in __init__)
# ----------------------------------------------------------------------------
def init_convlstm_params(key, in_channels, hidden_channels, kernel_sizes):
    params = []
    cur_in = in_channels
    for li, Chid in enumerate(hidden_channels):
        kh, kw = kernel_sizes[li]
        cin_total = cur_in + Chid
        kw_key, kb_key, key = jax.random.split(key, 3)
        # PyTorch Conv2d weight shape: (4*Chid, cin_total, kh, kw)
        w_oihw = 0.1 * jax.random.normal(kw_key, (4 * Chid, cin_total, kh, kw),
                                         dtype=jnp.float32)
        bias = 0.1 * jax.random.normal(kb_key, (4 * Chid,), dtype=jnp.float32)
        # -> HWIO, taps flattened: (kh*kw, cin_total, 4*Chid)
        w_hwio = jnp.transpose(w_oihw, (2, 3, 1, 0)).reshape(kh * kw, cin_total,
                                                             4 * Chid)
        # conv over concat([x, h]) == conv_x(x) + conv_h(h): split the input dim.
        w_x = w_hwio[:, :cur_in, :]
        w_h = w_hwio[:, cur_in:, :]
        params.append((w_x, w_h, bias.reshape(1, 4 * Chid)))
        cur_in = Chid
    return params


# ----------------------------------------------------------------------------
# Pure-XLA reference (lax.conv) used as a correctness check in __main__.
# ----------------------------------------------------------------------------
def _reference_forward(x_tbhwc, params, hidden_channels, kernel_sizes):
    T, B, H, W, _ = x_tbhwc.shape
    cur = x_tbhwc
    h = c = None
    for li, (w_x, w_h, bias) in enumerate(params):
        Chid = hidden_channels[li]
        kh, kw = kernel_sizes[li]
        Cin = w_x.shape[1]
        w_full = jnp.concatenate([w_x, w_h], axis=1).reshape(kh, kw,
                                                             Cin + Chid, 4 * Chid)
        h = jnp.zeros((B, H, W, Chid), jnp.float32)
        c = jnp.zeros((B, H, W, Chid), jnp.float32)
        outs = []
        for t in range(T):
            comb = jnp.concatenate([cur[t], h], axis=-1)
            conv = jax.lax.conv_general_dilated(
                comb, w_full, window_strides=(1, 1), padding="SAME",
                dimension_numbers=("NHWC", "HWIO", "NHWC"),
                precision=jax.lax.Precision.HIGHEST) + bias.reshape(1, 1, 1, -1)
            i = jax.nn.sigmoid(conv[..., 0:Chid])
            f = jax.nn.sigmoid(conv[..., Chid:2 * Chid])
            o = jax.nn.sigmoid(conv[..., 2 * Chid:3 * Chid])
            g = jnp.tanh(conv[..., 3 * Chid:4 * Chid])
            c = f * c + i * g
            h = o * jnp.tanh(c)
            outs.append(h)
        cur = jnp.stack(outs, axis=0)
    return cur, h, c


# ----------------------------------------------------------------------------
if __name__ == "__main__":
    # Module config: ConvLSTM(in_channels=4, hidden_channels=32, kernel_size=(3,3),
    #                         num_layers=2, batch_first=False, bias=True,
    #                         return_all_layers=False)
    B, T, Cin, H, W = 2, 8, 4, 16, 16
    num_layers = 2
    hidden_channels = [32] * num_layers
    kernel_sizes = [(3, 3)] * num_layers

    key = jax.random.PRNGKey(0)
    x_key, p_key = jax.random.split(key)
    # batch_first=False -> input is (t, b, c, h, w)
    x = jax.random.normal(x_key, (T, B, Cin, H, W), dtype=jnp.float32)
    params = init_convlstm_params(p_key, Cin, hidden_channels, kernel_sizes)

    fwd = jax.jit(functools.partial(convlstm_forward,
                                    hidden_channels=hidden_channels,
                                    kernel_sizes=kernel_sizes,
                                    batch_first=False,
                                    return_all_layers=False))
    layer_output_list, last_state_list = fwd(x, params)

    out = jax.block_until_ready(layer_output_list[-1])
    h_last, c_last = last_state_list[-1]
    jax.block_until_ready(h_last)
    jax.block_until_ready(c_last)

    assert out.shape == (B, T, hidden_channels[-1], H, W)
    assert h_last.shape == (B, hidden_channels[-1], H, W)
    assert c_last.shape == (B, hidden_channels[-1], H, W)

    # Correctness check against a pure-XLA reference (loose tol for MXU f32).
    ref_fn = jax.jit(functools.partial(_reference_forward,
                                       hidden_channels=hidden_channels,
                                       kernel_sizes=kernel_sizes))
    x_tbhwc = jnp.transpose(x, (0, 1, 3, 4, 2))
    ref_seq, ref_h, ref_c = ref_fn(x_tbhwc, params)
    ref_out = jnp.transpose(ref_seq, (1, 0, 4, 2, 3))     # (B,T,Ch,H,W)
    ref_h = jnp.transpose(ref_h, (0, 3, 1, 2))
    ref_c = jnp.transpose(ref_c, (0, 3, 1, 2))
    assert bool(jnp.allclose(out, ref_out, atol=5e-2, rtol=5e-2))
    assert bool(jnp.allclose(h_last, ref_h, atol=5e-2, rtol=5e-2))
    assert bool(jnp.allclose(c_last, ref_c, atol=5e-2, rtol=5e-2))

    print("KERNEL_OK")
</pallas_src>

<mosaic_0001>
module attributes {stable_mosaic.version = 11 : i64} {
  func.func @_xpath_conv_kernel(%arg0: i32, %arg1: memref<1x2x18x18x8xf32, #tpu.memory_space<vmem>>, %arg2: memref<9x8x128xf32, #tpu.memory_space<vmem>>, %arg3: memref<1x128xf32, #tpu.memory_space<vmem>>, %arg4: memref<1x512x128xf32, #tpu.memory_space<vmem>>) attributes {dimension_semantics = [#tpu.dimension_semantics<parallel>], iteration_bounds = array<i64: 8>, scalar_prefetch = 0 : i64, scratch_operands = 0 : i64, tpu.core_type = #tpu.core_type<tc>, window_params = [{transform_indices = @transform_0, window_bounds = array<i64: 1, 2, 18, 18, 8>}, {pipeline_mode = #tpu.pipeline_mode<synchronous>, transform_indices = @transform_1, window_bounds = array<i64: 9, 8, 128>}, {pipeline_mode = #tpu.pipeline_mode<synchronous>, transform_indices = @transform_2, window_bounds = array<i64: 1, 128>}, {transform_indices = @transform_3, window_bounds = array<i64: 1, 512, 128>}]} {
    %c0 = arith.constant 0 : index
    %c0_0 = arith.constant 0 : index
    %0 = vector.load %arg3[%c0, %c0_0] : memref<1x128xf32, #tpu.memory_space<vmem>>, vector<1x128xf32>
    %1 = vector.shape_cast %0 : vector<1x128xf32> to vector<1x128xf32>
    %2 = vector.broadcast %1 : vector<1x128xf32> to vector<512x128xf32>
    %c0_1 = arith.constant 0 : index
    %c0_2 = arith.constant 0 : index
    %c0_3 = arith.constant 0 : index
    %3 = vector.load %arg4[%c0_1, %c0_2, %c0_3] : memref<1x512x128xf32, #tpu.memory_space<vmem>>, vector<1x512x128xf32>
    %4 = vector.shape_cast %3 : vector<1x512x128xf32> to vector<512x128xf32>
    %5 = vector.shape_cast %2 : vector<512x128xf32> to vector<1x512x128xf32>
    tpu.vector_store %arg4[%c0_1, %c0_2, %c0_3], %5 {strides = array<i32>} : memref<1x512x128xf32, #tpu.memory_space<vmem>>, vector<1x512x128xf32>,
    %c0_4 = arith.constant 0 : index
    %c0_5 = arith.constant 0 : index
    %c0_6 = arith.constant 0 : index
    %c0_7 = arith.constant 0 : index
    %c0_8 = arith.constant 0 : index
    %6 = vector.load %arg1[%c0_4, %c0_5, %c0_6, %c0_7, %c0_8] : memref<1x2x18x18x8xf32, #tpu.memory_space<vmem>>, vector<1x2x16x16x8xf32>
    %7 = vector.shape_cast %6 : vector<1x2x16x16x8xf32> to vector<2x16x16x8xf32>
    %c0_9 = arith.constant 0 : index
    %c0_10 = arith.constant 0 : index
    %c0_11 = arith.constant 0 : index
    %8 = vector.load %arg4[%c0_9, %c0_10, %c0_11] : memref<1x512x128xf32, #tpu.memory_space<vmem>>, vector<1x512x128xf32>
    %9 = vector.shape_cast %8 : vector<1x512x128xf32> to vector<512x128xf32>
    %10 = vector.shape_cast %7 : vector<2x16x16x8xf32> to vector<512x8xf32>
    %c0_12 = arith.constant 0 : index
    %c0_13 = arith.constant 0 : index
    %c0_14 = arith.constant 0 : index
    %11 = vector.load %arg2[%c0_12, %c0_13, %c0_14] : memref<9x8x128xf32, #tpu.memory_space<vmem>>, vector<1x8x128xf32>
    %12 = vector.shape_cast %11 : vector<1x8x128xf32> to vector<8x128xf32>
    %cst = arith.constant dense<0.000000e+00> : vector<512x128xf32>
    %13 = tpu.matmul %10, %12, %cst {dimension_numbers = #tpu.dot_dimension_numbers<[1], [0], [0], [1], [0, 0, 1, 1], [], []>} : vector<512x8xf32>, vector<8x128xf32>, vector<512x128xf32> -> vector<512x128xf32>
    %14 = arith.addf %9, %13 : vector<512x128xf32>
    %c0_15 = arith.constant 0 : index
    %c0_16 = arith.constant 0 : index
    %c0_17 = arith.constant 0 : index
    %15 = vector.load %arg4[%c0_15, %c0_16, %c0_17] : memref<1x512x128xf32, #tpu.memory_space<vmem>>, vector<1x512x128xf32>
    %16 = vector.shape_cast %15 : vector<1x512x128xf32> to vector<512x128xf32>
    %17 = vector.shape_cast %14 : vector<512x128xf32> to vector<1x512x128xf32>
    tpu.vector_store %arg4[%c0_15, %c0_16, %c0_17], %17 {strides = array<i32>} : memref<1x512x128xf32, #tpu.memory_space<vmem>>, vector<1x512x128xf32>,
    %c0_18 = arith.constant 0 : index
    %c0_19 = arith.constant 0 : index
    %c0_20 = arith.constant 0 : index
    %c1 = arith.constant 1 : index
    %c0_21 = arith.constant 0 : index
    %18 = vector.load %arg1[%c0_18, %c0_19, %c0_20, %c1, %c0_21] : memref<1x2x18x18x8xf32, #tpu.memory_space<vmem>>, vector<1x2x16x16x8xf32>
    %19 = vector.shape_cast %18 : vector<1x2x16x16x8xf32> to vector<2x16x16x8xf32>
    %c0_22 = arith.constant 0 : index
    %c0_23 = arith.constant 0 : index
    %c0_24 = arith.constant 0 : index
    %20 = vector.load %arg4[%c0_22, %c0_23, %c0_24] : memref<1x512x128xf32, #tpu.memory_space<vmem>>, vector<1x512x128xf32>
    %21 = vector.shape_cast %20 : vector<1x512x128xf32> to vector<512x128xf32>
    %22 = vector.shape_cast %19 : vector<2x16x16x8xf32> to vector<512x8xf32>
    %c1_25 = arith.constant 1 : index
    %c0_26 = arith.constant 0 : index
    %c0_27 = arith.constant 0 : index
    %23 = vector.load %arg2[%c1_25, %c0_26, %c0_27] : memref<9x8x128xf32, #tpu.memory_space<vmem>>, vector<1x8x128xf32>
    %24 = vector.shape_cast %23 : vector<1x8x128xf32> to vector<8x128xf32>
    %cst_28 = arith.constant dense<0.000000e+00> : vector<512x128xf32>
    %25 = tpu.matmul %22, %24, %cst_28 {dimension_numbers = #tpu.dot_dimension_numbers<[1], [0], [0], [1], [0, 0, 1, 1], [], []>} : vector<512x8xf32>, vector<8x128xf32>, vector<512x128xf32> -> vector<512x128xf32>
    %26 = arith.addf %21, %25 : vector<512x128xf32>
    %c0_29 = arith.constant 0 : index
    %c0_30 = arith.constant 0 : index
    %c0_31 = arith.constant 0 : index
    %27 = vector.load %arg4[%c0_29, %c0_30, %c0_31] : memref<1x512x128xf32, #tpu.memory_space<vmem>>, vector<1x512x128xf32>
    %28 = vector.shape_cast %27 : vector<1x512x128xf32> to vector<512x128xf32>
    %29 = vector.shape_cast %26 : vector<512x128xf32> to vector<1x512x128xf32>
    tpu.vector_store %arg4[%c0_29, %c0_30, %c0_31], %29 {strides = array<i32>} : memref<1x512x128xf32, #tpu.memory_space<vmem>>, vector<1x512x128xf32>,
    %c0_32 = arith.constant 0 : index
    %c0_33 = arith.constant 0 : index
    %c0_34 = arith.constant 0 : index
    %c2 = arith.constant 2 : index
    %c0_35 = arith.constant 0 : index
    %30 = vector.load %arg1[%c0_32, %c0_33, %c0_34, %c2, %c0_35] : memref<1x2x18x18x8xf32, #tpu.memory_space<vmem>>, vector<1x2x16x16x8xf32>
    %31 = vector.shape_cast %30 : vector<1x2x16x16x8xf32> to vector<2x16x16x8xf32>
    %c0_36 = arith.constant 0 : index
    %c0_37 = arith.constant 0 : index
    %c0_38 = arith.constant 0 : index
    %32 = vector.load %arg4[%c0_36, %c0_37, %c0_38] : memref<1x512x128xf32, #tpu.memory_space<vmem>>, vector<1x512x128xf32>
    %33 = vector.shape_cast %32 : vector<1x512x128xf32> to vector<512x128xf32>
    %34 = vector.shape_cast %31 : vector<2x16x16x8xf32> to vector<512x8xf32>
    %c2_39 = arith.constant 2 : index
    %c0_40 = arith.constant 0 : index
    %c0_41 = arith.constant 0 : index
    %35 = vector.load %arg2[%c2_39, %c0_40, %c0_41] : memref<9x8x128xf32, #tpu.memory_space<vmem>>, vector<1x8x128xf32>
    %36 = vector.shape_cast %35 : vector<1x8x128xf32> to vector<8x128xf32>
    %cst_42 = arith.constant dense<0.000000e+00> : vector<512x128xf32>
    %37 = tpu.matmul %34, %36, %cst_42 {dimension_numbers = #tpu.dot_dimension_numbers<[1], [0], [0], [1], [0, 0, 1, 1], [], []>} : vector<512x8xf32>, vector<8x128xf32>, vector<512x128xf32> -> vector<512x128xf32>
    %38 = arith.addf %33, %37 : vector<512x128xf32>
    %c0_43 = arith.constant 0 : index
    %c0_44 = arith.constant 0 : index
    %c0_45 = arith.constant 0 : index
    %39 = vector.load %arg4[%c0_43, %c0_44, %c0_45] : memref<1x512x128xf32, #tpu.memory_space<vmem>>, vector<1x512x128xf32>
    %40 = vector.shape_cast %39 : vector<1x512x128xf32> to vector<512x128xf32>
    %41 = vector.shape_cast %38 : vector<512x128xf32> to vector<1x512x128xf32>
    tpu.vector_store %arg4[%c0_43, %c0_44, %c0_45], %41 {strides = array<i32>} : memref<1x512x128xf32, #tpu.memory_space<vmem>>, vector<1x512x128xf32>,
    %c0_46 = arith.constant 0 : index
    %c0_47 = arith.constant 0 : index
    %c1_48 = arith.constant 1 : index
    %c0_49 = arith.constant 0 : index
    %c0_50 = arith.constant 0 : index
    %42 = vector.load %arg1[%c0_46, %c0_47, %c1_48, %c0_49, %c0_50] : memref<1x2x18x18x8xf32, #tpu.memory_space<vmem>>, vector<1x2x16x16x8xf32>
    %43 = vector.shape_cast %42 : vector<1x2x16x16x8xf32> to vector<2x16x16x8xf32>
    %c0_51 = arith.constant 0 : index
    %c0_52 = arith.constant 0 : index
    %c0_53 = arith.constant 0 : index
    %44 = vector.load %arg4[%c0_51, %c0_52, %c0_53] : memref<1x512x128xf32, #tpu.memory_space<vmem>>, vector<1x512x128xf32>
    %45 = vector.shape_cast %44 : vector<1x512x128xf32> to vector<512x128xf32>
    %46 = vector.shape_cast %43 : vector<2x16x16x8xf32> to vector<512x8xf32>
    %c3 = arith.constant 3 : index
    %c0_54 = arith.constant 0 : index
    %c0_55 = arith.constant 0 : index
    %47 = vector.load %arg2[%c3, %c0_54, %c0_55] : memref<9x8x128xf32, #tpu.memory_space<vmem>>, vector<1x8x128xf32>
    %48 = vector.shape_cast %47 : vector<1x8x128xf32> to vector<8x128xf32>
    %cst_56 = arith.constant dense<0.000000e+00> : vector<512x128xf32>
    %49 = tpu.matmul %46, %48, %cst_56 {dimension_numbers = #tpu.dot_dimension_numbers<[1], [0], [0], [1], [0, 0, 1, 1], [], []>} : vector<512x8xf32>, vector<8x128xf32>, vector<512x128xf32> -> vector<512x128xf32>
    %50 = arith.addf %45, %49 : vector<512x128xf32>
    %c0_57 = arith.constant 0 : index
    %c0_58 = arith.constant 0 : index
    %c0_59 = arith.constant 0 : index
    %51 = vector.load %arg4[%c0_57, %c0_58, %c0_59] : memref<1x512x128xf32, #tpu.memory_space<vmem>>, vector<1x512x128xf32>
    %52 = vector.shape_cast %51 : vector<1x512x128xf32> to vector<512x128xf32>
    %53 = vector.shape_cast %50 : vector<512x128xf32> to vector<1x512x128xf32>
    tpu.vector_store %arg4[%c0_57, %c0_58, %c0_59], %53 {strides = array<i32>} : memref<1x512x128xf32, #tpu.memory_space<vmem>>, vector<1x512x128xf32>,
    %c0_60 = arith.constant 0 : index
    %c0_61 = arith.constant 0 : index
    %c1_62 = arith.constant 1 : index
    %c1_63 = arith.constant 1 : index
    %c0_64 = arith.constant 0 : index
    %54 = vector.load %arg1[%c0_60, %c0_61, %c1_62, %c1_63, %c0_64] : memref<1x2x18x18x8xf32, #tpu.memory_space<vmem>>, vector<1x2x16x16x8xf32>
    %55 = vector.shape_cast %54 : vector<1x2x16x16x8xf32> to vector<2x16x16x8xf32>
    %c0_65 = arith.constant 0 : index
    %c0_66 = arith.constant 0 : index
    %c0_67 = arith.constant 0 : index
    %56 = vector.load %arg4[%c0_65, %c0_66, %c0_67] : memref<1x512x128xf32, #tpu.memory_space<vmem>>, vector<1x512x128xf32>
    %57 = vector.shape_cast %56 : vector<1x512x128xf32> to vector<512x128xf32>
    %58 = vector.shape_cast %55 : vector<2x16x16x8xf32> to vector<512x8xf32>
    %c4 = arith.constant 4 : index
    %c0_68 = arith.constant 0 : index
    %c0_69 = arith.constant 0 : index
    %59 = vector.load %arg2[%c4, %c0_68, %c0_69] : memref<9x8x128xf32, #tpu.memory_space<vmem>>, vector<1x8x128xf32>
    %60 = vector.shape_cast %59 : vector<1x8x128xf32> to vector<8x128xf32>
    %cst_70 = arith.constant dense<0.000000e+00> : vector<512x128xf32>
    %61 = tpu.matmul %58, %60, %cst_70 {dimension_numbers = #tpu.dot_dimension_numbers<[1], [0], [0], [1], [0, 0, 1, 1], [], []>} : vector<512x8xf32>, vector<8x128xf32>, vector<512x128xf32> -> vector<512x128xf32>
    %62 = arith.addf %57, %61 : vector<512x128xf32>
    %c0_71 = arith.constant 0 : index
    %c0_72 = arith.constant 0 : index
    %c0_73 = arith.constant 0 : index
    %63 = vector.load %arg4[%c0_71, %c0_72, %c0_73] : memref<1x512x128xf32, #tpu.memory_space<vmem>>, vector<1x512x128xf32>
    %64 = vector.shape_cast %63 : vector<1x512x128xf32> to vector<512x128xf32>
    %65 = vector.shape_cast %62 : vector<512x128xf32> to vector<1x512x128xf32>
    tpu.vector_store %arg4[%c0_71, %c0_72, %c0_73], %65 {strides = array<i32>} : memref<1x512x128xf32, #tpu.memory_space<vmem>>, vector<1x512x128xf32>,
    %c0_74 = arith.constant 0 : index
    %c0_75 = arith.constant 0 : index
    %c1_76 = arith.constant 1 : index
    %c2_77 = arith.constant 2 : index
    %c0_78 = arith.constant 0 : index
    %66 = vector.load %arg1[%c0_74, %c0_75, %c1_76, %c2_77, %c0_78] : memref<1x2x18x18x8xf32, #tpu.memory_space<vmem>>, vector<1x2x16x16x8xf32>
    %67 = vector.shape_cast %66 : vector<1x2x16x16x8xf32> to vector<2x16x16x8xf32>
    %c0_79 = arith.constant 0 : index
    %c0_80 = arith.constant 0 : index
    %c0_81 = arith.constant 0 : index
    %68 = vector.load %arg4[%c0_79, %c0_80, %c0_81] : memref<1x512x128xf32, #tpu.memory_space<vmem>>, vector<1x512x128xf32>
    %69 = vector.shape_cast %68 : vector<1x512x128xf32> to vector<512x128xf32>
    %70 = vector.shape_cast %67 : vector<2x16x16x8xf32> to vector<512x8xf32>
    %c5 = arith.constant 5 : index
    %c0_82 = arith.constant 0 : index
    %c0_83 = arith.constant 0 : index
    %71 = vector.load %arg2[%c5, %c0_82, %c0_83] : memref<9x8x128xf32, #tpu.memory_space<vmem>>, vector<1x8x128xf32>
    %72 = vector.shape_cast %71 : vector<1x8x128xf32> to vector<8x128xf32>
    %cst_84 = arith.constant dense<0.000000e+00> : vector<512x128xf32>
    %73 = tpu.matmul %70, %72, %cst_84 {dimension_numbers = #tpu.dot_dimension_numbers<[1], [0], [0], [1], [0, 0, 1, 1], [], []>} : vector<512x8xf32>, vector<8x128xf32>, vector<512x128xf32> -> vector<512x128xf32>
    %74 = arith.addf %69, %73 : vector<512x128xf32>
    %c0_85 = arith.constant 0 : index
    %c0_86 = arith.constant 0 : index
    %c0_87 = arith.constant 0 : index
    %75 = vector.load %arg4[%c0_85, %c0_86, %c0_87] : memref<1x512x128xf32, #tpu.memory_space<vmem>>, vector<1x512x128xf32>
    %76 = vector.shape_cast %75 : vector<1x512x128xf32> to vector<512x128xf32>
    %77 = vector.shape_cast %74 : vector<512x128xf32> to vector<1x512x128xf32>
    tpu.vector_store %arg4[%c0_85, %c0_86, %c0_87], %77 {strides = array<i32>} : memref<1x512x128xf32, #tpu.memory_space<vmem>>, vector<1x512x128xf32>,
    %c0_88 = arith.constant 0 : index
    %c0_89 = arith.constant 0 : index
    %c2_90 = arith.constant 2 : index
    %c0_91 = arith.constant 0 : index
    %c0_92 = arith.constant 0 : index
    %78 = vector.load %arg1[%c0_88, %c0_89, %c2_90, %c0_91, %c0_92] : memref<1x2x18x18x8xf32, #tpu.memory_space<vmem>>, vector<1x2x16x16x8xf32>
    %79 = vector.shape_cast %78 : vector<1x2x16x16x8xf32> to vector<2x16x16x8xf32>
    %c0_93 = arith.constant 0 : index
    %c0_94 = arith.constant 0 : index
    %c0_95 = arith.constant 0 : index
    %80 = vector.load %arg4[%c0_93, %c0_94, %c0_95] : memref<1x512x128xf32, #tpu.memory_space<vmem>>, vector<1x512x128xf32>
    %81 = vector.shape_cast %80 : vector<1x512x128xf32> to vector<512x128xf32>
    %82 = vector.shape_cast %79 : vector<2x16x16x8xf32> to vector<512x8xf32>
    %c6 = arith.constant 6 : index
    %c0_96 = arith.constant 0 : index
    %c0_97 = arith.constant 0 : index
    %83 = vector.load %arg2[%c6, %c0_96, %c0_97] : memref<9x8x128xf32, #tpu.memory_space<vmem>>, vector<1x8x128xf32>
    %84 = vector.shape_cast %83 : vector<1x8x128xf32> to vector<8x128xf32>
    %cst_98 = arith.constant dense<0.000000e+00> : vector<512x128xf32>
    %85 = tpu.matmul %82, %84, %cst_98 {dimension_numbers = #tpu.dot_dimension_numbers<[1], [0], [0], [1], [0, 0, 1, 1], [], []>} : vector<512x8xf32>, vector<8x128xf32>, vector<512x128xf32> -> vector<512x128xf32>
    %86 = arith.addf %81, %85 : vector<512x128xf32>
    %c0_99 = arith.constant 0 : index
    %c0_100 = arith.constant 0 : index
    %c0_101 = arith.constant 0 : index
    %87 = vector.load %arg4[%c0_99, %c0_100, %c0_101] : memref<1x512x128xf32, #tpu.memory_space<vmem>>, vector<1x512x128xf32>
    %88 = vector.shape_cast %87 : vector<1x512x128xf32> to vector<512x128xf32>
    %89 = vector.shape_cast %86 : vector<512x128xf32> to vector<1x512x128xf32>
    tpu.vector_store %arg4[%c0_99, %c0_100, %c0_101], %89 {strides = array<i32>} : memref<1x512x128xf32, #tpu.memory_space<vmem>>, vector<1x512x128xf32>,
    %c0_102 = arith.constant 0 : index
    %c0_103 = arith.constant 0 : index
    %c2_104 = arith.constant 2 : index
    %c1_105 = arith.constant 1 : index
    %c0_106 = arith.constant 0 : index
    %90 = vector.load %arg1[%c0_102, %c0_103, %c2_104, %c1_105, %c0_106] : memref<1x2x18x18x8xf32, #tpu.memory_space<vmem>>, vector<1x2x16x16x8xf32>
    %91 = vector.shape_cast %90 : vector<1x2x16x16x8xf32> to vector<2x16x16x8xf32>
    %c0_107 = arith.constant 0 : index
    %c0_108 = arith.constant 0 : index
    %c0_109 = arith.constant 0 : index
    %92 = vector.load %arg4[%c0_107, %c0_108, %c0_109] : memref<1x512x128xf32, #tpu.memory_space<vmem>>, vector<1x512x128xf32>
    %93 = vector.shape_cast %92 : vector<1x512x128xf32> to vector<512x128xf32>
    %94 = vector.shape_cast %91 : vector<2x16x16x8xf32> to vector<512x8xf32>
    %c7 = arith.constant 7 : index
    %c0_110 = arith.constant 0 : index
    %c0_111 = arith.constant 0 : index
    %95 = vector.load %arg2[%c7, %c0_110, %c0_111] : memref<9x8x128xf32, #tpu.memory_space<vmem>>, vector<1x8x128xf32>
    %96 = vector.shape_cast %95 : vector<1x8x128xf32> to vector<8x128xf32>
    %cst_112 = arith.constant dense<0.000000e+00> : vector<512x128xf32>
    %97 = tpu.matmul %94, %96, %cst_112 {dimension_numbers = #tpu.dot_dimension_numbers<[1], [0], [0], [1], [0, 0, 1, 1], [], []>} : vector<512x8xf32>, vector<8x128xf32>, vector<512x128xf32> -> vector<512x128xf32>
    %98 = arith.addf %93, %97 : vector<512x128xf32>
    %c0_113 = arith.constant 0 : index
    %c0_114 = arith.constant 0 : index
    %c0_115 = arith.constant 0 : index
    %99 = vector.load %arg4[%c0_113, %c0_114, %c0_115] : memref<1x512x128xf32, #tpu.memory_space<vmem>>, vector<1x512x128xf32>
    %100 = vector.shape_cast %99 : vector<1x512x128xf32> to vector<512x128xf32>
    %101 = vector.shape_cast %98 : vector<512x128xf32> to vector<1x512x128xf32>
    tpu.vector_store %arg4[%c0_113, %c0_114, %c0_115], %101 {strides = array<i32>} : memref<1x512x128xf32, #tpu.memory_space<vmem>>, vector<1x512x128xf32>,
    %c0_116 = arith.constant 0 : index
    %c0_117 = arith.constant 0 : index
    %c2_118 = arith.constant 2 : index
    %c2_119 = arith.constant 2 : index
    %c0_120 = arith.constant 0 : index
    %102 = vector.load %arg1[%c0_116, %c0_117, %c2_118, %c2_119, %c0_120] : memref<1x2x18x18x8xf32, #tpu.memory_space<vmem>>, vector<1x2x16x16x8xf32>
    %103 = vector.shape_cast %102 : vector<1x2x16x16x8xf32> to vector<2x16x16x8xf32>
    %c0_121 = arith.constant 0 : index
    %c0_122 = arith.constant 0 : index
    %c0_123 = arith.constant 0 : index
    %104 = vector.load %arg4[%c0_121, %c0_122, %c0_123] : memref<1x512x128xf32, #tpu.memory_space<vmem>>, vector<1x512x128xf32>
    %105 = vector.shape_cast %104 : vector<1x512x128xf32> to vector<512x128xf32>
    %106 = vector.shape_cast %103 : vector<2x16x16x8xf32> to vector<512x8xf32>
    %c8 = arith.constant 8 : index
    %c0_124 = arith.constant 0 : index
    %c0_125 = arith.constant 0 : index
    %107 = vector.load %arg2[%c8, %c0_124, %c0_125] : memref<9x8x128xf32, #tpu.memory_space<vmem>>, vector<1x8x128xf32>
    %108 = vector.shape_cast %107 : vector<1x8x128xf32> to vector<8x128xf32>
    %cst_126 = arith.constant dense<0.000000e+00> : vector<512x128xf32>
    %109 = tpu.matmul %106, %108, %cst_126 {dimension_numbers = #tpu.dot_dimension_numbers<[1], [0], [0], [1], [0, 0, 1, 1], [], []>} : vector<512x8xf32>, vector<8x128xf32>, vector<512x128xf32> -> vector<512x128xf32>
    %110 = arith.addf %105, %109 : vector<512x128xf32>
    %c0_127 = arith.constant 0 : index
    %c0_128 = arith.constant 0 : index
    %c0_129 = arith.constant 0 : index
    %111 = vector.load %arg4[%c0_127, %c0_128, %c0_129] : memref<1x512x128xf32, #tpu.memory_space<vmem>>, vector<1x512x128xf32>
    %112 = vector.shape_cast %111 : vector<1x512x128xf32> to vector<512x128xf32>
    %113 = vector.shape_cast %110 : vector<512x128xf32> to vector<1x512x128xf32>
    tpu.vector_store %arg4[%c0_127, %c0_128, %c0_129], %113 {strides = array<i32>} : memref<1x512x128xf32, #tpu.memory_space<vmem>>, vector<1x512x128xf32>,
    return
  }
  func.func @transform_0(%arg0: i32) -> (i32, i32, i32, i32, i32) {
    %c0_i32 = arith.constant 0 : i32
    %c0_i32_0 = arith.constant 0 : i32
    %c0_i32_1 = arith.constant 0 : i32
    %c0_i32_2 = arith.constant 0 : i32
    %c0_i32_3 = arith.constant 0 : i32
    return %arg0, %c0_i32, %c0_i32_0, %c0_i32_1, %c0_i32_2 : i32, i32, i32, i32, i32
  }
  func.func @transform_1(%arg0: i32) -> (i32, i32, i32) {
    %c0_i32 = arith.constant 0 : i32
    %c0_i32_0 = arith.constant 0 : i32
    %c0_i32_1 = arith.constant 0 : i32
    %c0_i32_2 = arith.constant 0 : i32
    return %c0_i32, %c0_i32_0, %c0_i32_1 : i32, i32, i32
  }
  func.func @transform_2(%arg0: i32) -> (i32, i32) {
    %c0_i32 = arith.constant 0 : i32
    %c0_i32_0 = arith.constant 0 : i32
    %c0_i32_1 = arith.constant 0 : i32
    return %c0_i32, %c0_i32_0 : i32, i32
  }
  func.func @transform_3(%arg0: i32) -> (i32, i32, i32) {
    %c0_i32 = arith.constant 0 : i32
    %c0_i32_0 = arith.constant 0 : i32
    %c0_i32_1 = arith.constant 0 : i32
    return %arg0, %c0_i32, %c0_i32_0 : i32, i32, i32
  }
}

module attributes {stable_mosaic.version = 11 : i64} {
  func.func @_convlstm_recurrent_kernel(%arg0: i32, %arg1: i32, %arg2: memref<1x256x128xf32, #tpu.memory_space<vmem>>, %arg3: memref<9x32x128xf32, #tpu.memory_space<vmem>>, %arg4: memref<1x1x16x16x32xf32, #tpu.memory_space<vmem>>, %arg5: memref<1x16x16x32xf32, #tpu.memory_space<vmem>>, %arg6: memref<18x18x32xf32, #tpu.memory_space<vmem>>, %arg7: memref<256x32xf32, #tpu.memory_space<vmem>>, %arg8: memref<256x128xf32, #tpu.memory_space<vmem>>) attributes {dimension_semantics = [#tpu.dimension_semantics<parallel>, #tpu.dimension_semantics<arbitrary>], iteration_bounds = array<i64: 2, 8>, scalar_prefetch = 0 : i64, scratch_operands = 3 : i64, tpu.core_type = #tpu.core_type<tc>, window_params = [{transform_indices = @transform_0, window_bounds = array<i64: 1, 256, 128>}, {pipeline_mode = #tpu.pipeline_mode<synchronous>, transform_indices = @transform_1, window_bounds = array<i64: 9, 32, 128>}, {transform_indices = @transform_2, window_bounds = array<i64: 1, 1, 16, 16, 32>}, {transform_indices = @transform_3, window_bounds = array<i64: 1, 16, 16, 32>}]} {
    %c0_i32 = arith.constant 0 : i32
    %0 = arith.cmpi eq, %arg1, %c0_i32 : i32
    %1 = arith.extui %0 : i1 to i32
    %c0_i32_0 = arith.constant 0 : i32
    %2 = arith.cmpi ne, %1, %c0_i32_0 : i32
    scf.if %2 {
      %cst_114 = arith.constant 0.000000e+00 : f32
      %110 = vector.broadcast %cst_114 : f32 to vector<18x18x32xf32>
      %c0_115 = arith.constant 0 : index
      %c0_116 = arith.constant 0 : index
      %c0_117 = arith.constant 0 : index
      %111 = vector.load %arg6[%c0_115, %c0_116, %c0_117] : memref<18x18x32xf32, #tpu.memory_space<vmem>>, vector<18x18x32xf32>
      tpu.vector_store %arg6[%c0_115, %c0_116, %c0_117], %110 {strides = array<i32>} : memref<18x18x32xf32, #tpu.memory_space<vmem>>, vector<18x18x32xf32>,
      %cst_118 = arith.constant 0.000000e+00 : f32
      %112 = vector.broadcast %cst_118 : f32 to vector<256x32xf32>
      %c0_119 = arith.constant 0 : index
      %c0_120 = arith.constant 0 : index
      %113 = vector.load %arg7[%c0_119, %c0_120] : memref<256x32xf32, #tpu.memory_space<vmem>>, vector<256x32xf32>
      tpu.vector_store %arg7[%c0_119, %c0_120], %112 {strides = array<i32>} : memref<256x32xf32, #tpu.memory_space<vmem>>, vector<256x32xf32>,
    } else {
    }
    %c0 = arith.constant 0 : index
    %c0_1 = arith.constant 0 : index
    %c0_2 = arith.constant 0 : index
    %3 = vector.load %arg2[%c0, %c0_1, %c0_2] : memref<1x256x128xf32, #tpu.memory_space<vmem>>, vector<1x256x128xf32>
    %4 = vector.shape_cast %3 : vector<1x256x128xf32> to vector<256x128xf32>
    %c0_3 = arith.constant 0 : index
    %c0_4 = arith.constant 0 : index
    %5 = vector.load %arg8[%c0_3, %c0_4] : memref<256x128xf32, #tpu.memory_space<vmem>>, vector<256x128xf32>
    tpu.vector_store %arg8[%c0_3, %c0_4], %4 {strides = array<i32>} : memref<256x128xf32, #tpu.memory_space<vmem>>, vector<256x128xf32>,
    %c0_5 = arith.constant 0 : index
    %c0_6 = arith.constant 0 : index
    %c0_7 = arith.constant 0 : index
    %6 = vector.load %arg6[%c0_5, %c0_6, %c0_7] : memref<18x18x32xf32, #tpu.memory_space<vmem>>, vector<16x16x32xf32>
    %c0_8 = arith.constant 0 : index
    %c0_9 = arith.constant 0 : index
    %7 = vector.load %arg8[%c0_8, %c0_9] : memref<256x128xf32, #tpu.memory_space<vmem>>, vector<256x128xf32>
    %8 = vector.shape_cast %6 : vector<16x16x32xf32> to vector<256x32xf32>
    %c0_10 = arith.constant 0 : index
    %c0_11 = arith.constant 0 : index
    %c0_12 = arith.constant 0 : index
    %9 = vector.load %arg3[%c0_10, %c0_11, %c0_12] : memref<9x32x128xf32, #tpu.memory_space<vmem>>, vector<1x32x128xf32>
    %10 = vector.shape_cast %9 : vector<1x32x128xf32> to vector<32x128xf32>
    %cst = arith.constant dense<0.000000e+00> : vector<256x128xf32>
    %11 = tpu.matmul %8, %10, %cst {dimension_numbers = #tpu.dot_dimension_numbers<[1], [0], [0], [1], [0, 0, 1, 1], [], []>} : vector<256x32xf32>, vector<32x128xf32>, vector<256x128xf32> -> vector<256x128xf32>
    %12 = arith.addf %7, %11 : vector<256x128xf32>
    %c0_13 = arith.constant 0 : index
    %c0_14 = arith.constant 0 : index
    %13 = vector.load %arg8[%c0_13, %c0_14] : memref<256x128xf32, #tpu.memory_space<vmem>>, vector<256x128xf32>
    tpu.vector_store %arg8[%c0_13, %c0_14], %12 {strides = array<i32>} : memref<256x128xf32, #tpu.memory_space<vmem>>, vector<256x128xf32>,
    %c0_15 = arith.constant 0 : index
    %c1 = arith.constant 1 : index
    %c0_16 = arith.constant 0 : index
    %14 = vector.load %arg6[%c0_15, %c1, %c0_16] : memref<18x18x32xf32, #tpu.memory_space<vmem>>, vector<16x16x32xf32>
    %c0_17 = arith.constant 0 : index
    %c0_18 = arith.constant 0 : index
    %15 = vector.load %arg8[%c0_17, %c0_18] : memref<256x128xf32, #tpu.memory_space<vmem>>, vector<256x128xf32>
    %16 = vector.shape_cast %14 : vector<16x16x32xf32> to vector<256x32xf32>
    %c1_19 = arith.constant 1 : index
    %c0_20 = arith.constant 0 : index
    %c0_21 = arith.constant 0 : index
    %17 = vector.load %arg3[%c1_19, %c0_20, %c0_21] : memref<9x32x128xf32, #tpu.memory_space<vmem>>, vector<1x32x128xf32>
    %18 = vector.shape_cast %17 : vector<1x32x128xf32> to vector<32x128xf32>
    %cst_22 = arith.constant dense<0.000000e+00> : vector<256x128xf32>
    %19 = tpu.matmul %16, %18, %cst_22 {dimension_numbers = #tpu.dot_dimension_numbers<[1], [0], [0], [1], [0, 0, 1, 1], [], []>} : vector<256x32xf32>, vector<32x128xf32>, vector<256x128xf32> -> vector<256x128xf32>
    %20 = arith.addf %15, %19 : vector<256x128xf32>
    %c0_23 = arith.constant 0 : index
    %c0_24 = arith.constant 0 : index
    %21 = vector.load %arg8[%c0_23, %c0_24] : memref<256x128xf32, #tpu.memory_space<vmem>>, vector<256x128xf32>
    tpu.vector_store %arg8[%c0_23, %c0_24], %20 {strides = array<i32>} : memref<256x128xf32, #tpu.memory_space<vmem>>, vector<256x128xf32>,
    %c0_25 = arith.constant 0 : index
    %c2 = arith.constant 2 : index
    %c0_26 = arith.constant 0 : index
    %22 = vector.load %arg6[%c0_25, %c2, %c0_26] : memref<18x18x32xf32, #tpu.memory_space<vmem>>, vector<16x16x32xf32>
    %c0_27 = arith.constant 0 : index
    %c0_28 = arith.constant 0 : index
    %23 = vector.load %arg8[%c0_27, %c0_28] : memref<256x128xf32, #tpu.memory_space<vmem>>, vector<256x128xf32>
    %24 = vector.shape_cast %22 : vector<16x16x32xf32> to vector<256x32xf32>
    %c2_29 = arith.constant 2 : index
    %c0_30 = arith.constant 0 : index
    %c0_31 = arith.constant 0 : index
    %25 = vector.load %arg3[%c2_29, %c0_30, %c0_31] : memref<9x32x128xf32, #tpu.memory_space<vmem>>, vector<1x32x128xf32>
    %26 = vector.shape_cast %25 : vector<1x32x128xf32> to vector<32x128xf32>
    %cst_32 = arith.constant dense<0.000000e+00> : vector<256x128xf32>
    %27 = tpu.matmul %24, %26, %cst_32 {dimension_numbers = #tpu.dot_dimension_numbers<[1], [0], [0], [1], [0, 0, 1, 1], [], []>} : vector<256x32xf32>, vector<32x128xf32>, vector<256x128xf32> -> vector<256x128xf32>
    %28 = arith.addf %23, %27 : vector<256x128xf32>
    %c0_33 = arith.constant 0 : index
    %c0_34 = arith.constant 0 : index
    %29 = vector.load %arg8[%c0_33, %c0_34] : memref<256x128xf32, #tpu.memory_space<vmem>>, vector<256x128xf32>
    tpu.vector_store %arg8[%c0_33, %c0_34], %28 {strides = array<i32>} : memref<256x128xf32, #tpu.memory_space<vmem>>, vector<256x128xf32>,
    %c1_35 = arith.constant 1 : index
    %c0_36 = arith.constant 0 : index
    %c0_37 = arith.constant 0 : index
    %30 = vector.load %arg6[%c1_35, %c0_36, %c0_37] : memref<18x18x32xf32, #tpu.memory_space<vmem>>, vector<16x16x32xf32>
    %c0_38 = arith.constant 0 : index
    %c0_39 = arith.constant 0 : index
    %31 = vector.load %arg8[%c0_38, %c0_39] : memref<256x128xf32, #tpu.memory_space<vmem>>, vector<256x128xf32>
    %32 = vector.shape_cast %30 : vector<16x16x32xf32> to vector<256x32xf32>
    %c3 = arith.constant 3 : index
    %c0_40 = arith.constant 0 : index
    %c0_41 = arith.constant 0 : index
    %33 = vector.load %arg3[%c3, %c0_40, %c0_41] : memref<9x32x128xf32, #tpu.memory_space<vmem>>, vector<1x32x128xf32>
    %34 = vector.shape_cast %33 : vector<1x32x128xf32> to vector<32x128xf32>
    %cst_42 = arith.constant dense<0.000000e+00> : vector<256x128xf32>
    %35 = tpu.matmul %32, %34, %cst_42 {dimension_numbers = #tpu.dot_dimension_numbers<[1], [0], [0], [1], [0, 0, 1, 1], [], []>} : vector<256x32xf32>, vector<32x128xf32>, vector<256x128xf32> -> vector<256x128xf32>
    %36 = arith.addf %31, %35 : vector<256x128xf32>
    %c0_43 = arith.constant 0 : index
    %c0_44 = arith.constant 0 : index
    %37 = vector.load %arg8[%c0_43, %c0_44] : memref<256x128xf32, #tpu.memory_space<vmem>>, vector<256x128xf32>
    tpu.vector_store %arg8[%c0_43, %c0_44], %36 {strides = array<i32>} : memref<256x128xf32, #tpu.memory_space<vmem>>, vector<256x128xf32>,
    %c1_45 = arith.constant 1 : index
    %c1_46 = arith.constant 1 : index
    %c0_47 = arith.constant 0 : index
    %38 = vector.load %arg6[%c1_45, %c1_46, %c0_47] : memref<18x18x32xf32, #tpu.memory_space<vmem>>, vector<16x16x32xf32>
    %c0_48 = arith.constant 0 : index
    %c0_49 = arith.constant 0 : index
    %39 = vector.load %arg8[%c0_48, %c0_49] : memref<256x128xf32, #tpu.memory_space<vmem>>, vector<256x128xf32>
    %40 = vector.shape_cast %38 : vector<16x16x32xf32> to vector<256x32xf32>
    %c4 = arith.constant 4 : index
    %c0_50 = arith.constant 0 : index
    %c0_51 = arith.constant 0 : index
    %41 = vector.load %arg3[%c4, %c0_50, %c0_51] : memref<9x32x128xf32, #tpu.memory_space<vmem>>, vector<1x32x128xf32>
    %42 = vector.shape_cast %41 : vector<1x32x128xf32> to vector<32x128xf32>
    %cst_52 = arith.constant dense<0.000000e+00> : vector<256x128xf32>
    %43 = tpu.matmul %40, %42, %cst_52 {dimension_numbers = #tpu.dot_dimension_numbers<[1], [0], [0], [1], [0, 0, 1, 1], [], []>} : vector<256x32xf32>, vector<32x128xf32>, vector<256x128xf32> -> vector<256x128xf32>
    %44 = arith.addf %39, %43 : vector<256x128xf32>
    %c0_53 = arith.constant 0 : index
    %c0_54 = arith.constant 0 : index
    %45 = vector.load %arg8[%c0_53, %c0_54] : memref<256x128xf32, #tpu.memory_space<vmem>>, vector<256x128xf32>
    tpu.vector_store %arg8[%c0_53, %c0_54], %44 {strides = array<i32>} : memref<256x128xf32, #tpu.memory_space<vmem>>, vector<256x128xf32>,
    %c1_55 = arith.constant 1 : index
    %c2_56 = arith.constant 2 : index
    %c0_57 = arith.constant 0 : index
    %46 = vector.load %arg6[%c1_55, %c2_56, %c0_57] : memref<18x18x32xf32, #tpu.memory_space<vmem>>, vector<16x16x32xf32>
    %c0_58 = arith.constant 0 : index
    %c0_59 = arith.constant 0 : index
    %47 = vector.load %arg8[%c0_58, %c0_59] : memref<256x128xf32, #tpu.memory_space<vmem>>, vector<256x128xf32>
    %48 = vector.shape_cast %46 : vector<16x16x32xf32> to vector<256x32xf32>
    %c5 = arith.constant 5 : index
    %c0_60 = arith.constant 0 : index
    %c0_61 = arith.constant 0 : index
    %49 = vector.load %arg3[%c5, %c0_60, %c0_61] : memref<9x32x128xf32, #tpu.memory_space<vmem>>, vector<1x32x128xf32>
    %50 = vector.shape_cast %49 : vector<1x32x128xf32> to vector<32x128xf32>
    %cst_62 = arith.constant dense<0.000000e+00> : vector<256x128xf32>
    %51 = tpu.matmul %48, %50, %cst_62 {dimension_numbers = #tpu.dot_dimension_numbers<[1], [0], [0], [1], [0, 0, 1, 1], [], []>} : vector<256x32xf32>, vector<32x128xf32>, vector<256x128xf32> -> vector<256x128xf32>
    %52 = arith.addf %47, %51 : vector<256x128xf32>
    %c0_63 = arith.constant 0 : index
    %c0_64 = arith.constant 0 : index
    %53 = vector.load %arg8[%c0_63, %c0_64] : memref<256x128xf32, #tpu.memory_space<vmem>>, vector<256x128xf32>
    tpu.vector_store %arg8[%c0_63, %c0_64], %52 {strides = array<i32>} : memref<256x128xf32, #tpu.memory_space<vmem>>, vector<256x128xf32>,
    %c2_65 = arith.constant 2 : index
    %c0_66 = arith.constant 0 : index
    %c0_67 = arith.constant 0 : index
    %54 = vector.load %arg6[%c2_65, %c0_66, %c0_67] : memref<18x18x32xf32, #tpu.memory_space<vmem>>, vector<16x16x32xf32>
    %c0_68 = arith.constant 0 : index
    %c0_69 = arith.constant 0 : index
    %55 = vector.load %arg8[%c0_68, %c0_69] : memref<256x128xf32, #tpu.memory_space<vmem>>, vector<256x128xf32>
    %56 = vector.shape_cast %54 : vector<16x16x32xf32> to vector<256x32xf32>
    %c6 = arith.constant 6 : index
    %c0_70 = arith.constant 0 : index
    %c0_71 = arith.constant 0 : index
    %57 = vector.load %arg3[%c6, %c0_70, %c0_71] : memref<9x32x128xf32, #tpu.memory_space<vmem>>, vector<1x32x128xf32>
    %58 = vector.shape_cast %57 : vector<1x32x128xf32> to vector<32x128xf32>
    %cst_72 = arith.constant dense<0.000000e+00> : vector<256x128xf32>
    %59 = tpu.matmul %56, %58, %cst_72 {dimension_numbers = #tpu.dot_dimension_numbers<[1], [0], [0], [1], [0, 0, 1, 1], [], []>} : vector<256x32xf32>, vector<32x128xf32>, vector<256x128xf32> -> vector<256x128xf32>
    %60 = arith.addf %55, %59 : vector<256x128xf32>
    %c0_73 = arith.constant 0 : index
    %c0_74 = arith.constant 0 : index
    %61 = vector.load %arg8[%c0_73, %c0_74] : memref<256x128xf32, #tpu.memory_space<vmem>>, vector<256x128xf32>
    tpu.vector_store %arg8[%c0_73, %c0_74], %60 {strides = array<i32>} : memref<256x128xf32, #tpu.memory_space<vmem>>, vector<256x128xf32>,
    %c2_75 = arith.constant 2 : index
    %c1_76 = arith.constant 1 : index
    %c0_77 = arith.constant 0 : index
    %62 = vector.load %arg6[%c2_75, %c1_76, %c0_77] : memref<18x18x32xf32, #tpu.memory_space<vmem>>, vector<16x16x32xf32>
    %c0_78 = arith.constant 0 : index
    %c0_79 = arith.constant 0 : index
    %63 = vector.load %arg8[%c0_78, %c0_79] : memref<256x128xf32, #tpu.memory_space<vmem>>, vector<256x128xf32>
    %64 = vector.shape_cast %62 : vector<16x16x32xf32> to vector<256x32xf32>
    %c7 = arith.constant 7 : index
    %c0_80 = arith.constant 0 : index
    %c0_81 = arith.constant 0 : index
    %65 = vector.load %arg3[%c7, %c0_80, %c0_81] : memref<9x32x128xf32, #tpu.memory_space<vmem>>, vector<1x32x128xf32>
    %66 = vector.shape_cast %65 : vector<1x32x128xf32> to vector<32x128xf32>
    %cst_82 = arith.constant dense<0.000000e+00> : vector<256x128xf32>
    %67 = tpu.matmul %64, %66, %cst_82 {dimension_numbers = #tpu.dot_dimension_numbers<[1], [0], [0], [1], [0, 0, 1, 1], [], []>} : vector<256x32xf32>, vector<32x128xf32>, vector<256x128xf32> -> vector<256x128xf32>
    %68 = arith.addf %63, %67 : vector<256x128xf32>
    %c0_83 = arith.constant 0 : index
    %c0_84 = arith.constant 0 : index
    %69 = vector.load %arg8[%c0_83, %c0_84] : memref<256x128xf32, #tpu.memory_space<vmem>>, vector<256x128xf32>
    tpu.vector_store %arg8[%c0_83, %c0_84], %68 {strides = array<i32>} : memref<256x128xf32, #tpu.memory_space<vmem>>, vector<256x128xf32>,
    %c2_85 = arith.constant 2 : index
    %c2_86 = arith.constant 2 : index
    %c0_87 = arith.constant 0 : index
    %70 = vector.load %arg6[%c2_85, %c2_86, %c0_87] : memref<18x18x32xf32, #tpu.memory_space<vmem>>, vector<16x16x32xf32>
    %c0_88 = arith.constant 0 : index
    %c0_89 = arith.constant 0 : index
    %71 = vector.load %arg8[%c0_88, %c0_89] : memref<256x128xf32, #tpu.memory_space<vmem>>, vector<256x128xf32>
    %72 = vector.shape_cast %70 : vector<16x16x32xf32> to vector<256x32xf32>
    %c8 = arith.constant 8 : index
    %c0_90 = arith.constant 0 : index
    %c0_91 = arith.constant 0 : index
    %73 = vector.load %arg3[%c8, %c0_90, %c0_91] : memref<9x32x128xf32, #tpu.memory_space<vmem>>, vector<1x32x128xf32>
    %74 = vector.shape_cast %73 : vector<1x32x128xf32> to vector<32x128xf32>
    %cst_92 = arith.constant dense<0.000000e+00> : vector<256x128xf32>
    %75 = tpu.matmul %72, %74, %cst_92 {dimension_numbers = #tpu.dot_dimension_numbers<[1], [0], [0], [1], [0, 0, 1, 1], [], []>} : vector<256x32xf32>, vector<32x128xf32>, vector<256x128xf32> -> vector<256x128xf32>
    %76 = arith.addf %71, %75 : vector<256x128xf32>
    %c0_93 = arith.constant 0 : index
    %c0_94 = arith.constant 0 : index
    %77 = vector.load %arg8[%c0_93, %c0_94] : memref<256x128xf32, #tpu.memory_space<vmem>>, vector<256x128xf32>
    tpu.vector_store %arg8[%c0_93, %c0_94], %76 {strides = array<i32>} : memref<256x128xf32, #tpu.memory_space<vmem>>, vector<256x128xf32>,
    %c0_95 = arith.constant 0 : index
    %c0_96 = arith.constant 0 : index
    %78 = vector.load %arg8[%c0_95, %c0_96] : memref<256x128xf32, #tpu.memory_space<vmem>>, vector<256x128xf32>
    %79 = tpu.iota {dimensions = array<i32: 1>} : vector<256x128xi32>
    %c96_i32 = arith.constant 96 : i32
    %80 = vector.broadcast %c96_i32 : i32 to vector<256x128xi32>
    %81 = arith.cmpi slt, %79, %80 : vector<256x128xi32>
    %82 = arith.negf %78 : vector<256x128xf32>
    %83 = math.exp %82 : vector<256x128xf32>
    %cst_97 = arith.constant 1.000000e+00 : f32
    %84 = vector.broadcast %cst_97 : f32 to vector<256x128xf32>
    %85 = arith.addf %84, %83 : vector<256x128xf32>
    %86 = arith.divf %84, %85 : vector<256x128xf32>
    %87 = math.tanh %78 : vector<256x128xf32>
    %88 = arith.select %81, %86, %87 : vector<256x128xi1>, vector<256x128xf32>
    %89 = vector.extract_strided_slice %88 {offsets = [0, 0], sizes = [256, 32], strides = [1, 1]} : vector<256x128xf32> to vector<256x32xf32>
    %90 = vector.extract_strided_slice %88 {offsets = [0, 32], sizes = [256, 32], strides = [1, 1]} : vector<256x128xf32> to vector<256x32xf32>
    %91 = vector.extract_strided_slice %88 {offsets = [0, 64], sizes = [256, 32], strides = [1, 1]} : vector<256x128xf32> to vector<256x32xf32>
    %92 = vector.extract_strided_slice %88 {offsets = [0, 96], sizes = [256, 32], strides = [1, 1]} : vector<256x128xf32> to vector<256x32xf32>
    %c0_98 = arith.constant 0 : index
    %c0_99 = arith.constant 0 : index
    %93 = vector.load %arg7[%c0_98, %c0_99] : memref<256x32xf32, #tpu.memory_space<vmem>>, vector<256x32xf32>
    %94 = arith.mulf %90, %93 : vector<256x32xf32>
    %95 = arith.mulf %89, %92 : vector<256x32xf32>
    %96 = arith.addf %94, %95 : vector<256x32xf32>
    %97 = math.tanh %96 : vector<256x32xf32>
    %98 = arith.mulf %91, %97 : vector<256x32xf32>
    %c0_100 = arith.constant 0 : index
    %c0_101 = arith.constant 0 : index
    %99 = vector.load %arg7[%c0_100, %c0_101] : memref<256x32xf32, #tpu.memory_space<vmem>>, vector<256x32xf32>
    tpu.vector_store %arg7[%c0_100, %c0_101], %96 {strides = array<i32>} : memref<256x32xf32, #tpu.memory_space<vmem>>, vector<256x32xf32>,
    %100 = vector.shape_cast %98 : vector<256x32xf32> to vector<16x16x32xf32>
    %c1_102 = arith.constant 1 : index
    %c1_103 = arith.constant 1 : index
    %c0_104 = arith.constant 0 : index
    %101 = vector.load %arg6[%c1_102, %c1_103, %c0_104] : memref<18x18x32xf32, #tpu.memory_space<vmem>>, vector<16x16x32xf32>
    tpu.vector_store %arg6[%c1_102, %c1_103, %c0_104], %100 {strides = array<i32>} : memref<18x18x32xf32, #tpu.memory_space<vmem>>, vector<16x16x32xf32>,
    %102 = vector.shape_cast %98 : vector<256x32xf32> to vector<16x16x32xf32>
    %c0_105 = arith.constant 0 : index
    %c0_106 = arith.constant 0 : index
    %c0_107 = arith.constant 0 : index
    %c0_108 = arith.constant 0 : index
    %c0_109 = arith.constant 0 : index
    %103 = vector.load %arg4[%c0_105, %c0_106, %c0_107, %c0_108, %c0_109] : memref<1x1x16x16x32xf32, #tpu.memory_space<vmem>>, vector<1x1x16x16x32xf32>
    %104 = vector.shape_cast %103 : vector<1x1x16x16x32xf32> to vector<16x16x32xf32>
    %105 = vector.shape_cast %102 : vector<16x16x32xf32> to vector<1x1x16x16x32xf32>
    tpu.vector_store %arg4[%c0_105, %c0_106, %c0_107, %c0_108, %c0_109], %105 {strides = array<i32>} : memref<1x1x16x16x32xf32, #tpu.memory_space<vmem>>, vector<1x1x16x16x32xf32>,
    %106 = vector.shape_cast %96 : vector<256x32xf32> to vector<16x16x32xf32>
    %c0_110 = arith.constant 0 : index
    %c0_111 = arith.constant 0 : index
    %c0_112 = arith.constant 0 : index
    %c0_113 = arith.constant 0 : index
    %107 = vector.load %arg5[%c0_110, %c0_111, %c0_112, %c0_113] : memref<1x16x16x32xf32, #tpu.memory_space<vmem>>, vector<1x16x16x32xf32>
    %108 = vector.shape_cast %107 : vector<1x16x16x32xf32> to vector<16x16x32xf32>
    %109 = vector.shape_cast %106 : vector<16x16x32xf32> to vector<1x16x16x32xf32>
    tpu.vector_store %arg5[%c0_110, %c0_111, %c0_112, %c0_113], %109 {strides = array<i32>} : memref<1x16x16x32xf32, #tpu.memory_space<vmem>>, vector<1x16x16x32xf32>,
    return
  }
  func.func @transform_0(%arg0: i32, %arg1: i32) -> (i32, i32, i32) {
    %c0_i32 = arith.constant 0 : i32
    %c0_i32_0 = arith.constant 0 : i32
    return %arg1, %arg0, %c0_i32 : i32, i32, i32
  }
  func.func @transform_1(%arg0: i32, %arg1: i32) -> (i32, i32, i32) {
    %c0_i32 = arith.constant 0 : i32
    %c0_i32_0 = arith.constant 0 : i32
    %c0_i32_1 = arith.constant 0 : i32
    %c0_i32_2 = arith.constant 0 : i32
    return %c0_i32, %c0_i32_0, %c0_i32_1 : i32, i32, i32
  }
  func.func @transform_2(%arg0: i32, %arg1: i32) -> (i32, i32, i32, i32, i32) {
    %c0_i32 = arith.constant 0 : i32
    %c0_i32_0 = arith.constant 0 : i32
    %c0_i32_1 = arith.constant 0 : i32
    %c0_i32_2 = arith.constant 0 : i32
    return %arg1, %arg0, %c0_i32, %c0_i32_0, %c0_i32_1 : i32, i32, i32, i32, i32
  }
  func.func @transform_3(%arg0: i32, %arg1: i32) -> (i32, i32, i32, i32) {
    %c0_i32 = arith.constant 0 : i32
    %c0_i32_0 = arith.constant 0 : i32
    %c0_i32_1 = arith.constant 0 : i32
    %c0_i32_2 = arith.constant 0 : i32
    return %arg0, %c0_i32, %c0_i32_0, %c0_i32_1 : i32, i32, i32, i32
  }
}

module attributes {stable_mosaic.version = 11 : i64} {
  func.func @_xpath_conv_kernel(%arg0: i32, %arg1: memref<1x2x18x18x32xf32, #tpu.memory_space<vmem>>, %arg2: memref<9x32x128xf32, #tpu.memory_space<vmem>>, %arg3: memref<1x128xf32, #tpu.memory_space<vmem>>, %arg4: memref<1x512x128xf32, #tpu.memory_space<vmem>>) attributes {dimension_semantics = [#tpu.dimension_semantics<parallel>], iteration_bounds = array<i64: 8>, scalar_prefetch = 0 : i64, scratch_operands = 0 : i64, tpu.core_type = #tpu.core_type<tc>, window_params = [{transform_indices = @transform_0, window_bounds = array<i64: 1, 2, 18, 18, 32>}, {pipeline_mode = #tpu.pipeline_mode<synchronous>, transform_indices = @transform_1, window_bounds = array<i64: 9, 32, 128>}, {pipeline_mode = #tpu.pipeline_mode<synchronous>, transform_indices = @transform_2, window_bounds = array<i64: 1, 128>}, {transform_indices = @transform_3, window_bounds = array<i64: 1, 512, 128>}]} {
    %c0 = arith.constant 0 : index
    %c0_0 = arith.constant 0 : index
    %0 = vector.load %arg3[%c0, %c0_0] : memref<1x128xf32, #tpu.memory_space<vmem>>, vector<1x128xf32>
    %1 = vector.shape_cast %0 : vector<1x128xf32> to vector<1x128xf32>
    %2 = vector.broadcast %1 : vector<1x128xf32> to vector<512x128xf32>
    %c0_1 = arith.constant 0 : index
    %c0_2 = arith.constant 0 : index
    %c0_3 = arith.constant 0 : index
    %3 = vector.load %arg4[%c0_1, %c0_2, %c0_3] : memref<1x512x128xf32, #tpu.memory_space<vmem>>, vector<1x512x128xf32>
    %4 = vector.shape_cast %3 : vector<1x512x128xf32> to vector<512x128xf32>
    %5 = vector.shape_cast %2 : vector<512x128xf32> to vector<1x512x128xf32>
    tpu.vector_store %arg4[%c0_1, %c0_2, %c0_3], %5 {strides = array<i32>} : memref<1x512x128xf32, #tpu.memory_space<vmem>>, vector<1x512x128xf32>,
    %c0_4 = arith.constant 0 : index
    %c0_5 = arith.constant 0 : index
    %c0_6 = arith.constant 0 : index
    %c0_7 = arith.constant 0 : index
    %c0_8 = arith.constant 0 : index
    %6 = vector.load %arg1[%c0_4, %c0_5, %c0_6, %c0_7, %c0_8] : memref<1x2x18x18x32xf32, #tpu.memory_space<vmem>>, vector<1x2x16x16x32xf32>
    %7 = vector.shape_cast %6 : vector<1x2x16x16x32xf32> to vector<2x16x16x32xf32>
    %c0_9 = arith.constant 0 : index
    %c0_10 = arith.constant 0 : index
    %c0_11 = arith.constant 0 : index
    %8 = vector.load %arg4[%c0_9, %c0_10, %c0_11] : memref<1x512x128xf32, #tpu.memory_space<vmem>>, vector<1x512x128xf32>
    %9 = vector.shape_cast %8 : vector<1x512x128xf32> to vector<512x128xf32>
    %10 = vector.shape_cast %7 : vector<2x16x16x32xf32> to vector<512x32xf32>
    %c0_12 = arith.constant 0 : index
    %c0_13 = arith.constant 0 : index
    %c0_14 = arith.constant 0 : index
    %11 = vector.load %arg2[%c0_12, %c0_13, %c0_14] : memref<9x32x128xf32, #tpu.memory_space<vmem>>, vector<1x32x128xf32>
    %12 = vector.shape_cast %11 : vector<1x32x128xf32> to vector<32x128xf32>
    %cst = arith.constant dense<0.000000e+00> : vector<512x128xf32>
    %13 = tpu.matmul %10, %12, %cst {dimension_numbers = #tpu.dot_dimension_numbers<[1], [0], [0], [1], [0, 0, 1, 1], [], []>} : vector<512x32xf32>, vector<32x128xf32>, vector<512x128xf32> -> vector<512x128xf32>
    %14 = arith.addf %9, %13 : vector<512x128xf32>
    %c0_15 = arith.constant 0 : index
    %c0_16 = arith.constant 0 : index
    %c0_17 = arith.constant 0 : index
    %15 = vector.load %arg4[%c0_15, %c0_16, %c0_17] : memref<1x512x128xf32, #tpu.memory_space<vmem>>, vector<1x512x128xf32>
    %16 = vector.shape_cast %15 : vector<1x512x128xf32> to vector<512x128xf32>
    %17 = vector.shape_cast %14 : vector<512x128xf32> to vector<1x512x128xf32>
    tpu.vector_store %arg4[%c0_15, %c0_16, %c0_17], %17 {strides = array<i32>} : memref<1x512x128xf32, #tpu.memory_space<vmem>>, vector<1x512x128xf32>,
    %c0_18 = arith.constant 0 : index
    %c0_19 = arith.constant 0 : index
    %c0_20 = arith.constant 0 : index
    %c1 = arith.constant 1 : index
    %c0_21 = arith.constant 0 : index
    %18 = vector.load %arg1[%c0_18, %c0_19, %c0_20, %c1, %c0_21] : memref<1x2x18x18x32xf32, #tpu.memory_space<vmem>>, vector<1x2x16x16x32xf32>
    %19 = vector.shape_cast %18 : vector<1x2x16x16x32xf32> to vector<2x16x16x32xf32>
    %c0_22 = arith.constant 0 : index
    %c0_23 = arith.constant 0 : index
    %c0_24 = arith.constant 0 : index
    %20 = vector.load %arg4[%c0_22, %c0_23, %c0_24] : memref<1x512x128xf32, #tpu.memory_space<vmem>>, vector<1x512x128xf32>
    %21 = vector.shape_cast %20 : vector<1x512x128xf32> to vector<512x128xf32>
    %22 = vector.shape_cast %19 : vector<2x16x16x32xf32> to vector<512x32xf32>
    %c1_25 = arith.constant 1 : index
    %c0_26 = arith.constant 0 : index
    %c0_27 = arith.constant 0 : index
    %23 = vector.load %arg2[%c1_25, %c0_26, %c0_27] : memref<9x32x128xf32, #tpu.memory_space<vmem>>, vector<1x32x128xf32>
    %24 = vector.shape_cast %23 : vector<1x32x128xf32> to vector<32x128xf32>
    %cst_28 = arith.constant dense<0.000000e+00> : vector<512x128xf32>
    %25 = tpu.matmul %22, %24, %cst_28 {dimension_numbers = #tpu.dot_dimension_numbers<[1], [0], [0], [1], [0, 0, 1, 1], [], []>} : vector<512x32xf32>, vector<32x128xf32>, vector<512x128xf32> -> vector<512x128xf32>
    %26 = arith.addf %21, %25 : vector<512x128xf32>
    %c0_29 = arith.constant 0 : index
    %c0_30 = arith.constant 0 : index
    %c0_31 = arith.constant 0 : index
    %27 = vector.load %arg4[%c0_29, %c0_30, %c0_31] : memref<1x512x128xf32, #tpu.memory_space<vmem>>, vector<1x512x128xf32>
    %28 = vector.shape_cast %27 : vector<1x512x128xf32> to vector<512x128xf32>
    %29 = vector.shape_cast %26 : vector<512x128xf32> to vector<1x512x128xf32>
    tpu.vector_store %arg4[%c0_29, %c0_30, %c0_31], %29 {strides = array<i32>} : memref<1x512x128xf32, #tpu.memory_space<vmem>>, vector<1x512x128xf32>,
    %c0_32 = arith.constant 0 : index
    %c0_33 = arith.constant 0 : index
    %c0_34 = arith.constant 0 : index
    %c2 = arith.constant 2 : index
    %c0_35 = arith.constant 0 : index
    %30 = vector.load %arg1[%c0_32, %c0_33, %c0_34, %c2, %c0_35] : memref<1x2x18x18x32xf32, #tpu.memory_space<vmem>>, vector<1x2x16x16x32xf32>
    %31 = vector.shape_cast %30 : vector<1x2x16x16x32xf32> to vector<2x16x16x32xf32>
    %c0_36 = arith.constant 0 : index
    %c0_37 = arith.constant 0 : index
    %c0_38 = arith.constant 0 : index
    %32 = vector.load %arg4[%c0_36, %c0_37, %c0_38] : memref<1x512x128xf32, #tpu.memory_space<vmem>>, vector<1x512x128xf32>
    %33 = vector.shape_cast %32 : vector<1x512x128xf32> to vector<512x128xf32>
    %34 = vector.shape_cast %31 : vector<2x16x16x32xf32> to vector<512x32xf32>
    %c2_39 = arith.constant 2 : index
    %c0_40 = arith.constant 0 : index
    %c0_41 = arith.constant 0 : index
    %35 = vector.load %arg2[%c2_39, %c0_40, %c0_41] : memref<9x32x128xf32, #tpu.memory_space<vmem>>, vector<1x32x128xf32>
    %36 = vector.shape_cast %35 : vector<1x32x128xf32> to vector<32x128xf32>
    %cst_42 = arith.constant dense<0.000000e+00> : vector<512x128xf32>
    %37 = tpu.matmul %34, %36, %cst_42 {dimension_numbers = #tpu.dot_dimension_numbers<[1], [0], [0], [1], [0, 0, 1, 1], [], []>} : vector<512x32xf32>, vector<32x128xf32>, vector<512x128xf32> -> vector<512x128xf32>
    %38 = arith.addf %33, %37 : vector<512x128xf32>
    %c0_43 = arith.constant 0 : index
    %c0_44 = arith.constant 0 : index
    %c0_45 = arith.constant 0 : index
    %39 = vector.load %arg4[%c0_43, %c0_44, %c0_45] : memref<1x512x128xf32, #tpu.memory_space<vmem>>, vector<1x512x128xf32>
    %40 = vector.shape_cast %39 : vector<1x512x128xf32> to vector<512x128xf32>
    %41 = vector.shape_cast %38 : vector<512x128xf32> to vector<1x512x128xf32>
    tpu.vector_store %arg4[%c0_43, %c0_44, %c0_45], %41 {strides = array<i32>} : memref<1x512x128xf32, #tpu.memory_space<vmem>>, vector<1x512x128xf32>,
    %c0_46 = arith.constant 0 : index
    %c0_47 = arith.constant 0 : index
    %c1_48 = arith.constant 1 : index
    %c0_49 = arith.constant 0 : index
    %c0_50 = arith.constant 0 : index
    %42 = vector.load %arg1[%c0_46, %c0_47, %c1_48, %c0_49, %c0_50] : memref<1x2x18x18x32xf32, #tpu.memory_space<vmem>>, vector<1x2x16x16x32xf32>
    %43 = vector.shape_cast %42 : vector<1x2x16x16x32xf32> to vector<2x16x16x32xf32>
    %c0_51 = arith.constant 0 : index
    %c0_52 = arith.constant 0 : index
    %c0_53 = arith.constant 0 : index
    %44 = vector.load %arg4[%c0_51, %c0_52, %c0_53] : memref<1x512x128xf32, #tpu.memory_space<vmem>>, vector<1x512x128xf32>
    %45 = vector.shape_cast %44 : vector<1x512x128xf32> to vector<512x128xf32>
    %46 = vector.shape_cast %43 : vector<2x16x16x32xf32> to vector<512x32xf32>
    %c3 = arith.constant 3 : index
    %c0_54 = arith.constant 0 : index
    %c0_55 = arith.constant 0 : index
    %47 = vector.load %arg2[%c3, %c0_54, %c0_55] : memref<9x32x128xf32, #tpu.memory_space<vmem>>, vector<1x32x128xf32>
    %48 = vector.shape_cast %47 : vector<1x32x128xf32> to vector<32x128xf32>
    %cst_56 = arith.constant dense<0.000000e+00> : vector<512x128xf32>
    %49 = tpu.matmul %46, %48, %cst_56 {dimension_numbers = #tpu.dot_dimension_numbers<[1], [0], [0], [1], [0, 0, 1, 1], [], []>} : vector<512x32xf32>, vector<32x128xf32>, vector<512x128xf32> -> vector<512x128xf32>
    %50 = arith.addf %45, %49 : vector<512x128xf32>
    %c0_57 = arith.constant 0 : index
    %c0_58 = arith.constant 0 : index
    %c0_59 = arith.constant 0 : index
    %51 = vector.load %arg4[%c0_57, %c0_58, %c0_59] : memref<1x512x128xf32, #tpu.memory_space<vmem>>, vector<1x512x128xf32>
    %52 = vector.shape_cast %51 : vector<1x512x128xf32> to vector<512x128xf32>
    %53 = vector.shape_cast %50 : vector<512x128xf32> to vector<1x512x128xf32>
    tpu.vector_store %arg4[%c0_57, %c0_58, %c0_59], %53 {strides = array<i32>} : memref<1x512x128xf32, #tpu.memory_space<vmem>>, vector<1x512x128xf32>,
    %c0_60 = arith.constant 0 : index
    %c0_61 = arith.constant 0 : index
    %c1_62 = arith.constant 1 : index
    %c1_63 = arith.constant 1 : index
    %c0_64 = arith.constant 0 : index
    %54 = vector.load %arg1[%c0_60, %c0_61, %c1_62, %c1_63, %c0_64] : memref<1x2x18x18x32xf32, #tpu.memory_space<vmem>>, vector<1x2x16x16x32xf32>
    %55 = vector.shape_cast %54 : vector<1x2x16x16x32xf32> to vector<2x16x16x32xf32>
    %c0_65 = arith.constant 0 : index
    %c0_66 = arith.constant 0 : index
    %c0_67 = arith.constant 0 : index
    %56 = vector.load %arg4[%c0_65, %c0_66, %c0_67] : memref<1x512x128xf32, #tpu.memory_space<vmem>>, vector<1x512x128xf32>
    %57 = vector.shape_cast %56 : vector<1x512x128xf32> to vector<512x128xf32>
    %58 = vector.shape_cast %55 : vector<2x16x16x32xf32> to vector<512x32xf32>
    %c4 = arith.constant 4 : index
    %c0_68 = arith.constant 0 : index
    %c0_69 = arith.constant 0 : index
    %59 = vector.load %arg2[%c4, %c0_68, %c0_69] : memref<9x32x128xf32, #tpu.memory_space<vmem>>, vector<1x32x128xf32>
    %60 = vector.shape_cast %59 : vector<1x32x128xf32> to vector<32x128xf32>
    %cst_70 = arith.constant dense<0.000000e+00> : vector<512x128xf32>
    %61 = tpu.matmul %58, %60, %cst_70 {dimension_numbers = #tpu.dot_dimension_numbers<[1], [0], [0], [1], [0, 0, 1, 1], [], []>} : vector<512x32xf32>, vector<32x128xf32>, vector<512x128xf32> -> vector<512x128xf32>
    %62 = arith.addf %57, %61 : vector<512x128xf32>
    %c0_71 = arith.constant 0 : index
    %c0_72 = arith.constant 0 : index
    %c0_73 = arith.constant 0 : index
    %63 = vector.load %arg4[%c0_71, %c0_72, %c0_73] : memref<1x512x128xf32, #tpu.memory_space<vmem>>, vector<1x512x128xf32>
    %64 = vector.shape_cast %63 : vector<1x512x128xf32> to vector<512x128xf32>
    %65 = vector.shape_cast %62 : vector<512x128xf32> to vector<1x512x128xf32>
    tpu.vector_store %arg4[%c0_71, %c0_72, %c0_73], %65 {strides = array<i32>} : memref<1x512x128xf32, #tpu.memory_space<vmem>>, vector<1x512x128xf32>,
    %c0_74 = arith.constant 0 : index
    %c0_75 = arith.constant 0 : index
    %c1_76 = arith.constant 1 : index
    %c2_77 = arith.constant 2 : index
    %c0_78 = arith.constant 0 : index
    %66 = vector.load %arg1[%c0_74, %c0_75, %c1_76, %c2_77, %c0_78] : memref<1x2x18x18x32xf32, #tpu.memory_space<vmem>>, vector<1x2x16x16x32xf32>
    %67 = vector.shape_cast %66 : vector<1x2x16x16x32xf32> to vector<2x16x16x32xf32>
    %c0_79 = arith.constant 0 : index
    %c0_80 = arith.constant 0 : index
    %c0_81 = arith.constant 0 : index
    %68 = vector.load %arg4[%c0_79, %c0_80, %c0_81] : memref<1x512x128xf32, #tpu.memory_space<vmem>>, vector<1x512x128xf32>
    %69 = vector.shape_cast %68 : vector<1x512x128xf32> to vector<512x128xf32>
    %70 = vector.shape_cast %67 : vector<2x16x16x32xf32> to vector<512x32xf32>
    %c5 = arith.constant 5 : index
    %c0_82 = arith.constant 0 : index
    %c0_83 = arith.constant 0 : index
    %71 = vector.load %arg2[%c5, %c0_82, %c0_83] : memref<9x32x128xf32, #tpu.memory_space<vmem>>, vector<1x32x128xf32>
    %72 = vector.shape_cast %71 : vector<1x32x128xf32> to vector<32x128xf32>
    %cst_84 = arith.constant dense<0.000000e+00> : vector<512x128xf32>
    %73 = tpu.matmul %70, %72, %cst_84 {dimension_numbers = #tpu.dot_dimension_numbers<[1], [0], [0], [1], [0, 0, 1, 1], [], []>} : vector<512x32xf32>, vector<32x128xf32>, vector<512x128xf32> -> vector<512x128xf32>
    %74 = arith.addf %69, %73 : vector<512x128xf32>
    %c0_85 = arith.constant 0 : index
    %c0_86 = arith.constant 0 : index
    %c0_87 = arith.constant 0 : index
    %75 = vector.load %arg4[%c0_85, %c0_86, %c0_87] : memref<1x512x128xf32, #tpu.memory_space<vmem>>, vector<1x512x128xf32>
    %76 = vector.shape_cast %75 : vector<1x512x128xf32> to vector<512x128xf32>
    %77 = vector.shape_cast %74 : vector<512x128xf32> to vector<1x512x128xf32>
    tpu.vector_store %arg4[%c0_85, %c0_86, %c0_87], %77 {strides = array<i32>} : memref<1x512x128xf32, #tpu.memory_space<vmem>>, vector<1x512x128xf32>,
    %c0_88 = arith.constant 0 : index
    %c0_89 = arith.constant 0 : index
    %c2_90 = arith.constant 2 : index
    %c0_91 = arith.constant 0 : index
    %c0_92 = arith.constant 0 : index
    %78 = vector.load %arg1[%c0_88, %c0_89, %c2_90, %c0_91, %c0_92] : memref<1x2x18x18x32xf32, #tpu.memory_space<vmem>>, vector<1x2x16x16x32xf32>
    %79 = vector.shape_cast %78 : vector<1x2x16x16x32xf32> to vector<2x16x16x32xf32>
    %c0_93 = arith.constant 0 : index
    %c0_94 = arith.constant 0 : index
    %c0_95 = arith.constant 0 : index
    %80 = vector.load %arg4[%c0_93, %c0_94, %c0_95] : memref<1x512x128xf32, #tpu.memory_space<vmem>>, vector<1x512x128xf32>
    %81 = vector.shape_cast %80 : vector<1x512x128xf32> to vector<512x128xf32>
    %82 = vector.shape_cast %79 : vector<2x16x16x32xf32> to vector<512x32xf32>
    %c6 = arith.constant 6 : index
    %c0_96 = arith.constant 0 : index
    %c0_97 = arith.constant 0 : index
    %83 = vector.load %arg2[%c6, %c0_96, %c0_97] : memref<9x32x128xf32, #tpu.memory_space<vmem>>, vector<1x32x128xf32>
    %84 = vector.shape_cast %83 : vector<1x32x128xf32> to vector<32x128xf32>
    %cst_98 = arith.constant dense<0.000000e+00> : vector<512x128xf32>
    %85 = tpu.matmul %82, %84, %cst_98 {dimension_numbers = #tpu.dot_dimension_numbers<[1], [0], [0], [1], [0, 0, 1, 1], [], []>} : vector<512x32xf32>, vector<32x128xf32>, vector<512x128xf32> -> vector<512x128xf32>
    %86 = arith.addf %81, %85 : vector<512x128xf32>
    %c0_99 = arith.constant 0 : index
    %c0_100 = arith.constant 0 : index
    %c0_101 = arith.constant 0 : index
    %87 = vector.load %arg4[%c0_99, %c0_100, %c0_101] : memref<1x512x128xf32, #tpu.memory_space<vmem>>, vector<1x512x128xf32>
    %88 = vector.shape_cast %87 : vector<1x512x128xf32> to vector<512x128xf32>
    %89 = vector.shape_cast %86 : vector<512x128xf32> to vector<1x512x128xf32>
    tpu.vector_store %arg4[%c0_99, %c0_100, %c0_101], %89 {strides = array<i32>} : memref<1x512x128xf32, #tpu.memory_space<vmem>>, vector<1x512x128xf32>,
    %c0_102 = arith.constant 0 : index
    %c0_103 = arith.constant 0 : index
    %c2_104 = arith.constant 2 : index
    %c1_105 = arith.constant 1 : index
    %c0_106 = arith.constant 0 : index
    %90 = vector.load %arg1[%c0_102, %c0_103, %c2_104, %c1_105, %c0_106] : memref<1x2x18x18x32xf32, #tpu.memory_space<vmem>>, vector<1x2x16x16x32xf32>
    %91 = vector.shape_cast %90 : vector<1x2x16x16x32xf32> to vector<2x16x16x32xf32>
    %c0_107 = arith.constant 0 : index
    %c0_108 = arith.constant 0 : index
    %c0_109 = arith.constant 0 : index
    %92 = vector.load %arg4[%c0_107, %c0_108, %c0_109] : memref<1x512x128xf32, #tpu.memory_space<vmem>>, vector<1x512x128xf32>
    %93 = vector.shape_cast %92 : vector<1x512x128xf32> to vector<512x128xf32>
    %94 = vector.shape_cast %91 : vector<2x16x16x32xf32> to vector<512x32xf32>
    %c7 = arith.constant 7 : index
    %c0_110 = arith.constant 0 : index
    %c0_111 = arith.constant 0 : index
    %95 = vector.load %arg2[%c7, %c0_110, %c0_111] : memref<9x32x128xf32, #tpu.memory_space<vmem>>, vector<1x32x128xf32>
    %96 = vector.shape_cast %95 : vector<1x32x128xf32> to vector<32x128xf32>
    %cst_112 = arith.constant dense<0.000000e+00> : vector<512x128xf32>
    %97 = tpu.matmul %94, %96, %cst_112 {dimension_numbers = #tpu.dot_dimension_numbers<[1], [0], [0], [1], [0, 0, 1, 1], [], []>} : vector<512x32xf32>, vector<32x128xf32>, vector<512x128xf32> -> vector<512x128xf32>
    %98 = arith.addf %93, %97 : vector<512x128xf32>
    %c0_113 = arith.constant 0 : index
    %c0_114 = arith.constant 0 : index
    %c0_115 = arith.constant 0 : index
    %99 = vector.load %arg4[%c0_113, %c0_114, %c0_115] : memref<1x512x128xf32, #tpu.memory_space<vmem>>, vector<1x512x128xf32>
    %100 = vector.shape_cast %99 : vector<1x512x128xf32> to vector<512x128xf32>
    %101 = vector.shape_cast %98 : vector<512x128xf32> to vector<1x512x128xf32>
    tpu.vector_store %arg4[%c0_113, %c0_114, %c0_115], %101 {strides = array<i32>} : memref<1x512x128xf32, #tpu.memory_space<vmem>>, vector<1x512x128xf32>,
    %c0_116 = arith.constant 0 : index
    %c0_117 = arith.constant 0 : index
    %c2_118 = arith.constant 2 : index
    %c2_119 = arith.constant 2 : index
    %c0_120 = arith.constant 0 : index
    %102 = vector.load %arg1[%c0_116, %c0_117, %c2_118, %c2_119, %c0_120] : memref<1x2x18x18x32xf32, #tpu.memory_space<vmem>>, vector<1x2x16x16x32xf32>
    %103 = vector.shape_cast %102 : vector<1x2x16x16x32xf32> to vector<2x16x16x32xf32>
    %c0_121 = arith.constant 0 : index
    %c0_122 = arith.constant 0 : index
    %c0_123 = arith.constant 0 : index
    %104 = vector.load %arg4[%c0_121, %c0_122, %c0_123] : memref<1x512x128xf32, #tpu.memory_space<vmem>>, vector<1x512x128xf32>
    %105 = vector.shape_cast %104 : vector<1x512x128xf32> to vector<512x128xf32>
    %106 = vector.shape_cast %103 : vector<2x16x16x32xf32> to vector<512x32xf32>
    %c8 = arith.constant 8 : index
    %c0_124 = arith.constant 0 : index
    %c0_125 = arith.constant 0 : index
    %107 = vector.load %arg2[%c8, %c0_124, %c0_125] : memref<9x32x128xf32, #tpu.memory_space<vmem>>, vector<1x32x128xf32>
    %108 = vector.shape_cast %107 : vector<1x32x128xf32> to vector<32x128xf32>
    %cst_126 = arith.constant dense<0.000000e+00> : vector<512x128xf32>
    %109 = tpu.matmul %106, %108, %cst_126 {dimension_numbers = #tpu.dot_dimension_numbers<[1], [0], [0], [1], [0, 0, 1, 1], [], []>} : vector<512x32xf32>, vector<32x128xf32>, vector<512x128xf32> -> vector<512x128xf32>
    %110 = arith.addf %105, %109 : vector<512x128xf32>
    %c0_127 = arith.constant 0 : index
    %c0_128 = arith.constant 0 : index
    %c0_129 = arith.constant 0 : index
    %111 = vector.load %arg4[%c0_127, %c0_128, %c0_129] : memref<1x512x128xf32, #tpu.memory_space<vmem>>, vector<1x512x128xf32>
    %112 = vector.shape_cast %111 : vector<1x512x128xf32> to vector<512x128xf32>
    %113 = vector.shape_cast %110 : vector<512x128xf32> to vector<1x512x128xf32>
    tpu.vector_store %arg4[%c0_127, %c0_128, %c0_129], %113 {strides = array<i32>} : memref<1x512x128xf32, #tpu.memory_space<vmem>>, vector<1x512x128xf32>,
    return
  }
  func.func @transform_0(%arg0: i32) -> (i32, i32, i32, i32, i32) {
    %c0_i32 = arith.constant 0 : i32
    %c0_i32_0 = arith.constant 0 : i32
    %c0_i32_1 = arith.constant 0 : i32
    %c0_i32_2 = arith.constant 0 : i32
    %c0_i32_3 = arith.constant 0 : i32
    return %arg0, %c0_i32, %c0_i32_0, %c0_i32_1, %c0_i32_2 : i32, i32, i32, i32, i32
  }
  func.func @transform_1(%arg0: i32) -> (i32, i32, i32) {
    %c0_i32 = arith.constant 0 : i32
    %c0_i32_0 = arith.constant 0 : i32
    %c0_i32_1 = arith.constant 0 : i32
    %c0_i32_2 = arith.constant 0 : i32
    return %c0_i32, %c0_i32_0, %c0_i32_1 : i32, i32, i32
  }
  func.func @transform_2(%arg0: i32) -> (i32, i32) {
    %c0_i32 = arith.constant 0 : i32
    %c0_i32_0 = arith.constant 0 : i32
    %c0_i32_1 = arith.constant 0 : i32
    return %c0_i32, %c0_i32_0 : i32, i32
  }
  func.func @transform_3(%arg0: i32) -> (i32, i32, i32) {
    %c0_i32 = arith.constant 0 : i32
    %c0_i32_0 = arith.constant 0 : i32
    %c0_i32_1 = arith.constant 0 : i32
    return %arg0, %c0_i32, %c0_i32_0 : i32, i32, i32
  }
}

</mosaic_0001>

<bundles_post_ra>
// kernel: convlstm_forward.5
= control target key start
LH: loop header
LB: loop body
LE: loop exit
PB: predicated region body
PF: predicated region fallthrough
CT: control target
= control target key end

     0   :  { %9 = vsyncpa [#allocation6], 0  ;;  %s10136_s0 = inlined_call_operand.vmem [shape: f32[8,512,128], index: 0, kind: input, shape index: {}]   ;;  %s10137_s1 = inlined_call_operand.vmem [shape: f32[9,32,128], index: 1, kind: input, shape index: {}]   ;;  %s10138_s2 = inlined_call_operand.vmem [shape: f32[8,2,16,16,32], index: 2, kind: output, shape index: {0}]   ;;  %s10139_s3 = inlined_call_operand.hbm [shape: f32[2,16,16,32], index: 3, kind: output, shape index: {1}]  }
   0x1   :  { %11 = vsyncpa [#allocation6 + $0x1], 0  ;;  %s8008_s12 = smov 0   ;;  %s8010_s13 = smov 0  }
   0x2   :  { %s8012_s14 = smov 0   ;;  %s8014_s15 = smov 0  }
   0x3   :  { %s8016_s16 = smov 0   ;;  %s8018_s17 = smov 0  }
   0x4   :  { %s8020_s18 = smov 0   ;;  %s8022_s19 = smov 0  }
   0x5 LB: > { %10203 = sst [smem:[#allocation8_spill]] %s7975_s18  ;;  %s5989_s20 = sadd.s32 4294967295, %s7979_s19   ;;  %s7979_s19 = sphi %s8022_s19, %s17_s19   ;;  %s7975_s18 = sphi %s8020_s18, %s10318_s18   ;;  %s7971_s17 = sphi %s8018_s17, %s10323_s17   ;;  %s7967_s16 = sphi %s8016_s16, %s10316_s16   ;;  %s7963_s15 = sphi %s8014_s15, %s10322_s15   ;;  %s7959_s14 = sphi %s8012_s14, %s10321_s14   ;;  %s7955_s13 = sphi %s8010_s13, %s10320_s13   ;;  %s7951_s12 = sphi %s8008_s12, %s10319_s12  }
   0x6   : > { %s5990_s21 = sadd.s32 4294967294, %s7979_s19   ;;  %s26_s22 = sadd.s32 1, %s7971_s17 }
   0x7   : > { %p27_p0 = scmp.ge.s32.totalorder %s26_s22, 8  ;;  %s29_s23 = sadd.s32 1, %s7975_s18 }
   0x8   : > { %p123_p1 = scmp.ne.s32.totalorder %s7959_s14, %s7955_s13  ;;  %p124_p2 = scmp.eq.s32.totalorder %s5989_s20, 15 }
   0x9   : > { %s10325_s22 = smov (%p27_p0, %s26_s22), 0  ;;  %s10327_s23 = smov (!%p27_p0, %s29_s23), %s7975_s18 }
   0xa   : > { %10204 = sst [smem:[#allocation9_spill]] %s10325_s22  ;;  %p8057_p3 = por %p124_p2, %p123_p1 }
   0xb   : > { %p129_p4 = scmp.ne.s32.totalorder %s7955_s13, %s7951_s12  ;;  %p31_p5 = scmp.ge.s32.totalorder %s10327_s23, 2 }
   0xc   : > { %p130_p6 = scmp.eq.s32.totalorder %s5990_s21, 15  ;;  %p5993_p7 = scmp.ge.s32.totalorder %s7979_s19, 1 }
   0xd   : > { %p164_p8 = scmp.lt.s32.totalorder %s7979_s19, 17  ;;  %s10329_s23 = smov (%p31_p5, %s10327_s23), 0 }
   0xe   : > { %10206 = sst [smem:[#allocation10_spill]] %s10329_s23  ;;  %p8067_p9 = por %p130_p6, %p129_p4 }
   0xf   : > { %p165_p10 = pnand %p5993_p7, %p164_p8  ;;  %s110_s26 = ssub.s32 %s7975_s18, %s10329_s23 }
  0x10   : > { %s113_s27 = sadd.s32 1, %s7959_s14  ;;  %p111_p11 = scmp.eq.s32.totalorder %s110_s26, 0 }
  0x11   : > { %168 = sbr.rel (%p165_p10) target bundleno = 1156 (0x484), region = 28 }
  0x12   : > { %s8075_s28 = scalar_select %p111_p11, %s7959_s14, %s113_s27  }
  0x18   : > { %s10141_s29 = sand.u32 1, %s7955_s13   ;;  %s5995_s30 = sshll.u32 %s7967_s16, 5 }
  0x19   : > { %s5994_s4 = sshll.u32 %s10141_s29, 8  ;;  %p202_p12 = scmp.lt.s32.totalorder %s7963_s15, 7 }
  0x1a   : > { %p204_p13 = scmp.lt.s32.totalorder %s5995_s30, 63  ;;  %p213_p0 = scmp.lt.s32.totalorder %s7967_s16, 1 }
  0x1b   : > { %s203_s5 = scalar_select %p202_p12, %s7963_s15, 7 }
  0x1c   : > { %s10331_s30 = smov (!%p204_p13, %s5995_s30), 63  ;;  %s8095_s18 = scalar_lea.vmem [#allocation5], %s5994_s4 }
  0x1d   : > { %s5996_s6 = sshll.u32 %s203_s5, 6  ;;  %p6001_p1 = scmp.ne.s32.totalorder %s7963_s15, 0 }
  0x1e   : > { %s207_s7 = sadd.s32 %s5996_s6, %s10331_s30  ;;  %vm224_vm0 = vcmask (!%p6001_p1), 261120   ;;  %vm227_vm1 = vcmask (!%p6001_p1), 254976   ;;  %v7981_v0 = vmov (!%p6001_p1), 0.0  }
  0x1f   : > { %s5997_s8 = sshll.u32 %s207_s7, 3  ;;  %225 = vst.msk [vmem:[#allocation2] sm:$0xff] (!%p6001_p1), %vm224_vm0, %v7981_v0  ;;  %226 = vst.msk [vmem:[#allocation2 + $0x8] sm:$0xff] (!%p6001_p1), %vm224_vm0, %v7981_v0 }
  0x20   : > { %s8087_s11 = scalar_lea.vmem %s10136_s0, %s5997_s8  ;;  %223 = sbr.rel (%p6001_p1) target bundleno = 75 (0x4b), region = 32  ;;  %229 = vst.msk [vmem:[#allocation2 + $0x18] sm:$0xff] (!%p6001_p1), %vm224_vm0, %v7981_v0  ;;  %230 = vst.msk [vmem:[#allocation2 + $0x20] sm:$0xff] (!%p6001_p1), %vm224_vm0, %v7981_v0 }
  0x21   : > { %s214_s20 = scalar_select %p213_p0, %s7967_s16, 1 }
  0x22   : > { %232 = vst.msk [vmem:[#allocation2 + $0x30] sm:$0xff] (!%p6001_p1), %vm224_vm0, %v7981_v0  ;;  %233 = vst.msk [vmem:[#allocation2 + $0x38] sm:$0xff] (!%p6001_p1), %vm224_vm0, %v7981_v0 }
  0x23   : > { %s5998_s21 = sshll.u32 %s214_s20, 5  ;;  %235 = vst.msk [vmem:[#allocation2 + $0x48] sm:$0xff] (!%p6001_p1), %vm224_vm0, %v7981_v0  ;;  %236 = vst.msk [vmem:[#allocation2 + $0x50] sm:$0xff] (!%p6001_p1), %vm224_vm0, %v7981_v0 }
  0x24   : > { %s217_s26 = sadd.s32 %s5998_s21, %s5996_s6  ;;  %238 = vst.msk [vmem:[#allocation2 + $0x60] sm:$0xff] (!%p6001_p1), %vm224_vm0, %v7981_v0  ;;  %239 = vst.msk [vmem:[#allocation2 + $0x68] sm:$0xff] (!%p6001_p1), %vm224_vm0, %v7981_v0 }
  0x25   : > { %s6000_s27 = sshll.u32 %s217_s26, 3  ;;  %241 = vst.msk [vmem:[#allocation2 + $0x78] sm:$0xff] (!%p6001_p1), %vm224_vm0, %v7981_v0  ;;  %242 = vst.msk [vmem:[#allocation2 + $0x80] sm:$0xff] (!%p6001_p1), %vm224_vm0, %v7981_v0 }
  0x26   : > { %s8093_s29 = scalar_lea.vmem %s10138_s2, %s6000_s27  ;;  %244 = vst.msk [vmem:[#allocation2 + $0x90] sm:$0xff] (!%p6001_p1), %vm224_vm0, %v7981_v0  ;;  %245 = vst.msk [vmem:[#allocation2 + $0x98] sm:$0xff] (!%p6001_p1), %vm224_vm0, %v7981_v0 }
  0x27   : > { %247 = vst.msk [vmem:[#allocation2 + $0xa8] sm:$0xff] %vm224_vm0, %v7981_v0  ;;  %248 = vst.msk [vmem:[#allocation2 + $0xb0] sm:$0xff] %vm224_vm0, %v7981_v0 }
  0x28   : > { %250 = vst.msk [vmem:[#allocation2 + $0xc0] sm:$0xff] %vm224_vm0, %v7981_v0  ;;  %251 = vst.msk [vmem:[#allocation2 + $0xc8] sm:$0xff] %vm224_vm0, %v7981_v0 }
  0x29   : > { %253 = vst.msk [vmem:[#allocation2 + $0xd8] sm:$0xff] %vm224_vm0, %v7981_v0  ;;  %254 = vst.msk [vmem:[#allocation2 + $0xe0] sm:$0xff] %vm224_vm0, %v7981_v0 }
  0x2a   : > { %256 = vst.msk [vmem:[#allocation2 + $0xf0] sm:$0xff] %vm224_vm0, %v7981_v0  ;;  %257 = vst.msk [vmem:[#allocation2 + $0xf8] sm:$0xff] %vm224_vm0, %v7981_v0 }
  0x2b   : > { %259 = vst.msk [vmem:[#allocation2 + $0x108] sm:$0xff] %vm224_vm0, %v7981_v0  ;;  %260 = vst.msk [vmem:[#allocation2 + $0x110] sm:$0xff] %vm224_vm0, %v7981_v0 }
  0x2c   : > { %262 = vst.msk [vmem:[#allocation2 + $0x120] sm:$0xff] %vm224_vm0, %v7981_v0  ;;  %263 = vst.msk [vmem:[#allocation2 + $0x128] sm:$0xff] %vm224_vm0, %v7981_v0 }
  0x2d   : > { %265 = vst.msk [vmem:[#allocation2 + $0x138] sm:$0xff] %vm224_vm0, %v7981_v0  ;;  %266 = vst.msk [vmem:[#allocation2 + $0x140] sm:$0xff] %vm224_vm0, %v7981_v0 }
  0x2e   : > { %268 = vst.msk [vmem:[#allocation2 + $0x150] sm:$0xff] %vm224_vm0, %v7981_v0  ;;  %269 = vst.msk [vmem:[#allocation2 + $0x158] sm:$0xff] %vm224_vm0, %v7981_v0 }
  0x2f   : > { %271 = vst.msk [vmem:[#allocation2 + $0x168] sm:$0xff] %vm224_vm0, %v7981_v0  ;;  %272 = vst.msk [vmem:[#allocation2 + $0x170] sm:$0xff] %vm224_vm0, %v7981_v0 }
  0x30   : > { %274 = vst.msk [vmem:[#allocation2 + $0x180] sm:$0xff] %vm224_vm0, %v7981_v0  ;;  %275 = vst.msk [vmem:[#allocation2 + $0x188] sm:$0xff] %vm224_vm0, %v7981_v0 }
  0x31   : > { %277 = vst.msk [vmem:[#allocation2 + $0x198] sm:$0xff] %vm224_vm0, %v7981_v0  ;;  %278 = vst.msk [vmem:[#allocation2 + $0x1a0] sm:$0xff] %vm224_vm0, %v7981_v0 }
  0x32   : > { %280 = vst.msk [vmem:[#allocation3] sm:$0xff] %vm224_vm0, %v7981_v0  ;;  %281 = vst.msk [vmem:[#allocation3 + $0x8] sm:$0xff] %vm224_vm0, %v7981_v0 }
  0x33   : > { %282 = vst.msk [vmem:[#allocation3 + $0x10] sm:$0xff] %vm224_vm0, %v7981_v0  ;;  %283 = vst.msk [vmem:[#allocation3 + $0x18] sm:$0xff] %vm224_vm0, %v7981_v0 }
  0x34   : > { %284 = vst.msk [vmem:[#allocation3 + $0x20] sm:$0xff] %vm224_vm0, %v7981_v0  ;;  %285 = vst.msk [vmem:[#allocation3 + $0x28] sm:$0xff] %vm224_vm0, %v7981_v0 }
  0x35   : > { %286 = vst.msk [vmem:[#allocation3 + $0x30] sm:$0xff] %vm224_vm0, %v7981_v0  ;;  %287 = vst.msk [vmem:[#allocation3 + $0x38] sm:$0xff] %vm224_vm0, %v7981_v0 }
  0x36   : > { %288 = vst.msk [vmem:[#allocation3 + $0x40] sm:$0xff] %vm224_vm0, %v7981_v0  ;;  %289 = vst.msk [vmem:[#allocation3 + $0x48] sm:$0xff] %vm224_vm0, %v7981_v0 }
  0x37   : > { %290 = vst.msk [vmem:[#allocation3 + $0x50] sm:$0xff] %vm224_vm0, %v7981_v0  ;;  %291 = vst.msk [vmem:[#allocation3 + $0x58] sm:$0xff] %vm224_vm0, %v7981_v0 }
  0x38   : > { %292 = vst.msk [vmem:[#allocation3 + $0x60] sm:$0xff] %vm224_vm0, %v7981_v0  ;;  %293 = vst.msk [vmem:[#allocation3 + $0x68] sm:$0xff] %vm224_vm0, %v7981_v0 }
  0x39   : > { %294 = vst.msk [vmem:[#allocation3 + $0x70] sm:$0xff] %vm224_vm0, %v7981_v0  ;;  %295 = vst.msk [vmem:[#allocation3 + $0x78] sm:$0xff] %vm224_vm0, %v7981_v0 }
  0x3a   : > { %296 = vst.msk [vmem:[#allocation3 + $0x80] sm:$0xff] %vm224_vm0, %v7981_v0  ;;  %297 = vst.msk [vmem:[#allocation3 + $0x88] sm:$0xff] %vm224_vm0, %v7981_v0 }
  0x3b   : > { %298 = vst.msk [vmem:[#allocation3 + $0x90] sm:$0xff] %vm224_vm0, %v7981_v0  ;;  %299 = vst.msk [vmem:[#allocation3 + $0x98] sm:$0xff] %vm224_vm0, %v7981_v0 }
  0x3c   : > { %300 = vst.msk [vmem:[#allocation3 + $0xa0] sm:$0xff] %vm224_vm0, %v7981_v0  ;;  %301 = vst.msk [vmem:[#allocation3 + $0xa8] sm:$0xff] %vm224_vm0, %v7981_v0 }
  0x3d   : > { %302 = vst.msk [vmem:[#allocation3 + $0xb0] sm:$0xff] %vm224_vm0, %v7981_v0  ;;  %303 = vst.msk [vmem:[#allocation3 + $0xb8] sm:$0xff] %vm224_vm0, %v7981_v0 }
  0x3e   : > { %304 = vst.msk [vmem:[#allocation3 + $0xc0] sm:$0xff] %vm224_vm0, %v7981_v0  ;;  %305 = vst.msk [vmem:[#allocation3 + $0xc8] sm:$0xff] %vm224_vm0, %v7981_v0 }
  0x3f   : > { %306 = vst.msk [vmem:[#allocation3 + $0xd0] sm:$0xff] %vm224_vm0, %v7981_v0  ;;  %307 = vst.msk [vmem:[#allocation3 + $0xd8] sm:$0xff] %vm224_vm0, %v7981_v0 }
  0x40   : > { %308 = vst.msk [vmem:[#allocation3 + $0xe0] sm:$0xff] %vm224_vm0, %v7981_v0  ;;  %309 = vst.msk [vmem:[#allocation3 + $0xe8] sm:$0xff] %vm224_vm0, %v7981_v0 }
  0x41   : > { %310 = vst.msk [vmem:[#allocation3 + $0xf0] sm:$0xff] %vm224_vm0, %v7981_v0  ;;  %311 = vst.msk [vmem:[#allocation3 + $0xf8] sm:$0xff] %vm224_vm0, %v7981_v0 }
  0x42   : > { %228 = vst.msk [vmem:[#allocation2 + $0x10] sm:$0x3] %vm227_vm1, %v7981_v0  ;;  %231 = vst.msk [vmem:[#allocation2 + $0x28] sm:$0x3] %vm227_vm1, %v7981_v0 }
  0x43   : > { %234 = vst.msk [vmem:[#allocation2 + $0x40] sm:$0x3] %vm227_vm1, %v7981_v0  ;;  %237 = vst.msk [vmem:[#allocation2 + $0x58] sm:$0x3] %vm227_vm1, %v7981_v0 }
  0x44   : > { %240 = vst.msk [vmem:[#allocation2 + $0x70] sm:$0x3] %vm227_vm1, %v7981_v0  ;;  %243 = vst.msk [vmem:[#allocation2 + $0x88] sm:$0x3] %vm227_vm1, %v7981_v0 }
  0x45   : > { %246 = vst.msk [vmem:[#allocation2 + $0xa0] sm:$0x3] %vm227_vm1, %v7981_v0  ;;  %249 = vst.msk [vmem:[#allocation2 + $0xb8] sm:$0x3] %vm227_vm1, %v7981_v0 }
  0x46   : > { %252 = vst.msk [vmem:[#allocation2 + $0xd0] sm:$0x3] %vm227_vm1, %v7981_v0  ;;  %255 = vst.msk [vmem:[#allocation2 + $0xe8] sm:$0x3] %vm227_vm1, %v7981_v0 }
  0x47   : > { %258 = vst.msk [vmem:[#allocation2 + $0x100] sm:$0x3] %vm227_vm1, %v7981_v0  ;;  %261 = vst.msk [vmem:[#allocation2 + $0x118] sm:$0x3] %vm227_vm1, %v7981_v0 }
  0x48   : > { %264 = vst.msk [vmem:[#allocation2 + $0x130] sm:$0x3] %vm227_vm1, %v7981_v0  ;;  %267 = vst.msk [vmem:[#allocation2 + $0x148] sm:$0x3] %vm227_vm1, %v7981_v0 }
  0x49   : > { %270 = vst.msk [vmem:[#allocation2 + $0x160] sm:$0x3] %vm227_vm1, %v7981_v0  ;;  %273 = vst.msk [vmem:[#allocation2 + $0x178] sm:$0x3] %vm227_vm1, %v7981_v0 }
  0x4a   : > { %276 = vst.msk [vmem:[#allocation2 + $0x190] sm:$0x3] %vm227_vm1, %v7981_v0  ;;  %279 = vst.msk [vmem:[#allocation2 + $0x1a8] sm:$0x3] %vm227_vm1, %v7981_v0 }
  0x4b PF: > { %v440_v1 = vld [vmem:[%s10137_s1] sm:$0xff]  ;;  %v441_v2 = vld [vmem:[%s10137_s1 + $0x8] sm:$0xff]  ;;  %vm444_vm2 = vcmask 261120   ;;  %v442_v6 = vld [vmem:[%s10137_s1 + $0x10] sm:$0xff]  ;;  %s7982_s21 = smov 32   ;;  %s7984_s26 = smov 64  }
  0x4c   : > { %v6142_v3 = vld [vmem:[%s10137_s1 + $0x80] sm:$0xff]  ;;  %v7188_v4 = vpack.c.bf16 %v441_v2, %v440_v1  ;;  %v6143_v5 = vld [vmem:[%s10137_s1 + $0x88] sm:$0xff]  ;;  %v443_v7 = vld [vmem:[%s10137_s1 + $0x18] sm:$0xff]  ;;  %s6359_s27 = sshll.u32 %s7967_s16, 12  ;;  %s5869_s15 = sshll.u32 %s8095_s18, 4  ;;  %s9973_s15 = int_to_ptr.vmem [resolvable:$true] %s5869_s15 }
  0x4d   : > { %v8288_v8 = vpack.c.bf16 %v6143_v5, %v6142_v3  ;;  %v7192_v9 = vpack.c.bf16 %v443_v7, %v442_v6  ;;  %v6144_v10 = vld [vmem:[%s10137_s1 + $0x90] sm:$0xff]  ;;  %v6145_v11 = vld [vmem:[%s10137_s1 + $0x98] sm:$0xff]  ;;  %v376_v12 = vld [vmem:[#allocation2] sm:$0xff]  ;;  %s9971_s30 = scalar_lea.hbm %s10139_s3, %s6359_s27  ;;  %s10315_s16 = sand.u32 1, %s7955_s13  }
  0x4e   : > { %7189 = vmatprep.subr.bf16.mxu1 %v7188_v4  ;;  %v8296_v13 = vpack.c.bf16 %v6145_v11, %v6144_v10  ;;  %6692 = vmatprep.mubr.msk.f32.mxu1 %vm444_vm2, %v376_v12  ;;  %v8299_v14 = vld [vmem:[#allocation2 + $0x19] sm:$0xff]  ;;  %v6179_v16 = vld [vmem:[%s10137_s1 + $0xa8] sm:$0xff]  ;;  %v8317_v21 = vld [vmem:[#allocation2 + $0x31] sm:$0xff]  ;;  %s7885_s4 = scalar_lea.vmem %s9973_s15, 4096  ;;  %s7985_s5 = smov [#allocation5]  }
  0x4f   : > { %7221 = vmatprep.subr.bf16.mxu0 %v8288_v8  ;;  %7191 = vmatpush3.bf16.msra.mxu1 %v7188_v4  ;;  %v6178_v15 = vld [vmem:[%s10137_s1 + $0xa0] sm:$0xff]  ;;  %v377_v18 = vld [vmem:[#allocation2 + $0x8] sm:$0xff]  ;;  %v8315_v20 = vld [vmem:[#allocation2 + $0x18] sm:$0xff]  ;;  %p7886_p2 = scmp.ne.s32.totalorder %s9973_s15, %s7885_s4  ;;  %s7889_s6 = sshll.u32 %s7985_s5, 4  ;;  %s7890_s6 = int_to_ptr.vmem [resolvable:$false] %s7889_s6 }
  0x50   : > { %10208 = vst [vmem:[#allocation11_spill] sm:$0xff] %v8296_v13  ;;  %7223 = vmatpush3.bf16.msra.mxu0 %v8288_v8  ;;  %7193 = vmatprep.subr.bf16.mxu1 %v7192_v9  ;;  %v7228_v17 = vpack.c.bf16 %v6179_v16, %v6178_v15  ;;  %v8313_v19 = vld [vmem:[#allocation2 + $0x21] sm:$0xff]  ;;  %10209 = vst [vmem:[#allocation12_spill] sm:$0xff] %v8315_v20  ;;  %v6180_v22 = vld [vmem:[%s10137_s1 + $0xb0] sm:$0xff]  ;;  %s7891_s7 = scalar_lea.vmem %s7890_s6, 8192  ;;  %p7892_p6 = scmp.lt.s32.totalorder %s9973_s15, %s7890_s6 }
  0x51   : > { %7225 = vmatprep.subr.bf16.mxu0 %v8296_v13  ;;  %6916 = vmatprep.mubr.msk.f32.mxu0 %vm444_vm2, %v8299_v14  ;;  %v6181_v23 = vld [vmem:[%s10137_s1 + $0xb8] sm:$0xff]  ;;  %v8330_v25 = vld [vmem:[#allocation2 + $0x20] sm:$0xff]  ;;  %v6035_v27 = vld [vmem:[%s10137_s1 + $0x28] sm:$0xff]  ;;  %p7887_p4 = pnand %p7886_p2, %p8057_p3  ;;  %p7893_p7 = scmp.lt.s32.totalorder %s7891_s7, %s7885_s4 }
  0x52   : > { %v7232_v24 = vpack.c.bf16 %v6181_v23, %v6180_v22  ;;  %10210 = vst [vmem:[#allocation13_spill] sm:$0xff] %v8330_v25  ;;  %v6034_v26 = vld [vmem:[%s10137_s1 + $0x20] sm:$0xff]  ;;  %v8342_v29 = vld [vmem:[#allocation2 + $0x30] sm:$0xff]  ;;  %v8352_v32 = vld [vmem:[#allocation2 + $0x38] sm:$0xff] }
  0x53   : > { %7195 = vmatpush3.bf16.msra.mxu1 %v7192_v9  ;;  %v8340_v28 = vld [vmem:[#allocation2 + $0x39] sm:$0xff]  ;;  %10211 = vst [vmem:[#allocation14_spill] sm:$0xff] %v8342_v29  ;;  %v7196_v30 = vpack.c.bf16 %v6035_v27, %v6034_v26  ;;  %v8344_v31 = vld [vmem:[#allocation2 + $0x49] sm:$0xff]  ;;  %10212 = vst [vmem:[#allocation15_spill] sm:$0xff] %v8352_v32  ;;  %p7888_p5 = pneg %p7887_p4  ;;  %p7894_p8 = por %p7893_p7, %p7892_p6 }
  0x54   : > { %7227 = vmatpush3.bf16.msra.mxu0 %v8296_v13  ;;  %v6214_v33 = vld [vmem:[%s10137_s1 + $0xc0] sm:$0xff]  ;;  %v8359_v34 = vld [vmem:[#allocation2 + $0x51] sm:$0xff]  ;;  %v8361_v35 = vld [vmem:[#allocation2 + $0x48] sm:$0xff] }
  0x55   : > { %7229 = vmatprep.subr.bf16.mxu0 %v7228_v17  ;;  %7197 = vmatprep.subr.bf16.mxu1 %v7196_v30  ;;  %v6215_v36 = vld [vmem:[%s10137_s1 + $0xc8] sm:$0xff]  ;;  %v8376_v39 = vld [vmem:[#allocation2 + $0x50] sm:$0xff]  ;;  %v8382_v41 = vld [vmem:[#allocation2 + $0x60] sm:$0xff]  ;;  %p7895_p10 = pnand %p7894_p8, %p7888_p5 }
  0x56   : > { %6693 = vmatmul.mubr.msk.f32.vlgmr.msra.gmra.mrb[0].mxu1 %vm444_vm2, %v377_v18  ;;  %v8366_v37 = vld [vmem:[#allocation2 + $0x61] sm:$0xff]  ;;  %v8368_v38 = vpack.c.bf16 %v6215_v36, %v6214_v33  ;;  %v8380_v40 = vld [vmem:[#allocation2 + $0x69] sm:$0xff]  ;;  %v8385_v42 = vld [vmem:[#allocation2 + $0x79] sm:$0xff] }
  0x57   : > { %6917 = vmatmul.mubr.msk.f32.vlgmr.msra.gmra.mrb[0].mxu0 %vm444_vm2, %v8313_v19  ;;  %6695 = vmatprep.mubr.msk.f32.mxu1 %vm444_vm2, %v8315_v20  ;;  %v8393_v43 = vld [vmem:[#allocation2 + $0x68] sm:$0xff]  ;;  %v6036_v44 = vld [vmem:[%s10137_s1 + $0x30] sm:$0xff]  ;;  %v6037_v45 = vld [vmem:[%s10137_s1 + $0x38] sm:$0xff] }
  0x58   : > { %7231 = vmatpush3.bf16.msra.mxu0 %v7228_v17  ;;  %6919 = vmatprep.mubr.msk.f32.mxu0 %vm444_vm2, %v8317_v21  ;;  %10213 = vst [vmem:[#allocation16_spill] sm:$0xff] %v8393_v43  ;;  %v8403_v46 = vld [vmem:[#allocation2 + $0x81] sm:$0xff]  ;;  %v8405_v47 = vld [vmem:[#allocation2 + $0x78] sm:$0xff]  ;;  %v7200_v48 = vpack.c.bf16 %v6037_v45, %v6036_v44  ;;  %v8421_v52 = vld [vmem:[#allocation2 + $0x90] sm:$0xff] }
  0x59   : > { %7233 = vmatprep.subr.bf16.mxu0 %v7232_v24  ;;  %7199 = vmatpush3.bf16.msra.mxu1 %v7196_v30  ;;  %10214 = vst [vmem:[#allocation17_spill] sm:$0xff] %v8405_v47  ;;  %v8407_v49 = vld [vmem:[#allocation2 + $0x91] sm:$0xff]  ;;  %v8415_v50 = vld [vmem:[#allocation2 + $0x80] sm:$0xff]  ;;  %10216 = vst [vmem:[#allocation19_spill] sm:$0xff] %v8421_v52 }
  0x5a   : > { %6696 = vmatmul.mubr.msk.f32.gmra.mrb[2].mxu1 %vm444_vm2, %v8330_v25  ;;  %7201 = vmatprep.subr.bf16.mxu1 %v7200_v48  ;;  %10215 = vst [vmem:[#allocation18_spill] sm:$0xff] %v8415_v50  ;;  %v8419_v51 = vld [vmem:[#allocation2 + $0x99] sm:$0xff]  ;;  %v8423_v53 = vld [vmem:[#allocation2 + $0xa9] sm:$0xff]  ;;  %v8438_v56 = vld [vmem:[#allocation2 + $0xb1] sm:$0xff] }
  0x5b   : > { %6920 = vmatmul.mubr.msk.f32.gmra.mrb[2].mxu0 %vm444_vm2, %v8340_v28  ;;  %6698 = vmatprep.mubr.msk.f32.mxu1 %vm444_vm2, %v8342_v29  ;;  %v8431_v54 = vld [vmem:[#allocation2 + $0x98] sm:$0xff]  ;;  %v6070_v55 = vld [vmem:[%s10137_s1 + $0x40] sm:$0xff]  ;;  %10218 = vst [vmem:[#allocation21_spill] sm:$0xff] %v8438_v56  ;;  %v8440_v57 = vld [vmem:[#allocation2 + $0xa8] sm:$0xff] }
  0x5c   : > { %6922 = vmatprep.mubr.msk.f32.mxu0 %vm444_vm2, %v8344_v31  ;;  %7235 = vmatpush3.bf16.msra.mxu0 %v7232_v24  ;;  %10217 = vst [vmem:[#allocation20_spill] sm:$0xff] %v8431_v54  ;;  %10219 = vst [vmem:[#allocation22_spill] sm:$0xff] %v8440_v57  ;;  %v6071_v58 = vld [vmem:[%s10137_s1 + $0x48] sm:$0xff]  ;;  %v8455_v61 = vld [vmem:[#allocation2 + $0xb0] sm:$0xff] }
  0x5d   : > { %7237 = vmatprep.subr.bf16.mxu0 %v8368_v38  ;;  %7203 = vmatpush3.bf16.msra.mxu1 %v7200_v48  ;;  %v8445_v59 = vld [vmem:[#allocation2 + $0xc1] sm:$0xff]  ;;  %v8447_v60 = vpack.c.bf16 %v6071_v58, %v6070_v55  ;;  %10220 = vst [vmem:[#allocation23_spill] sm:$0xff] %v8455_v61  ;;  %v8459_v62 = vld [vmem:[#allocation2 + $0xc9] sm:$0xff]  ;;  %v6217_v2 = vld [vmem:[%s10137_s1 + $0xd8] sm:$0xff] }
  0x5e   : > { %6699 = vmatmul.mubr.msk.f32.gmra.mrb[4].mxu1 %vm444_vm2, %v8352_v32  ;;  %v8461_v63 = vld [vmem:[#allocation2 + $0xc0] sm:$0xff]  ;;  %v6216_v1 = vld [vmem:[%s10137_s1 + $0xd0] sm:$0xff]  ;;  %v8478_v3 = vld [vmem:[#allocation2 + $0xc8] sm:$0xff] }
  0x5f   : > { %6923 = vmatmul.mubr.msk.f32.gmra.mrb[4].mxu0 %vm444_vm2, %v8359_v34  ;;  %6701 = vmatprep.mubr.msk.f32.mxu1 %vm444_vm2, %v8361_v35  ;;  %10221 = vst [vmem:[#allocation24_spill] sm:$0xff] %v8461_v63  ;;  %v8464_v0 = vld [vmem:[#allocation2 + $0x1a] sm:$0xff]  ;;  %10222 = vst [vmem:[#allocation25_spill] sm:$0xff] %v8478_v3  ;;  %v8482_v4 = vld [vmem:[#allocation2 + $0x22] sm:$0xff]  ;;  %v7240_v7 = vpack.c.bf16 %v6217_v2, %v6216_v1 }
  0x60   : > { %6925 = vmatprep.mubr.msk.f32.mxu0 %vm444_vm2, %v8366_v37  ;;  %7205 = vmatprep.subr.bf16.mxu1 %v8447_v60  ;;  %v8484_v5 = vld [vmem:[#allocation2 + $0xd8] sm:$0xff]  ;;  %v6250_v9 = vld [vmem:[%s10137_s1 + $0xe0] sm:$0xff]  ;;  %v6251_v10 = vld [vmem:[%s10137_s1 + $0xe8] sm:$0xff] }
  0x61   : > { %10223 = vst [vmem:[#allocation26_spill] sm:$0xff] %v8484_v5  ;;  %v8486_v6 = vld [vmem:[#allocation2 + $0x32] sm:$0xff]  ;;  %v8500_v11 = vld [vmem:[#allocation2 + $0xe0] sm:$0xff]  ;;  %v8509_v16 = vld [vmem:[#allocation2 + $0x4a] sm:$0xff]  ;;  %v8511_v17 = vpack.c.bf16 %v6251_v10, %v6250_v9 }
  0x62   : > { %6702 = vmatmul.mubr.msk.f32.gmra.mrb[6].mxu1 %vm444_vm2, %v8376_v39  ;;  %v8505_v12 = vld [vmem:[#allocation2 + $0x3a] sm:$0xff]  ;;  %v8507_v15 = vld [vmem:[#allocation2 + $0xf0] sm:$0xff]  ;;  %v8525_v23 = vld [vmem:[#allocation2 + $0x108] sm:$0xff] }
  0x63   : > { %6926 = vmatmul.mubr.msk.f32.gmra.mrb[6].mxu0 %vm444_vm2, %v8380_v40  ;;  %6704 = vmatprep.mubr.msk.f32.mxu1 %vm444_vm2, %v8382_v41  ;;  %v8519_v18 = vld [vmem:[#allocation2 + $0xf8] sm:$0xff]  ;;  %v8527_v24 = vld [vmem:[#allocation2 + $0x62] sm:$0xff]  ;;  %v8536_v26 = vld [vmem:[#allocation2 + $0x110] sm:$0xff] }
  0x64   : > { %6928 = vmatprep.mubr.msk.f32.mxu0 %vm444_vm2, %v8385_v42  ;;  %v8523_v22 = vld [vmem:[#allocation2 + $0x52] sm:$0xff]  ;;  %v8540_v27 = vld [vmem:[#allocation2 + $0x6a] sm:$0xff]  ;;  %v8542_v30 = vld [vmem:[#allocation2 + $0x120] sm:$0xff] }
  0x65   : > { %v8544_v33 = vld [vmem:[#allocation2 + $0x7a] sm:$0xff]  ;;  %v8552_v36 = vld [vmem:[#allocation2 + $0x128] sm:$0xff]  ;;  %v8560_v45 = vld [vmem:[#allocation2 + $0x92] sm:$0xff] }
  0x66   : > { %6705 = vmatmul.mubr.msk.f32.gmra.mrb[8].mxu1 %vm444_vm2, %v8393_v43  ;;  %v8558_v44 = vld [vmem:[#allocation2 + $0x138] sm:$0xff]  ;;  %10225 = vst [vmem:[#allocation28_spill] sm:$0xff] %v8560_v45  ;;  %v8568_v48 = vld [vmem:[#allocation2 + $0x140] sm:$0xff]  ;;  %v8574_v58 = vld [vmem:[#allocation2 + $0x150] sm:$0xff] }
  0x67   : > { %6929 = vmatmul.mubr.msk.f32.gmra.mrb[8].mxu0 %vm444_vm2, %v8403_v46  ;;  %6707 = vmatprep.mubr.msk.f32.mxu1 %vm444_vm2, %v8405_v47  ;;  %10226 = vst [vmem:[#allocation29_spill] sm:$0xff] %v8568_v48  ;;  %v8572_v55 = vld [vmem:[#allocation2 + $0x9a] sm:$0xff]  ;;  %10228 = vst [vmem:[#allocation31_spill] sm:$0xff] %v8574_v58  ;;  %v8576_v1 = vld [vmem:[#allocation2 + $0xaa] sm:$0xff] }
  0x68   : > { %6931 = vmatprep.mubr.msk.f32.mxu0 %vm444_vm2, %v8407_v49  ;;  %10227 = vst [vmem:[#allocation30_spill] sm:$0xff] %v8572_v55  ;;  %10229 = vst [vmem:[#allocation32_spill] sm:$0xff] %v8576_v1  ;;  %v8584_v2 = vld [vmem:[#allocation2 + $0x158] sm:$0xff]  ;;  %v8590_v9 = vld [vmem:[#allocation2 + $0x168] sm:$0xff] }
  0x69   : > { %10230 = vst [vmem:[#allocation33_spill] sm:$0xff] %v8584_v2  ;;  %10232 = vst [vmem:[#allocation35_spill] sm:$0xff] %v8590_v9  ;;  %v8592_v10 = vld [vmem:[#allocation2 + $0xc2] sm:$0xff]  ;;  %v8600_v13 = vld [vmem:[#allocation2 + $0x170] sm:$0xff] }
  0x6a   : > { %6708 = vmatmul.mubr.msk.f32.gmra.mrb[10].mxu1 %vm444_vm2, %v8415_v50  ;;  %10233 = vst [vmem:[#allocation36_spill] sm:$0xff] %v8592_v10  ;;  %10234 = vst [vmem:[#allocation37_spill] sm:$0xff] %v8600_v13  ;;  %v8604_v25 = vld [vmem:[#allocation2 + $0xca] sm:$0xff]  ;;  %v830_v20 = vld [vmem:[#allocation2 + $0x1] sm:$0xff] }
  0x6b   : > { %6932 = vmatmul.mubr.msk.f32.gmra.mrb[10].mxu0 %vm444_vm2, %v8419_v51  ;;  %6710 = vmatprep.mubr.msk.f32.mxu1 %vm444_vm2, %v8421_v52  ;;  %10235 = vst [vmem:[#allocation38_spill] sm:$0xff] %v8604_v25 }
  0x6c   : > { %6934 = vmatprep.mubr.msk.f32.mxu0 %vm444_vm2, %v8423_v53 }
  0x6e   : > { %6711 = vmatmul.mubr.msk.f32.gmra.mrb[12].mxu1 %vm444_vm2, %v8431_v54 }
  0x6f   : > { %6935 = vmatmul.mubr.msk.f32.gmra.mrb[12].mxu0 %vm444_vm2, %v8438_v56  ;;  %6713 = vmatprep.mubr.msk.f32.mxu1 %vm444_vm2, %v8440_v57 }
  0x70   : > { %6937 = vmatprep.mubr.msk.f32.mxu0 %vm444_vm2, %v8445_v59 }
  0x72   : > { %6714 = vmatmul.mubr.msk.f32.gmra.mrb[14].mxu1 %vm444_vm2, %v8455_v61 }
  0x73   : > { %6938 = vmatmul.mubr.msk.f32.gmra.mrb[14].mxu0 %vm444_vm2, %v8459_v62  ;;  %6716 = vmatprep.mubr.msk.f32.mxu1 %vm444_vm2, %v8461_v63 }
  0x74   : > { %6972 = vmatprep.mubr.msk.f32.mxu0 %vm444_vm2, %v8464_v0 }
  0x76   : > { %6717 = vmatmul.mubr.msk.f32.gmra.mrb[16].mxu1 %vm444_vm2, %v8478_v3 }
  0x77   : > { %6973 = vmatmul.mubr.msk.f32.vlgmr.msra.gmra.mrb[0].mxu0 %vm444_vm2, %v8482_v4  ;;  %6719 = vmatprep.mubr.msk.f32.mxu1 %vm444_vm2, %v8484_v5 }
  0x78   : > { %7239 = vmatpush3.bf16.msra.mxu0 %v8368_v38  ;;  %6975 = vmatprep.mubr.msk.f32.mxu0 %vm444_vm2, %v8486_v6  ;;  %v8556_v38 = vld [vmem:[#allocation2 + $0x82] sm:$0xff] }
  0x79   : > { %7241 = vmatprep.subr.bf16.mxu0 %v7240_v7  ;;  %10224 = vst [vmem:[#allocation27_spill] sm:$0xff] %v8556_v38 }
  0x7a   : > { %6720 = vmatmul.mubr.msk.f32.gmra.mrb[18].mxu1 %vm444_vm2, %v8500_v11 }
  0x7b   : > { %6976 = vmatmul.mubr.msk.f32.gmra.mrb[2].mxu0 %vm444_vm2, %v8505_v12  ;;  %6722 = vmatprep.mubr.msk.f32.mxu1 %vm444_vm2, %v8507_v15 }
  0x7c   : > { %6978 = vmatprep.mubr.msk.f32.mxu0 %vm444_vm2, %v8509_v16  ;;  %7243 = vmatpush3.bf16.msra.mxu0 %v7240_v7  ;;  %v8588_v7 = vld [vmem:[#allocation2 + $0xb2] sm:$0xff] }
  0x7d   : > { %7245 = vmatprep.subr.bf16.mxu0 %v8511_v17  ;;  %10231 = vst [vmem:[#allocation34_spill] sm:$0xff] %v8588_v7 }
  0x7e   : > { %6723 = vmatmul.mubr.msk.f32.gmra.mrb[20].mxu1 %vm444_vm2, %v8519_v18 }
  0x7f   : > { %6979 = vmatmul.mubr.msk.f32.gmra.mrb[4].mxu0 %vm444_vm2, %v8523_v22  ;;  %6725 = vmatprep.mubr.msk.f32.mxu1 %vm444_vm2, %v8525_v23 }
  0x80   : > { %6981 = vmatprep.mubr.msk.f32.mxu0 %vm444_vm2, %v8527_v24 }
  0x82   : > { %6726 = vmatmul.mubr.msk.f32.gmra.mrb[22].mxu1 %vm444_vm2, %v8536_v26 }
  0x83   : > { %6982 = vmatmul.mubr.msk.f32.gmra.mrb[6].mxu0 %vm444_vm2, %v8540_v27  ;;  %6728 = vmatprep.mubr.msk.f32.mxu1 %vm444_vm2, %v8542_v30 }
  0x84   : > { %6984 = vmatprep.mubr.msk.f32.mxu0 %vm444_vm2, %v8544_v33 }
  0x86   : > { %6729 = vmatmul.mubr.msk.f32.gmra.mrb[24].mxu1 %vm444_vm2, %v8552_v36 }
  0x87   : > { %6985 = vmatmul.mubr.msk.f32.gmra.mrb[8].mxu0 %vm444_vm2, %v8556_v38  ;;  %6731 = vmatprep.mubr.msk.f32.mxu1 %vm444_vm2, %v8558_v44 }
  0x88   : > { %6987 = vmatprep.mubr.msk.f32.mxu0 %vm444_vm2, %v8560_v45  ;;  %v8621_v45 = vld [vmem:[#allocation2 + $0xe2] sm:$0xff] }
  0x8a   : > { %6732 = vmatmul.mubr.msk.f32.gmra.mrb[26].mxu1 %vm444_vm2, %v8568_v48 }
  0x8b   : > { %6988 = vmatmul.mubr.msk.f32.gmra.mrb[10].mxu0 %vm444_vm2, %v8572_v55  ;;  %6734 = vmatprep.mubr.msk.f32.mxu1 %vm444_vm2, %v8574_v58  ;;  %v6073_v55 = vld [vmem:[%s10137_s1 + $0x58] sm:$0xff] }
  0x8c   : > { %6990 = vmatprep.mubr.msk.f32.mxu0 %vm444_vm2, %v8576_v1  ;;  %v8606_v1 = vld [vmem:[#allocation2 + $0xda] sm:$0xff] }
  0x8e   : > { %6735 = vmatmul.mubr.msk.f32.gmra.mrb[28].mxu1 %vm444_vm2, %v8584_v2 }
  0x8f   : > { %6991 = vmatmul.mubr.msk.f32.gmra.mrb[12].mxu0 %vm444_vm2, %v8588_v7  ;;  %6737 = vmatprep.mubr.msk.f32.mxu1 %vm444_vm2, %v8590_v9  ;;  %v6072_v7 = vld [vmem:[%s10137_s1 + $0x50] sm:$0xff]  ;;  %v6106_v9 = vld [vmem:[%s10137_s1 + $0x60] sm:$0xff] }
  0x90   : > { %6993 = vmatprep.mubr.msk.f32.mxu0 %vm444_vm2, %v8592_v10  ;;  %v831_v10 = vld [vmem:[#allocation2 + $0x9] sm:$0xff]  ;;  %v7208_v38 = vpack.c.bf16 %v6073_v55, %v6072_v7 }
  0x91   : > { %v8641_v55 = vld [vmem:[#allocation2 + $0x10a] sm:$0xff] }
  0x92   : > { %6738 = vmatmul.mubr.msk.f32.gmra.mrb[30].mxu1 %vm444_vm2, %v8600_v13  ;;  %v8623_v13 = vld [vmem:[#allocation2 + $0xf2] sm:$0xff] }
  0x93   : > { %6994 = vmatmul.mubr.msk.f32.gmra.mrb[14].mxu0 %vm444_vm2, %v8604_v25  ;;  %6748 = vmatprep.mubr.msk.f32.mxu1 %vm444_vm2, %v830_v20  ;;  %v6107_v25 = vld [vmem:[%s10137_s1 + $0x68] sm:$0xff]  ;;  %v8638_v20 = vld [vmem:[#allocation2 + $0xfa] sm:$0xff] }
  0x94   : > { %6996 = vmatprep.mubr.msk.f32.mxu0 %vm444_vm2, %v8606_v1  ;;  %v8643_v7 = vpack.c.bf16 %v6107_v25, %v6106_v9  ;;  %v8668_v25 = vld [vmem:[#allocation2 + $0x13a] sm:$0xff]  ;;  %v8680_v9 = vld [vmem:[#allocation2 + $0x152] sm:$0xff] }
  0x95   : > { %10237 = vst [vmem:[#allocation40_spill] sm:$0xff] %v8668_v25  ;;  %10239 = vst [vmem:[#allocation42_spill] sm:$0xff] %v8680_v9 }
  0x96   : > { %6749 = vmatmul.mubr.msk.f32.vlgmr.msra.gmra.mrb[0].mxu1 %vm444_vm2, %v831_v10  ;;  %v8690_v10 = vld [vmem:[#allocation2 + $0x15a] sm:$0xff] }
  0x97   : > { %6997 = vmatmul.mubr.msk.f32.gmra.mrb[16].mxu0 %vm444_vm2, %v8621_v45  ;;  %6751 = vmatprep.mubr.msk.f32.mxu1 %vm444_vm2, %v8299_v14  ;;  %v8653_v14 = vld [vmem:[#allocation2 + $0x112] sm:$0xff]  ;;  %10240 = vst [vmem:[#allocation43_spill] sm:$0xff] %v8690_v10 }
  0x98   : > { %6999 = vmatprep.mubr.msk.f32.mxu0 %vm444_vm2, %v8623_v13  ;;  %7207 = vmatpush3.bf16.msra.mxu1 %v8447_v60  ;;  %v8655_v60 = vld [vmem:[#allocation2 + $0x122] sm:$0xff] }
  0x99   : > { %7209 = vmatprep.subr.bf16.mxu1 %v7208_v38 }
  0x9a   : > { %6752 = vmatmul.mubr.msk.f32.gmra.mrb[2].mxu1 %vm444_vm2, %v8313_v19  ;;  %v8666_v19 = vld [vmem:[#allocation2 + $0x12a] sm:$0xff] }
  0x9b   : > { %7000 = vmatmul.mubr.msk.f32.gmra.mrb[18].mxu0 %vm444_vm2, %v8638_v20  ;;  %6754 = vmatprep.mubr.msk.f32.mxu1 %vm444_vm2, %v8317_v21  ;;  %10236 = vst [vmem:[#allocation39_spill] sm:$0xff] %v8666_v19 }
  0x9c   : > { %7002 = vmatprep.mubr.msk.f32.mxu0 %vm444_vm2, %v8641_v55  ;;  %7211 = vmatpush3.bf16.msra.mxu1 %v7208_v38  ;;  %v8678_v38 = vld [vmem:[#allocation2 + $0x142] sm:$0xff] }
  0x9d   : > { %7213 = vmatprep.subr.bf16.mxu1 %v8643_v7  ;;  %10238 = vst [vmem:[#allocation41_spill] sm:$0xff] %v8678_v38 }
  0x9e   : > { %6755 = vmatmul.mubr.msk.f32.gmra.mrb[4].mxu1 %vm444_vm2, %v8340_v28 }
  0x9f   : > { %7003 = vmatmul.mubr.msk.f32.gmra.mrb[20].mxu0 %vm444_vm2, %v8653_v14  ;;  %6757 = vmatprep.mubr.msk.f32.mxu1 %vm444_vm2, %v8344_v31 }
  0xa0   : > { %7005 = vmatprep.mubr.msk.f32.mxu0 %vm444_vm2, %v8655_v60 }
  0xa2   : > { %6758 = vmatmul.mubr.msk.f32.gmra.mrb[6].mxu1 %vm444_vm2, %v8359_v34 }
  0xa3   : > { %7006 = vmatmul.mubr.msk.f32.gmra.mrb[22].mxu0 %vm444_vm2, %v8666_v19  ;;  %6760 = vmatprep.mubr.msk.f32.mxu1 %vm444_vm2, %v8366_v37  ;;  %v8692_v19 = vld [vmem:[#allocation2 + $0x16a] sm:$0xff] }
  0xa4   : > { %7008 = vmatprep.mubr.msk.f32.mxu0 %vm444_vm2, %v8668_v25  ;;  %10241 = vst [vmem:[#allocation44_spill] sm:$0xff] %v8692_v19  ;;  %v8704_v25 = vld [vmem:[#allocation2 + $0x182] sm:$0xff] }
  0xa5   : > { %10243 = vst [vmem:[#allocation46_spill] sm:$0xff] %v8704_v25 }
  0xa6   : > { %6761 = vmatmul.mubr.msk.f32.gmra.mrb[8].mxu1 %vm444_vm2, %v8380_v40 }
  0xa7   : > { %7009 = vmatmul.mubr.msk.f32.gmra.mrb[24].mxu0 %vm444_vm2, %v8678_v38  ;;  %6763 = vmatprep.mubr.msk.f32.mxu1 %vm444_vm2, %v8385_v42  ;;  %v8702_v38 = vld [vmem:[#allocation2 + $0x172] sm:$0xff] }
  0xa8   : > { %7011 = vmatprep.mubr.msk.f32.mxu0 %vm444_vm2, %v8680_v9  ;;  %10242 = vst [vmem:[#allocation45_spill] sm:$0xff] %v8702_v38  ;;  %v6253_v9 = vld [vmem:[%s10137_s1 + $0xf8] sm:$0xff] }
  0xaa   : > { %6764 = vmatmul.mubr.msk.f32.gmra.mrb[10].mxu1 %vm444_vm2, %v8403_v46 }
  0xab   : > { %7012 = vmatmul.mubr.msk.f32.gmra.mrb[26].mxu0 %vm444_vm2, %v8690_v10  ;;  %6766 = vmatprep.mubr.msk.f32.mxu1 %vm444_vm2, %v8407_v49  ;;  %v8714_v10 = vld [vmem:[#allocation2 + $0x18a] sm:$0xff] }
  0xac   : > { %7014 = vmatprep.mubr.msk.f32.mxu0 %vm444_vm2, %v8692_v19  ;;  %10244 = vst [vmem:[#allocation47_spill] sm:$0xff] %v8714_v10  ;;  %v6252_v19 = vld [vmem:[%s10137_s1 + $0xf0] sm:$0xff] }
  0xae   : > { %6767 = vmatmul.mubr.msk.f32.gmra.mrb[12].mxu1 %vm444_vm2, %v8419_v51 }
  0xaf   : > { %7015 = vmatmul.mubr.msk.f32.gmra.mrb[28].mxu0 %vm444_vm2, %v8702_v38  ;;  %6769 = vmatprep.mubr.msk.f32.mxu1 %vm444_vm2, %v8423_v53  ;;  %v7248_v38 = vpack.c.bf16 %v6253_v9, %v6252_v19  ;;  %v8749_v19 = vld [vmem:[#allocation2 + $0xf1] sm:$0xff] }
  0xb0   : > { %7017 = vmatprep.mubr.msk.f32.mxu0 %vm444_vm2, %v8704_v25  ;;  %v8730_v25 = vld [vmem:[#allocation2 + $0xd9] sm:$0xff] }
  0xb2   : > { %6770 = vmatmul.mubr.msk.f32.gmra.mrb[14].mxu1 %vm444_vm2, %v8438_v56  ;;  %v6286_v56 = vld [vmem:[%s10137_s1 + $0x100] sm:$0xff] }
  0xb3   : > { %7018 = vmatmul.mubr.msk.f32.gmra.mrb[30].mxu0 %vm444_vm2, %v8714_v10  ;;  %6772 = vmatprep.mubr.msk.f32.mxu1 %vm444_vm2, %v8445_v59  ;;  %v6287_v10 = vld [vmem:[%s10137_s1 + $0x108] sm:$0xff] }
  0xb4   : > { %7028 = vmatprep.mubr.msk.f32.mxu0 %vm444_vm2, %v8342_v29  ;;  %v8744_v29 = vld [vmem:[#allocation2 + $0xe1] sm:$0xff]  ;;  %v8751_v9 = vpack.c.bf16 %v6287_v10, %v6286_v56  ;;  %v8772_v56 = vld [vmem:[#allocation2 + $0x111] sm:$0xff] }
  0xb5   : > { %v8776_v10 = vld [vmem:[#allocation2 + $0x121] sm:$0xff] }
  0xb6   : > { %6773 = vmatmul.mubr.msk.f32.gmra.mrb[16].mxu1 %vm444_vm2, %v8459_v62 }
  0xb7   : > { %7029 = vmatmul.mubr.msk.f32.vlgmr.msra.gmra.mrb[0].mxu0 %vm444_vm2, %v8352_v32  ;;  %6775 = vmatprep.mubr.msk.f32.mxu1 %vm444_vm2, %v8730_v25  ;;  %v8759_v32 = vld [vmem:[#allocation2 + $0xf9] sm:$0xff] }
  0xb8   : > { %7247 = vmatpush3.bf16.msra.mxu0 %v8511_v17  ;;  %7031 = vmatprep.mubr.msk.f32.mxu0 %vm444_vm2, %v8361_v35  ;;  %v8763_v17 = vld [vmem:[#allocation2 + $0x109] sm:$0xff] }
  0xb9   : > { %7249 = vmatprep.subr.bf16.mxu0 %v7248_v38 }
  0xba   : > { %6776 = vmatmul.mubr.msk.f32.gmra.mrb[18].mxu1 %vm444_vm2, %v8744_v29 }
  0xbb   : > { %7032 = vmatmul.mubr.msk.f32.gmra.mrb[2].mxu0 %vm444_vm2, %v8376_v39  ;;  %6778 = vmatprep.mubr.msk.f32.mxu1 %vm444_vm2, %v8749_v19 }
  0xbc   : > { %7034 = vmatprep.mubr.msk.f32.mxu0 %vm444_vm2, %v8382_v41  ;;  %7251 = vmatpush3.bf16.msra.mxu0 %v7248_v38  ;;  %v8784_v38 = vld [vmem:[#allocation2 + $0x129] sm:$0xff] }
  0xbd   : > { %7253 = vmatprep.subr.bf16.mxu0 %v8751_v9 }
  0xbe   : > { %6779 = vmatmul.mubr.msk.f32.gmra.mrb[20].mxu1 %vm444_vm2, %v8759_v32 }
  0xbf   : > { %7035 = vmatmul.mubr.msk.f32.gmra.mrb[4].mxu0 %vm444_vm2, %v8393_v43  ;;  %6781 = vmatprep.mubr.msk.f32.mxu1 %vm444_vm2, %v8763_v17  ;;  %v8788_v43 = vld [vmem:[#allocation2 + $0x139] sm:$0xff] }
  0xc0   : > { %7037 = vmatprep.mubr.msk.f32.mxu0 %vm444_vm2, %v8405_v47  ;;  %v8800_v47 = vld [vmem:[#allocation2 + $0x151] sm:$0xff] }
  0xc2   : > { %6782 = vmatmul.mubr.msk.f32.gmra.mrb[22].mxu1 %vm444_vm2, %v8772_v56 }
  0xc3   : > { %7038 = vmatmul.mubr.msk.f32.gmra.mrb[6].mxu0 %vm444_vm2, %v8415_v50  ;;  %6784 = vmatprep.mubr.msk.f32.mxu1 %vm444_vm2, %v8776_v10  ;;  %v8796_v50 = vld [vmem:[#allocation2 + $0x141] sm:$0xff] }
  0xc4   : > { %7040 = vmatprep.mubr.msk.f32.mxu0 %vm444_vm2, %v8421_v52  ;;  %v8812_v52 = vld [vmem:[#allocation2 + $0x169] sm:$0xff] }
  0xc5   : > { %10245 = vst [vmem:[#allocation48_spill] sm:$0xff] %v8812_v52 }
  0xc6   : > { %6785 = vmatmul.mubr.msk.f32.gmra.mrb[24].mxu1 %vm444_vm2, %v8784_v38 }
  0xc7   : > { %7041 = vmatmul.mubr.msk.f32.gmra.mrb[8].mxu0 %vm444_vm2, %v8431_v54  ;;  %6787 = vmatprep.mubr.msk.f32.mxu1 %vm444_vm2, %v8788_v43  ;;  %v8808_v54 = vld [vmem:[#allocation2 + $0x159] sm:$0xff] }
  0xc8   : > { %7043 = vmatprep.mubr.msk.f32.mxu0 %vm444_vm2, %v8440_v57  ;;  %v1284_v57 = vld [vmem:[#allocation2 + $0x2] sm:$0xff] }
  0xca   : > { %6788 = vmatmul.mubr.msk.f32.gmra.mrb[26].mxu1 %vm444_vm2, %v8796_v50 }
  0xcb   : > { %7044 = vmatmul.mubr.msk.f32.gmra.mrb[10].mxu0 %vm444_vm2, %v8455_v61  ;;  %6790 = vmatprep.mubr.msk.f32.mxu1 %vm444_vm2, %v8800_v47  ;;  %v8820_v61 = vld [vmem:[#allocation2 + $0x171] sm:$0xff] }
  0xcc   : > { %7046 = vmatprep.mubr.msk.f32.mxu0 %vm444_vm2, %v8461_v63  ;;  %v6108_v63 = vld [vmem:[%s10137_s1 + $0x70] sm:$0xff] }
  0xce   : > { %6791 = vmatmul.mubr.msk.f32.gmra.mrb[28].mxu1 %vm444_vm2, %v8808_v54 }
  0xcf   : > { %7047 = vmatmul.mubr.msk.f32.gmra.mrb[12].mxu0 %vm444_vm2, %v8478_v3  ;;  %6793 = vmatprep.mubr.msk.f32.mxu1 %vm444_vm2, %v8812_v52  ;;  %v6109_v3 = vld [vmem:[%s10137_s1 + $0x78] sm:$0xff]  ;;  %v1285_v52 = vld [vmem:[#allocation2 + $0xa] sm:$0xff] }
  0xd0   : > { %7049 = vmatprep.mubr.msk.f32.mxu0 %vm444_vm2, %v8484_v5  ;;  %v7216_v5 = vpack.c.bf16 %v6109_v3, %v6108_v63  ;;  %v10248_v63 = vld [vmem:[#allocation27_spill] sm:$0xff]  ;;  %v10250_v3 = vld [vmem:[#allocation28_spill] sm:$0xff] }
  0xd2   : > { %6794 = vmatmul.mubr.msk.f32.gmra.mrb[30].mxu1 %vm444_vm2, %v8820_v61 }
  0xd3   : > { %7050 = vmatmul.mubr.msk.f32.gmra.mrb[14].mxu0 %vm444_vm2, %v8500_v11  ;;  %6804 = vmatprep.mubr.msk.f32.mxu1 %vm444_vm2, %v1284_v57  ;;  %v8878_v57 = vld [vmem:[#allocation2 + $0x180] sm:$0xff] }
  0xd4   : > { %7052 = vmatprep.mubr.msk.f32.mxu0 %vm444_vm2, %v8507_v15  ;;  %10247 = vst [vmem:[#allocation49_spill] sm:$0xff] %v8878_v57 }
  0xd6   : > { %6805 = vmatmul.mubr.msk.f32.vlgmr.msra.gmra.mrb[0].mxu1 %vm444_vm2, %v1285_v52  ;;  %v10246_v52 = vld [vmem:[#allocation35_spill] sm:$0xff] }
  0xd7   : > { %7053 = vmatmul.mubr.msk.f32.gmra.mrb[16].mxu0 %vm444_vm2, %v8519_v18  ;;  %6807 = vmatprep.mubr.msk.f32.mxu1 %vm444_vm2, %v8464_v0  ;;  %v10249_v0 = vld [vmem:[#allocation37_spill] sm:$0xff] }
  0xd8   : > { %7055 = vmatprep.mubr.msk.f32.mxu0 %vm444_vm2, %v8525_v23  ;;  %7215 = vmatpush3.bf16.msra.mxu1 %v8643_v7  ;;  %v10252_v7 = vld [vmem:[#allocation30_spill] sm:$0xff] }
  0xd9   : > { %7217 = vmatprep.subr.bf16.mxu1 %v7216_v5 }
  0xda   : > { %6808 = vmatmul.mubr.msk.f32.gmra.mrb[2].mxu1 %vm444_vm2, %v8482_v4  ;;  %v8888_v4 = vld [vmem:[#allocation2 + $0x188] sm:$0xff] }
  0xdb   : > { %7056 = vmatmul.mubr.msk.f32.gmra.mrb[18].mxu0 %vm444_vm2, %v8536_v26  ;;  %6810 = vmatprep.mubr.msk.f32.mxu1 %vm444_vm2, %v8486_v6  ;;  %10251 = vst [vmem:[#allocation27_spill] sm:$0xff] %v8888_v4 }
  0xdc   : > { %7058 = vmatprep.mubr.msk.f32.mxu0 %vm444_vm2, %v8542_v30  ;;  %7219 = vmatpush3.bf16.msra.mxu1 %v7216_v5  ;;  %v3132_v5 = vld [vmem:[#allocation2 + $0x198] sm:$0xff] }
  0xdd   : > { %7260 = vmatprep.subr.bf16.mxu1 %v8288_v8 }
  0xde   : > { %6811 = vmatmul.mubr.msk.f32.gmra.mrb[4].mxu1 %vm444_vm2, %v8505_v12 }
  0xdf   : > { %7059 = vmatmul.mubr.msk.f32.gmra.mrb[20].mxu0 %vm444_vm2, %v8552_v36  ;;  %6813 = vmatprep.mubr.msk.f32.mxu1 %vm444_vm2, %v8509_v16 }
  0xe0   : > { %7061 = vmatprep.mubr.msk.f32.mxu0 %vm444_vm2, %v8558_v44 }
  0xe2   : > { %6814 = vmatmul.mubr.msk.f32.gmra.mrb[6].mxu1 %vm444_vm2, %v8523_v22 }
  0xe3   : > { %7062 = vmatmul.mubr.msk.f32.gmra.mrb[22].mxu0 %vm444_vm2, %v8568_v48  ;;  %6816 = vmatprep.mubr.msk.f32.mxu1 %vm444_vm2, %v8527_v24  ;;  %v4756_v48 = vld [vmem:[#allocation3 + $0x8] sm:$0xff] }
  0xe4   : > { %7064 = vmatprep.mubr.msk.f32.mxu0 %vm444_vm2, %v8574_v58  ;;  %v6289_v58 = vld [vmem:[%s10137_s1 + $0x118] sm:$0xff] }
  0xe6   : > { %6817 = vmatmul.mubr.msk.f32.gmra.mrb[8].mxu1 %vm444_vm2, %v8540_v27 }
  0xe7   : > { %7065 = vmatmul.mubr.msk.f32.gmra.mrb[24].mxu0 %vm444_vm2, %v8584_v2  ;;  %6819 = vmatprep.mubr.msk.f32.mxu1 %vm444_vm2, %v8544_v33  ;;  %v10254_v2 = vld [vmem:[#allocation34_spill] sm:$0xff] }
  0xe8   : > { %7067 = vmatprep.mubr.msk.f32.mxu0 %vm444_vm2, %v10246_v52  ;;  %v10253_v52 = vld [vmem:[#allocation32_spill] sm:$0xff] }
  0xea   : > { %6820 = vmatmul.mubr.msk.f32.gmra.mrb[10].mxu1 %vm444_vm2, %v10248_v63 }
  0xeb   : > { %7068 = vmatmul.mubr.msk.f32.gmra.mrb[26].mxu0 %vm444_vm2, %v10249_v0  ;;  %6822 = vmatprep.mubr.msk.f32.mxu1 %vm444_vm2, %v10250_v3  ;;  %v3133_v0 = vld [vmem:[#allocation2 + $0x1a0] sm:$0xff] }
  0xec   : > { %7070 = vmatprep.mubr.msk.f32.mxu0 %vm444_vm2, %v8878_v57  ;;  %v6288_v57 = vld [vmem:[%s10137_s1 + $0x110] sm:$0xff] }
  0xee   : > { %6823 = vmatmul.mubr.msk.f32.gmra.mrb[12].mxu1 %vm444_vm2, %v10252_v7  ;;  %v4757_v7 = vld [vmem:[#allocation3 + $0x10] sm:$0xff] }
  0xef   : > { %7071 = vmatmul.mubr.msk.f32.gmra.mrb[28].mxu0 %vm444_vm2, %v8888_v4  ;;  %6825 = vmatprep.mubr.msk.f32.mxu1 %vm444_vm2, %v10253_v52  ;;  %v10255_v4 = vld [vmem:[#allocation36_spill] sm:$0xff]  ;;  %v4755_v52 = vld [vmem:[#allocation3] sm:$0xff] }
  0xf0   : > { %7073 = vmatprep.mubr.msk.f32.mxu0 %vm444_vm2, %v3132_v5  ;;  %4819 = vrot.lane.b32.xlu0 %v4755_v52, %s7982_s21  ;;  %v7256_v5 = vpack.c.bf16 %v6289_v58, %v6288_v57  ;;  %v10258_v58 = vld [vmem:[#allocation40_spill] sm:$0xff]  ;;  %v10260_v52 = vld [vmem:[#allocation21_spill] sm:$0xff]  ;;  %v10261_v57 = vld [vmem:[#allocation42_spill] sm:$0xff] }
  0xf1   : > { %4823 = vrot.lane.b32.xlu1 %v4757_v7, %s7982_s21  ;;  %v4769_v7 = vld [vmem:[#allocation3 + $0x70] sm:$0xff] }
  0xf2   : > { %6826 = vmatmul.mubr.msk.f32.gmra.mrb[14].mxu1 %vm444_vm2, %v10254_v2  ;;  %v10256_v2 = vld [vmem:[#allocation38_spill] sm:$0xff] }
  0xf3   : > { %7074 = vmatmul.mubr.msk.f32.gmra.mrb[30].mxu0 %vm444_vm2, %v3133_v0  ;;  %6828 = vmatprep.mubr.msk.f32.mxu1 %vm444_vm2, %v10255_v4  ;;  %v4758_v0 = vld [vmem:[#allocation3 + $0x18] sm:$0xff] }
  0xf4   : > { %7084 = vmatprep.mubr.msk.f32.mxu0 %vm444_vm2, %v8317_v21  ;;  %4821 = vrot.lane.b32.xlu0 %v4756_v48, %s7982_s21  ;;  %v4759_v21 = vld [vmem:[#allocation3 + $0x20] sm:$0xff]  ;;  %v4765_v48 = vld [vmem:[#allocation3 + $0x50] sm:$0xff] }
  0xf5   : > { %4825 = vrot.lane.b32.xlu1 %v4758_v0, %s7982_s21  ;;  %v4770_v0 = vld [vmem:[#allocation3 + $0x78] sm:$0xff] }
  0xf6   : > { %6829 = vmatmul.mubr.msk.f32.gmra.mrb[16].mxu1 %vm444_vm2, %v10256_v2 }
  0xf7   : > { %7085 = vmatmul.mubr.msk.f32.vlgmr.msra.gmra.mrb[0].mxu0 %vm444_vm2, %v8340_v28  ;;  %6831 = vmatprep.mubr.msk.f32.mxu1 %vm444_vm2, %v8606_v1  ;;  %v4760_v28 = vld [vmem:[#allocation3 + $0x28] sm:$0xff] }
  0xf8   : > { %7255 = vmatpush3.bf16.msra.mxu0 %v8751_v9  ;;  %7087 = vmatprep.mubr.msk.f32.mxu0 %vm444_vm2, %v8344_v31  ;;  %v4761_v31 = vld [vmem:[#allocation3 + $0x30] sm:$0xff]  ;;  %v4767_v9 = vld [vmem:[#allocation3 + $0x60] sm:$0xff] }
  0xf9   : > { %7257 = vmatprep.subr.bf16.mxu0 %v7256_v5  ;;  %4827 = vrot.lane.b32.xlu0 %v4759_v21, %s7982_s21  ;;  %v4771_v21 = vld [vmem:[#allocation3 + $0x80] sm:$0xff] }
  0xfa   : > { %6832 = vmatmul.mubr.msk.f32.gmra.mrb[18].mxu1 %vm444_vm2, %v8621_v45  ;;  %4829 = vrot.lane.b32.xlu1 %v4760_v28, %s7982_s21  ;;  %v10265_v28 = vld [vmem:[#allocation12_spill] sm:$0xff] }
  0xfb   : > { %7088 = vmatmul.mubr.msk.f32.gmra.mrb[2].mxu0 %vm444_vm2, %v8359_v34  ;;  %6834 = vmatprep.mubr.msk.f32.mxu1 %vm444_vm2, %v8623_v13  ;;  %v4762_v34 = vld [vmem:[#allocation3 + $0x38] sm:$0xff] }
  0xfc   : > { %7090 = vmatprep.mubr.msk.f32.mxu0 %vm444_vm2, %v8366_v37  ;;  %7259 = vmatpush3.bf16.msra.mxu0 %v7256_v5  ;;  %v4763_v37 = vld [vmem:[#allocation3 + $0x40] sm:$0xff]  ;;  %v10263_v5 = vld [vmem:[#allocation44_spill] sm:$0xff] }
  0xfd   : > { %4831 = vrot.lane.b32.xlu0 %v4761_v31, %s7982_s21  ;;  %v10266_v31 = vld [vmem:[#allocation13_spill] sm:$0xff] }
  0xfe   : > { %6835 = vmatmul.mubr.msk.f32.gmra.mrb[20].mxu1 %vm444_vm2, %v8638_v20  ;;  %4833 = vrot.lane.b32.xlu1 %v4762_v34, %s7982_s21  ;;  %v4773_v34 = vld [vmem:[#allocation3 + $0x90] sm:$0xff] }
  0xff   : > { %7091 = vmatmul.mubr.msk.f32.gmra.mrb[4].mxu0 %vm444_vm2, %v8380_v40  ;;  %6837 = vmatprep.mubr.msk.f32.mxu1 %vm444_vm2, %v8641_v55  ;;  %v4764_v40 = vld [vmem:[#allocation3 + $0x48] sm:$0xff] }
 0x100   : > { %7093 = vmatprep.mubr.msk.f32.mxu0 %vm444_vm2, %v8385_v42  ;;  %v10257_v42 = vld [vmem:[#allocation39_spill] sm:$0xff] }
 0x101   : > { %4835 = vrot.lane.b32.xlu0 %v4763_v37, %s7982_s21  ;;  %v10267_v37 = vld [vmem:[#allocation14_spill] sm:$0xff] }
 0x102   : > { %6838 = vmatmul.mubr.msk.f32.gmra.mrb[22].mxu1 %vm444_vm2, %v8653_v14  ;;  %4837 = vrot.lane.b32.xlu1 %v4764_v40, %s7982_s21  ;;  %v4774_v40 = vld [vmem:[#allocation3 + $0x98] sm:$0xff] }
 0x103   : > { %7094 = vmatmul.mubr.msk.f32.gmra.mrb[6].mxu0 %vm444_vm2, %v8403_v46  ;;  %6840 = vmatprep.mubr.msk.f32.mxu1 %vm444_vm2, %v8655_v60  ;;  %v4766_v46 = vld [vmem:[#allocation3 + $0x58] sm:$0xff] }
 0x104   : > { %7096 = vmatprep.mubr.msk.f32.mxu0 %vm444_vm2, %v8407_v49  ;;  %v10259_v49 = vld [vmem:[#allocation41_spill] sm:$0xff] }
 0x105   : > { %4839 = vrot.lane.b32.xlu0 %v4765_v48, %s7982_s21  ;;  %v10268_v48 = vld [vmem:[#allocation11_spill] sm:$0xff] }
 0x106   : > { %6841 = vmatmul.mubr.msk.f32.gmra.mrb[24].mxu1 %vm444_vm2, %v10257_v42  ;;  %4841 = vrot.lane.b32.xlu1 %v4766_v46, %s7982_s21  ;;  %v10269_v46 = vld [vmem:[#allocation15_spill] sm:$0xff] }
 0x107   : > { %7097 = vmatmul.mubr.msk.f32.gmra.mrb[8].mxu0 %vm444_vm2, %v8419_v51  ;;  %6843 = vmatprep.mubr.msk.f32.mxu1 %vm444_vm2, %v10258_v58  ;;  %v4768_v51 = vld [vmem:[#allocation3 + $0x68] sm:$0xff] }
 0x108   : > { %7099 = vmatprep.mubr.msk.f32.mxu0 %vm444_vm2, %v8423_v53  ;;  %v10262_v53 = vld [vmem:[#allocation43_spill] sm:$0xff] }
 0x109   : > { %4843 = vrot.lane.b32.xlu0 %v4767_v9, %s7982_s21  ;;  %v4775_v9 = vld [vmem:[#allocation3 + $0xa0] sm:$0xff] }
 0x10a   : > { %6844 = vmatmul.mubr.msk.f32.gmra.mrb[26].mxu1 %vm444_vm2, %v10259_v49  ;;  %4845 = vrot.lane.b32.xlu1 %v4768_v51, %s7982_s21  ;;  %v10270_v51 = vld [vmem:[#allocation16_spill] sm:$0xff] }
 0x10b   : > { %7100 = vmatmul.mubr.msk.f32.gmra.mrb[10].mxu0 %vm444_vm2, %v10260_v52  ;;  %6846 = vmatprep.mubr.msk.f32.mxu1 %vm444_vm2, %v10261_v57  ;;  %v4776_v52 = vld [vmem:[#allocation3 + $0xa8] sm:$0xff] }
 0x10c   : > { %7102 = vmatprep.mubr.msk.f32.mxu0 %vm444_vm2, %v8445_v59  ;;  %v10264_v59 = vld [vmem:[#allocation45_spill] sm:$0xff] }
 0x10d   : > { %4847 = vrot.lane.b32.xlu0 %v4769_v7, %s7982_s21  ;;  %v10271_v7 = vld [vmem:[#allocation17_spill] sm:$0xff] }
 0x10e   : > { %6847 = vmatmul.mubr.msk.f32.gmra.mrb[28].mxu1 %vm444_vm2, %v10262_v53  ;;  %4849 = vrot.lane.b32.xlu1 %v4770_v0, %s7982_s21  ;;  %v4780_v0 = vld [vmem:[#allocation3 + $0xc8] sm:$0xff] }
 0x10f   : > { %7103 = vmatmul.mubr.msk.f32.gmra.mrb[12].mxu0 %vm444_vm2, %v8459_v62  ;;  %6849 = vmatprep.mubr.msk.f32.mxu1 %vm444_vm2, %v10263_v5  ;;  %v4772_v62 = vld [vmem:[#allocation3 + $0x88] sm:$0xff] }
 0x110   : > { %7105 = vmatprep.mubr.msk.f32.mxu0 %vm444_vm2, %v8730_v25 }
 0x111   : > { %4851 = vrot.lane.b32.xlu0 %v4771_v21, %s7982_s21  ;;  %v10273_v21 = vld [vmem:[#allocation19_spill] sm:$0xff] }
 0x112   : > { %6850 = vmatmul.mubr.msk.f32.gmra.mrb[30].mxu1 %vm444_vm2, %v10264_v59  ;;  %4853 = vrot.lane.b32.xlu1 %v4772_v62, %s7982_s21  ;;  %v9044_v62 = vld [vmem:[#allocation2 + $0x181] sm:$0xff] }
 0x113   : > { %7106 = vmatmul.mubr.msk.f32.gmra.mrb[14].mxu0 %vm444_vm2, %v8744_v29  ;;  %6860 = vmatprep.mubr.msk.f32.mxu1 %vm444_vm2, %v10265_v28  ;;  %v10274_v28 = vld [vmem:[#allocation48_spill] sm:$0xff] }
 0x114   : > { %7108 = vmatprep.mubr.msk.f32.mxu0 %vm444_vm2, %v8749_v19 }
 0x115   : > { %4855 = vrot.lane.b32.xlu0 %v4773_v34, %s7982_s21  ;;  %v10276_v34 = vld [vmem:[#allocation22_spill] sm:$0xff] }
 0x116   : > { %6861 = vmatmul.mubr.msk.f32.vlgmr.msra.gmra.mrb[0].mxu1 %vm444_vm2, %v10266_v31  ;;  %4857 = vrot.lane.b32.xlu1 %v4774_v40, %s7982_s21  ;;  %v10275_v31 = vld [vmem:[#allocation20_spill] sm:$0xff] }
 0x117   : > { %7109 = vmatmul.mubr.msk.f32.gmra.mrb[16].mxu0 %vm444_vm2, %v8759_v32  ;;  %6863 = vmatprep.mubr.msk.f32.mxu1 %vm444_vm2, %v10267_v37  ;;  %v9054_v37 = vld [vmem:[#allocation2 + $0x189] sm:$0xff]  ;;  %v3586_v40 = vld [vmem:[#allocation2 + $0x199] sm:$0xff] }
 0x118   : > { %7111 = vmatprep.mubr.msk.f32.mxu0 %vm444_vm2, %v8763_v17  ;;  %7262 = vmatpush3.bf16.msra.mxu1 %v8288_v8  ;;  %v4777_v8 = vld [vmem:[#allocation3 + $0xb0] sm:$0xff] }
 0x119   : > { %7261 = vmatprep.subr.bf16.mxu1 %v10268_v48  ;;  %4859 = vrot.lane.b32.xlu0 %v4775_v9, %s7982_s21  ;;  %v3587_v9 = vld [vmem:[#allocation2 + $0x1a1] sm:$0xff] }
 0x11a   : > { %6864 = vmatmul.mubr.msk.f32.gmra.mrb[2].mxu1 %vm444_vm2, %v10269_v46  ;;  %4861 = vrot.lane.b32.xlu1 %v4776_v52, %s7982_s21  ;;  %v10278_v46 = vld [vmem:[#allocation24_spill] sm:$0xff]  ;;  %v10279_v52 = vld [vmem:[#allocation25_spill] sm:$0xff] }
 0x11b   : > { %7112 = vmatmul.mubr.msk.f32.gmra.mrb[18].mxu0 %vm444_vm2, %v8772_v56  ;;  %6866 = vmatprep.mubr.msk.f32.mxu1 %vm444_vm2, %v8361_v35  ;;  %v4778_v35 = vld [vmem:[#allocation3 + $0xb8] sm:$0xff] }
 0x11c   : > { %7114 = vmatprep.mubr.msk.f32.mxu0 %vm444_vm2, %v8776_v10  ;;  %7263 = vmatpush3.bf16.msra.mxu1 %v10268_v48  ;;  %v10277_v48 = vld [vmem:[#allocation23_spill] sm:$0xff] }
 0x11d   : > { %4863 = vrot.lane.b32.xlu0 %v4777_v8, %s7982_s21  ;;  %v10280_v8 = vld [vmem:[#allocation26_spill] sm:$0xff] }
 0x11e   : > { %6867 = vmatmul.mubr.msk.f32.gmra.mrb[4].mxu1 %vm444_vm2, %v8376_v39  ;;  %4865 = vrot.lane.b32.xlu1 %v4778_v35, %s7982_s21  ;;  %v4779_v39 = vld [vmem:[#allocation3 + $0xc0] sm:$0xff] }
 0x11f   : > { %7115 = vmatmul.mubr.msk.f32.gmra.mrb[20].mxu0 %vm444_vm2, %v8784_v38  ;;  %6869 = vmatprep.mubr.msk.f32.mxu1 %vm444_vm2, %v8382_v41  ;;  %v10272_v41 = vld [vmem:[#allocation18_spill] sm:$0xff] }
 0x120   : > { %7117 = vmatprep.mubr.msk.f32.mxu0 %vm444_vm2, %v8788_v43 }
 0x121   : > { %4867 = vrot.lane.b32.xlu0 %v4779_v39, %s7982_s21 }
 0x122   : > { %6870 = vmatmul.mubr.msk.f32.gmra.mrb[6].mxu1 %vm444_vm2, %v10270_v51  ;;  %4869 = vrot.lane.b32.xlu1 %v4780_v0, %s7982_s21 }
 0x123   : > { %7118 = vmatmul.mubr.msk.f32.gmra.mrb[22].mxu0 %vm444_vm2, %v8796_v50  ;;  %6872 = vmatprep.mubr.msk.f32.mxu1 %vm444_vm2, %v10271_v7  ;;  %v317_v7 = vld [vmem:[%s8087_s11 + $0x28] sm:$0xff] }
 0x124   : > { %7120 = vmatprep.mubr.msk.f32.mxu0 %vm444_vm2, %v8800_v47 }
 0x126   : > { %6873 = vmatmul.mubr.msk.f32.gmra.mrb[8].mxu1 %vm444_vm2, %v10272_v41 }
 0x127   : > { %7121 = vmatmul.mubr.msk.f32.gmra.mrb[24].mxu0 %vm444_vm2, %v8808_v54  ;;  %6875 = vmatprep.mubr.msk.f32.mxu1 %vm444_vm2, %v10273_v21  ;;  %v316_v21 = vld [vmem:[%s8087_s11 + $0x20] sm:$0xff] }
 0x128   : > { %7123 = vmatprep.mubr.msk.f32.mxu0 %vm444_vm2, %v10274_v28 }
 0x12a   : > { %6876 = vmatmul.mubr.msk.f32.gmra.mrb[10].mxu1 %vm444_vm2, %v10275_v31 }
 0x12b   : > { %7124 = vmatmul.mubr.msk.f32.gmra.mrb[26].mxu0 %vm444_vm2, %v8820_v61  ;;  %6878 = vmatprep.mubr.msk.f32.mxu1 %vm444_vm2, %v10276_v34 }
 0x12c   : > { %7126 = vmatprep.mubr.msk.f32.mxu0 %vm444_vm2, %v9044_v62 }
 0x12e   : > { %6879 = vmatmul.mubr.msk.f32.gmra.mrb[12].mxu1 %vm444_vm2, %v10277_v48  ;;  %v319_v48 = vld [vmem:[%s8087_s11 + $0x38] sm:$0xff] }
 0x12f   : > { %7127 = vmatmul.mubr.msk.f32.gmra.mrb[28].mxu0 %vm444_vm2, %v9054_v37  ;;  %6881 = vmatprep.mubr.msk.f32.mxu1 %vm444_vm2, %v10278_v46 }
 0x130   : > { %7129 = vmatprep.mubr.msk.f32.mxu0 %vm444_vm2, %v3586_v40 }
 0x132   : > { %6882 = vmatmul.mubr.msk.f32.gmra.mrb[14].mxu1 %vm444_vm2, %v10279_v52  ;;  %v318_v52 = vld [vmem:[%s8087_s11 + $0x30] sm:$0xff] }
 0x133   : > { %7130 = vmatmul.mubr.msk.f32.gmra.mrb[30].mxu0 %vm444_vm2, %v3587_v9  ;;  %6884 = vmatprep.mubr.msk.f32.mxu1 %vm444_vm2, %v10280_v8 }
 0x134   : > { %7140 = vmatprep.mubr.msk.f32.mxu0 %vm444_vm2, %v8486_v6  ;;  %v10281_v6 = vld [vmem:[#allocation29_spill] sm:$0xff] }
 0x136   : > { %6885 = vmatmul.mubr.msk.f32.gmra.mrb[16].mxu1 %vm444_vm2, %v8500_v11  ;;  %v10282_v11 = vld [vmem:[#allocation30_spill] sm:$0xff] }
 0x137   : > { %7141 = vmatmul.mubr.msk.f32.vlgmr.msra.gmra.mrb[0].mxu0 %vm444_vm2, %v8505_v12  ;;  %6887 = vmatprep.mubr.msk.f32.mxu1 %vm444_vm2, %v8507_v15  ;;  %v10283_v12 = vld [vmem:[#allocation31_spill] sm:$0xff]  ;;  %v10284_v15 = vld [vmem:[#allocation32_spill] sm:$0xff] }
 0x138   : > { %7143 = vmatprep.mubr.msk.f32.mxu0 %vm444_vm2, %v8509_v16  ;;  %v10285_v16 = vld [vmem:[#allocation33_spill] sm:$0xff] }
 0x13a   : > { %6888 = vmatmul.mubr.msk.f32.gmra.mrb[18].mxu1 %vm444_vm2, %v8519_v18  ;;  %v10286_v18 = vld [vmem:[#allocation34_spill] sm:$0xff] }
 0x13b   : > { %7144 = vmatmul.mubr.msk.f32.gmra.mrb[2].mxu0 %vm444_vm2, %v8523_v22  ;;  %6890 = vmatprep.mubr.msk.f32.mxu1 %vm444_vm2, %v8525_v23  ;;  %v10287_v22 = vld [vmem:[#allocation35_spill] sm:$0xff]  ;;  %v10288_v23 = vld [vmem:[#allocation37_spill] sm:$0xff] }
 0x13c   : > { %7146 = vmatprep.mubr.msk.f32.mxu0 %vm444_vm2, %v8527_v24  ;;  %v10289_v24 = vld [vmem:[#allocation49_spill] sm:$0xff] }
 0x13e   : > { %6891 = vmatmul.mubr.msk.f32.gmra.mrb[20].mxu1 %vm444_vm2, %v8536_v26  ;;  %v10290_v26 = vld [vmem:[#allocation27_spill] sm:$0xff] }
 0x13f   : > { %7147 = vmatmul.mubr.msk.f32.gmra.mrb[4].mxu0 %vm444_vm2, %v8540_v27  ;;  %6893 = vmatprep.mubr.msk.f32.mxu1 %vm444_vm2, %v8542_v30  ;;  %v4041_v27 = vld [vmem:[#allocation2 + $0x1a2] sm:$0xff] }
 0x140   : > { %7149 = vmatprep.mubr.msk.f32.mxu0 %vm444_vm2, %v8544_v33  ;;  %v4786_v30 = vld [vmem:[#allocation3 + $0xf8] sm:$0xff] }
 0x142   : > { %6894 = vmatmul.mubr.msk.f32.gmra.mrb[22].mxu1 %vm444_vm2, %v8552_v36 }
 0x143   : > { %7150 = vmatmul.mubr.msk.f32.gmra.mrb[6].mxu0 %vm444_vm2, %v10248_v63  ;;  %6896 = vmatprep.mubr.msk.f32.mxu1 %vm444_vm2, %v8558_v44 }
 0x144   : > { %7152 = vmatprep.mubr.msk.f32.mxu0 %vm444_vm2, %v10250_v3  ;;  %v312_v3 = vld [vmem:[%s8087_s11] sm:$0xff] }
 0x146   : > { %6897 = vmatmul.mubr.msk.f32.gmra.mrb[24].mxu1 %vm444_vm2, %v10281_v6 }
 0x147   : > { %7153 = vmatmul.mubr.msk.f32.gmra.mrb[8].mxu0 %vm444_vm2, %v10282_v11  ;;  %6899 = vmatprep.mubr.msk.f32.mxu1 %vm444_vm2, %v10283_v12 }
 0x148   : > { %7155 = vmatprep.mubr.msk.f32.mxu0 %vm444_vm2, %v10284_v15 }
 0x14a   : > { %6900 = vmatmul.mubr.msk.f32.gmra.mrb[26].mxu1 %vm444_vm2, %v10285_v16 }
 0x14b   : > { %7156 = vmatmul.mubr.msk.f32.gmra.mrb[10].mxu0 %vm444_vm2, %v10286_v18  ;;  %6902 = vmatprep.mubr.msk.f32.mxu1 %vm444_vm2, %v10287_v22  ;;  %v321_v18 = vld [vmem:[%s8087_s11 + $0x48] sm:$0xff] }
 0x14c   : > { %7158 = vmatprep.mubr.msk.f32.mxu0 %vm444_vm2, %v10255_v4 }
 0x14e   : > { %6903 = vmatmul.mubr.msk.f32.gmra.mrb[28].mxu1 %vm444_vm2, %v10288_v23 }
 0x14f   : > { %7159 = vmatmul.mubr.msk.f32.gmra.mrb[12].mxu0 %vm444_vm2, %v10256_v2  ;;  %6905 = vmatprep.mubr.msk.f32.mxu1 %vm444_vm2, %v10289_v24  ;;  %v320_v24 = vld [vmem:[%s8087_s11 + $0x40] sm:$0xff] }
 0x150   : > { %7161 = vmatprep.mubr.msk.f32.mxu0 %vm444_vm2, %v8606_v1 }
 0x152   : > { %6906 = vmatmul.mubr.msk.f32.gmra.mrb[30].mxu1 %vm444_vm2, %v10290_v26 }
 0x153   : > { %7162 = vmatmul.mubr.msk.f32.gmra.mrb[14].mxu0 %vm444_vm2, %v8621_v45  ;;  %6940 = vmatprep.mubr.msk.f32.mxu1 %vm444_vm2, %v8730_v25 }
 0x154   : > { %7164 = vmatprep.mubr.msk.f32.mxu0 %vm444_vm2, %v8623_v13  ;;  %v4782_v13 = vld [vmem:[#allocation3 + $0xd8] sm:$0xff] }
 0x155   : > { %4873 = vrot.lane.b32.xlu1 %v4782_v13, %s7982_s21 }
 0x156   : > { %6941 = vmatmul.mubr.msk.f32.vlgmr.msra.gmra.mrb[16].mxu1 %vm444_vm2, %v8744_v29  ;;  %v4781_v29 = vld [vmem:[#allocation3 + $0xd0] sm:$0xff] }
 0x157   : > { %7165 = vmatmul.mubr.msk.f32.gmra.mrb[16].mxu0 %vm444_vm2, %v8638_v20  ;;  %6943 = vmatprep.mubr.msk.f32.mxu1 %vm444_vm2, %v8749_v19 }
 0x158   : > { %7167 = vmatprep.mubr.msk.f32.mxu0 %vm444_vm2, %v8641_v55  ;;  %4871 = vrot.lane.b32.xlu0 %v4781_v29, %s7982_s21 }
 0x15a   : > { %6944 = vmatmul.mubr.msk.f32.gmra.mrb[18].mxu1 %vm444_vm2, %v8759_v32  ;;  %v10291_v32 = vld [vmem:[#allocation46_spill] sm:$0xff] }
 0x15b   : > { %7168 = vmatmul.mubr.msk.f32.gmra.mrb[18].mxu0 %vm444_vm2, %v8653_v14  ;;  %6946 = vmatprep.mubr.msk.f32.mxu1 %vm444_vm2, %v8763_v17 }
 0x15c   : > { %7170 = vmatprep.mubr.msk.f32.mxu0 %vm444_vm2, %v8655_v60 }
 0x15e   : > { %6947 = vmatmul.mubr.msk.f32.gmra.mrb[20].mxu1 %vm444_vm2, %v8772_v56 }
 0x15f   : > { %7171 = vmatmul.mubr.msk.f32.gmra.mrb[20].mxu0 %vm444_vm2, %v10257_v42  ;;  %6949 = vmatprep.mubr.msk.f32.mxu1 %vm444_vm2, %v8776_v10 }
 0x160   : > { %7173 = vmatprep.mubr.msk.f32.mxu0 %vm444_vm2, %v10258_v58  ;;  %v315_v58 = vld [vmem:[%s8087_s11 + $0x18] sm:$0xff] }
 0x162   : > { %6950 = vmatmul.mubr.msk.f32.gmra.mrb[22].mxu1 %vm444_vm2, %v8784_v38  ;;  %v313_v38 = vld [vmem:[%s8087_s11 + $0x8] sm:$0xff] }
 0x163   : > { %7174 = vmatmul.mubr.msk.f32.gmra.mrb[22].mxu0 %vm444_vm2, %v10259_v49  ;;  %6952 = vmatprep.mubr.msk.f32.mxu1 %vm444_vm2, %v8788_v43  ;;  %v4040_v43 = vld [vmem:[#allocation2 + $0x19a] sm:$0xff] }
 0x164   : > { %7176 = vmatprep.mubr.msk.f32.mxu0 %vm444_vm2, %v10261_v57  ;;  %v314_v57 = vld [vmem:[%s8087_s11 + $0x10] sm:$0xff] }
 0x166   : > { %6953 = vmatmul.mubr.msk.f32.gmra.mrb[24].mxu1 %vm444_vm2, %v8796_v50  ;;  %v10292_v50 = vld [vmem:[#allocation47_spill] sm:$0xff] }
 0x167   : > { %7177 = vmatmul.mubr.msk.f32.gmra.mrb[24].mxu0 %vm444_vm2, %v10262_v53  ;;  %6955 = vmatprep.mubr.msk.f32.mxu1 %vm444_vm2, %v8800_v47  ;;  %v4784_v47 = vld [vmem:[#allocation3 + $0xe8] sm:$0xff] }
 0x168   : > { %7179 = vmatprep.mubr.msk.f32.mxu0 %vm444_vm2, %v10263_v5  ;;  %4877 = vrot.lane.b32.xlu1 %v4784_v47, %s7982_s21 }
 0x16a   : > { %6956 = vmatmul.mubr.msk.f32.gmra.mrb[26].mxu1 %vm444_vm2, %v8808_v54  ;;  %v4783_v54 = vld [vmem:[#allocation3 + $0xe0] sm:$0xff] }
 0x16b   : > { %7180 = vmatmul.mubr.msk.f32.gmra.mrb[26].mxu0 %vm444_vm2, %v10264_v59  ;;  %6958 = vmatprep.mubr.msk.f32.mxu1 %vm444_vm2, %v10274_v28 }
 0x16c   : > { %7182 = vmatprep.mubr.msk.f32.mxu0 %vm444_vm2, %v10291_v32  ;;  %4875 = vrot.lane.b32.xlu0 %v4783_v54, %s7982_s21 }
 0x16d   : > { %4881 = vrot.lane.b32.xlu1 %v4786_v30, %s7982_s21 }
 0x16e   : > { %6959 = vmatmul.mubr.msk.f32.gmra.mrb[28].mxu1 %vm444_vm2, %v8820_v61  ;;  %v4785_v61 = vld [vmem:[#allocation3 + $0xf0] sm:$0xff] }
 0x16f   : > { %7183 = vmatmul.mubr.msk.f32.gmra.mrb[28].mxu0 %vm444_vm2, %v10292_v50  ;;  %6961 = vmatprep.mubr.msk.f32.mxu1 %vm444_vm2, %v9044_v62 }
 0x170   : > { %7185 = vmatprep.mubr.msk.f32.mxu0 %vm444_vm2, %v4040_v43  ;;  %4879 = vrot.lane.b32.xlu0 %v4785_v61, %s7982_s21 }
 0x172   : > { %6962 = vmatmul.mubr.msk.f32.gmra.mrb[30].mxu1 %vm444_vm2, %v9054_v37 }
 0x173   : > { %7186 = vmatmul.mubr.msk.f32.gmra.mrb[30].mxu0 %vm444_vm2, %v4041_v27  ;;  %v323_v27 = vld [vmem:[%s8087_s11 + $0x58] sm:$0xff] }
 0x1e9   : > { %v6862_v33 = vpop.f32.mrb[0].mxu1 }
 0x1ea   : > { %v1970_v36 = vpop.f32.mrb[1].mxu1  ;;  %v7264_v4 = vadd.f32 %v6862_v33, %v313_v38 }
 0x1eb   : > { %v7266_v42 = vadd.f32 %v1970_v36, %v312_v3 }
 0x1ed   : > { %v6865_v44 = vpop.f32.mrb[2].mxu1 }
 0x1ee   : > { %v1980_v45 = vpop.f32.mrb[3].mxu1  ;;  %v7268_v35 = vadd.f32 %v6865_v44, %v315_v58  ;;  %v322_v44 = vld [vmem:[%s8087_s11 + $0x50] sm:$0xff]  ;;  %v325_v58 = vld [vmem:[%s8087_s11 + $0x68] sm:$0xff] }
 0x1ef   : > { %v7270_v39 = vadd.f32 %v1980_v45, %v314_v57 }
 0x1f1   : > { %v6868_v1 = vpop.f32.mrb[4].mxu1 }
 0x1f2   : > { %v1990_v2 = vpop.f32.mrb[5].mxu1  ;;  %v7272_v34 = vadd.f32 %v6868_v1, %v317_v7 }
 0x1f3   : > { %v7274_v40 = vadd.f32 %v1990_v2, %v316_v21 }
 0x1f5   : > { %v6871_v20 = vpop.f32.mrb[6].mxu1 }
 0x1f6   : > { %v2000_v55 = vpop.f32.mrb[7].mxu1  ;;  %v7276_v12 = vadd.f32 %v6871_v20, %v319_v48 }
 0x1f7   : > { %v7278_v16 = vadd.f32 %v2000_v55, %v318_v52 }
 0x1f9   : > { %v6874_v14 = vpop.f32.mrb[8].mxu1 }
 0x1fa   : > { %v2010_v60 = vpop.f32.mrb[9].mxu1  ;;  %v7280_v43 = vadd.f32 %v6874_v14, %v321_v18  ;;  %v4496_v14 = vlaneseq }
 0x1fb   : > { %v7282_v54 = vadd.f32 %v2010_v60, %v320_v24 }
 0x1fc   : > { %v9247_v7 = vand.u32 127, %v4496_v14 }
 0x1fd   : > { %v9198_v25 = vpop.f32.mrb[10].mxu1 }
 0x1fe   : > { %v9200_v19 = vpop.f32.mrb[11].mxu1  ;;  %v7284_v38 = vadd.f32 %v9198_v25, %v323_v27  ;;  %vm4498_vm3 = vcmp.lt.s32.totalorder %v9247_v7, 96 }
 0x201   : > { %v9202_v17 = vpop.f32.mrb[12].mxu1 }
 0x202   : > { %v9204_v56 = vpop.f32.mrb[13].mxu1 }
 0x205   : > { %v9206_v10 = vpop.f32.mrb[14].mxu1 }
 0x206   : > { %v9209_v63 = vpop.f32.mrb[15].mxu1 }
 0x20a   : > { %v7142_v49 = vpop.f32.mrb[0].mxu0 }
 0x20b   : > { %v7265_v53 = vadd.f32 %v7264_v4, %v7142_v49  ;;  %v4241_v5 = vpop.f32.mrb[1].mxu0 }
 0x20c   : > { %v7267_v59 = vadd.f32 %v7266_v42, %v4241_v5  ;;  %v7286_v42 = vadd.f32 %v9200_v19, %v322_v44  ;;  %v324_v5 = vld [vmem:[%s8087_s11 + $0x60] sm:$0xff] }
 0x20d   : > { %v6323_v51 = vmul.f32 -1.442695, %v7265_v53 }
 0x20e   : > { %v6322_v0 = vmul.f32 -1.442695, %v7267_v59  ;;  %v7145_v41 = vpop.f32.mrb[2].mxu0 }
 0x20f   : > { %7629 = vpow2.f32 %v6323_v51  ;;  %v7269_v28 = vadd.f32 %v7268_v35, %v7145_v41  ;;  %v4251_v62 = vpop.f32.mrb[3].mxu0  ;;  %v7288_v41 = vadd.f32 %v9202_v17, %v325_v58 }
 0x210   : > { %7631 = vpow2.f32 %v6322_v0  ;;  %v7271_v31 = vadd.f32 %v7270_v39, %v4251_v62  ;;  %v327_v62 = vld [vmem:[%s8087_s11 + $0x78] sm:$0xff] }
 0x211   : > { %7633 = vtanh.f32 %v7265_v53  ;;  %v6325_v37 = vmul.f32 -1.442695, %v7269_v28 }
 0x212   : > { %7635 = vtanh.f32 %v7267_v59  ;;  %v6324_v46 = vmul.f32 -1.442695, %v7271_v31  ;;  %v7148_v9 = vpop.f32.mrb[4].mxu0 }
 0x213   : > { %7637 = vpow2.f32 %v6325_v37  ;;  %v7273_v8 = vadd.f32 %v7272_v34, %v7148_v9  ;;  %v4261_v6 = vpop.f32.mrb[5].mxu0 }
 0x214   : > { %7639 = vpow2.f32 %v6324_v46  ;;  %v7275_v11 = vadd.f32 %v7274_v40, %v4261_v6  ;;  %v326_v40 = vld [vmem:[%s8087_s11 + $0x70] sm:$0xff]  ;;  %v7292_v6 = vadd.f32 %v9206_v10, %v327_v62 }
 0x215   : > { %7641 = vtanh.f32 %v7269_v28  ;;  %v6327_v15 = vmul.f32 -1.442695, %v7273_v8  ;;  %v7290_v28 = vadd.f32 %v9204_v56, %v324_v5 }
 0x216   : > { %7643 = vtanh.f32 %v7271_v31  ;;  %v6326_v22 = vmul.f32 -1.442695, %v7275_v11  ;;  %v7151_v23 = vpop.f32.mrb[6].mxu0 }
 0x217   : > { %7645 = vpow2.f32 %v6327_v15  ;;  %v7277_v26 = vadd.f32 %v7276_v12, %v7151_v23  ;;  %v4271_v13 = vpop.f32.mrb[7].mxu0  ;;  %v7294_v12 = vadd.f32 %v9209_v63, %v326_v40 }
 0x218   : > { %7647 = vpow2.f32 %v6326_v22  ;;  %v9220_v29 = vadd.f32 %v7278_v16, %v4271_v13 }
 0x219   : > { %v7630_v32 = vpop.eup %7629  ;;  %7649 = vtanh.f32 %v7273_v8  ;;  %v6329_v47 = vmul.f32 -1.442695, %v7277_v26 }
 0x21a   : > { %v7632_v50 = vpop.eup %7631  ;;  %v4596_v30 = vadd.f32 1.0, %v7630_v32  ;;  %7651 = vtanh.f32 %v7275_v11  ;;  %v6328_v61 = vmul.f32 -1.442695, %v9220_v29  ;;  %v7154_v33 = vpop.f32.mrb[8].mxu0  ;;  %v328_v32 = vld [vmem:[%s8087_s11 + $0x80] sm:$0xff] }
 0x21b   : > { %v9224_v36 = vpop.eup %7633  ;;  %v4595_v45 = vadd.f32 1.0, %v7632_v50  ;;  %7653 = vpow2.f32 %v6329_v47  ;;  %v9227_v1 = vadd.f32 %v7280_v43, %v7154_v33  ;;  %v4281_v2 = vpop.f32.mrb[9].mxu0 }
 0x21c   : > { %v9229_v20 = vpop.eup %7635  ;;  %7655 = vrcp.f32 %v4596_v30  ;;  %v9231_v55 = vadd.f32 %v7282_v54, %v4281_v2 }
 0x21d   : > { %v7638_v60 = vpop.eup %7637  ;;  %7657 = vrcp.f32 %v4595_v45  ;;  %v6331_v3 = vmul.f32 -1.442695, %v9227_v1 }
 0x21e   : > { %v7640_v4 = vpop.eup %7639  ;;  %v4598_v49 = vadd.f32 1.0, %v7638_v60  ;;  %7659 = vpow2.f32 %v6328_v61  ;;  %v7157_v57 = vpop.f32.mrb[10].mxu0  ;;  %v6330_v35 = vmul.f32 -1.442695, %v9231_v55 }
 0x21f   : > { %v9237_v53 = vpop.eup %7641  ;;  %v4597_v59 = vadd.f32 1.0, %v7640_v4  ;;  %7661 = vpow2.f32 %v6331_v3  ;;  %v9241_v51 = vadd.f32 %v7284_v38, %v7157_v57  ;;  %v4291_v25 = vpop.f32.mrb[11].mxu0  ;;  %v330_v3 = vld [vmem:[%s8087_s11 + $0x90] sm:$0xff] }
 0x220   : > { %v9243_v39 = vpop.eup %7643  ;;  %7663 = vrcp.f32 %v4598_v49  ;;  %v9245_v19 = vadd.f32 %v7286_v42, %v4291_v25 }
 0x221   : > { %v7646_v0 = vpop.eup %7645  ;;  %7665 = vrcp.f32 %v4597_v59  ;;  %v6333_v46 = vmul.f32 -1.442695, %v9241_v51 }
 0x222   : > { %v7648_v21 = vpop.eup %7647  ;;  %v4600_v31 = vadd.f32 1.0, %v7646_v0  ;;  %7667 = vtanh.f32 %v7277_v26  ;;  %v7160_v34 = vpop.f32.mrb[12].mxu0  ;;  %v6332_v16 = vmul.f32 -1.442695, %v9245_v19  ;;  %v329_v26 = vld [vmem:[%s8087_s11 + $0x88] sm:$0xff] }
 0x223   : > { %v9252_v37 = vpop.eup %7649  ;;  %v4599_v48 = vadd.f32 1.0, %v7648_v21  ;;  %7669 = vpow2.f32 %v6330_v35  ;;  %v9256_v9 = vadd.f32 %v7288_v41, %v7160_v34  ;;  %v4301_v52 = vpop.f32.mrb[13].mxu0 }
 0x224   : > { %v9258_v8 = vpop.eup %7651  ;;  %7671 = vrcp.f32 %v4600_v31  ;;  %v9261_v17 = vadd.f32 %v7290_v28, %v4301_v52  ;;  %v333_v28 = vld [vmem:[%s8087_s11 + $0xa8] sm:$0xff] }
 0x225   : > { %v7654_v56 = vpop.eup %7653  ;;  %7673 = vrcp.f32 %v4599_v48  ;;  %v6335_v30 = vmul.f32 -1.442695, %v9256_v9 }
 0x226   : > { %v7656_v11 = vpop.eup %7655  ;;  %v4602_v15 = vadd.f32 1.0, %v7654_v56  ;;  %7675 = vtanh.f32 %v9220_v29  ;;  %v7163_v18 = vpop.f32.mrb[14].mxu0  ;;  %v6334_v42 = vmul.f32 -1.442695, %v9261_v17 }
 0x227   : > { %v7658_v22 = vpop.eup %7657  ;;  %7677 = vpow2.f32 %v6333_v46  ;;  %v9267_v23 = vadd.f32 %v7292_v6, %v7163_v18  ;;  %v9272_v24 = vsel %vm4498_vm3, %v7656_v11, %v9224_v36  ;;  %v4311_v10 = vpop.f32.mrb[15].mxu0 }
 0x228   : > { %v7660_v13 = vpop.eup %7659  ;;  %7679 = vrcp.f32 %v4602_v15  ;;  %v9278_v63 = vsel %vm4498_vm3, %v7658_v22, %v9229_v20  ;;  %v9280_v29 = vadd.f32 %v7294_v12, %v4311_v10  ;;  %4981 = vrot.lane.b32.xlu1 %v9272_v24, %s7982_s21  ;;  %v331_v20 = vld [vmem:[%s8087_s11 + $0x98] sm:$0xff] }
 0x229   : > { %v7662_v43 = vpop.eup %7661  ;;  %v4601_v47 = vadd.f32 1.0, %v7660_v13  ;;  %7681 = vtanh.f32 %v9227_v1  ;;  %4979 = vrot.lane.b32.xlu0 %v9278_v63, %s7982_s21  ;;  %v6942_v50 = vpop.f32.mrb[16].mxu1  ;;  %v335_v22 = vld [vmem:[%s8087_s11 + $0xb8] sm:$0xff] }
 0x22a   : > { %v7664_v54 = vpop.eup %7663  ;;  %v4604_v27 = vadd.f32 1.0, %v7662_v43  ;;  %7683 = vpow2.f32 %v6332_v16  ;;  %v7296_v61 = vadd.f32 %v6942_v50, %v329_v26  ;;  %v7166_v33 = vpop.f32.mrb[16].mxu0  ;;  %v334_v50 = vld [vmem:[%s8087_s11 + $0xb0] sm:$0xff] }
 0x22b   : > { %v2504_v36 = vpop.f32.mrb[17].mxu1  ;;  %v7666_v44 = vpop.eup %7665  ;;  %7685 = vrcp.f32 %v4601_v47  ;;  %v9292_v45 = vsel %vm4498_vm3, %v7664_v54, %v9237_v53 }
 0x22c   : > { %v7298_v1 = vadd.f32 %v2504_v36, %v328_v32  ;;  %v4321_v2 = vpop.f32.mrb[17].mxu0  ;;  %v7668_v14 = vpop.eup %7667  ;;  %7687 = vrcp.f32 %v4604_v27  ;;  %v9298_v60 = vsel %vm4498_vm3, %v7666_v44, %v9243_v39  ;;  %v9300_v38 = vadd.f32 %v7296_v61, %v7166_v33  ;;  %4985 = vrot.lane.b32.xlu1 %v9292_v45, %s7982_s21  ;;  %v337_v44 = vld [vmem:[%s8087_s11 + $0xc8] sm:$0xff] }
 0x22d   : > { %v7670_v4 = vpop.eup %7669  ;;  %4983 = vrot.lane.b32.xlu0 %v9298_v60, %s7982_s21  ;;  %v6945_v49 = vpop.f32.mrb[18].mxu1  ;;  %7689 = vpow2.f32 %v6335_v30  ;;  %v6337_v39 = vmul.f32 -1.442695, %v9267_v23 }
 0x22e   : > { %v9306_v58 = vadd.f32 %v7298_v1, %v4321_v2  ;;  %v7672_v57 = vpop.eup %7671  ;;  %v4603_v53 = vadd.f32 1.0, %v7670_v4  ;;  %v7300_v5 = vadd.f32 %v6945_v49, %v331_v20  ;;  %v7169_v59 = vpop.f32.mrb[18].mxu0  ;;  %7691 = vtanh.f32 %v9231_v55  ;;  %v332_v55 = vld [vmem:[%s8087_s11 + $0xa0] sm:$0xff] }
 0x22f   : > { %v2514_v35 = vpop.f32.mrb[19].mxu1  ;;  %v7674_v25 = vpop.eup %7673  ;;  %v9315_v0 = vsel %vm4498_vm3, %v7672_v57, %v9252_v37  ;;  %v6339_v32 = vmul.f32 -1.442695, %v9300_v38 }
 0x230   : > { %v7302_v41 = vadd.f32 %v2514_v35, %v330_v3  ;;  %v4331_v21 = vpop.f32.mrb[19].mxu0  ;;  %v7676_v62 = vpop.eup %7675  ;;  %7693 = vrcp.f32 %v4603_v53  ;;  %v9318_v31 = vadd.f32 %v7300_v5, %v7169_v59  ;;  %v9323_v34 = vsel %vm4498_vm3, %v7674_v25, %v9258_v8  ;;  %4989 = vrot.lane.b32.xlu1 %v9315_v0, %s7982_s21  ;;  %v336_v3 = vld [vmem:[%s8087_s11 + $0xc0] sm:$0xff] }
 0x231   : > { %v7678_v40 = vpop.eup %7677  ;;  %7695 = vpow2.f32 %v6334_v42  ;;  %4987 = vrot.lane.b32.xlu0 %v9323_v34, %s7982_s21  ;;  %v6948_v48 = vpop.f32.mrb[20].mxu1  ;;  %v6336_v8 = vmul.f32 -1.442695, %v9280_v29  ;;  %v6338_v2 = vmul.f32 -1.442695, %v9306_v58 }
 0x232   : > { %v9328_v37 = vadd.f32 %v7302_v41, %v4331_v21  ;;  %v7680_v46 = vpop.eup %7679  ;;  %v4606_v52 = vadd.f32 1.0, %v7678_v40  ;;  %7697 = vtanh.f32 %v9241_v51  ;;  %v7304_v56 = vadd.f32 %v6948_v48, %v333_v28  ;;  %v7172_v6 = vpop.f32.mrb[20].mxu0  ;;  %v339_v28 = vld [vmem:[%s8087_s11 + $0xd8] sm:$0xff] }
 0x233   : > { %v2524_v11 = vpop.f32.mrb[21].mxu1  ;;  %v7682_v12 = vpop.eup %7681  ;;  %7699 = vpow2.f32 %v6337_v39  ;;  %v9336_v15 = vsel %vm4498_vm3, %v7680_v46, %v7668_v14  ;;  %v6341_v25 = vmul.f32 -1.442695, %v9318_v31 }
 0x234   : > { %v7306_v16 = vadd.f32 %v2524_v11, %v332_v55  ;;  %v4341_v18 = vpop.f32.mrb[21].mxu0  ;;  %v7684_v10 = vpop.eup %7683  ;;  %7701 = vrcp.f32 %v4606_v52  ;;  %v9339_v26 = vadd.f32 %v7304_v56, %v7172_v6  ;;  %4993 = vrot.lane.b32.xlu1 %v9336_v15, %s7982_s21  ;;  %v6340_v11 = vmul.f32 -1.442695, %v9328_v37 }
 0x235   : > { %v7686_v51 = vpop.eup %7685  ;;  %v4605_v13 = vadd.f32 1.0, %v7684_v10  ;;  %7703 = vtanh.f32 %v9245_v19  ;;  %v6951_v47 = vpop.f32.mrb[22].mxu1 }
 0x236   : > { %v9345_v43 = vadd.f32 %v7306_v16, %v4341_v18  ;;  %v7688_v54 = vpop.eup %7687  ;;  %7705 = vpow2.f32 %v6336_v8  ;;  %v9350_v27 = vsel %vm4498_vm3, %v7686_v51, %v7676_v62  ;;  %v7308_v30 = vadd.f32 %v6951_v47, %v335_v22  ;;  %v7175_v61 = vpop.f32.mrb[22].mxu0  ;;  %v338_v8 = vld [vmem:[%s8087_s11 + $0xd0] sm:$0xff]  ;;  %v341_v47 = vld [vmem:[%s8087_s11 + $0xe8] sm:$0xff] }
 0x237   : > { %v2534_v33 = vpop.f32.mrb[23].mxu1  ;;  %7707 = vrcp.f32 %v4605_v13  ;;  %4991 = vrot.lane.b32.xlu0 %v9350_v27, %s7982_s21  ;;  %v9356_v19 = vsel %vm4498_vm3, %v7688_v54, %v7682_v12  ;;  %v4351_v36 = vpop.f32.mrb[23].mxu0 }
 0x238   : > { %v7690_v1 = vpop.eup %7689  ;;  %7709 = vtanh.f32 %v9256_v9  ;;  %v9361_v20 = vadd.f32 %v7308_v30, %v7175_v61  ;;  %v7310_v14 = vadd.f32 %v2534_v33, %v334_v50  ;;  %4997 = vrot.lane.b32.xlu1 %v9356_v19, %s7982_s21  ;;  %v9378_v40 = vpop.permute.xlu1 %4823  ;;  %v340_v50 = vld [vmem:[%s8087_s11 + $0xe0] sm:$0xff]  ;;  %v6343_v33 = vmul.f32 -1.442695, %v9339_v26 }
 0x239   : > { %v7692_v4 = vpop.eup %7691  ;;  %v4608_v42 = vadd.f32 1.0, %v7690_v1  ;;  %7711 = vpow2.f32 %v6339_v32  ;;  %v6954_v49 = vpop.f32.mrb[24].mxu1 }
 0x23a   : > { %v7694_v57 = vpop.eup %7693  ;;  %7713 = vtanh.f32 %v9261_v17  ;;  %v9367_v53 = vadd.f32 %v7310_v14, %v4351_v36  ;;  %v7312_v9 = vadd.f32 %v6954_v49, %v337_v44  ;;  %v7178_v5 = vpop.f32.mrb[24].mxu0 }
 0x23b   : > { %v2544_v59 = vpop.f32.mrb[25].mxu1  ;;  %v7696_v35 = vpop.eup %7695  ;;  %7715 = vrcp.f32 %v4608_v42  ;;  %v9372_v39 = vsel %vm4498_vm3, %v7694_v57, %v7692_v4  ;;  %v343_v57 = vld [vmem:[%s8087_s11 + $0xf8] sm:$0xff] }
 0x23c   : > { %v7314_v41 = vadd.f32 %v2544_v59, %v336_v3  ;;  %v4361_v21 = vpop.f32.mrb[25].mxu0  ;;  %v7698_v62 = vpop.eup %7697  ;;  %v4607_v55 = vadd.f32 1.0, %v7696_v35  ;;  %7717 = vpow2.f32 %v6338_v2  ;;  %4995 = vrot.lane.b32.xlu0 %v9372_v39, %s7982_s21  ;;  %v9380_v48 = vadd.f32 %v7312_v9, %v7178_v5 }
 0x23d   : > { %v7700_v17 = vpop.eup %7699  ;;  %7719 = vtanh.f32 %v9267_v23  ;;  %v6957_v52 = vpop.f32.mrb[26].mxu1  ;;  %v6342_v35 = vmul.f32 -1.442695, %v9345_v43 }
 0x23e   : > { %v9382_v46 = vadd.f32 %v7314_v41, %v4361_v21  ;;  %v7702_v56 = vpop.eup %7701  ;;  %7721 = vrcp.f32 %v4607_v55  ;;  %v4610_v6 = vadd.f32 1.0, %v7700_v17  ;;  %v7316_v12 = vadd.f32 %v6957_v52, %v339_v28  ;;  %v7181_v16 = vpop.f32.mrb[26].mxu0 }
 0x23f   : > { %v2554_v18 = vpop.f32.mrb[27].mxu1  ;;  %v7704_v22 = vpop.eup %7703  ;;  %7723 = vpow2.f32 %v6341_v25  ;;  %v9388_v23 = vsel %vm4498_vm3, %v7702_v56, %v7698_v62  ;;  %v342_v62 = vld [vmem:[%s8087_s11 + $0xf0] sm:$0xff]  ;;  %s7983_s11 = smov 96  }
 0x240   : > { %v4371_v10 = vpop.f32.mrb[27].mxu0  ;;  %v7706_v51 = vpop.eup %7705  ;;  %7725 = vrcp.f32 %v4610_v6  ;;  %5001 = vrot.lane.b32.xlu1 %v9388_v23, %s7982_s21  ;;  %v9392_v13 = vadd.f32 %v7316_v12, %v7181_v16  ;;  %v7318_v32 = vadd.f32 %v2554_v18, %v338_v8  ;;  %v6345_v12 = vmul.f32 -1.442695, %v9361_v20 }
 0x241   : > { %v7708_v54 = vpop.eup %7707  ;;  %v9396_v30 = vpop.permute.xlu0 %4819  ;;  %v4609_v61 = vadd.f32 1.0, %v7706_v51  ;;  %7727 = vtanh.f32 %v9280_v29 }
 0x242   : > { %v6960_v36 = vpop.f32.mrb[28].mxu1  ;;  %v7710_v44 = vpop.eup %7709  ;;  %7729 = vpow2.f32 %v6340_v11  ;;  %v9402_v1 = vsel %vm4498_vm3, %v7708_v54, %v7704_v22  ;;  %v9404_v2 = vadd.f32 %v7318_v32, %v4371_v10  ;;  %v6344_v54 = vmul.f32 -1.442695, %v9367_v53 }
 0x243   : > { %v7184_v14 = vpop.f32.mrb[28].mxu0  ;;  %v2564_v3 = vpop.f32.mrb[29].mxu1  ;;  %7731 = vrcp.f32 %v4609_v61  ;;  %4999 = vrot.lane.b32.xlu0 %v9402_v1, %s7982_s21  ;;  %v7320_v29 = vadd.f32 %v6960_v36, %v341_v47 }
 0x244   : > { %v7712_v4 = vpop.eup %7711  ;;  %v7322_v42 = vadd.f32 %v2564_v3, %v340_v50  ;;  %v4381_v49 = vpop.f32.mrb[29].mxu0  ;;  %7733 = vtanh.f32 %v9300_v38 }
 0x245   : > { %v7714_v9 = vpop.eup %7713  ;;  %v4612_v5 = vadd.f32 1.0, %v7712_v4  ;;  %v9410_v59 = vpop.permute.xlu1 %4825  ;;  %7735 = vpow2.f32 %v6343_v33  ;;  %v9413_v41 = vadd.f32 %v7320_v29, %v7184_v14  ;;  %v6347_v4 = vmul.f32 -1.442695, %v9380_v48 }
 0x246   : > { %v7716_v25 = vpop.eup %7715  ;;  %v9415_v21 = vadd.f32 %v7322_v42, %v4381_v49  ;;  %v6963_v28 = vpop.f32.mrb[30].mxu1 }
 0x247   : > { %v7718_v55 = vpop.eup %7717  ;;  %7737 = vrcp.f32 %v4612_v5  ;;  %v9420_v17 = vsel %vm4498_vm3, %v7716_v25, %v7710_v44  ;;  %v7324_v52 = vadd.f32 %v6963_v28, %v343_v57  ;;  %v7187_v38 = vpop.f32.mrb[30].mxu0 }
 0x248   : > { %v2574_v8 = vpop.f32.mrb[31].mxu1  ;;  %v7720_v56 = vpop.eup %7719  ;;  %v4611_v11 = vadd.f32 1.0, %v7718_v55  ;;  %7739 = vtanh.f32 %v9306_v58  ;;  %5005 = vrot.lane.b32.xlu1 %v9420_v17, %s7982_s21 }
 0x249   : > { %v9422_v6 = vpop.permute.xlu0 %4821  ;;  %v4391_v16 = vpop.f32.mrb[31].mxu0  ;;  %7741 = vpow2.f32 %v6342_v35  ;;  %v9428_v22 = vadd.f32 %v7324_v52, %v7187_v38  ;;  %v7326_v10 = vadd.f32 %v2574_v8, %v342_v62 }
 0x24a   : > { %v7722_v18 = vpop.eup %7721  ;;  %7743 = vrcp.f32 %v4611_v11  ;;  %v9435_v58 = vpop.permute.xlu1 %4829 }
 0x24b   : > { %v7724_v51 = vpop.eup %7723  ;;  %v9432_v32 = vsel %vm4498_vm3, %v7722_v18, %v7714_v9  ;;  %7745 = vtanh.f32 %v9318_v31  ;;  %v9446_v44 = vadd.f32 %v7326_v10, %v4391_v16 }
 0x24c   : > { %v7726_v47 = vpop.eup %7725  ;;  %v4614_v50 = vadd.f32 1.0, %v7724_v51  ;;  %5003 = vrot.lane.b32.xlu0 %v9432_v32, %s7982_s21  ;;  %7747 = vpow2.f32 %v6345_v12 }
 0x24d   : > { %v7728_v61 = vpop.eup %7727  ;;  %v9440_v33 = vpop.permute.xlu0 %4827  ;;  %v9444_v36 = vsel %vm4498_vm3, %v7726_v47, %v7720_v56 }
 0x24e   : > { %v7730_v14 = vpop.eup %7729  ;;  %7749 = vrcp.f32 %v4614_v50  ;;  %5009 = vrot.lane.b32.xlu1 %v9444_v36, %s7982_s21  ;;  %v9459_v5 = vpop.permute.xlu1 %4833 }
 0x24f   : > { %v7732_v31 = vpop.eup %7731  ;;  %v4613_v3 = vadd.f32 1.0, %v7730_v14  ;;  %7751 = vtanh.f32 %v9328_v37  ;;  %v6346_v37 = vmul.f32 -1.442695, %v9382_v46 }
 0x250   : > { %v7734_v29 = vpop.eup %7733  ;;  %7753 = vpow2.f32 %v6344_v54  ;;  %v9454_v42 = vsel %vm4498_vm3, %v7732_v31, %v7728_v61 }
 0x251   : > { %v7736_v49 = vpop.eup %7735  ;;  %7755 = vrcp.f32 %v4613_v3  ;;  %5007 = vrot.lane.b32.xlu0 %v9454_v42, %s7982_s21  ;;  %v9462_v25 = vpop.permute.xlu0 %4831 }
 0x252   : > { %v7738_v57 = vpop.eup %7737  ;;  %v4616_v9 = vadd.f32 1.0, %v7736_v49  ;;  %7757 = vtanh.f32 %v9339_v26  ;;  %v6349_v26 = vmul.f32 -1.442695, %v9392_v13  ;;  %v9479_v16 = vpop.permute.xlu1 %4837 }
 0x253   : > { %v7740_v35 = vpop.eup %7739  ;;  %7759 = vpow2.f32 %v6347_v4  ;;  %v9466_v28 = vsel %vm4498_vm3, %v7738_v57, %v7734_v29 }
 0x254   : > { %v7742_v62 = vpop.eup %7741  ;;  %7761 = vrcp.f32 %v4616_v9  ;;  %5013 = vrot.lane.b32.xlu1 %v9466_v28, %s7982_s21 }
 0x255   : > { %v7744_v55 = vpop.eup %7743  ;;  %v4615_v52 = vadd.f32 1.0, %v7742_v62  ;;  %7763 = vtanh.f32 %v9345_v43  ;;  %v6348_v43 = vmul.f32 -1.442695, %v9404_v2  ;;  %v9482_v10 = vpop.permute.xlu0 %4835 }
 0x256   : > { %v7746_v38 = vpop.eup %7745  ;;  %7765 = vpow2.f32 %v6346_v37  ;;  %v9474_v8 = vsel %vm4498_vm3, %v7744_v55, %v7740_v35  ;;  %v9499_v29 = vpop.permute.xlu1 %4841 }
 0x257   : > { %v7748_v56 = vpop.eup %7747  ;;  %7767 = vrcp.f32 %v4615_v52  ;;  %5011 = vrot.lane.b32.xlu0 %v9474_v8, %s7982_s21 }
 0x258   : > { %v7750_v11 = vpop.eup %7749  ;;  %v4618_v12 = vadd.f32 1.0, %v7748_v56  ;;  %7769 = vtanh.f32 %v9361_v20  ;;  %v6351_v20 = vmul.f32 -1.442695, %v9413_v41 }
 0x259   : > { %v7752_v18 = vpop.eup %7751  ;;  %7771 = vpow2.f32 %v6349_v26  ;;  %v9486_v51 = vsel %vm4498_vm3, %v7750_v11, %v7746_v38  ;;  %v9502_v57 = vpop.permute.xlu0 %4839 }
 0x25a   : > { %v7754_v47 = vpop.eup %7753  ;;  %7773 = vrcp.f32 %v4618_v12  ;;  %5017 = vrot.lane.b32.xlu1 %v9486_v51, %s7982_s21  ;;  %v9519_v11 = vpop.permute.xlu1 %4845 }
 0x25b   : > { %v7756_v50 = vpop.eup %7755  ;;  %v4617_v54 = vadd.f32 1.0, %v7754_v47  ;;  %7775 = vtanh.f32 %v9367_v53  ;;  %v6350_v53 = vmul.f32 -1.442695, %v9415_v21 }
 0x25c   : > { %v7758_v61 = vpop.eup %7757  ;;  %7777 = vpow2.f32 %v6348_v43  ;;  %v9494_v14 = vsel %vm4498_vm3, %v7756_v50, %v7752_v18 }
 0x25d   : > { %v7760_v31 = vpop.eup %7759  ;;  %7779 = vrcp.f32 %v4617_v54  ;;  %5015 = vrot.lane.b32.xlu0 %v9494_v14, %s7982_s21  ;;  %v9522_v43 = vpop.permute.xlu0 %4843 }
 0x25e   : > { %v7762_v3 = vpop.eup %7761  ;;  %v4620_v4 = vadd.f32 1.0, %v7760_v31  ;;  %7781 = vtanh.f32 %v9380_v48  ;;  %v6353_v48 = vmul.f32 -1.442695, %v9428_v22 }
 0x25f   : > { %v7764_v49 = vpop.eup %7763  ;;  %7783 = vpow2.f32 %v6351_v20  ;;  %v9506_v9 = vsel %vm4498_vm3, %v7762_v3, %v7758_v61 }
 0x260   : > { %v7766_v37 = vpop.eup %7765  ;;  %7785 = vrcp.f32 %v4620_v4  ;;  %5021 = vrot.lane.b32.xlu1 %v9506_v9, %s7982_s21  ;;  %v9537_v4 = vpop.permute.xlu1 %4849 }
 0x261   : > { %v7768_v35 = vpop.eup %7767  ;;  %v4619_v62 = vadd.f32 1.0, %v7766_v37  ;;  %7787 = vtanh.f32 %v9382_v46  ;;  %v6352_v46 = vmul.f32 -1.442695, %v9446_v44 }
 0x262   : > { %v7770_v55 = vpop.eup %7769  ;;  %7789 = vpow2.f32 %v6350_v53  ;;  %v9514_v52 = vsel %vm4498_vm3, %v7768_v35, %v7764_v49  ;;  %v9540_v49 = vpop.permute.xlu0 %4847 }
 0x263   : > { %v7772_v26 = vpop.eup %7771  ;;  %7791 = vrcp.f32 %v4619_v62  ;;  %5019 = vrot.lane.b32.xlu0 %v9514_v52, %s7982_s21 }
 0x264   : > { %v7774_v38 = vpop.eup %7773  ;;  %v4622_v56 = vadd.f32 1.0, %v7772_v26  ;;  %7793 = vtanh.f32 %v9392_v13 }
 0x265   : > { %v7776_v12 = vpop.eup %7775  ;;  %7795 = vpow2.f32 %v6353_v48  ;;  %v9526_v18 = vsel %vm4498_vm3, %v7774_v38, %v7770_v55  ;;  %v9549_v55 = vpop.permute.xlu1 %4853 }
 0x266   : > { %v7778_v47 = vpop.eup %7777  ;;  %7797 = vrcp.f32 %v4622_v56  ;;  %5025 = vrot.lane.b32.xlu1 %v9526_v18, %s7982_s21  ;;  %v9555_v38 = vpop.permute.xlu0 %4851 }
 0x267   : > { %v7780_v50 = vpop.eup %7779  ;;  %v4621_v54 = vadd.f32 1.0, %v7778_v47  ;;  %7799 = vtanh.f32 %v9404_v2 }
 0x268   : > { %v7782_v13 = vpop.eup %7781  ;;  %7801 = vpow2.f32 %v6352_v46  ;;  %v9533_v20 = vsel %vm4498_vm3, %v7780_v50, %v7776_v12 }
 0x269   : > { %v7784_v61 = vpop.eup %7783  ;;  %7803 = vrcp.f32 %v4621_v54  ;;  %5023 = vrot.lane.b32.xlu0 %v9533_v20, %s7982_s21 }
 0x26a   : > { %v7786_v31 = vpop.eup %7785  ;;  %v4624_v3 = vadd.f32 1.0, %v7784_v61  ;;  %7805 = vtanh.f32 %v9413_v41 }
 0x26b   : > { %v7788_v53 = vpop.eup %7787  ;;  %v9544_v2 = vsel %vm4498_vm3, %v7786_v31, %v7782_v13  ;;  %v9567_v13 = vpop.permute.xlu1 %4857 }
 0x26c   : > { %v7790_v37 = vpop.eup %7789  ;;  %7807 = vrcp.f32 %v4624_v3  ;;  %5029 = vrot.lane.b32.xlu1 %v9544_v2, %s7982_s21  ;;  %v9573_v31 = vpop.permute.xlu0 %4855 }
 0x26d   : > { %v7792_v35 = vpop.eup %7791  ;;  %v4623_v62 = vadd.f32 1.0, %v7790_v37  ;;  %7809 = vtanh.f32 %v9415_v21 }
 0x26e   : > { %v7794_v48 = vpop.eup %7793  ;;  %v9553_v41 = vsel %vm4498_vm3, %v7792_v35, %v7788_v53 }
 0x26f   : > { %v7796_v26 = vpop.eup %7795  ;;  %7811 = vrcp.f32 %v4623_v62  ;;  %5027 = vrot.lane.b32.xlu0 %v9553_v41, %s7982_s21  ;;  %v9583_v35 = vpop.permute.xlu1 %4861 }
 0x270   : > { %v7798_v56 = vpop.eup %7797  ;;  %v4626_v46 = vadd.f32 1.0, %v7796_v26  ;;  %7813 = vtanh.f32 %v9428_v22  ;;  %v9589_v26 = vpop.permute.xlu0 %4859 }
 0x271   : > { %v7800_v12 = vpop.eup %7799  ;;  %v9562_v21 = vsel %vm4498_vm3, %v7798_v56, %v7794_v48  ;;  %10294 = vst [vmem:[#allocation36_spill] sm:$0xff] %v9589_v26 }
 0x272   : > { %v7802_v47 = vpop.eup %7801  ;;  %7815 = vrcp.f32 %v4626_v46  ;;  %5033 = vrot.lane.b32.xlu1 %v9562_v21, %s7982_s21 }
 0x273   : > { %v7804_v50 = vpop.eup %7803  ;;  %v4625_v54 = vadd.f32 1.0, %v7802_v47  ;;  %7817 = vtanh.f32 %v9446_v44 }
 0x274   : > { %v9571_v61 = vsel %vm4498_vm3, %v7804_v50, %v7800_v12  ;;  %v7806_v22 = vpop.eup %7805  ;;  %v9599_v50 = vpop.permute.xlu1 %4865 }
 0x275   : > { %7819 = vrcp.f32 %v4625_v54  ;;  %5031 = vrot.lane.b32.xlu0 %v9571_v61, %s7982_s21  ;;  %10295 = vst [vmem:[#allocation38_spill] sm:$0xff] %v9599_v50 }
 0x276   : > { %v7808_v3 = vpop.eup %7807 }
 0x277   : > { %v9579_v53 = vsel %vm4498_vm3, %v7808_v3, %v7806_v22  ;;  %v7810_v37 = vpop.eup %7809  ;;  %v9605_v22 = vpop.permute.xlu0 %4863 }
 0x278   : > { %5037 = vrot.lane.b32.xlu1 %v9579_v53, %s7982_s21  ;;  %10296 = vst [vmem:[#allocation39_spill] sm:$0xff] %v9605_v22  ;;  %v9609_v3 = vpop.permute.xlu1 %4869 }
 0x279   : > { %v7812_v44 = vpop.eup %7811  ;;  %10297 = vst [vmem:[#allocation40_spill] sm:$0xff] %v9609_v3 }
 0x27a   : > { %v9587_v62 = vsel %vm4498_vm3, %v7812_v44, %v7810_v37  ;;  %v7814_v48 = vpop.eup %7813 }
 0x27b   : > { %10293 = vst [vmem:[#allocation28_spill] sm:$0xff] %v9587_v62  ;;  %5035 = vrot.lane.b32.xlu0 %v9587_v62, %s7982_s21  ;;  %v9611_v37 = vpop.permute.xlu0 %4867 }
 0x27c   : > { %v7816_v56 = vpop.eup %7815  ;;  %10298 = vst [vmem:[#allocation41_spill] sm:$0xff] %v9611_v37  ;;  %v9613_v44 = vpop.permute.xlu1 %4873 }
 0x27d   : > { %v9595_v46 = vsel %vm4498_vm3, %v7816_v56, %v7814_v48  ;;  %v7818_v12 = vpop.eup %7817 }
 0x27e   : > { %5041 = vrot.lane.b32.xlu1 %v9595_v46, %s7982_s21 }
 0x27f   : > { %v7820_v47 = vpop.eup %7819  ;;  %v9615_v48 = vpop.permute.xlu0 %4871 }
 0x280   : > { %v9603_v54 = vsel %vm4498_vm3, %v7820_v47, %v7818_v12  ;;  %10299 = vst [vmem:[#allocation21_spill] sm:$0xff] %v9615_v48  ;;  %v9617_v56 = vpop.permute.xlu1 %4877 }
 0x281   : > { %5039 = vrot.lane.b32.xlu0 %v9603_v54, %s7982_s21  ;;  %10300 = vst [vmem:[#allocation42_spill] sm:$0xff] %v9617_v56 }
 0x283   : > { %v9619_v50 = vpop.permute.xlu0 %4875 }
 0x284   : > { %10301 = vst [vmem:[#allocation43_spill] sm:$0xff] %v9619_v50  ;;  %v9621_v7 = vpop.permute.xlu1 %4881 }
 0x285   : > { %10302 = vst [vmem:[#allocation44_spill] sm:$0xff] %v9621_v7 }
 0x287   : > { %v9623_v12 = vpop.permute.xlu0 %4879 }
 0x288   : > { %10303 = vst [vmem:[#allocation45_spill] sm:$0xff] %v9623_v12 }
 0x29a   : > { %v4982_v47 = vpop.permute.xlu1 %4981 }
 0x29b   : > { %v5076_v22 = vmul.f32 %v4982_v47, %v9272_v24  ;;  %v4980_v26 = vpop.permute.xlu0 %4979 }
 0x29c   : > { %v5075_v3 = vmul.f32 %v4980_v26, %v9278_v63 }
 0x29d   : > { %5141 = vrot.lane.b32.xlu1 %v5076_v22, %s7982_s21 }
 0x29e   : > { %v4986_v37 = vpop.permute.xlu1 %4985  ;;  %5139 = vrot.lane.b32.xlu0 %v5075_v3, %s7982_s21 }
 0x29f   : > { %v5078_v48 = vmul.f32 %v4986_v37, %v9292_v45  ;;  %v4984_v56 = vpop.permute.xlu0 %4983 }
 0x2a0   : > { %v5077_v50 = vmul.f32 %v4984_v56, %v9298_v60 }
 0x2a1   : > { %5145 = vrot.lane.b32.xlu1 %v5078_v48, %s7982_s21 }
 0x2a2   : > { %v4990_v7 = vpop.permute.xlu1 %4989  ;;  %5143 = vrot.lane.b32.xlu0 %v5077_v50, %s7982_s21 }
 0x2a3   : > { %v5080_v47 = vmul.f32 %v4990_v7, %v9315_v0  ;;  %v4988_v12 = vpop.permute.xlu0 %4987 }
 0x2a4   : > { %v5079_v26 = vmul.f32 %v4988_v12, %v9323_v34 }
 0x2a5   : > { %5149 = vrot.lane.b32.xlu1 %v5080_v47, %s7982_s21 }
 0x2a6   : > { %v4994_v22 = vpop.permute.xlu1 %4993  ;;  %5147 = vrot.lane.b32.xlu0 %v5079_v26, %s7982_s21 }
 0x2a7   : > { %v5082_v3 = vmul.f32 %v4994_v22, %v9336_v15 }
 0x2a9   : > { %v4992_v37 = vpop.permute.xlu0 %4991  ;;  %5153 = vrot.lane.b32.xlu1 %v5082_v3, %s7982_s21 }
 0x2aa   : > { %v5081_v48 = vmul.f32 %v4992_v37, %v9350_v27  ;;  %v4998_v56 = vpop.permute.xlu1 %4997 }
 0x2ab   : > { %v5084_v50 = vmul.f32 %v4998_v56, %v9356_v19 }
 0x2ac   : > { %5151 = vrot.lane.b32.xlu0 %v5081_v48, %s7982_s21 }
 0x2ad   : > { %5157 = vrot.lane.b32.xlu1 %v5084_v50, %s7982_s21 }
 0x2ae   : > { %v4996_v7 = vpop.permute.xlu0 %4995 }
 0x2af   : > { %v5083_v12 = vmul.f32 %v4996_v7, %v9372_v39 }
 0x2b1   : > { %5155 = vrot.lane.b32.xlu0 %v5083_v12, %s7982_s21 }
 0x2b2   : > { %v5002_v47 = vpop.permute.xlu1 %5001 }
 0x2b3   : > { %v5086_v26 = vmul.f32 %v5002_v47, %v9388_v23 }
 0x2b5   : > { %v5000_v22 = vpop.permute.xlu0 %4999  ;;  %5161 = vrot.lane.b32.xlu1 %v5086_v26, %s7982_s21 }
 0x2b6   : > { %v5085_v3 = vmul.f32 %v5000_v22, %v9402_v1 }
 0x2b8   : > { %5159 = vrot.lane.b32.xlu0 %v5085_v3, %s7982_s21 }
 0x2ba   : > { %v5006_v37 = vpop.permute.xlu1 %5005 }
 0x2bb   : > { %v5088_v48 = vmul.f32 %v5006_v37, %v9420_v17 }
 0x2bd   : > { %5165 = vrot.lane.b32.xlu1 %v5088_v48, %s7982_s21 }
 0x2be   : > { %v5004_v56 = vpop.permute.xlu0 %5003 }
 0x2bf   : > { %v5087_v50 = vmul.f32 %v5004_v56, %v9432_v32 }
 0x2c0   : > { %v5010_v7 = vpop.permute.xlu1 %5009 }
 0x2c1   : > { %v5090_v12 = vmul.f32 %v5010_v7, %v9444_v36  ;;  %5163 = vrot.lane.b32.xlu0 %v5087_v50, %s7982_s21 }
 0x2c3   : > { %v5008_v47 = vpop.permute.xlu0 %5007  ;;  %5169 = vrot.lane.b32.xlu1 %v5090_v12, %s7982_s21 }
 0x2c4   : > { %v5089_v26 = vmul.f32 %v5008_v47, %v9454_v42 }
 0x2c6   : > { %5167 = vrot.lane.b32.xlu0 %v5089_v26, %s7982_s21  ;;  %v5014_v22 = vpop.permute.xlu1 %5013 }
 0x2c7   : > { %v5092_v3 = vmul.f32 %v5014_v22, %v9466_v28 }
 0x2c9   : > { %v5012_v37 = vpop.permute.xlu0 %5011  ;;  %5173 = vrot.lane.b32.xlu1 %v5092_v3, %s7982_s21 }
 0x2ca   : > { %v5091_v48 = vmul.f32 %v5012_v37, %v9474_v8 }
 0x2cc   : > { %v5018_v56 = vpop.permute.xlu1 %5017  ;;  %5171 = vrot.lane.b32.xlu0 %v5091_v48, %s7982_s21 }
 0x2cd   : > { %v5094_v50 = vmul.f32 %v5018_v56, %v9486_v51 }
 0x2cf   : > { %v5016_v7 = vpop.permute.xlu0 %5015  ;;  %5177 = vrot.lane.b32.xlu1 %v5094_v50, %s7982_s21 }
 0x2d0   : > { %v5093_v12 = vmul.f32 %v5016_v7, %v9494_v14 }
 0x2d2   : > { %v5022_v47 = vpop.permute.xlu1 %5021  ;;  %5175 = vrot.lane.b32.xlu0 %v5093_v12, %s7982_s21 }
 0x2d3   : > { %v5096_v26 = vmul.f32 %v5022_v47, %v9506_v9 }
 0x2d5   : > { %v5020_v22 = vpop.permute.xlu0 %5019  ;;  %5181 = vrot.lane.b32.xlu1 %v5096_v26, %s7982_s21 }
 0x2d6   : > { %v5095_v3 = vmul.f32 %v5020_v22, %v9514_v52 }
 0x2d8   : > { %v5026_v37 = vpop.permute.xlu1 %5025  ;;  %5179 = vrot.lane.b32.xlu0 %v5095_v3, %s7982_s21 }
 0x2d9   : > { %v5098_v48 = vmul.f32 %v5026_v37, %v9526_v18 }
 0x2db   : > { %v5024_v56 = vpop.permute.xlu0 %5023  ;;  %5185 = vrot.lane.b32.xlu1 %v5098_v48, %s7982_s21 }
 0x2dc   : > { %v5097_v50 = vmul.f32 %v5024_v56, %v9533_v20 }
 0x2de   : > { %v5030_v7 = vpop.permute.xlu1 %5029  ;;  %5183 = vrot.lane.b32.xlu0 %v5097_v50, %s7982_s21 }
 0x2df   : > { %v5100_v12 = vmul.f32 %v5030_v7, %v9544_v2 }
 0x2e1   : > { %v5028_v47 = vpop.permute.xlu0 %5027  ;;  %5189 = vrot.lane.b32.xlu1 %v5100_v12, %s7982_s21 }
 0x2e2   : > { %v5099_v26 = vmul.f32 %v5028_v47, %v9553_v41 }
 0x2e4   : > { %v5034_v22 = vpop.permute.xlu1 %5033  ;;  %5187 = vrot.lane.b32.xlu0 %v5099_v26, %s7982_s21 }
 0x2e5   : > { %v5102_v3 = vmul.f32 %v5034_v22, %v9562_v21 }
 0x2e7   : > { %v5032_v37 = vpop.permute.xlu0 %5031  ;;  %5193 = vrot.lane.b32.xlu1 %v5102_v3, %s7982_s21 }
 0x2e8   : > { %v5101_v48 = vmul.f32 %v5032_v37, %v9571_v61  ;;  %v4916_v37 = vmul.f32 %v9422_v6, %v9272_v24 }
 0x2ea   : > { %v5038_v56 = vpop.permute.xlu1 %5037  ;;  %5191 = vrot.lane.b32.xlu0 %v5101_v48, %s7982_s21  ;;  %v4915_v48 = vmul.f32 %v9396_v30, %v9278_v63 }
 0x2eb   : > { %v5104_v50 = vmul.f32 %v5038_v56, %v9579_v53 }
 0x2ed   : > { %v5036_v7 = vpop.permute.xlu0 %5035  ;;  %5197 = vrot.lane.b32.xlu1 %v5104_v50, %s7982_s21 }
 0x2ee   : > { %v5103_v12 = vmul.f32 %v5036_v7, %v9587_v62 }
 0x2f0   : > { %v5042_v47 = vpop.permute.xlu1 %5041  ;;  %5195 = vrot.lane.b32.xlu0 %v5103_v12, %s7982_s21  ;;  %v4918_v12 = vmul.f32 %v9410_v59, %v9292_v45  ;;  %v4919_v59 = vmul.f32 %v9440_v33, %v9323_v34  ;;  %v4921_v33 = vmul.f32 %v9462_v25, %v9350_v27  ;;  %v4923_v25 = vmul.f32 %v9482_v10, %v9372_v39 }
 0x2f1   : > { %v5106_v26 = vmul.f32 %v5042_v47, %v9595_v46  ;;  %v4917_v47 = vmul.f32 %v9378_v40, %v9298_v60  ;;  %v4925_v10 = vmul.f32 %v9502_v57, %v9402_v1  ;;  %v4927_v57 = vmul.f32 %v9522_v43, %v9432_v32 }
 0x2f2   : > { %v4929_v43 = vmul.f32 %v9540_v49, %v9454_v42  ;;  %v4931_v49 = vmul.f32 %v9555_v38, %v9474_v8  ;;  %v4933_v38 = vmul.f32 %v9573_v31, %v9494_v14  ;;  %v10304_v31 = vld [vmem:[#allocation36_spill] sm:$0xff] }
 0x2f3   : > { %v5040_v22 = vpop.permute.xlu0 %5039  ;;  %5201 = vrot.lane.b32.xlu1 %v5106_v26, %s7982_s21 }
 0x2f4   : > { %v5105_v3 = vmul.f32 %v5040_v22, %v9603_v54 }
 0x2f6   : > { %5199 = vrot.lane.b32.xlu0 %v5105_v3, %s7982_s21  ;;  %v4920_v3 = vmul.f32 %v9435_v58, %v9315_v0 }
 0x30f   : > { %v5142_v56 = vpop.permute.xlu1 %5141 }
 0x310   : > { %v5236_v50 = vadd.f32 %v5142_v56, %v4916_v37  ;;  %v5140_v7 = vpop.permute.xlu0 %5139 }
 0x311   : > { %v5235_v62 = vadd.f32 %v5140_v7, %v4915_v48  ;;  %v4922_v7 = vmul.f32 %v9459_v5, %v9336_v15  ;;  %v4924_v5 = vmul.f32 %v9479_v16, %v9356_v19  ;;  %v4926_v16 = vmul.f32 %v9499_v29, %v9388_v23 }
 0x312   : > { %7821 = vtanh.f32 %v5236_v50  ;;  %5493 = vrot.lane.b32.xlu1 %v5236_v50, %s7983_s11  ;;  %v4928_v29 = vmul.f32 %v9519_v11, %v9420_v17  ;;  %v4930_v11 = vmul.f32 %v9537_v4, %v9444_v36  ;;  %v4932_v4 = vmul.f32 %v9549_v55, %v9466_v28 }
 0x313   : > { %7823 = vtanh.f32 %v5235_v62  ;;  %v5146_v26 = vpop.permute.xlu1 %5145  ;;  %5491 = vrot.lane.b32.xlu0 %v5235_v62, %s7983_s11  ;;  %v4934_v55 = vmul.f32 %v9567_v13, %v9486_v51  ;;  %v4936_v13 = vmul.f32 %v9583_v35, %v9506_v9  ;;  %v10305_v35 = vld [vmem:[#allocation38_spill] sm:$0xff] }
 0x314   : > { %v5238_v6 = vadd.f32 %v5146_v26, %v4918_v12  ;;  %v5144_v30 = vpop.permute.xlu0 %5143 }
 0x315   : > { %v5237_v22 = vadd.f32 %v5144_v30, %v4917_v47 }
 0x316   : > { %5497 = vrot.lane.b32.xlu1 %v5238_v6, %s7983_s11  ;;  %7825 = vtanh.f32 %v5238_v6 }
 0x317   : > { %v5150_v37 = vpop.permute.xlu1 %5149  ;;  %5495 = vrot.lane.b32.xlu0 %v5237_v22, %s7983_s11  ;;  %7827 = vtanh.f32 %v5237_v22 }
 0x318   : > { %v5240_v48 = vadd.f32 %v5150_v37, %v4920_v3  ;;  %v5148_v40 = vpop.permute.xlu0 %5147 }
 0x319   : > { %v5239_v56 = vadd.f32 %v5148_v40, %v4919_v59 }
 0x31a   : > { %5501 = vrot.lane.b32.xlu1 %v5240_v48, %s7983_s11  ;;  %7829 = vtanh.f32 %v5240_v48 }
 0x31b   : > { %5499 = vrot.lane.b32.xlu0 %v5239_v56, %s7983_s11  ;;  %v5154_v58 = vpop.permute.xlu1 %5153  ;;  %7831 = vtanh.f32 %v5239_v56 }
 0x31c   : > { %v7822_v62 = vpop.eup %7821  ;;  %v5242_v47 = vadd.f32 %v5154_v58, %v4922_v7 }
 0x31d   : > { %v7824_v50 = vpop.eup %7823 }
 0x31e   : > { %v5152_v12 = vpop.permute.xlu0 %5151  ;;  %5333 = vrot.lane.b32.xlu1 %v7822_v62, %s7982_s21  ;;  %7833 = vtanh.f32 %v5242_v47 }
 0x31f   : > { %5331 = vrot.lane.b32.xlu0 %v7824_v50, %s7982_s21  ;;  %v5241_v26 = vadd.f32 %v5152_v12, %v4921_v33  ;;  %v5158_v30 = vpop.permute.xlu1 %5157 }
 0x320   : > { %v7826_v6 = vpop.eup %7825  ;;  %v5244_v59 = vadd.f32 %v5158_v30, %v4924_v5 }
 0x321   : > { %v7828_v22 = vpop.eup %7827  ;;  %7835 = vtanh.f32 %v5241_v26 }
 0x322   : > { %5505 = vrot.lane.b32.xlu1 %v5242_v47, %s7983_s11  ;;  %7837 = vtanh.f32 %v5244_v59 }
 0x323   : > { %5503 = vrot.lane.b32.xlu0 %v5241_v26, %s7983_s11  ;;  %v5156_v3 = vpop.permute.xlu0 %5155 }
 0x324   : > { %v5243_v37 = vadd.f32 %v5156_v3, %v4923_v25  ;;  %v7830_v48 = vpop.eup %7829 }
 0x325   : > { %v7832_v56 = vpop.eup %7831 }
 0x326   : > { %5337 = vrot.lane.b32.xlu1 %v7826_v6, %s7982_s21  ;;  %7839 = vtanh.f32 %v5243_v37 }
 0x327   : > { %5335 = vrot.lane.b32.xlu0 %v7828_v22, %s7982_s21  ;;  %v5162_v40 = vpop.permute.xlu1 %5161 }
 0x328   : > { %v5246_v50 = vadd.f32 %v5162_v40, %v4926_v16  ;;  %v7834_v7 = vpop.eup %7833 }
 0x32a   : > { %5509 = vrot.lane.b32.xlu1 %v5244_v59, %s7983_s11  ;;  %v5160_v62 = vpop.permute.xlu0 %5159  ;;  %7841 = vtanh.f32 %v5246_v50 }
 0x32b   : > { %5507 = vrot.lane.b32.xlu0 %v5243_v37, %s7983_s11  ;;  %v5245_v58 = vadd.f32 %v5160_v62, %v4925_v10  ;;  %v7836_v33 = vpop.eup %7835 }
 0x32c   : > { %v7838_v30 = vpop.eup %7837 }
 0x32d   : > { %7843 = vtanh.f32 %v5245_v58 }
 0x32e   : > { %5341 = vrot.lane.b32.xlu1 %v7830_v48, %s7982_s21 }
 0x32f   : > { %5339 = vrot.lane.b32.xlu0 %v7832_v56, %s7982_s21  ;;  %v5166_v12 = vpop.permute.xlu1 %5165 }
 0x330   : > { %v5248_v26 = vadd.f32 %v5166_v12, %v4928_v29  ;;  %v7840_v5 = vpop.eup %7839 }
 0x332   : > { %5513 = vrot.lane.b32.xlu1 %v5246_v50, %s7983_s11  ;;  %7845 = vtanh.f32 %v5248_v26 }
 0x333   : > { %5511 = vrot.lane.b32.xlu0 %v5245_v58, %s7983_s11  ;;  %v5164_v47 = vpop.permute.xlu0 %5163 }
 0x334   : > { %v5247_v6 = vadd.f32 %v5164_v47, %v4927_v57  ;;  %v7842_v37 = vpop.eup %7841 }
 0x335   : > { %v5170_v22 = vpop.permute.xlu1 %5169 }
 0x336   : > { %5345 = vrot.lane.b32.xlu1 %v7834_v7, %s7982_s21  ;;  %v5250_v25 = vadd.f32 %v5170_v22, %v4930_v11  ;;  %7847 = vtanh.f32 %v5247_v6 }
 0x337   : > { %5343 = vrot.lane.b32.xlu0 %v7836_v33, %s7982_s21  ;;  %v7844_v40 = vpop.eup %7843 }
 0x338   : > { %v5168_v3 = vpop.permute.xlu0 %5167  ;;  %7849 = vtanh.f32 %v5250_v25 }
 0x339   : > { %v5249_v59 = vadd.f32 %v5168_v3, %v4929_v43  ;;  %v4938_v43 = vmul.f32 %v10305_v35, %v9526_v18  ;;  %v10312_v35 = vld [vmem:[#allocation43_spill] sm:$0xff] }
 0x33a   : > { %5517 = vrot.lane.b32.xlu1 %v5248_v26, %s7983_s11 }
 0x33b   : > { %5515 = vrot.lane.b32.xlu0 %v5247_v6, %s7983_s11  ;;  %v5174_v48 = vpop.permute.xlu1 %5173  ;;  %7851 = vtanh.f32 %v5249_v59  ;;  %v4935_v6 = vmul.f32 %v10304_v31, %v9514_v52 }
 0x33c   : > { %v5252_v16 = vadd.f32 %v5174_v48, %v4932_v4  ;;  %v7846_v10 = vpop.eup %7845 }
 0x33e   : > { %5349 = vrot.lane.b32.xlu1 %v7838_v30, %s7982_s21  ;;  %v5172_v56 = vpop.permute.xlu0 %5171  ;;  %7853 = vtanh.f32 %v5252_v16 }
 0x33f   : > { %5347 = vrot.lane.b32.xlu0 %v7840_v5, %s7982_s21  ;;  %v5251_v62 = vadd.f32 %v5172_v56, %v4931_v49 }
 0x340   : > { %v7848_v58 = vpop.eup %7847 }
 0x341   : > { %v5178_v50 = vpop.permute.xlu1 %5177  ;;  %7855 = vtanh.f32 %v5251_v62 }
 0x342   : > { %5521 = vrot.lane.b32.xlu1 %v5250_v25, %s7983_s11  ;;  %v5254_v12 = vadd.f32 %v5178_v50, %v4934_v55  ;;  %v7850_v29 = vpop.eup %7849  ;;  %v10308_v50 = vld [vmem:[#allocation41_spill] sm:$0xff] }
 0x343   : > { %5519 = vrot.lane.b32.xlu0 %v5249_v59, %s7983_s11  ;;  %v10306_v59 = vld [vmem:[#allocation39_spill] sm:$0xff] }
 0x344   : > { %v5176_v7 = vpop.permute.xlu0 %5175  ;;  %7857 = vtanh.f32 %v5254_v12 }
 0x345   : > { %v5253_v33 = vadd.f32 %v5176_v7, %v4933_v38  ;;  %v7852_v57 = vpop.eup %7851 }
 0x346   : > { %5353 = vrot.lane.b32.xlu1 %v7842_v37, %s7982_s21  ;;  %v4937_v37 = vmul.f32 %v10306_v59, %v9533_v20 }
 0x347   : > { %5351 = vrot.lane.b32.xlu0 %v7844_v40, %s7982_s21  ;;  %v5182_v47 = vpop.permute.xlu1 %5181  ;;  %7859 = vtanh.f32 %v5253_v33 }
 0x348   : > { %v5256_v30 = vadd.f32 %v5182_v47, %v4936_v13  ;;  %v7854_v5 = vpop.eup %7853 }
 0x34a   : > { %5525 = vrot.lane.b32.xlu1 %v5252_v16, %s7983_s11  ;;  %v5180_v26 = vpop.permute.xlu0 %5179  ;;  %7861 = vtanh.f32 %v5256_v30  ;;  %v10307_v16 = vld [vmem:[#allocation40_spill] sm:$0xff] }
 0x34b   : > { %5523 = vrot.lane.b32.xlu0 %v5251_v62, %s7983_s11  ;;  %v5255_v22 = vadd.f32 %v5180_v26, %v4935_v6  ;;  %v7856_v3 = vpop.eup %7855  ;;  %v4940_v62 = vmul.f32 %v10307_v16, %v9544_v2  ;;  %v10314_v16 = vld [vmem:[#allocation45_spill] sm:$0xff] }
 0x34d   : > { %v5186_v11 = vpop.permute.xlu1 %5185  ;;  %7863 = vtanh.f32 %v5255_v22 }
 0x34e   : > { %5357 = vrot.lane.b32.xlu1 %v7846_v10, %s7982_s21  ;;  %v5258_v48 = vadd.f32 %v5186_v11, %v4938_v43  ;;  %v7858_v4 = vpop.eup %7857 }
 0x34f   : > { %5355 = vrot.lane.b32.xlu0 %v7848_v58, %s7982_s21  ;;  %v4939_v58 = vmul.f32 %v10308_v50, %v9553_v41 }
 0x350   : > { %v5184_v25 = vpop.permute.xlu0 %5183  ;;  %7865 = vtanh.f32 %v5258_v48 }
 0x351   : > { %v5257_v40 = vadd.f32 %v5184_v25, %v4937_v37  ;;  %v7860_v49 = vpop.eup %7859 }
 0x352   : > { %5529 = vrot.lane.b32.xlu1 %v5254_v12, %s7983_s11 }
 0x353   : > { %5527 = vrot.lane.b32.xlu0 %v5253_v33, %s7983_s11  ;;  %v5190_v56 = vpop.permute.xlu1 %5189  ;;  %7867 = vtanh.f32 %v5257_v40 }
 0x354   : > { %v5260_v55 = vadd.f32 %v5190_v56, %v4940_v62  ;;  %v7862_v38 = vpop.eup %7861  ;;  %v4945_v62 = vmul.f32 %v10314_v16, %v9603_v54 }
 0x356   : > { %5361 = vrot.lane.b32.xlu1 %v7850_v29, %s7982_s21  ;;  %v5188_v10 = vpop.permute.xlu0 %5187  ;;  %v4942_v29 = vmul.f32 %v9613_v44, %v9562_v21  ;;  %7869 = vtanh.f32 %v5260_v55  ;;  %v10310_v44 = vld [vmem:[#allocation42_spill] sm:$0xff] }
 0x357   : > { %5359 = vrot.lane.b32.xlu0 %v7852_v57, %s7982_s21  ;;  %v5259_v7 = vadd.f32 %v5188_v10, %v4939_v58  ;;  %v7864_v33 = vpop.eup %7863  ;;  %v10309_v57 = vld [vmem:[#allocation21_spill] sm:$0xff] }
 0x358   : > { %v4941_v13 = vmul.f32 %v10309_v57, %v9571_v61 }
 0x359   : > { %v5194_v12 = vpop.permute.xlu1 %5193  ;;  %7871 = vtanh.f32 %v5259_v7 }
 0x35a   : > { %5533 = vrot.lane.b32.xlu1 %v5256_v30, %s7983_s11  ;;  %v5262_v26 = vadd.f32 %v5194_v12, %v4942_v29  ;;  %v7866_v6 = vpop.eup %7865 }
 0x35b   : > { %5531 = vrot.lane.b32.xlu0 %v5255_v22, %s7983_s11 }
 0x35c   : > { %v5192_v47 = vpop.permute.xlu0 %5191  ;;  %7873 = vtanh.f32 %v5262_v26 }
 0x35d   : > { %v5261_v31 = vadd.f32 %v5192_v47, %v4941_v13  ;;  %v7868_v22 = vpop.eup %7867 }
 0x35e   : > { %5365 = vrot.lane.b32.xlu1 %v7854_v5, %s7982_s21  ;;  %v4944_v5 = vmul.f32 %v10310_v44, %v9579_v53 }
 0x35f   : > { %5363 = vrot.lane.b32.xlu0 %v7856_v3, %s7982_s21  ;;  %v5198_v30 = vpop.permute.xlu1 %5197  ;;  %v10311_v3 = vld [vmem:[#allocation28_spill] sm:$0xff]  ;;  %7875 = vtanh.f32 %v5261_v31 }
 0x360   : > { %v4943_v43 = vmul.f32 %v10312_v35, %v10311_v3  ;;  %v5264_v25 = vadd.f32 %v5198_v30, %v4944_v5 }
 0x362   : > { %5537 = vrot.lane.b32.xlu1 %v5258_v48, %s7983_s11  ;;  %v5196_v11 = vpop.permute.xlu0 %5195  ;;  %v7870_v48 = vpop.eup %7869  ;;  %7877 = vtanh.f32 %v5264_v25 }
 0x363   : > { %5535 = vrot.lane.b32.xlu0 %v5257_v40, %s7983_s11  ;;  %v5263_v59 = vadd.f32 %v5196_v11, %v4943_v43  ;;  %v10313_v40 = vld [vmem:[#allocation44_spill] sm:$0xff] }
 0x365   : > { %v5202_v37 = vpop.permute.xlu1 %5201  ;;  %7879 = vtanh.f32 %v5263_v59 }
 0x366   : > { %5369 = vrot.lane.b32.xlu1 %v7858_v4, %s7982_s21  ;;  %v4946_v4 = vmul.f32 %v10313_v40, %v9595_v46 }
 0x367   : > { %5367 = vrot.lane.b32.xlu0 %v7860_v49, %s7982_s21  ;;  %v7872_v49 = vpop.eup %7871 }
 0x368   : > { %v5200_v56 = vpop.permute.xlu0 %5199  ;;  %v5266_v10 = vadd.f32 %v5202_v37, %v4946_v4 }
 0x369   : > { %v5265_v50 = vadd.f32 %v5200_v56, %v4945_v62 }
 0x36a   : > { %5541 = vrot.lane.b32.xlu1 %v5260_v55, %s7983_s11  ;;  %7881 = vtanh.f32 %v5266_v10  ;;  %v7874_v55 = vpop.eup %7873 }
 0x36b   : > { %5539 = vrot.lane.b32.xlu0 %v5259_v7, %s7983_s11  ;;  %7883 = vtanh.f32 %v5265_v50 }
 0x36e   : > { %5373 = vrot.lane.b32.xlu1 %v7862_v38, %s7982_s21  ;;  %v7876_v38 = vpop.eup %7875 }
 0x36f   : > { %5371 = vrot.lane.b32.xlu0 %v7864_v33, %s7982_s21  ;;  %v7878_v33 = vpop.eup %7877 }
 0x370   : > { %v7880_v47 = vpop.eup %7879 }
 0x372   : > { %5545 = vrot.lane.b32.xlu1 %v5262_v26, %s7983_s11 }
 0x373   : > { %5543 = vrot.lane.b32.xlu0 %v5261_v31, %s7983_s11 }
 0x374   : > { %v7882_v13 = vpop.eup %7881 }
 0x375   : > { %v7884_v31 = vpop.eup %7883 }
 0x376   : > { %5377 = vrot.lane.b32.xlu1 %v7866_v6, %s7982_s21 }
 0x377   : > { %5375 = vrot.lane.b32.xlu0 %v7868_v22, %s7982_s21 }
 0x37a   : > { %5549 = vrot.lane.b32.xlu1 %v5264_v25, %s7983_s11 }
 0x37b   : > { %5547 = vrot.lane.b32.xlu0 %v5263_v59, %s7983_s11 }
 0x37e   : > { %5381 = vrot.lane.b32.xlu1 %v7870_v48, %s7982_s21 }
 0x37f   : > { %5379 = vrot.lane.b32.xlu0 %v7872_v49, %s7982_s21 }
 0x382   : > { %5553 = vrot.lane.b32.xlu1 %v5266_v10, %s7983_s11 }
 0x383   : > { %5551 = vrot.lane.b32.xlu0 %v5265_v50, %s7983_s11 }
 0x384   : > { %v5494_v58 = vpop.permute.xlu1 %5493 }
 0x385   : > { %5588 = vst.msk [vmem:[#allocation3 + $0x8] sm:$0xff] %vm444_vm2, %v5494_v58  ;;  %5812 = vst.msk [vmem:[%s8095_s18 + $0x8] sm:$0xff] %vm444_vm2, %v5494_v58  ;;  %v5492_v7 = vpop.permute.xlu0 %5491 }
 0x386   : > { %5587 = vst.msk [vmem:[#allocation3] sm:$0xff] %vm444_vm2, %v5492_v7  ;;  %5811 = vst.msk [vmem:[%s8095_s18] sm:$0xff] %vm444_vm2, %v5492_v7  ;;  %5385 = vrot.lane.b32.xlu1 %v7874_v55, %s7982_s21 }
 0x387   : > { %5383 = vrot.lane.b32.xlu0 %v7876_v38, %s7982_s21 }
 0x388   : > { %v5498_v12 = vpop.permute.xlu1 %5497 }
 0x389   : > { %5590 = vst.msk [vmem:[#allocation3 + $0x18] sm:$0xff] %vm444_vm2, %v5498_v12  ;;  %5814 = vst.msk [vmem:[%s8095_s18 + $0x18] sm:$0xff] %vm444_vm2, %v5498_v12  ;;  %v5496_v29 = vpop.permute.xlu0 %5495 }
 0x38a   : > { %5589 = vst.msk [vmem:[#allocation3 + $0x10] sm:$0xff] %vm444_vm2, %v5496_v29  ;;  %5813 = vst.msk [vmem:[%s8095_s18 + $0x10] sm:$0xff] %vm444_vm2, %v5496_v29  ;;  %5389 = vrot.lane.b32.xlu1 %v7878_v33, %s7982_s21 }
 0x38b   : > { %5387 = vrot.lane.b32.xlu0 %v7880_v47, %s7982_s21 }
 0x38c   : > { %v5502_v57 = vpop.permute.xlu1 %5501 }
 0x38d   : > { %5592 = vst.msk [vmem:[#allocation3 + $0x28] sm:$0xff] %vm444_vm2, %v5502_v57  ;;  %5816 = vst.msk [vmem:[%s8095_s18 + $0x28] sm:$0xff] %vm444_vm2, %v5502_v57  ;;  %v5500_v26 = vpop.permute.xlu0 %5499 }
 0x38e   : > { %5591 = vst.msk [vmem:[#allocation3 + $0x20] sm:$0xff] %vm444_vm2, %v5500_v26  ;;  %5815 = vst.msk [vmem:[%s8095_s18 + $0x20] sm:$0xff] %vm444_vm2, %v5500_v26  ;;  %5393 = vrot.lane.b32.xlu1 %v7882_v13, %s7982_s21 }
 0x38f   : > { %5391 = vrot.lane.b32.xlu0 %v7884_v31, %s7982_s21 }
 0x390   : > { %v5334_v6 = vpop.permute.xlu1 %5333 }
 0x391   : > { %v5428_v30 = vmul.f32 %v5334_v6, %v9272_v24  ;;  %v5332_v22 = vpop.permute.xlu0 %5331 }
 0x392   : > { %v5427_v44 = vmul.f32 %v5332_v22, %v9278_v63 }
 0x393   : > { %5653 = vrot.lane.b32.xlu1 %v5428_v30, %s7984_s26 }
 0x394   : > { %v5506_v5 = vpop.permute.xlu1 %5505  ;;  %5651 = vrot.lane.b32.xlu0 %v5427_v44, %s7984_s26 }
 0x395   : > { %5594 = vst.msk [vmem:[#allocation3 + $0x38] sm:$0xff] %vm444_vm2, %v5506_v5  ;;  %5818 = vst.msk [vmem:[%s8095_s18 + $0x38] sm:$0xff] %vm444_vm2, %v5506_v5  ;;  %v5504_v11 = vpop.permute.xlu0 %5503 }
 0x396   : > { %5593 = vst.msk [vmem:[#allocation3 + $0x30] sm:$0xff] %vm444_vm2, %v5504_v11  ;;  %5817 = vst.msk [vmem:[%s8095_s18 + $0x30] sm:$0xff] %vm444_vm2, %v5504_v11 }
 0x398   : > { %v5338_v24 = vpop.permute.xlu1 %5337 }
 0x399   : > { %v5430_v63 = vmul.f32 %v5338_v24, %v9292_v45  ;;  %v5336_v35 = vpop.permute.xlu0 %5335 }
 0x39a   : > { %v5429_v43 = vmul.f32 %v5336_v35, %v9298_v60 }
 0x39b   : > { %5657 = vrot.lane.b32.xlu1 %v5430_v63, %s7984_s26 }
 0x39c   : > { %v5510_v25 = vpop.permute.xlu1 %5509  ;;  %5655 = vrot.lane.b32.xlu0 %v5429_v43, %s7984_s26 }
 0x39d   : > { %5596 = vst.msk [vmem:[#allocation3 + $0x48] sm:$0xff] %vm444_vm2, %v5510_v25  ;;  %5820 = vst.msk [vmem:[%s8095_s18 + $0x48] sm:$0xff] %vm444_vm2, %v5510_v25  ;;  %v5508_v59 = vpop.permute.xlu0 %5507 }
 0x39e   : > { %5595 = vst.msk [vmem:[#allocation3 + $0x40] sm:$0xff] %vm444_vm2, %v5508_v59  ;;  %5819 = vst.msk [vmem:[%s8095_s18 + $0x40] sm:$0xff] %vm444_vm2, %v5508_v59 }
 0x3a0   : > { %v5342_v45 = vpop.permute.xlu1 %5341 }
 0x3a1   : > { %v5432_v37 = vmul.f32 %v5342_v45, %v9315_v0  ;;  %v5340_v60 = vpop.permute.xlu0 %5339 }
 0x3a2   : > { %v5431_v48 = vmul.f32 %v5340_v60, %v9323_v34 }
 0x3a3   : > { %5661 = vrot.lane.b32.xlu1 %v5432_v37, %s7984_s26 }
 0x3a4   : > { %v5514_v40 = vpop.permute.xlu1 %5513  ;;  %5659 = vrot.lane.b32.xlu0 %v5431_v48, %s7984_s26 }
 0x3a5   : > { %5598 = vst.msk [vmem:[#allocation3 + $0x58] sm:$0xff] %vm444_vm2, %v5514_v40  ;;  %5822 = vst.msk [vmem:[%s8095_s18 + $0x58] sm:$0xff] %vm444_vm2, %v5514_v40  ;;  %v5512_v4 = vpop.permute.xlu0 %5511 }
 0x3a6   : > { %5597 = vst.msk [vmem:[#allocation3 + $0x50] sm:$0xff] %vm444_vm2, %v5512_v4  ;;  %5821 = vst.msk [vmem:[%s8095_s18 + $0x50] sm:$0xff] %vm444_vm2, %v5512_v4 }
 0x3a8   : > { %v5346_v0 = vpop.permute.xlu1 %5345 }
 0x3a9   : > { %v5434_v56 = vmul.f32 %v5346_v0, %v9336_v15  ;;  %v5344_v34 = vpop.permute.xlu0 %5343 }
 0x3aa   : > { %v5433_v49 = vmul.f32 %v5344_v34, %v9350_v27 }
 0x3ab   : > { %5665 = vrot.lane.b32.xlu1 %v5434_v56, %s7984_s26 }
 0x3ac   : > { %v5518_v16 = vpop.permute.xlu1 %5517  ;;  %5663 = vrot.lane.b32.xlu0 %v5433_v49, %s7984_s26 }
 0x3ad   : > { %5600 = vst.msk [vmem:[#allocation3 + $0x68] sm:$0xff] %vm444_vm2, %v5518_v16  ;;  %5824 = vst.msk [vmem:[%s8095_s18 + $0x68] sm:$0xff] %vm444_vm2, %v5518_v16  ;;  %v5516_v62 = vpop.permute.xlu0 %5515 }
 0x3ae   : > { %5599 = vst.msk [vmem:[#allocation3 + $0x60] sm:$0xff] %vm444_vm2, %v5516_v62  ;;  %5823 = vst.msk [vmem:[%s8095_s18 + $0x60] sm:$0xff] %vm444_vm2, %v5516_v62 }
 0x3b0   : > { %v5350_v15 = vpop.permute.xlu1 %5349 }
 0x3b1   : > { %v5436_v10 = vmul.f32 %v5350_v15, %v9356_v19  ;;  %v5348_v27 = vpop.permute.xlu0 %5347 }
 0x3b2   : > { %v5435_v50 = vmul.f32 %v5348_v27, %v9372_v39 }
 0x3b3   : > { %5669 = vrot.lane.b32.xlu1 %v5436_v10, %s7984_s26 }
 0x3b4   : > { %v5522_v58 = vpop.permute.xlu1 %5521  ;;  %5667 = vrot.lane.b32.xlu0 %v5435_v50, %s7984_s26 }
 0x3b5   : > { %5602 = vst.msk [vmem:[#allocation3 + $0x78] sm:$0xff] %vm444_vm2, %v5522_v58  ;;  %5826 = vst.msk [vmem:[%s8095_s18 + $0x78] sm:$0xff] %vm444_vm2, %v5522_v58  ;;  %v5520_v55 = vpop.permute.xlu0 %5519 }
 0x3b6   : > { %5601 = vst.msk [vmem:[#allocation3 + $0x70] sm:$0xff] %vm444_vm2, %v5520_v55  ;;  %5825 = vst.msk [vmem:[%s8095_s18 + $0x70] sm:$0xff] %vm444_vm2, %v5520_v55 }
 0x3b8   : > { %v5354_v19 = vpop.permute.xlu1 %5353 }
 0x3b9   : > { %v5438_v7 = vmul.f32 %v5354_v19, %v9388_v23  ;;  %v5352_v39 = vpop.permute.xlu0 %5351 }
 0x3ba   : > { %v5437_v38 = vmul.f32 %v5352_v39, %v9402_v1 }
 0x3bb   : > { %5673 = vrot.lane.b32.xlu1 %v5438_v7, %s7984_s26 }
 0x3bc   : > { %v5526_v12 = vpop.permute.xlu1 %5525  ;;  %5671 = vrot.lane.b32.xlu0 %v5437_v38, %s7984_s26 }
 0x3bd   : > { %5604 = vst.msk [vmem:[#allocation3 + $0x88] sm:$0xff] %vm444_vm2, %v5526_v12  ;;  %5828 = vst.msk [vmem:[%s8095_s18 + $0x88] sm:$0xff] %vm444_vm2, %v5526_v12  ;;  %v5524_v33 = vpop.permute.xlu0 %5523 }
 0x3be   : > { %5603 = vst.msk [vmem:[#allocation3 + $0x80] sm:$0xff] %vm444_vm2, %v5524_v33  ;;  %5827 = vst.msk [vmem:[%s8095_s18 + $0x80] sm:$0xff] %vm444_vm2, %v5524_v33 }
 0x3c0   : > { %v5358_v23 = vpop.permute.xlu1 %5357 }
 0x3c1   : > { %v5440_v29 = vmul.f32 %v5358_v23, %v9420_v17  ;;  %v5356_v1 = vpop.permute.xlu0 %5355 }
 0x3c2   : > { %v5439_v47 = vmul.f32 %v5356_v1, %v9432_v32 }
 0x3c3   : > { %5677 = vrot.lane.b32.xlu1 %v5440_v29, %s7984_s26 }
 0x3c4   : > { %v5530_v57 = vpop.permute.xlu1 %5529  ;;  %5675 = vrot.lane.b32.xlu0 %v5439_v47, %s7984_s26 }
 0x3c5   : > { %5606 = vst.msk [vmem:[#allocation3 + $0x98] sm:$0xff] %vm444_vm2, %v5530_v57  ;;  %5830 = vst.msk [vmem:[%s8095_s18 + $0x98] sm:$0xff] %vm444_vm2, %v5530_v57  ;;  %v5528_v13 = vpop.permute.xlu0 %5527 }
 0x3c6   : > { %5605 = vst.msk [vmem:[#allocation3 + $0x90] sm:$0xff] %vm444_vm2, %v5528_v13  ;;  %5829 = vst.msk [vmem:[%s8095_s18 + $0x90] sm:$0xff] %vm444_vm2, %v5528_v13 }
 0x3c8   : > { %v5362_v17 = vpop.permute.xlu1 %5361 }
 0x3c9   : > { %v5442_v26 = vmul.f32 %v5362_v17, %v9444_v36  ;;  %v5360_v32 = vpop.permute.xlu0 %5359 }
 0x3ca   : > { %v5441_v31 = vmul.f32 %v5360_v32, %v9454_v42 }
 0x3cb   : > { %5681 = vrot.lane.b32.xlu1 %v5442_v26, %s7984_s26 }
 0x3cc   : > { %v5534_v6 = vpop.permute.xlu1 %5533  ;;  %5679 = vrot.lane.b32.xlu0 %v5441_v31, %s7984_s26 }
 0x3cd   : > { %5608 = vst.msk [vmem:[#allocation3 + $0xa8] sm:$0xff] %vm444_vm2, %v5534_v6  ;;  %5832 = vst.msk [vmem:[%s8095_s18 + $0xa8] sm:$0xff] %vm444_vm2, %v5534_v6  ;;  %v5532_v30 = vpop.permute.xlu0 %5531 }
 0x3ce   : > { %5607 = vst.msk [vmem:[#allocation3 + $0xa0] sm:$0xff] %vm444_vm2, %v5532_v30  ;;  %5831 = vst.msk [vmem:[%s8095_s18 + $0xa0] sm:$0xff] %vm444_vm2, %v5532_v30 }
 0x3d0   : > { %v5366_v36 = vpop.permute.xlu1 %5365 }
 0x3d1   : > { %v5444_v22 = vmul.f32 %v5366_v36, %v9466_v28  ;;  %v5364_v42 = vpop.permute.xlu0 %5363 }
 0x3d2   : > { %v5443_v44 = vmul.f32 %v5364_v42, %v9474_v8 }
 0x3d3   : > { %5685 = vrot.lane.b32.xlu1 %v5444_v22, %s7984_s26 }
 0x3d4   : > { %v5538_v5 = vpop.permute.xlu1 %5537  ;;  %5683 = vrot.lane.b32.xlu0 %v5443_v44, %s7984_s26 }
 0x3d5   : > { %5610 = vst.msk [vmem:[#allocation3 + $0xb8] sm:$0xff] %vm444_vm2, %v5538_v5  ;;  %5834 = vst.msk [vmem:[%s8095_s18 + $0xb8] sm:$0xff] %vm444_vm2, %v5538_v5  ;;  %v5536_v11 = vpop.permute.xlu0 %5535 }
 0x3d6   : > { %5609 = vst.msk [vmem:[#allocation3 + $0xb0] sm:$0xff] %vm444_vm2, %v5536_v11  ;;  %5833 = vst.msk [vmem:[%s8095_s18 + $0xb0] sm:$0xff] %vm444_vm2, %v5536_v11 }
 0x3d8   : > { %v5370_v28 = vpop.permute.xlu1 %5369 }
 0x3d9   : > { %v5446_v24 = vmul.f32 %v5370_v28, %v9486_v51  ;;  %v5368_v8 = vpop.permute.xlu0 %5367 }
 0x3da   : > { %v5445_v63 = vmul.f32 %v5368_v8, %v9494_v14 }
 0x3db   : > { %5689 = vrot.lane.b32.xlu1 %v5446_v24, %s7984_s26 }
 0x3dc   : > { %v5542_v35 = vpop.permute.xlu1 %5541  ;;  %5687 = vrot.lane.b32.xlu0 %v5445_v63, %s7984_s26 }
 0x3dd   : > { %5612 = vst.msk [vmem:[#allocation3 + $0xc8] sm:$0xff] %vm444_vm2, %v5542_v35  ;;  %5836 = vst.msk [vmem:[%s8095_s18 + $0xc8] sm:$0xff] %vm444_vm2, %v5542_v35  ;;  %v5540_v43 = vpop.permute.xlu0 %5539 }
 0x3de   : > { %5611 = vst.msk [vmem:[#allocation3 + $0xc0] sm:$0xff] %vm444_vm2, %v5540_v43  ;;  %5835 = vst.msk [vmem:[%s8095_s18 + $0xc0] sm:$0xff] %vm444_vm2, %v5540_v43 }
 0x3e0   : > { %v5374_v51 = vpop.permute.xlu1 %5373 }
 0x3e1   : > { %v5448_v25 = vmul.f32 %v5374_v51, %v9506_v9  ;;  %v5372_v14 = vpop.permute.xlu0 %5371 }
 0x3e2   : > { %v5447_v59 = vmul.f32 %v5372_v14, %v9514_v52 }
 0x3e3   : > { %5693 = vrot.lane.b32.xlu1 %v5448_v25, %s7984_s26 }
 0x3e4   : > { %v5546_v45 = vpop.permute.xlu1 %5545  ;;  %5691 = vrot.lane.b32.xlu0 %v5447_v59, %s7984_s26 }
 0x3e5   : > { %5614 = vst.msk [vmem:[#allocation3 + $0xd8] sm:$0xff] %vm444_vm2, %v5546_v45  ;;  %5838 = vst.msk [vmem:[%s8095_s18 + $0xd8] sm:$0xff] %vm444_vm2, %v5546_v45  ;;  %v5544_v37 = vpop.permute.xlu0 %5543 }
 0x3e6   : > { %5613 = vst.msk [vmem:[#allocation3 + $0xd0] sm:$0xff] %vm444_vm2, %v5544_v37  ;;  %5837 = vst.msk [vmem:[%s8095_s18 + $0xd0] sm:$0xff] %vm444_vm2, %v5544_v37 }
 0x3e8   : > { %v5378_v9 = vpop.permute.xlu1 %5377 }
 0x3e9   : > { %v5450_v60 = vmul.f32 %v5378_v9, %v9526_v18  ;;  %v5376_v52 = vpop.permute.xlu0 %5375 }
 0x3ea   : > { %v5449_v48 = vmul.f32 %v5376_v52, %v9533_v20 }
 0x3eb   : > { %5697 = vrot.lane.b32.xlu1 %v5450_v60, %s7984_s26 }
 0x3ec   : > { %v5550_v40 = vpop.permute.xlu1 %5549  ;;  %5695 = vrot.lane.b32.xlu0 %v5449_v48, %s7984_s26 }
 0x3ed   : > { %5616 = vst.msk [vmem:[#allocation3 + $0xe8] sm:$0xff] %vm444_vm2, %v5550_v40  ;;  %5840 = vst.msk [vmem:[%s8095_s18 + $0xe8] sm:$0xff] %vm444_vm2, %v5550_v40  ;;  %v5548_v4 = vpop.permute.xlu0 %5547 }
 0x3ee   : > { %5615 = vst.msk [vmem:[#allocation3 + $0xe0] sm:$0xff] %vm444_vm2, %v5548_v4  ;;  %5839 = vst.msk [vmem:[%s8095_s18 + $0xe0] sm:$0xff] %vm444_vm2, %v5548_v4 }
 0x3f0   : > { %v5382_v18 = vpop.permute.xlu1 %5381 }
 0x3f1   : > { %v5452_v20 = vmul.f32 %v5382_v18, %v9544_v2  ;;  %v5380_v0 = vpop.permute.xlu0 %5379 }
 0x3f2   : > { %v5451_v56 = vmul.f32 %v5380_v0, %v9553_v41 }
 0x3f3   : > { %5701 = vrot.lane.b32.xlu1 %v5452_v20, %s7984_s26 }
 0x3f4   : > { %v5554_v34 = vpop.permute.xlu1 %5553  ;;  %5699 = vrot.lane.b32.xlu0 %v5451_v56, %s7984_s26 }
 0x3f5   : > { %5618 = vst.msk [vmem:[#allocation3 + $0xf8] sm:$0xff] %vm444_vm2, %v5554_v34  ;;  %5842 = vst.msk [vmem:[%s8095_s18 + $0xf8] sm:$0xff] %vm444_vm2, %v5554_v34  ;;  %v5552_v49 = vpop.permute.xlu0 %5551 }
 0x3f6   : > { %5617 = vst.msk [vmem:[#allocation3 + $0xf0] sm:$0xff] %vm444_vm2, %v5552_v49  ;;  %5841 = vst.msk [vmem:[%s8095_s18 + $0xf0] sm:$0xff] %vm444_vm2, %v5552_v49  ;;  %s9981_s18 = scalar_lea.sflag [#allocation6], %s10315_s16 }
 0x3f8   : > { %v5386_v2 = vpop.permute.xlu1 %5385 }
 0x3f9   : > { %v5454_v41 = vmul.f32 %v5386_v2, %v9562_v21  ;;  %v5384_v16 = vpop.permute.xlu0 %5383 }
 0x3fa   : > { %v5453_v62 = vmul.f32 %v5384_v16, %v9571_v61 }
 0x3fb   : > { %5705 = vrot.lane.b32.xlu1 %v5454_v41, %s7984_s26 }
 0x3fc   : > { %v5390_v15 = vpop.permute.xlu1 %5389  ;;  %5703 = vrot.lane.b32.xlu0 %v5453_v62, %s7984_s26 }
 0x3fd   : > { %v5456_v21 = vmul.f32 %v5390_v15, %v9579_v53  ;;  %v5388_v10 = vpop.permute.xlu0 %5387 }
 0x3fe   : > { %7898 = shalt.err (!%p7895_p10)
}
 0x3ff   : > { %s7899_s8 = scalar_lea.hbm %s9971_s30, 4096  ;;  %s7903_s20 = scalar_lea.hbm %s10139_s3, 8192 }
 0x400   : > { %p7900_p11 = scmp.ne.s32.totalorder %s9971_s30, %s7899_s8  ;;  %p7904_p0 = scmp.lt.u32.totalorder %s9971_s30, %s10139_s3 }
 0x401   : > { %p7905_p1 = scmp.lt.u32.totalorder %s7903_s20, %s7899_s8  ;;  %p7907_p4 = scmp.lt.u32.totalorder %s7899_s8, %s9971_s30 }
 0x402   : > { %p7901_p12 = pnand %p7900_p11, %p8057_p3 }
 0x403   : > { %p7906_p2 = por %p7905_p1, %p7904_p0 }
 0x404   : > { %p7902_p13 = pneg %p7901_p12 }
 0x405   : > { %p7908_p5 = por %p7907_p4, %p7906_p2 }
 0x407   : > { %p7909_p6 = pnand %p7908_p5, %p7902_p13 }
 0x409   : > { %7912 = shalt.err (!%p7909_p6)
}
 0x40a   : > { %s7986_s27 = smov 128   ;;  %s7987_s22 = smov 8   ;;  %v5455_v61 = vmul.f32 %v5388_v10, %v10311_v3  ;;  %5709 = vrot.lane.b32.xlu1 %v5456_v21, %s7984_s26  ;;  %v5394_v53 = vpop.permute.xlu1 %5393  ;;  %v5392_v50 = vpop.permute.xlu0 %5391 }
 0x40b   : > { %7552 = dma.vmem_to_hbm [thread:$0]  (%p8057_p3), %s9973_s15, 4096, %s9971_s30, %s9981_s18, %s7986_s27, %s7986_s27, %s7987_s22   ;;  %v5458_v27 = vmul.f32 %v5394_v53, %v9595_v46  ;;  %v5457_v58 = vmul.f32 %v5392_v50, %v9603_v54 }
 0x40c   : > { %5707 = vrot.lane.b32.xlu0 %v5455_v61, %s7984_s26 }
 0x40e   : > { %5713 = vrot.lane.b32.xlu1 %v5458_v27, %s7984_s26  ;;  %v5654_v55 = vpop.permute.xlu1 %5653  ;;  %v5652_v3 = vpop.permute.xlu0 %5651 }
 0x40f   : > { %5748 = vst.msk [vmem:[#allocation2 + $0x21] sm:$0xff] %vm444_vm2, %v5654_v55  ;;  %5780 = vst.msk [vmem:[%s8093_s29 + $0x8] sm:$0xff] %vm444_vm2, %v5654_v55 }
 0x410   : > { %5711 = vrot.lane.b32.xlu0 %v5457_v58, %s7984_s26  ;;  %5747 = vst.msk [vmem:[#allocation2 + $0x19] sm:$0xff] %vm444_vm2, %v5652_v3  ;;  %5779 = vst.msk [vmem:[%s8093_s29] sm:$0xff] %vm444_vm2, %v5652_v3 }
 0x412   : > { %v5658_v46 = vpop.permute.xlu1 %5657  ;;  %v5656_v54 = vpop.permute.xlu0 %5655 }
 0x413   : > { %5750 = vst.msk [vmem:[#allocation2 + $0x39] sm:$0xff] %vm444_vm2, %v5658_v46  ;;  %5782 = vst.msk [vmem:[%s8093_s29 + $0x18] sm:$0xff] %vm444_vm2, %v5658_v46 }
 0x414   : > { %5749 = vst.msk [vmem:[#allocation2 + $0x31] sm:$0xff] %vm444_vm2, %v5656_v54  ;;  %5781 = vst.msk [vmem:[%s8093_s29 + $0x10] sm:$0xff] %vm444_vm2, %v5656_v54 }
 0x416   : > { %v5662_v19 = vpop.permute.xlu1 %5661  ;;  %v5660_v7 = vpop.permute.xlu0 %5659 }
 0x417   : > { %5752 = vst.msk [vmem:[#allocation2 + $0x51] sm:$0xff] %vm444_vm2, %v5662_v19  ;;  %5784 = vst.msk [vmem:[%s8093_s29 + $0x28] sm:$0xff] %vm444_vm2, %v5662_v19 }
 0x418   : > { %5751 = vst.msk [vmem:[#allocation2 + $0x49] sm:$0xff] %vm444_vm2, %v5660_v7  ;;  %5783 = vst.msk [vmem:[%s8093_s29 + $0x20] sm:$0xff] %vm444_vm2, %v5660_v7 }
 0x41d   : > { %v5666_v39 = vpop.permute.xlu1 %5665 }
 0x41e   : > { %5754 = vst.msk [vmem:[#allocation2 + $0x69] sm:$0xff] %vm444_vm2, %v5666_v39  ;;  %5786 = vst.msk [vmem:[%s8093_s29 + $0x38] sm:$0xff] %vm444_vm2, %v5666_v39  ;;  %v5664_v38 = vpop.permute.xlu0 %5663 }
 0x41f   : > { %5753 = vst.msk [vmem:[#allocation2 + $0x61] sm:$0xff] %vm444_vm2, %v5664_v38  ;;  %5785 = vst.msk [vmem:[%s8093_s29 + $0x30] sm:$0xff] %vm444_vm2, %v5664_v38 }
 0x425   : > { %v5670_v12 = vpop.permute.xlu1 %5669 }
 0x426   : > { %5756 = vst.msk [vmem:[#allocation2 + $0x81] sm:$0xff] %vm444_vm2, %v5670_v12  ;;  %5788 = vst.msk [vmem:[%s8093_s29 + $0x48] sm:$0xff] %vm444_vm2, %v5670_v12  ;;  %v5668_v33 = vpop.permute.xlu0 %5667 }
 0x427   : > { %5755 = vst.msk [vmem:[#allocation2 + $0x79] sm:$0xff] %vm444_vm2, %v5668_v33  ;;  %5787 = vst.msk [vmem:[%s8093_s29 + $0x40] sm:$0xff] %vm444_vm2, %v5668_v33 }
 0x42d   : > { %v5674_v23 = vpop.permute.xlu1 %5673 }
 0x42e   : > { %5758 = vst.msk [vmem:[#allocation2 + $0x99] sm:$0xff] %vm444_vm2, %v5674_v23  ;;  %5790 = vst.msk [vmem:[%s8093_s29 + $0x58] sm:$0xff] %vm444_vm2, %v5674_v23  ;;  %v5672_v29 = vpop.permute.xlu0 %5671 }
 0x42f   : > { %5757 = vst.msk [vmem:[#allocation2 + $0x91] sm:$0xff] %vm444_vm2, %v5672_v29  ;;  %5789 = vst.msk [vmem:[%s8093_s29 + $0x50] sm:$0xff] %vm444_vm2, %v5672_v29 }
 0x435   : > { %v5678_v1 = vpop.permute.xlu1 %5677 }
 0x436   : > { %5760 = vst.msk [vmem:[#allocation2 + $0xb1] sm:$0xff] %vm444_vm2, %v5678_v1  ;;  %5792 = vst.msk [vmem:[%s8093_s29 + $0x68] sm:$0xff] %vm444_vm2, %v5678_v1  ;;  %v5676_v47 = vpop.permute.xlu0 %5675 }
 0x437   : > { %5759 = vst.msk [vmem:[#allocation2 + $0xa9] sm:$0xff] %vm444_vm2, %v5676_v47  ;;  %5791 = vst.msk [vmem:[%s8093_s29 + $0x60] sm:$0xff] %vm444_vm2, %v5676_v47 }
 0x43d   : > { %v5682_v57 = vpop.permute.xlu1 %5681 }
 0x43e   : > { %5762 = vst.msk [vmem:[#allocation2 + $0xc9] sm:$0xff] %vm444_vm2, %v5682_v57  ;;  %5794 = vst.msk [vmem:[%s8093_s29 + $0x78] sm:$0xff] %vm444_vm2, %v5682_v57  ;;  %v5680_v13 = vpop.permute.xlu0 %5679 }
 0x43f   : > { %5761 = vst.msk [vmem:[#allocation2 + $0xc1] sm:$0xff] %vm444_vm2, %v5680_v13  ;;  %5793 = vst.msk [vmem:[%s8093_s29 + $0x70] sm:$0xff] %vm444_vm2, %v5680_v13 }
 0x445   : > { %v5686_v17 = vpop.permute.xlu1 %5685 }
 0x446   : > { %5764 = vst.msk [vmem:[#allocation2 + $0xe1] sm:$0xff] %vm444_vm2, %v5686_v17  ;;  %5796 = vst.msk [vmem:[%s8093_s29 + $0x88] sm:$0xff] %vm444_vm2, %v5686_v17  ;;  %v5684_v26 = vpop.permute.xlu0 %5683 }
 0x447   : > { %5763 = vst.msk [vmem:[#allocation2 + $0xd9] sm:$0xff] %vm444_vm2, %v5684_v26  ;;  %5795 = vst.msk [vmem:[%s8093_s29 + $0x80] sm:$0xff] %vm444_vm2, %v5684_v26 }
 0x44d   : > { %v5690_v32 = vpop.permute.xlu1 %5689 }
 0x44e   : > { %5766 = vst.msk [vmem:[#allocation2 + $0xf9] sm:$0xff] %vm444_vm2, %v5690_v32  ;;  %5798 = vst.msk [vmem:[%s8093_s29 + $0x98] sm:$0xff] %vm444_vm2, %v5690_v32  ;;  %v5688_v31 = vpop.permute.xlu0 %5687 }
 0x44f   : > { %5765 = vst.msk [vmem:[#allocation2 + $0xf1] sm:$0xff] %vm444_vm2, %v5688_v31  ;;  %5797 = vst.msk [vmem:[%s8093_s29 + $0x90] sm:$0xff] %vm444_vm2, %v5688_v31 }
 0x455   : > { %v5694_v6 = vpop.permute.xlu1 %5693 }
 0x456   : > { %5768 = vst.msk [vmem:[#allocation2 + $0x111] sm:$0xff] %vm444_vm2, %v5694_v6  ;;  %5800 = vst.msk [vmem:[%s8093_s29 + $0xa8] sm:$0xff] %vm444_vm2, %v5694_v6  ;;  %v5692_v30 = vpop.permute.xlu0 %5691 }
 0x457   : > { %5767 = vst.msk [vmem:[#allocation2 + $0x109] sm:$0xff] %vm444_vm2, %v5692_v30  ;;  %5799 = vst.msk [vmem:[%s8093_s29 + $0xa0] sm:$0xff] %vm444_vm2, %v5692_v30 }
 0x45d   : > { %v5698_v36 = vpop.permute.xlu1 %5697 }
 0x45e   : > { %5770 = vst.msk [vmem:[#allocation2 + $0x129] sm:$0xff] %vm444_vm2, %v5698_v36  ;;  %5802 = vst.msk [vmem:[%s8093_s29 + $0xb8] sm:$0xff] %vm444_vm2, %v5698_v36  ;;  %v5696_v22 = vpop.permute.xlu0 %5695 }
 0x45f   : > { %5769 = vst.msk [vmem:[#allocation2 + $0x121] sm:$0xff] %vm444_vm2, %v5696_v22  ;;  %5801 = vst.msk [vmem:[%s8093_s29 + $0xb0] sm:$0xff] %vm444_vm2, %v5696_v22 }
 0x465   : > { %v5702_v42 = vpop.permute.xlu1 %5701 }
 0x466   : > { %5772 = vst.msk [vmem:[#allocation2 + $0x141] sm:$0xff] %vm444_vm2, %v5702_v42  ;;  %5804 = vst.msk [vmem:[%s8093_s29 + $0xc8] sm:$0xff] %vm444_vm2, %v5702_v42  ;;  %v5700_v44 = vpop.permute.xlu0 %5699 }
 0x467   : > { %5771 = vst.msk [vmem:[#allocation2 + $0x139] sm:$0xff] %vm444_vm2, %v5700_v44  ;;  %5803 = vst.msk [vmem:[%s8093_s29 + $0xc0] sm:$0xff] %vm444_vm2, %v5700_v44 }
 0x46d   : > { %v5706_v5 = vpop.permute.xlu1 %5705 }
 0x46e   : > { %5774 = vst.msk [vmem:[#allocation2 + $0x159] sm:$0xff] %vm444_vm2, %v5706_v5  ;;  %5806 = vst.msk [vmem:[%s8093_s29 + $0xd8] sm:$0xff] %vm444_vm2, %v5706_v5  ;;  %v5704_v11 = vpop.permute.xlu0 %5703 }
 0x46f   : > { %5773 = vst.msk [vmem:[#allocation2 + $0x151] sm:$0xff] %vm444_vm2, %v5704_v11  ;;  %5805 = vst.msk [vmem:[%s8093_s29 + $0xd0] sm:$0xff] %vm444_vm2, %v5704_v11 }
 0x47c   : > { %v5710_v28 = vpop.permute.xlu1 %5709 }
 0x47d   : > { %5776 = vst.msk [vmem:[#allocation2 + $0x171] sm:$0xff] %vm444_vm2, %v5710_v28  ;;  %5808 = vst.msk [vmem:[%s8093_s29 + $0xe8] sm:$0xff] %vm444_vm2, %v5710_v28 }
 0x47e   : > { %v5708_v24 = vpop.permute.xlu0 %5707 }
 0x47f   : > { %5775 = vst.msk [vmem:[#allocation2 + $0x169] sm:$0xff] %vm444_vm2, %v5708_v24  ;;  %5807 = vst.msk [vmem:[%s8093_s29 + $0xe0] sm:$0xff] %vm444_vm2, %v5708_v24 }
 0x480   : > { %v5714_v8 = vpop.permute.xlu1 %5713 }
 0x481   : > { %5778 = vst.msk [vmem:[#allocation2 + $0x189] sm:$0xff] %vm444_vm2, %v5714_v8  ;;  %5810 = vst.msk [vmem:[%s8093_s29 + $0xf8] sm:$0xff] %vm444_vm2, %v5714_v8 }
 0x482   : > { %v5712_v63 = vpop.permute.xlu0 %5711 }
 0x483   : > { %5777 = vst.msk [vmem:[#allocation2 + $0x181] sm:$0xff] %vm444_vm2, %v5712_v63  ;;  %5809 = vst.msk [vmem:[%s8093_s29 + $0xf0] sm:$0xff] %vm444_vm2, %v5712_v63 }
 0x484 PF: > { %p7558_p3 = scmp.ge.s32.totalorder %s7979_s19, 2  ;;  %s5896_s24 = sand.u32 1, %s7951_s12  }
 0x485   : > { %s5897_s26 = scalar_lea.sflag [#allocation6], %s5896_s24 }
 0x486   : > { %p7555_p7 = pnand %p7558_p3, %p8067_p9 }
 0x488   : > { %7946 = dma.done.wait (!%p7555_p7), %s5897_s26, 4096  }
 0x489   : > { %7948 = vsyncadd (!%p7555_p7), %s5897_s26, 4294963200  ;;  %s17_s19 = sadd.s32 1, %s7979_s19   ;;  %s10316_s16 = sld [smem:[#allocation8_spill]] }
 0x48a   : > { %p14_p8 = scmp.ge.s32.totalorder %s17_s19, 18   ;;  %s10317_s29 = sld [smem:[#allocation9_spill]] }
 0x48b   : > { %s10318_s18 = sld [smem:[#allocation10_spill]]  ;;  %s10319_s12 = smov %s7955_s13 }
 0x48c   : > { %s10320_s13 = smov %s7959_s14  ;;  %s10321_s14 = smov %s8075_s28 }
 0x48d   : > { %s10322_s15 = smov %s7971_s17  ;;  %16 = sbr.rel (!%p14_p8) target bundleno = 5 (0x5), region = 89 }
 0x490   : > { %s10323_s17 = smov %s10317_s29 }
 0x494   :  { %5902 = vsyncpa [#allocation6], 1 }
 0x495   :  { %5904 = vsyncpa [#allocation6 + $0x1], 1 }

// kernel: convlstm_forward.4
= control target key start
LH: loop header
LB: loop body
LE: loop exit
PB: predicated region body
PF: predicated region fallthrough
CT: control target
= control target key end

     0   :  { %s11133_s12 = smov 0   ;;  %s13124_s0 = inlined_call_operand.vmem [shape: f32[8,2,18,18,8], index: 0, kind: input, shape index: {}]   ;;  %s13125_s1 = inlined_call_operand.vmem [shape: f32[9,8,128], index: 1, kind: input, shape index: {}]   ;;  %s13126_s2 = inlined_call_operand.vmem [shape: f32[1,128], index: 2, kind: input, shape index: {}]   ;;  %s13127_s3 = inlined_call_operand.vmem [shape: f32[8,512,128], index: 3, kind: output, shape index: {}]  }
   0x1 LB: > { %s7814_s13 = sadd.s32 4294967295, %s11111_s12   ;;  %p7818_p0 = scmp.ge.s32.totalorder %s11111_s12, 1  ;;  %s11111_s12 = sphi %s11133_s12, %s13_s12  }
   0x2   : > { %p137_p1 = scmp.lt.s32.totalorder %s11111_s12, 9 }
   0x4   : > { %p138_p2 = pnand %p7818_p0, %p137_p1 }
   0x6   : > { %141 = sbr.rel (%p138_p2) target bundleno = 811 (0x32b), region = 32 }
   0xd   : > { %v370_v0 = vld [vmem:[%s13125_s1] sm:$0xff]  ;;  %p161_p3 = scmp.lt.s32.totalorder %s7814_s13, 7  ;;  %v7887_v2 = vld [vmem:[%s13125_s1 + $0x8] sm:$0xff]  ;;  %vm371_vm0 = vcmask 64512   ;;  %v11186_v10 = vld [vmem:[%s13125_s1 + $0x30] sm:$0xff] }
   0xe   : > { %v11147_v1 = vld [vmem:[%s13125_s1 + $0x20] sm:$0xff]  ;;  %9379 = vmatprep.subr.mxu1 %v370_v0  ;;  %v8339_v3 = vld [vmem:[%s13125_s1 + $0x28] sm:$0xff]  ;;  %v11191_v11 = vld [vmem:[%s13125_s1 + $0x10] sm:$0xff] }
   0xf   : > { %13197 = vst [vmem:[#allocation2_spill] sm:$0xff] %v11147_v1  ;;  %9771 = vmatprep.subr.mxu0 %v11147_v1  ;;  %9380 = vmatpush3.msra.mxu1 %v370_v0  ;;  %s13336_s13 = smov (!%p161_p3, %s7814_s13), 7 }
  0x10   : > { %9772 = vmatpush3.msra.mxu0 %v11147_v1  ;;  %9477 = vmatprep.subr.mxu1 %v7887_v2  ;;  %s11095_s22 = smul.u32 864, %s13336_s13  ;;  %s8793_s11 = sshll.u32 %s13336_s13, 9 }
  0x11   : > { %9869 = vmatprep.subr.mxu0 %v8339_v3  ;;  %s12650_s16 = scalar_lea.vmem %s13127_s3, %s8793_s11 }
  0x12   : > { %s11163_s25 = scalar_lea.vmem %s13124_s0, %s11095_s22 }
  0x13   : > { %v242_v4 = vld [vmem:[%s11163_s25] sm:$0xff]  ;;  %v243_v6 = vld [vmem:[%s11163_s25 + $0x8] sm:$0xff]  ;;  %v244_v8 = vld [vmem:[%s11163_s25 + $0x18] sm:$0xff] }
  0x14   : > { %v11167_v5 = vld [vmem:[%s11163_s25 + $0x19] sm:$0xff]  ;;  %9381 = vmatprep.mubr.msk.f32.mxu1 %vm371_vm0, %v242_v4  ;;  %v11174_v7 = vld [vmem:[%s11163_s25 + $0x21] sm:$0xff]  ;;  %v11178_v9 = vld [vmem:[%s11163_s25 + $0x31] sm:$0xff] }
  0x15   : > { %9773 = vmatprep.mubr.msk.f32.mxu0 %vm371_vm0, %v11167_v5  ;;  %9382 = vmatmul.mubr.msk.f32.vlgmr.msra.gmra.mrb[0].mxu1 %vm371_vm0, %v243_v6  ;;  %v245_v12 = vld [vmem:[%s11163_s25 + $0x20] sm:$0xff]  ;;  %v11201_v14 = vld [vmem:[%s11163_s25 + $0x30] sm:$0xff]  ;;  %v11216_v16 = vld [vmem:[%s11163_s25 + $0x38] sm:$0xff] }
  0x16   : > { %9774 = vmatmul.mubr.msk.f32.vlgmr.msra.gmra.mrb[0].mxu0 %vm371_vm0, %v11174_v7  ;;  %9478 = vmatpush3.msra.mxu1 %v7887_v2  ;;  %v11196_v13 = vld [vmem:[%s11163_s25 + $0x39] sm:$0xff]  ;;  %v11204_v15 = vld [vmem:[%s11163_s25 + $0x49] sm:$0xff]  ;;  %v11219_v17 = vld [vmem:[%s11163_s25 + $0x51] sm:$0xff] }
  0x17   : > { %9384 = vmatprep.mubr.msk.f32.mxu1 %vm371_vm0, %v244_v8  ;;  %9776 = vmatprep.mubr.msk.f32.mxu0 %vm371_vm0, %v11178_v9  ;;  %v11222_v18 = vld [vmem:[%s11163_s25 + $0x48] sm:$0xff]  ;;  %v11236_v20 = vld [vmem:[%s11163_s25 + $0x50] sm:$0xff]  ;;  %v11242_v22 = vld [vmem:[%s11163_s25 + $0x60] sm:$0xff] }
  0x18   : > { %9870 = vmatpush3.msra.mxu0 %v8339_v3  ;;  %9575 = vmatprep.subr.mxu1 %v11191_v11  ;;  %v11225_v19 = vld [vmem:[%s11163_s25 + $0x61] sm:$0xff]  ;;  %v11239_v21 = vld [vmem:[%s11163_s25 + $0x69] sm:$0xff]  ;;  %v11245_v23 = vld [vmem:[%s11163_s25 + $0x79] sm:$0xff] }
  0x19   : > { %9967 = vmatprep.subr.mxu0 %v11186_v10  ;;  %9385 = vmatmul.mubr.msk.f32.gmra.mrb[2].mxu1 %vm371_vm0, %v245_v12  ;;  %v11256_v24 = vld [vmem:[%s11163_s25 + $0x68] sm:$0xff]  ;;  %v11262_v26 = vld [vmem:[%s11163_s25 + $0x78] sm:$0xff]  ;;  %v11276_v28 = vld [vmem:[%s11163_s25 + $0x80] sm:$0xff] }
  0x1a   : > { %9777 = vmatmul.mubr.msk.f32.gmra.mrb[2].mxu0 %vm371_vm0, %v11196_v13  ;;  %9387 = vmatprep.mubr.msk.f32.mxu1 %vm371_vm0, %v11201_v14  ;;  %v11259_v25 = vld [vmem:[%s11163_s25 + $0x81] sm:$0xff]  ;;  %v11265_v27 = vld [vmem:[%s11163_s25 + $0x91] sm:$0xff]  ;;  %v11279_v29 = vld [vmem:[%s11163_s25 + $0x99] sm:$0xff] }
  0x1b   : > { %9779 = vmatprep.mubr.msk.f32.mxu0 %vm371_vm0, %v11204_v15  ;;  %v11282_v30 = vld [vmem:[%s11163_s25 + $0x90] sm:$0xff]  ;;  %v11296_v32 = vld [vmem:[%s11163_s25 + $0x98] sm:$0xff]  ;;  %v11302_v34 = vld [vmem:[%s11163_s25 + $0xa8] sm:$0xff] }
  0x1c   : > { %v11285_v31 = vld [vmem:[%s11163_s25 + $0xa9] sm:$0xff]  ;;  %v11299_v33 = vld [vmem:[%s11163_s25 + $0xb1] sm:$0xff]  ;;  %v11305_v35 = vld [vmem:[%s11163_s25 + $0xc1] sm:$0xff] }
  0x1d   : > { %9388 = vmatmul.mubr.msk.f32.gmra.mrb[4].mxu1 %vm371_vm0, %v11216_v16  ;;  %v11316_v36 = vld [vmem:[%s11163_s25 + $0xb0] sm:$0xff]  ;;  %v11322_v38 = vld [vmem:[%s11163_s25 + $0xc0] sm:$0xff]  ;;  %v11336_v40 = vld [vmem:[%s11163_s25 + $0xc8] sm:$0xff] }
  0x1e   : > { %9780 = vmatmul.mubr.msk.f32.gmra.mrb[4].mxu0 %vm371_vm0, %v11219_v17  ;;  %9390 = vmatprep.mubr.msk.f32.mxu1 %vm371_vm0, %v11222_v18  ;;  %v11319_v37 = vld [vmem:[%s11163_s25 + $0xc9] sm:$0xff]  ;;  %v11325_v39 = vld [vmem:[%s11163_s25 + $0xd9] sm:$0xff]  ;;  %v11339_v41 = vld [vmem:[%s11163_s25 + $0xe1] sm:$0xff] }
  0x1f   : > { %9782 = vmatprep.mubr.msk.f32.mxu0 %vm371_vm0, %v11225_v19  ;;  %v11342_v42 = vld [vmem:[%s11163_s25 + $0xd8] sm:$0xff]  ;;  %v11356_v44 = vld [vmem:[%s11163_s25 + $0xe0] sm:$0xff]  ;;  %v11362_v46 = vld [vmem:[%s11163_s25 + $0xf0] sm:$0xff] }
  0x20   : > { %v11345_v43 = vld [vmem:[%s11163_s25 + $0xf1] sm:$0xff]  ;;  %v11359_v45 = vld [vmem:[%s11163_s25 + $0xf9] sm:$0xff]  ;;  %v11365_v47 = vld [vmem:[%s11163_s25 + $0x109] sm:$0xff] }
  0x21   : > { %9391 = vmatmul.mubr.msk.f32.gmra.mrb[6].mxu1 %vm371_vm0, %v11236_v20  ;;  %v11376_v48 = vld [vmem:[%s11163_s25 + $0xf8] sm:$0xff]  ;;  %v11382_v50 = vld [vmem:[%s11163_s25 + $0x108] sm:$0xff]  ;;  %v11396_v52 = vld [vmem:[%s11163_s25 + $0x110] sm:$0xff] }
  0x22   : > { %9783 = vmatmul.mubr.msk.f32.gmra.mrb[6].mxu0 %vm371_vm0, %v11239_v21  ;;  %9393 = vmatprep.mubr.msk.f32.mxu1 %vm371_vm0, %v11242_v22  ;;  %v11379_v49 = vld [vmem:[%s11163_s25 + $0x111] sm:$0xff]  ;;  %v11385_v51 = vld [vmem:[%s11163_s25 + $0x121] sm:$0xff]  ;;  %v11399_v53 = vld [vmem:[%s11163_s25 + $0x129] sm:$0xff] }
  0x23   : > { %9785 = vmatprep.mubr.msk.f32.mxu0 %vm371_vm0, %v11245_v23  ;;  %v11402_v54 = vld [vmem:[%s11163_s25 + $0x120] sm:$0xff]  ;;  %v11416_v56 = vld [vmem:[%s11163_s25 + $0x128] sm:$0xff]  ;;  %v11422_v58 = vld [vmem:[%s11163_s25 + $0x138] sm:$0xff] }
  0x24   : > { %v11405_v55 = vld [vmem:[%s11163_s25 + $0x139] sm:$0xff]  ;;  %v11419_v57 = vld [vmem:[%s11163_s25 + $0x141] sm:$0xff]  ;;  %v11425_v59 = vld [vmem:[%s11163_s25 + $0x151] sm:$0xff] }
  0x25   : > { %9394 = vmatmul.mubr.msk.f32.gmra.mrb[8].mxu1 %vm371_vm0, %v11256_v24  ;;  %v11436_v60 = vld [vmem:[%s11163_s25 + $0x140] sm:$0xff]  ;;  %v11442_v62 = vld [vmem:[%s11163_s25 + $0x150] sm:$0xff]  ;;  %v11456_v0 = vld [vmem:[%s11163_s25 + $0x158] sm:$0xff] }
  0x26   : > { %9786 = vmatmul.mubr.msk.f32.gmra.mrb[8].mxu0 %vm371_vm0, %v11259_v25  ;;  %9396 = vmatprep.mubr.msk.f32.mxu1 %vm371_vm0, %v11262_v26  ;;  %v11439_v61 = vld [vmem:[%s11163_s25 + $0x159] sm:$0xff]  ;;  %13198 = vst [vmem:[#allocation3_spill] sm:$0xff] %v11442_v62  ;;  %v11445_v63 = vld [vmem:[%s11163_s25 + $0x169] sm:$0xff]  ;;  %13199 = vst [vmem:[#allocation4_spill] sm:$0xff] %v11456_v0 }
  0x27   : > { %9788 = vmatprep.mubr.msk.f32.mxu0 %vm371_vm0, %v11265_v27  ;;  %v11459_v2 = vld [vmem:[%s11163_s25 + $0x171] sm:$0xff]  ;;  %v11462_v3 = vld [vmem:[%s11163_s25 + $0x168] sm:$0xff]  ;;  %v11478_v1 = vld [vmem:[%s11163_s25 + $0x1a] sm:$0xff] }
  0x28   : > { %13200 = vst [vmem:[#allocation5_spill] sm:$0xff] %v11462_v3  ;;  %v8176_v4 = vld [vmem:[%s11163_s25 + $0x181] sm:$0xff]  ;;  %v11473_v6 = vld [vmem:[%s11163_s25 + $0x170] sm:$0xff]  ;;  %13202 = vst [vmem:[#allocation7_spill] sm:$0xff] %v11478_v1 }
  0x29   : > { %9397 = vmatmul.mubr.msk.f32.gmra.mrb[10].mxu1 %vm371_vm0, %v11276_v28  ;;  %13201 = vst [vmem:[#allocation6_spill] sm:$0xff] %v11473_v6  ;;  %v8177_v8 = vld [vmem:[%s11163_s25 + $0x189] sm:$0xff] }
  0x2a   : > { %9789 = vmatmul.mubr.msk.f32.gmra.mrb[10].mxu0 %vm371_vm0, %v11279_v29  ;;  %9399 = vmatprep.mubr.msk.f32.mxu1 %vm371_vm0, %v11282_v30  ;;  %v274_v12 = vld [vmem:[%s11163_s25 + $0x1b0] sm:$0xff] }
  0x2b   : > { %9791 = vmatprep.mubr.msk.f32.mxu0 %vm371_vm0, %v11285_v31 }
  0x2d   : > { %9400 = vmatmul.mubr.msk.f32.gmra.mrb[12].mxu1 %vm371_vm0, %v11296_v32 }
  0x2e   : > { %9792 = vmatmul.mubr.msk.f32.gmra.mrb[12].mxu0 %vm371_vm0, %v11299_v33  ;;  %9402 = vmatprep.mubr.msk.f32.mxu1 %vm371_vm0, %v11302_v34 }
  0x2f   : > { %9794 = vmatprep.mubr.msk.f32.mxu0 %vm371_vm0, %v11305_v35 }
  0x31   : > { %9403 = vmatmul.mubr.msk.f32.gmra.mrb[14].mxu1 %vm371_vm0, %v11316_v36 }
  0x32   : > { %9795 = vmatmul.mubr.msk.f32.gmra.mrb[14].mxu0 %vm371_vm0, %v11319_v37  ;;  %9405 = vmatprep.mubr.msk.f32.mxu1 %vm371_vm0, %v11322_v38 }
  0x33   : > { %9797 = vmatprep.mubr.msk.f32.mxu0 %vm371_vm0, %v11325_v39 }
  0x35   : > { %9406 = vmatmul.mubr.msk.f32.gmra.mrb[16].mxu1 %vm371_vm0, %v11336_v40 }
  0x36   : > { %9798 = vmatmul.mubr.msk.f32.gmra.mrb[16].mxu0 %vm371_vm0, %v11339_v41  ;;  %9408 = vmatprep.mubr.msk.f32.mxu1 %vm371_vm0, %v11342_v42 }
  0x37   : > { %9800 = vmatprep.mubr.msk.f32.mxu0 %vm371_vm0, %v11345_v43 }
  0x39   : > { %9409 = vmatmul.mubr.msk.f32.gmra.mrb[18].mxu1 %vm371_vm0, %v11356_v44 }
  0x3a   : > { %9801 = vmatmul.mubr.msk.f32.gmra.mrb[18].mxu0 %vm371_vm0, %v11359_v45  ;;  %9411 = vmatprep.mubr.msk.f32.mxu1 %vm371_vm0, %v11362_v46 }
  0x3b   : > { %9803 = vmatprep.mubr.msk.f32.mxu0 %vm371_vm0, %v11365_v47 }
  0x3d   : > { %9412 = vmatmul.mubr.msk.f32.gmra.mrb[20].mxu1 %vm371_vm0, %v11376_v48 }
  0x3e   : > { %9804 = vmatmul.mubr.msk.f32.gmra.mrb[20].mxu0 %vm371_vm0, %v11379_v49  ;;  %9414 = vmatprep.mubr.msk.f32.mxu1 %vm371_vm0, %v11382_v50 }
  0x3f   : > { %9806 = vmatprep.mubr.msk.f32.mxu0 %vm371_vm0, %v11385_v51 }
  0x41   : > { %9415 = vmatmul.mubr.msk.f32.gmra.mrb[22].mxu1 %vm371_vm0, %v11396_v52 }
  0x42   : > { %9807 = vmatmul.mubr.msk.f32.gmra.mrb[22].mxu0 %vm371_vm0, %v11399_v53  ;;  %9417 = vmatprep.mubr.msk.f32.mxu1 %vm371_vm0, %v11402_v54 }
  0x43   : > { %9809 = vmatprep.mubr.msk.f32.mxu0 %vm371_vm0, %v11405_v55 }
  0x45   : > { %9418 = vmatmul.mubr.msk.f32.gmra.mrb[24].mxu1 %vm371_vm0, %v11416_v56 }
  0x46   : > { %9810 = vmatmul.mubr.msk.f32.gmra.mrb[24].mxu0 %vm371_vm0, %v11419_v57  ;;  %9420 = vmatprep.mubr.msk.f32.mxu1 %vm371_vm0, %v11422_v58 }
  0x47   : > { %9812 = vmatprep.mubr.msk.f32.mxu0 %vm371_vm0, %v11425_v59 }
  0x49   : > { %9421 = vmatmul.mubr.msk.f32.gmra.mrb[26].mxu1 %vm371_vm0, %v11436_v60 }
  0x4a   : > { %9813 = vmatmul.mubr.msk.f32.gmra.mrb[26].mxu0 %vm371_vm0, %v11439_v61  ;;  %9423 = vmatprep.mubr.msk.f32.mxu1 %vm371_vm0, %v11442_v62  ;;  %v11492_v62 = vld [vmem:[%s11163_s25 + $0x32] sm:$0xff] }
  0x4b   : > { %9815 = vmatprep.mubr.msk.f32.mxu0 %vm371_vm0, %v11445_v63  ;;  %13204 = vst [vmem:[#allocation9_spill] sm:$0xff] %v11492_v62 }
  0x4d   : > { %9424 = vmatmul.mubr.msk.f32.gmra.mrb[28].mxu1 %vm371_vm0, %v11456_v0  ;;  %v276_v0 = vld [vmem:[%s11163_s25 + $0x1c8] sm:$0xff] }
  0x4e   : > { %9816 = vmatmul.mubr.msk.f32.gmra.mrb[28].mxu0 %vm371_vm0, %v11459_v2  ;;  %9426 = vmatprep.mubr.msk.f32.mxu1 %vm371_vm0, %v11462_v3  ;;  %v11488_v3 = vld [vmem:[%s11163_s25 + $0x22] sm:$0xff] }
  0x4f   : > { %9818 = vmatprep.mubr.msk.f32.mxu0 %vm371_vm0, %v8176_v4  ;;  %v275_v4 = vld [vmem:[%s11163_s25 + $0x1b8] sm:$0xff]  ;;  %13203 = vst [vmem:[#allocation8_spill] sm:$0xff] %v11488_v3 }
  0x51   : > { %9427 = vmatmul.mubr.msk.f32.gmra.mrb[30].mxu1 %vm371_vm0, %v11473_v6  ;;  %v11508_v6 = vld [vmem:[%s11163_s25 + $0x4a] sm:$0xff] }
  0x52   : > { %9819 = vmatmul.mubr.msk.f32.gmra.mrb[30].mxu0 %vm371_vm0, %v8177_v8  ;;  %9429 = vmatprep.mubr.msk.f32.mxu1 %vm371_vm0, %v274_v12  ;;  %v277_v8 = vld [vmem:[%s11163_s25 + $0x1d0] sm:$0xff]  ;;  %v11502_v12 = vld [vmem:[%s11163_s25 + $0x3a] sm:$0xff]  ;;  %13207 = vst [vmem:[#allocation12_spill] sm:$0xff] %v11508_v6 }
  0x53   : > { %9871 = vmatprep.mubr.msk.f32.mxu0 %vm371_vm0, %v11478_v1  ;;  %13205 = vst [vmem:[#allocation10_spill] sm:$0xff] %v11502_v12  ;;  %v11505_v1 = vld [vmem:[%s11163_s25 + $0x1e0] sm:$0xff] }
  0x54   : > { %13206 = vst [vmem:[#allocation11_spill] sm:$0xff] %v11505_v1 }
  0x55   : > { %9430 = vmatmul.mubr.msk.f32.gmra.mrb[32].mxu1 %vm371_vm0, %v275_v4  ;;  %v11522_v4 = vld [vmem:[%s11163_s25 + $0x52] sm:$0xff] }
  0x56   : > { %9872 = vmatmul.mubr.msk.f32.vlgmr.msra.gmra.mrb[0].mxu0 %vm371_vm0, %v11488_v3  ;;  %9432 = vmatprep.mubr.msk.f32.mxu1 %vm371_vm0, %v276_v0  ;;  %v11519_v0 = vld [vmem:[%s11163_s25 + $0x1e8] sm:$0xff]  ;;  %13209 = vst [vmem:[#allocation14_spill] sm:$0xff] %v11522_v4  ;;  %v11550_v3 = vld [vmem:[%s11163_s25 + $0x210] sm:$0xff] }
  0x57   : > { %9874 = vmatprep.mubr.msk.f32.mxu0 %vm371_vm0, %v11492_v62  ;;  %9968 = vmatpush3.msra.mxu0 %v11186_v10  ;;  %13208 = vst [vmem:[#allocation13_spill] sm:$0xff] %v11519_v0  ;;  %v11525_v62 = vld [vmem:[%s11163_s25 + $0x1f8] sm:$0xff]  ;;  %v11528_v10 = vld [vmem:[%s11163_s25 + $0x62] sm:$0xff]  ;;  %13214 = vst [vmem:[#allocation19_spill] sm:$0xff] %v11550_v3 }
  0x58   : > { %13210 = vst [vmem:[#allocation15_spill] sm:$0xff] %v11525_v62  ;;  %13211 = vst [vmem:[#allocation16_spill] sm:$0xff] %v11528_v10 }
  0x59   : > { %9433 = vmatmul.mubr.msk.f32.gmra.mrb[34].mxu1 %vm371_vm0, %v277_v8  ;;  %v11537_v8 = vld [vmem:[%s13125_s1 + $0x38] sm:$0xff] }
  0x5a   : > { %9875 = vmatmul.mubr.msk.f32.gmra.mrb[2].mxu0 %vm371_vm0, %v11502_v12  ;;  %9435 = vmatprep.mubr.msk.f32.mxu1 %vm371_vm0, %v11505_v1  ;;  %v11547_v12 = vld [vmem:[%s11163_s25 + $0x6a] sm:$0xff]  ;;  %v11574_v1 = vld [vmem:[%s11163_s25 + $0x92] sm:$0xff] }
  0x5b   : > { %9877 = vmatprep.mubr.msk.f32.mxu0 %vm371_vm0, %v11508_v6  ;;  %v11544_v6 = vld [vmem:[%s11163_s25 + $0x200] sm:$0xff]  ;;  %13213 = vst [vmem:[#allocation18_spill] sm:$0xff] %v11547_v12  ;;  %10065 = vmatprep.subr.mxu0 %v11537_v8  ;;  %13219 = vst [vmem:[#allocation24_spill] sm:$0xff] %v11574_v1 }
  0x5c   : > { %13212 = vst [vmem:[#allocation17_spill] sm:$0xff] %v11544_v6 }
  0x5d   : > { %9436 = vmatmul.mubr.msk.f32.gmra.mrb[36].mxu1 %vm371_vm0, %v11519_v0  ;;  %v11571_v0 = vld [vmem:[%s11163_s25 + $0x228] sm:$0xff] }
  0x5e   : > { %9878 = vmatmul.mubr.msk.f32.gmra.mrb[4].mxu0 %vm371_vm0, %v11522_v4  ;;  %9438 = vmatprep.mubr.msk.f32.mxu1 %vm371_vm0, %v11525_v62  ;;  %v11553_v4 = vld [vmem:[%s11163_s25 + $0x7a] sm:$0xff]  ;;  %v11568_v62 = vld [vmem:[%s11163_s25 + $0x82] sm:$0xff]  ;;  %13218 = vst [vmem:[#allocation23_spill] sm:$0xff] %v11571_v0 }
  0x5f   : > { %9880 = vmatprep.mubr.msk.f32.mxu0 %vm371_vm0, %v11528_v10  ;;  %13215 = vst [vmem:[#allocation20_spill] sm:$0xff] %v11553_v4  ;;  %v11565_v10 = vld [vmem:[%s11163_s25 + $0x218] sm:$0xff]  ;;  %13217 = vst [vmem:[#allocation22_spill] sm:$0xff] %v11568_v62 }
  0x60   : > { %13216 = vst [vmem:[#allocation21_spill] sm:$0xff] %v11565_v10 }
  0x61   : > { %9439 = vmatmul.mubr.msk.f32.gmra.mrb[38].mxu1 %vm371_vm0, %v11544_v6  ;;  %v11594_v6 = vld [vmem:[%s11163_s25 + $0xaa] sm:$0xff] }
  0x62   : > { %9881 = vmatmul.mubr.msk.f32.gmra.mrb[6].mxu0 %vm371_vm0, %v11547_v12  ;;  %9441 = vmatprep.mubr.msk.f32.mxu1 %vm371_vm0, %v11550_v3  ;;  %v11588_v12 = vld [vmem:[%s11163_s25 + $0x9a] sm:$0xff]  ;;  %13223 = vst [vmem:[#allocation28_spill] sm:$0xff] %v11594_v6 }
  0x63   : > { %9883 = vmatprep.mubr.msk.f32.mxu0 %vm371_vm0, %v11553_v4  ;;  %v11585_v4 = vld [vmem:[%s11163_s25 + $0x230] sm:$0xff]  ;;  %13221 = vst [vmem:[#allocation26_spill] sm:$0xff] %v11588_v12  ;;  %v11591_v3 = vld [vmem:[%s11163_s25 + $0x240] sm:$0xff] }
  0x64   : > { %13220 = vst [vmem:[#allocation25_spill] sm:$0xff] %v11585_v4  ;;  %13222 = vst [vmem:[#allocation27_spill] sm:$0xff] %v11591_v3 }
  0x65   : > { %9442 = vmatmul.mubr.msk.f32.gmra.mrb[40].mxu1 %vm371_vm0, %v11565_v10  ;;  %v11614_v10 = vld [vmem:[%s11163_s25 + $0xc2] sm:$0xff] }
  0x66   : > { %9884 = vmatmul.mubr.msk.f32.gmra.mrb[8].mxu0 %vm371_vm0, %v11568_v62  ;;  %9444 = vmatprep.mubr.msk.f32.mxu1 %vm371_vm0, %v11571_v0  ;;  %v11608_v62 = vld [vmem:[%s11163_s25 + $0xb2] sm:$0xff]  ;;  %13227 = vst [vmem:[#allocation32_spill] sm:$0xff] %v11614_v10 }
  0x67   : > { %9886 = vmatprep.mubr.msk.f32.mxu0 %vm371_vm0, %v11574_v1  ;;  %v11605_v1 = vld [vmem:[%s11163_s25 + $0x248] sm:$0xff]  ;;  %13225 = vst [vmem:[#allocation30_spill] sm:$0xff] %v11608_v62  ;;  %v11611_v0 = vld [vmem:[%s11163_s25 + $0x258] sm:$0xff] }
  0x68   : > { %13224 = vst [vmem:[#allocation29_spill] sm:$0xff] %v11605_v1  ;;  %13226 = vst [vmem:[#allocation31_spill] sm:$0xff] %v11611_v0 }
  0x69   : > { %9445 = vmatmul.mubr.msk.f32.gmra.mrb[42].mxu1 %vm371_vm0, %v11585_v4  ;;  %v11634_v4 = vld [vmem:[%s11163_s25 + $0xda] sm:$0xff] }
  0x6a   : > { %9887 = vmatmul.mubr.msk.f32.gmra.mrb[10].mxu0 %vm371_vm0, %v11588_v12  ;;  %9447 = vmatprep.mubr.msk.f32.mxu1 %vm371_vm0, %v11591_v3  ;;  %v11628_v12 = vld [vmem:[%s11163_s25 + $0xca] sm:$0xff]  ;;  %13231 = vst [vmem:[#allocation36_spill] sm:$0xff] %v11634_v4 }
  0x6b   : > { %9889 = vmatprep.mubr.msk.f32.mxu0 %vm371_vm0, %v11594_v6  ;;  %v11625_v6 = vld [vmem:[%s11163_s25 + $0x260] sm:$0xff]  ;;  %13229 = vst [vmem:[#allocation34_spill] sm:$0xff] %v11628_v12  ;;  %v11631_v3 = vld [vmem:[%s11163_s25 + $0x270] sm:$0xff] }
  0x6c   : > { %13228 = vst [vmem:[#allocation33_spill] sm:$0xff] %v11625_v6  ;;  %13230 = vst [vmem:[#allocation35_spill] sm:$0xff] %v11631_v3 }
  0x6d   : > { %9448 = vmatmul.mubr.msk.f32.gmra.mrb[44].mxu1 %vm371_vm0, %v11605_v1  ;;  %v11654_v1 = vld [vmem:[%s11163_s25 + $0xf2] sm:$0xff] }
  0x6e   : > { %9890 = vmatmul.mubr.msk.f32.gmra.mrb[12].mxu0 %vm371_vm0, %v11608_v62  ;;  %9450 = vmatprep.mubr.msk.f32.mxu1 %vm371_vm0, %v11611_v0  ;;  %v11648_v62 = vld [vmem:[%s11163_s25 + $0xe2] sm:$0xff]  ;;  %13235 = vst [vmem:[#allocation40_spill] sm:$0xff] %v11654_v1 }
  0x6f   : > { %9892 = vmatprep.mubr.msk.f32.mxu0 %vm371_vm0, %v11614_v10  ;;  %v11645_v10 = vld [vmem:[%s11163_s25 + $0x278] sm:$0xff]  ;;  %13233 = vst [vmem:[#allocation38_spill] sm:$0xff] %v11648_v62  ;;  %v11651_v0 = vld [vmem:[%s11163_s25 + $0x288] sm:$0xff] }
  0x70   : > { %13232 = vst [vmem:[#allocation37_spill] sm:$0xff] %v11645_v10  ;;  %13234 = vst [vmem:[#allocation39_spill] sm:$0xff] %v11651_v0 }
  0x71   : > { %9451 = vmatmul.mubr.msk.f32.gmra.mrb[46].mxu1 %vm371_vm0, %v11625_v6  ;;  %v11674_v6 = vld [vmem:[%s11163_s25 + $0x10a] sm:$0xff] }
  0x72   : > { %9893 = vmatmul.mubr.msk.f32.gmra.mrb[14].mxu0 %vm371_vm0, %v11628_v12  ;;  %9453 = vmatprep.mubr.msk.f32.mxu1 %vm371_vm0, %v11631_v3  ;;  %v11668_v12 = vld [vmem:[%s11163_s25 + $0xfa] sm:$0xff]  ;;  %13239 = vst [vmem:[#allocation44_spill] sm:$0xff] %v11674_v6 }
  0x73   : > { %9895 = vmatprep.mubr.msk.f32.mxu0 %vm371_vm0, %v11634_v4  ;;  %v11665_v4 = vld [vmem:[%s11163_s25 + $0x290] sm:$0xff]  ;;  %13237 = vst [vmem:[#allocation42_spill] sm:$0xff] %v11668_v12  ;;  %v11671_v3 = vld [vmem:[%s11163_s25 + $0x2a0] sm:$0xff] }
  0x74   : > { %13236 = vst [vmem:[#allocation41_spill] sm:$0xff] %v11665_v4  ;;  %13238 = vst [vmem:[#allocation43_spill] sm:$0xff] %v11671_v3 }
  0x75   : > { %9454 = vmatmul.mubr.msk.f32.gmra.mrb[48].mxu1 %vm371_vm0, %v11645_v10  ;;  %v11694_v10 = vld [vmem:[%s11163_s25 + $0x122] sm:$0xff] }
  0x76   : > { %9896 = vmatmul.mubr.msk.f32.gmra.mrb[16].mxu0 %vm371_vm0, %v11648_v62  ;;  %9456 = vmatprep.mubr.msk.f32.mxu1 %vm371_vm0, %v11651_v0  ;;  %v11688_v62 = vld [vmem:[%s11163_s25 + $0x112] sm:$0xff]  ;;  %13243 = vst [vmem:[#allocation48_spill] sm:$0xff] %v11694_v10 }
  0x77   : > { %9898 = vmatprep.mubr.msk.f32.mxu0 %vm371_vm0, %v11654_v1  ;;  %v11685_v1 = vld [vmem:[%s11163_s25 + $0x2a8] sm:$0xff]  ;;  %13241 = vst [vmem:[#allocation46_spill] sm:$0xff] %v11688_v62  ;;  %v11691_v0 = vld [vmem:[%s11163_s25 + $0x2b8] sm:$0xff] }
  0x78   : > { %13240 = vst [vmem:[#allocation45_spill] sm:$0xff] %v11685_v1  ;;  %13242 = vst [vmem:[#allocation47_spill] sm:$0xff] %v11691_v0 }
  0x79   : > { %9457 = vmatmul.mubr.msk.f32.gmra.mrb[50].mxu1 %vm371_vm0, %v11665_v4  ;;  %v11714_v4 = vld [vmem:[%s11163_s25 + $0x13a] sm:$0xff] }
  0x7a   : > { %9899 = vmatmul.mubr.msk.f32.gmra.mrb[18].mxu0 %vm371_vm0, %v11668_v12  ;;  %9459 = vmatprep.mubr.msk.f32.mxu1 %vm371_vm0, %v11671_v3  ;;  %v11708_v12 = vld [vmem:[%s11163_s25 + $0x12a] sm:$0xff]  ;;  %13247 = vst [vmem:[#allocation52_spill] sm:$0xff] %v11714_v4 }
  0x7b   : > { %9901 = vmatprep.mubr.msk.f32.mxu0 %vm371_vm0, %v11674_v6  ;;  %v11705_v6 = vld [vmem:[%s11163_s25 + $0x2c0] sm:$0xff]  ;;  %13245 = vst [vmem:[#allocation50_spill] sm:$0xff] %v11708_v12  ;;  %v11711_v3 = vld [vmem:[%s11163_s25 + $0x2d0] sm:$0xff] }
  0x7c   : > { %13244 = vst [vmem:[#allocation49_spill] sm:$0xff] %v11705_v6  ;;  %13246 = vst [vmem:[#allocation51_spill] sm:$0xff] %v11711_v3 }
  0x7d   : > { %9460 = vmatmul.mubr.msk.f32.gmra.mrb[52].mxu1 %vm371_vm0, %v11685_v1  ;;  %v11734_v1 = vld [vmem:[%s11163_s25 + $0x152] sm:$0xff] }
  0x7e   : > { %9902 = vmatmul.mubr.msk.f32.gmra.mrb[20].mxu0 %vm371_vm0, %v11688_v62  ;;  %9462 = vmatprep.mubr.msk.f32.mxu1 %vm371_vm0, %v11691_v0  ;;  %v11728_v62 = vld [vmem:[%s11163_s25 + $0x142] sm:$0xff]  ;;  %13251 = vst [vmem:[#allocation56_spill] sm:$0xff] %v11734_v1 }
  0x7f   : > { %9904 = vmatprep.mubr.msk.f32.mxu0 %vm371_vm0, %v11694_v10  ;;  %v11725_v10 = vld [vmem:[%s11163_s25 + $0x2d8] sm:$0xff]  ;;  %13249 = vst [vmem:[#allocation54_spill] sm:$0xff] %v11728_v62  ;;  %v11731_v0 = vld [vmem:[%s11163_s25 + $0x2e8] sm:$0xff] }
  0x80   : > { %13248 = vst [vmem:[#allocation53_spill] sm:$0xff] %v11725_v10  ;;  %13250 = vst [vmem:[#allocation55_spill] sm:$0xff] %v11731_v0 }
  0x81   : > { %9463 = vmatmul.mubr.msk.f32.gmra.mrb[54].mxu1 %vm371_vm0, %v11705_v6  ;;  %v11754_v6 = vld [vmem:[%s11163_s25 + $0x16a] sm:$0xff] }
  0x82   : > { %9905 = vmatmul.mubr.msk.f32.gmra.mrb[22].mxu0 %vm371_vm0, %v11708_v12  ;;  %9465 = vmatprep.mubr.msk.f32.mxu1 %vm371_vm0, %v11711_v3  ;;  %v11748_v12 = vld [vmem:[%s11163_s25 + $0x15a] sm:$0xff]  ;;  %13255 = vst [vmem:[#allocation60_spill] sm:$0xff] %v11754_v6 }
  0x83   : > { %9907 = vmatprep.mubr.msk.f32.mxu0 %vm371_vm0, %v11714_v4  ;;  %v11745_v4 = vld [vmem:[%s11163_s25 + $0x2f0] sm:$0xff]  ;;  %13253 = vst [vmem:[#allocation58_spill] sm:$0xff] %v11748_v12  ;;  %v11751_v3 = vld [vmem:[%s11163_s25 + $0x300] sm:$0xff] }
  0x84   : > { %13252 = vst [vmem:[#allocation57_spill] sm:$0xff] %v11745_v4  ;;  %13254 = vst [vmem:[#allocation59_spill] sm:$0xff] %v11751_v3 }
  0x85   : > { %9466 = vmatmul.mubr.msk.f32.gmra.mrb[56].mxu1 %vm371_vm0, %v11725_v10  ;;  %v8305_v10 = vld [vmem:[%s11163_s25 + $0x182] sm:$0xff] }
  0x86   : > { %9908 = vmatmul.mubr.msk.f32.gmra.mrb[24].mxu0 %vm371_vm0, %v11728_v62  ;;  %9468 = vmatprep.mubr.msk.f32.mxu1 %vm371_vm0, %v11731_v0  ;;  %v11768_v62 = vld [vmem:[%s11163_s25 + $0x172] sm:$0xff] }
  0x87   : > { %9910 = vmatprep.mubr.msk.f32.mxu0 %vm371_vm0, %v11734_v1  ;;  %v11765_v1 = vld [vmem:[%s11163_s25 + $0x308] sm:$0xff]  ;;  %13257 = vst [vmem:[#allocation62_spill] sm:$0xff] %v11768_v62  ;;  %v11771_v0 = vld [vmem:[%s11163_s25 + $0x318] sm:$0xff] }
  0x88   : > { %13256 = vst [vmem:[#allocation61_spill] sm:$0xff] %v11765_v1  ;;  %13258 = vst [vmem:[#allocation63_spill] sm:$0xff] %v11771_v0 }
  0x89   : > { %9469 = vmatmul.mubr.msk.f32.gmra.mrb[58].mxu1 %vm371_vm0, %v11745_v4  ;;  %v11787_v4 = vld [vmem:[%s11163_s25 + $0x1ca] sm:$0xff] }
  0x8a   : > { %9911 = vmatmul.mubr.msk.f32.gmra.mrb[26].mxu0 %vm371_vm0, %v11748_v12  ;;  %9471 = vmatprep.mubr.msk.f32.mxu1 %vm371_vm0, %v11751_v3  ;;  %v8306_v12 = vld [vmem:[%s11163_s25 + $0x18a] sm:$0xff]  ;;  %v1077_v3 = vld [vmem:[%s11163_s25 + $0x1] sm:$0xff] }
  0x8b   : > { %9913 = vmatprep.mubr.msk.f32.mxu0 %vm371_vm0, %v11754_v6  ;;  %v11782_v6 = vld [vmem:[%s11163_s25 + $0x320] sm:$0xff] }
  0x8d   : > { %9472 = vmatmul.mubr.msk.f32.gmra.mrb[60].mxu1 %vm371_vm0, %v11765_v1  ;;  %v11805_v1 = vld [vmem:[%s13125_s1 + $0x18] sm:$0xff] }
  0x8e   : > { %9914 = vmatmul.mubr.msk.f32.gmra.mrb[28].mxu0 %vm371_vm0, %v11768_v62  ;;  %9474 = vmatprep.mubr.msk.f32.mxu1 %vm371_vm0, %v11771_v0  ;;  %v1078_v62 = vld [vmem:[%s11163_s25 + $0x9] sm:$0xff] }
  0x8f   : > { %9916 = vmatprep.mubr.msk.f32.mxu0 %vm371_vm0, %v8305_v10  ;;  %v11797_v10 = vld [vmem:[%s11163_s25 + $0x1d2] sm:$0xff]  ;;  %v11800_v0 = vld [vmem:[%s11163_s25 + $0x1e2] sm:$0xff] }
  0x91   : > { %9475 = vmatmul.mubr.msk.f32.gmra.mrb[62].mxu1 %vm371_vm0, %v11782_v6 }
  0x92   : > { %9917 = vmatmul.mubr.msk.f32.gmra.mrb[30].mxu0 %vm371_vm0, %v8306_v12  ;;  %9479 = vmatprep.mubr.msk.f32.mxu1 %vm371_vm0, %v1077_v3  ;;  %v11814_v3 = vld [vmem:[%s11163_s25 + $0x1ea] sm:$0xff]  ;;  %v11819_v12 = vld [vmem:[%s11163_s25 + $0x1fa] sm:$0xff] }
  0x93   : > { %9919 = vmatprep.mubr.msk.f32.mxu0 %vm371_vm0, %v11787_v4 }
  0x95   : > { %9480 = vmatmul.mubr.msk.f32.vlgmr.msra.gmra.mrb[0].mxu1 %vm371_vm0, %v1078_v62  ;;  %v1111_v62 = vld [vmem:[%s11163_s25 + $0x1c9] sm:$0xff] }
  0x96   : > { %9920 = vmatmul.mubr.msk.f32.gmra.mrb[32].mxu0 %vm371_vm0, %v11797_v10  ;;  %9576 = vmatpush3.msra.mxu1 %v11191_v11  ;;  %v11834_v11 = vld [vmem:[%s11163_s25 + $0x212] sm:$0xff] }
  0x97   : > { %9482 = vmatprep.mubr.msk.f32.mxu1 %vm371_vm0, %v11167_v5  ;;  %9922 = vmatprep.mubr.msk.f32.mxu0 %vm371_vm0, %v11800_v0  ;;  %v11831_v5 = vld [vmem:[%s11163_s25 + $0x202] sm:$0xff] }
  0x98   : > { %9673 = vmatprep.subr.mxu1 %v11805_v1 }
  0x99   : > { %9483 = vmatmul.mubr.msk.f32.gmra.mrb[2].mxu1 %vm371_vm0, %v11174_v7  ;;  %v11845_v7 = vld [vmem:[%s11163_s25 + $0x21a] sm:$0xff] }
  0x9a   : > { %9923 = vmatmul.mubr.msk.f32.gmra.mrb[34].mxu0 %vm371_vm0, %v11814_v3  ;;  %9485 = vmatprep.mubr.msk.f32.mxu1 %vm371_vm0, %v11178_v9  ;;  %v11848_v9 = vld [vmem:[%s11163_s25 + $0x22a] sm:$0xff] }
  0x9b   : > { %9925 = vmatprep.mubr.msk.f32.mxu0 %vm371_vm0, %v11819_v12 }
  0x9d   : > { %9486 = vmatmul.mubr.msk.f32.gmra.mrb[4].mxu1 %vm371_vm0, %v11196_v13  ;;  %v11859_v13 = vld [vmem:[%s11163_s25 + $0x232] sm:$0xff] }
  0x9e   : > { %9926 = vmatmul.mubr.msk.f32.gmra.mrb[36].mxu0 %vm371_vm0, %v11831_v5  ;;  %9488 = vmatprep.mubr.msk.f32.mxu1 %vm371_vm0, %v11204_v15  ;;  %v11862_v15 = vld [vmem:[%s11163_s25 + $0x242] sm:$0xff] }
  0x9f   : > { %9928 = vmatprep.mubr.msk.f32.mxu0 %vm371_vm0, %v11834_v11 }
  0xa1   : > { %9489 = vmatmul.mubr.msk.f32.gmra.mrb[6].mxu1 %vm371_vm0, %v11219_v17  ;;  %v11873_v17 = vld [vmem:[%s11163_s25 + $0x24a] sm:$0xff] }
  0xa2   : > { %9929 = vmatmul.mubr.msk.f32.gmra.mrb[38].mxu0 %vm371_vm0, %v11845_v7  ;;  %9491 = vmatprep.mubr.msk.f32.mxu1 %vm371_vm0, %v11225_v19  ;;  %v11876_v19 = vld [vmem:[%s11163_s25 + $0x25a] sm:$0xff] }
  0xa3   : > { %9931 = vmatprep.mubr.msk.f32.mxu0 %vm371_vm0, %v11848_v9 }
  0xa5   : > { %9492 = vmatmul.mubr.msk.f32.gmra.mrb[8].mxu1 %vm371_vm0, %v11239_v21  ;;  %v11887_v21 = vld [vmem:[%s11163_s25 + $0x262] sm:$0xff] }
  0xa6   : > { %9932 = vmatmul.mubr.msk.f32.gmra.mrb[40].mxu0 %vm371_vm0, %v11859_v13  ;;  %9494 = vmatprep.mubr.msk.f32.mxu1 %vm371_vm0, %v11245_v23  ;;  %v11890_v23 = vld [vmem:[%s11163_s25 + $0x272] sm:$0xff] }
  0xa7   : > { %9934 = vmatprep.mubr.msk.f32.mxu0 %vm371_vm0, %v11862_v15 }
  0xa9   : > { %9495 = vmatmul.mubr.msk.f32.gmra.mrb[10].mxu1 %vm371_vm0, %v11259_v25  ;;  %v11901_v25 = vld [vmem:[%s11163_s25 + $0x27a] sm:$0xff] }
  0xaa   : > { %9935 = vmatmul.mubr.msk.f32.gmra.mrb[42].mxu0 %vm371_vm0, %v11873_v17  ;;  %9497 = vmatprep.mubr.msk.f32.mxu1 %vm371_vm0, %v11265_v27  ;;  %v11904_v27 = vld [vmem:[%s11163_s25 + $0x28a] sm:$0xff] }
  0xab   : > { %9937 = vmatprep.mubr.msk.f32.mxu0 %vm371_vm0, %v11876_v19 }
  0xad   : > { %9498 = vmatmul.mubr.msk.f32.gmra.mrb[12].mxu1 %vm371_vm0, %v11279_v29  ;;  %v11915_v29 = vld [vmem:[%s11163_s25 + $0x292] sm:$0xff] }
  0xae   : > { %9938 = vmatmul.mubr.msk.f32.gmra.mrb[44].mxu0 %vm371_vm0, %v11887_v21  ;;  %9500 = vmatprep.mubr.msk.f32.mxu1 %vm371_vm0, %v11285_v31  ;;  %v11918_v31 = vld [vmem:[%s11163_s25 + $0x2a2] sm:$0xff] }
  0xaf   : > { %9940 = vmatprep.mubr.msk.f32.mxu0 %vm371_vm0, %v11890_v23 }
  0xb1   : > { %9501 = vmatmul.mubr.msk.f32.gmra.mrb[14].mxu1 %vm371_vm0, %v11299_v33  ;;  %v11929_v33 = vld [vmem:[%s11163_s25 + $0x2aa] sm:$0xff] }
  0xb2   : > { %9941 = vmatmul.mubr.msk.f32.gmra.mrb[46].mxu0 %vm371_vm0, %v11901_v25  ;;  %9503 = vmatprep.mubr.msk.f32.mxu1 %vm371_vm0, %v11305_v35  ;;  %v11932_v35 = vld [vmem:[%s11163_s25 + $0x2ba] sm:$0xff] }
  0xb3   : > { %9943 = vmatprep.mubr.msk.f32.mxu0 %vm371_vm0, %v11904_v27 }
  0xb5   : > { %9504 = vmatmul.mubr.msk.f32.gmra.mrb[16].mxu1 %vm371_vm0, %v11319_v37  ;;  %v11943_v37 = vld [vmem:[%s11163_s25 + $0x2c2] sm:$0xff] }
  0xb6   : > { %9944 = vmatmul.mubr.msk.f32.gmra.mrb[48].mxu0 %vm371_vm0, %v11915_v29  ;;  %9506 = vmatprep.mubr.msk.f32.mxu1 %vm371_vm0, %v11325_v39  ;;  %v11946_v39 = vld [vmem:[%s11163_s25 + $0x2d2] sm:$0xff] }
  0xb7   : > { %9946 = vmatprep.mubr.msk.f32.mxu0 %vm371_vm0, %v11918_v31 }
  0xb9   : > { %9507 = vmatmul.mubr.msk.f32.gmra.mrb[18].mxu1 %vm371_vm0, %v11339_v41  ;;  %v11957_v41 = vld [vmem:[%s11163_s25 + $0x2da] sm:$0xff] }
  0xba   : > { %9947 = vmatmul.mubr.msk.f32.gmra.mrb[50].mxu0 %vm371_vm0, %v11929_v33  ;;  %9509 = vmatprep.mubr.msk.f32.mxu1 %vm371_vm0, %v11345_v43  ;;  %v11960_v43 = vld [vmem:[%s11163_s25 + $0x2ea] sm:$0xff] }
  0xbb   : > { %9949 = vmatprep.mubr.msk.f32.mxu0 %vm371_vm0, %v11932_v35 }
  0xbd   : > { %9510 = vmatmul.mubr.msk.f32.gmra.mrb[20].mxu1 %vm371_vm0, %v11359_v45  ;;  %v11971_v45 = vld [vmem:[%s11163_s25 + $0x2f2] sm:$0xff] }
  0xbe   : > { %9950 = vmatmul.mubr.msk.f32.gmra.mrb[52].mxu0 %vm371_vm0, %v11943_v37  ;;  %9512 = vmatprep.mubr.msk.f32.mxu1 %vm371_vm0, %v11365_v47  ;;  %v11974_v47 = vld [vmem:[%s11163_s25 + $0x302] sm:$0xff] }
  0xbf   : > { %9952 = vmatprep.mubr.msk.f32.mxu0 %vm371_vm0, %v11946_v39 }
  0xc1   : > { %9513 = vmatmul.mubr.msk.f32.gmra.mrb[22].mxu1 %vm371_vm0, %v11379_v49  ;;  %v11985_v49 = vld [vmem:[%s11163_s25 + $0x30a] sm:$0xff] }
  0xc2   : > { %9953 = vmatmul.mubr.msk.f32.gmra.mrb[54].mxu0 %vm371_vm0, %v11957_v41  ;;  %9515 = vmatprep.mubr.msk.f32.mxu1 %vm371_vm0, %v11385_v51  ;;  %v11988_v51 = vld [vmem:[%s11163_s25 + $0x31a] sm:$0xff] }
  0xc3   : > { %9955 = vmatprep.mubr.msk.f32.mxu0 %vm371_vm0, %v11960_v43 }
  0xc5   : > { %9516 = vmatmul.mubr.msk.f32.gmra.mrb[24].mxu1 %vm371_vm0, %v11399_v53  ;;  %v11999_v53 = vld [vmem:[%s11163_s25 + $0x322] sm:$0xff] }
  0xc6   : > { %9956 = vmatmul.mubr.msk.f32.gmra.mrb[56].mxu0 %vm371_vm0, %v11971_v45  ;;  %9518 = vmatprep.mubr.msk.f32.mxu1 %vm371_vm0, %v11405_v55  ;;  %v8337_v55 = vld [vmem:[%s11163_s25 + $0x332] sm:$0xff] }
  0xc7   : > { %9958 = vmatprep.mubr.msk.f32.mxu0 %vm371_vm0, %v11974_v47 }
  0xc9   : > { %9519 = vmatmul.mubr.msk.f32.gmra.mrb[26].mxu1 %vm371_vm0, %v11419_v57  ;;  %v8338_v57 = vld [vmem:[%s11163_s25 + $0x33a] sm:$0xff] }
  0xca   : > { %9959 = vmatmul.mubr.msk.f32.gmra.mrb[58].mxu0 %vm371_vm0, %v11985_v49  ;;  %9521 = vmatprep.mubr.msk.f32.mxu1 %vm371_vm0, %v11425_v59  ;;  %v1109_v59 = vld [vmem:[%s11163_s25 + $0x1b1] sm:$0xff] }
  0xcb   : > { %9961 = vmatprep.mubr.msk.f32.mxu0 %vm371_vm0, %v11988_v51 }
  0xcd   : > { %9522 = vmatmul.mubr.msk.f32.gmra.mrb[28].mxu1 %vm371_vm0, %v11439_v61  ;;  %v1110_v61 = vld [vmem:[%s11163_s25 + $0x1b9] sm:$0xff] }
  0xce   : > { %9962 = vmatmul.mubr.msk.f32.gmra.mrb[60].mxu0 %vm371_vm0, %v11999_v53  ;;  %9524 = vmatprep.mubr.msk.f32.mxu1 %vm371_vm0, %v11445_v63  ;;  %v1112_v63 = vld [vmem:[%s11163_s25 + $0x1d1] sm:$0xff] }
  0xcf   : > { %9964 = vmatprep.mubr.msk.f32.mxu0 %vm371_vm0, %v8337_v55  ;;  %v13260_v55 = vld [vmem:[#allocation4_spill] sm:$0xff] }
  0xd1   : > { %9525 = vmatmul.mubr.msk.f32.gmra.mrb[30].mxu1 %vm371_vm0, %v11459_v2  ;;  %v12027_v2 = vld [vmem:[%s11163_s25 + $0x1e1] sm:$0xff] }
  0xd2   : > { %9965 = vmatmul.mubr.msk.f32.gmra.mrb[62].mxu0 %vm371_vm0, %v8338_v57  ;;  %9527 = vmatprep.mubr.msk.f32.mxu1 %vm371_vm0, %v1109_v59  ;;  %v12198_v57 = vld [vmem:[%s11163_s25 + $0x2f1] sm:$0xff]  ;;  %v12201_v59 = vld [vmem:[%s11163_s25 + $0x301] sm:$0xff] }
  0xd3   : > { %9969 = vmatprep.mubr.msk.f32.mxu0 %vm371_vm0, %v11201_v14  ;;  %v12038_v14 = vld [vmem:[%s11163_s25 + $0x1e9] sm:$0xff]  ;;  %13263 = vst [vmem:[#allocation4_spill] sm:$0xff] %v12201_v59 }
  0xd5   : > { %9528 = vmatmul.mubr.msk.f32.gmra.mrb[32].mxu1 %vm371_vm0, %v1110_v61  ;;  %v12204_v61 = vld [vmem:[%s11163_s25 + $0x180] sm:$0xff] }
  0xd6   : > { %9970 = vmatmul.mubr.msk.f32.vlgmr.msra.gmra.mrb[0].mxu0 %vm371_vm0, %v11216_v16  ;;  %9530 = vmatprep.mubr.msk.f32.mxu1 %vm371_vm0, %v1111_v62  ;;  %v12041_v16 = vld [vmem:[%s11163_s25 + $0x1f9] sm:$0xff] }
  0xd7   : > { %9972 = vmatprep.mubr.msk.f32.mxu0 %vm371_vm0, %v11222_v18  ;;  %10066 = vmatpush3.msra.mxu0 %v11537_v8  ;;  %v12050_v18 = vld [vmem:[%s13125_s1 + $0x40] sm:$0xff]  ;;  %v12187_v8 = vld [vmem:[%s11163_s25 + $0x2e9] sm:$0xff] }
  0xd8   : > { %10163 = vmatprep.subr.mxu0 %v12050_v18  ;;  %v13265_v62 = vld [vmem:[#allocation6_spill] sm:$0xff] }
  0xd9   : > { %9531 = vmatmul.mubr.msk.f32.gmra.mrb[34].mxu1 %vm371_vm0, %v1112_v63  ;;  %v12215_v63 = vld [vmem:[%s11163_s25 + $0x309] sm:$0xff] }
  0xda   : > { %9973 = vmatmul.mubr.msk.f32.gmra.mrb[2].mxu0 %vm371_vm0, %v11236_v20  ;;  %9533 = vmatprep.mubr.msk.f32.mxu1 %vm371_vm0, %v12027_v2  ;;  %v12057_v20 = vld [vmem:[%s11163_s25 + $0x201] sm:$0xff]  ;;  %13266 = vst [vmem:[#allocation6_spill] sm:$0xff] %v12215_v63 }
  0xdb   : > { %9975 = vmatprep.mubr.msk.f32.mxu0 %vm371_vm0, %v11242_v22  ;;  %v12060_v22 = vld [vmem:[%s11163_s25 + $0x211] sm:$0xff] }
  0xdd   : > { %9534 = vmatmul.mubr.msk.f32.gmra.mrb[36].mxu1 %vm371_vm0, %v12038_v14 }
  0xde   : > { %9976 = vmatmul.mubr.msk.f32.gmra.mrb[4].mxu0 %vm371_vm0, %v11256_v24  ;;  %9536 = vmatprep.mubr.msk.f32.mxu1 %vm371_vm0, %v12041_v16  ;;  %v12072_v24 = vld [vmem:[%s11163_s25 + $0x219] sm:$0xff] }
  0xdf   : > { %9978 = vmatprep.mubr.msk.f32.mxu0 %vm371_vm0, %v11262_v26  ;;  %v12075_v26 = vld [vmem:[%s11163_s25 + $0x229] sm:$0xff] }
  0xe1   : > { %9537 = vmatmul.mubr.msk.f32.gmra.mrb[38].mxu1 %vm371_vm0, %v12057_v20 }
  0xe2   : > { %9979 = vmatmul.mubr.msk.f32.gmra.mrb[6].mxu0 %vm371_vm0, %v11276_v28  ;;  %9539 = vmatprep.mubr.msk.f32.mxu1 %vm371_vm0, %v12060_v22  ;;  %v12086_v28 = vld [vmem:[%s11163_s25 + $0x231] sm:$0xff] }
  0xe3   : > { %9981 = vmatprep.mubr.msk.f32.mxu0 %vm371_vm0, %v11282_v30  ;;  %v12089_v30 = vld [vmem:[%s11163_s25 + $0x241] sm:$0xff] }
  0xe5   : > { %9540 = vmatmul.mubr.msk.f32.gmra.mrb[40].mxu1 %vm371_vm0, %v12072_v24 }
  0xe6   : > { %9982 = vmatmul.mubr.msk.f32.gmra.mrb[8].mxu0 %vm371_vm0, %v11296_v32  ;;  %9542 = vmatprep.mubr.msk.f32.mxu1 %vm371_vm0, %v12075_v26  ;;  %v12100_v32 = vld [vmem:[%s11163_s25 + $0x249] sm:$0xff] }
  0xe7   : > { %9984 = vmatprep.mubr.msk.f32.mxu0 %vm371_vm0, %v11302_v34  ;;  %v12103_v34 = vld [vmem:[%s11163_s25 + $0x259] sm:$0xff] }
  0xe9   : > { %9543 = vmatmul.mubr.msk.f32.gmra.mrb[42].mxu1 %vm371_vm0, %v12086_v28 }
  0xea   : > { %9985 = vmatmul.mubr.msk.f32.gmra.mrb[10].mxu0 %vm371_vm0, %v11316_v36  ;;  %9545 = vmatprep.mubr.msk.f32.mxu1 %vm371_vm0, %v12089_v30  ;;  %v12114_v36 = vld [vmem:[%s11163_s25 + $0x261] sm:$0xff] }
  0xeb   : > { %9987 = vmatprep.mubr.msk.f32.mxu0 %vm371_vm0, %v11322_v38  ;;  %v12117_v38 = vld [vmem:[%s11163_s25 + $0x271] sm:$0xff] }
  0xed   : > { %9546 = vmatmul.mubr.msk.f32.gmra.mrb[44].mxu1 %vm371_vm0, %v12100_v32 }
  0xee   : > { %9988 = vmatmul.mubr.msk.f32.gmra.mrb[12].mxu0 %vm371_vm0, %v11336_v40  ;;  %9548 = vmatprep.mubr.msk.f32.mxu1 %vm371_vm0, %v12103_v34  ;;  %v12128_v40 = vld [vmem:[%s11163_s25 + $0x279] sm:$0xff] }
  0xef   : > { %9990 = vmatprep.mubr.msk.f32.mxu0 %vm371_vm0, %v11342_v42  ;;  %v12131_v42 = vld [vmem:[%s11163_s25 + $0x289] sm:$0xff] }
  0xf1   : > { %9549 = vmatmul.mubr.msk.f32.gmra.mrb[46].mxu1 %vm371_vm0, %v12114_v36 }
  0xf2   : > { %9991 = vmatmul.mubr.msk.f32.gmra.mrb[14].mxu0 %vm371_vm0, %v11356_v44  ;;  %9551 = vmatprep.mubr.msk.f32.mxu1 %vm371_vm0, %v12117_v38  ;;  %v12142_v44 = vld [vmem:[%s11163_s25 + $0x291] sm:$0xff] }
  0xf3   : > { %9993 = vmatprep.mubr.msk.f32.mxu0 %vm371_vm0, %v11362_v46  ;;  %v12145_v46 = vld [vmem:[%s11163_s25 + $0x2a1] sm:$0xff] }
  0xf5   : > { %9552 = vmatmul.mubr.msk.f32.gmra.mrb[48].mxu1 %vm371_vm0, %v12128_v40 }
  0xf6   : > { %9994 = vmatmul.mubr.msk.f32.gmra.mrb[16].mxu0 %vm371_vm0, %v11376_v48  ;;  %9554 = vmatprep.mubr.msk.f32.mxu1 %vm371_vm0, %v12131_v42  ;;  %v12156_v48 = vld [vmem:[%s11163_s25 + $0x2a9] sm:$0xff] }
  0xf7   : > { %9996 = vmatprep.mubr.msk.f32.mxu0 %vm371_vm0, %v11382_v50  ;;  %v12159_v50 = vld [vmem:[%s11163_s25 + $0x2b9] sm:$0xff] }
  0xf9   : > { %9555 = vmatmul.mubr.msk.f32.gmra.mrb[50].mxu1 %vm371_vm0, %v12142_v44 }
  0xfa   : > { %9997 = vmatmul.mubr.msk.f32.gmra.mrb[18].mxu0 %vm371_vm0, %v11396_v52  ;;  %9557 = vmatprep.mubr.msk.f32.mxu1 %vm371_vm0, %v12145_v46  ;;  %v12170_v52 = vld [vmem:[%s11163_s25 + $0x2c1] sm:$0xff] }
  0xfb   : > { %9999 = vmatprep.mubr.msk.f32.mxu0 %vm371_vm0, %v11402_v54  ;;  %v12173_v54 = vld [vmem:[%s11163_s25 + $0x2d1] sm:$0xff] }
  0xfd   : > { %9558 = vmatmul.mubr.msk.f32.gmra.mrb[52].mxu1 %vm371_vm0, %v12156_v48 }
  0xfe   : > { %10000 = vmatmul.mubr.msk.f32.gmra.mrb[20].mxu0 %vm371_vm0, %v11416_v56  ;;  %9560 = vmatprep.mubr.msk.f32.mxu1 %vm371_vm0, %v12159_v50  ;;  %v13259_v56 = vld [vmem:[#allocation3_spill] sm:$0xff] }
  0xff   : > { %10002 = vmatprep.mubr.msk.f32.mxu0 %vm371_vm0, %v11422_v58  ;;  %v12184_v58 = vld [vmem:[%s11163_s25 + $0x2d9] sm:$0xff]  ;;  %13262 = vst [vmem:[#allocation3_spill] sm:$0xff] %v12198_v57 }
 0x101   : > { %9561 = vmatmul.mubr.msk.f32.gmra.mrb[54].mxu1 %vm371_vm0, %v12170_v52 }
 0x102   : > { %10003 = vmatmul.mubr.msk.f32.gmra.mrb[22].mxu0 %vm371_vm0, %v11436_v60  ;;  %9563 = vmatprep.mubr.msk.f32.mxu1 %vm371_vm0, %v12173_v54  ;;  %v13261_v60 = vld [vmem:[#allocation5_spill] sm:$0xff] }
 0x103   : > { %10005 = vmatprep.mubr.msk.f32.mxu0 %vm371_vm0, %v13259_v56  ;;  %13264 = vst [vmem:[#allocation5_spill] sm:$0xff] %v12204_v61  ;;  %v12218_v56 = vld [vmem:[%s11163_s25 + $0x188] sm:$0xff] }
 0x104   : > { %13267 = vst [vmem:[#allocation64_spill] sm:$0xff] %v12218_v56 }
 0x105   : > { %9564 = vmatmul.mubr.msk.f32.gmra.mrb[56].mxu1 %vm371_vm0, %v12184_v58 }
 0x106   : > { %10006 = vmatmul.mubr.msk.f32.gmra.mrb[24].mxu0 %vm371_vm0, %v13260_v55  ;;  %9566 = vmatprep.mubr.msk.f32.mxu1 %vm371_vm0, %v12187_v8  ;;  %v12221_v55 = vld [vmem:[%s11163_s25 + $0x319] sm:$0xff] }
 0x107   : > { %10008 = vmatprep.mubr.msk.f32.mxu0 %vm371_vm0, %v13261_v60  ;;  %13268 = vst [vmem:[#allocation65_spill] sm:$0xff] %v12221_v55  ;;  %v8434_v60 = vld [vmem:[%s11163_s25 + $0x198] sm:$0xff] }
 0x109   : > { %9567 = vmatmul.mubr.msk.f32.gmra.mrb[58].mxu1 %vm371_vm0, %v12198_v57  ;;  %v13272_v57 = vld [vmem:[#allocation15_spill] sm:$0xff] }
 0x10a   : > { %10009 = vmatmul.mubr.msk.f32.gmra.mrb[26].mxu0 %vm371_vm0, %v13265_v62  ;;  %9569 = vmatprep.mubr.msk.f32.mxu1 %vm371_vm0, %v12201_v59  ;;  %v12232_v62 = vld [vmem:[%s11163_s25 + $0x321] sm:$0xff] }
 0x10b   : > { %10011 = vmatprep.mubr.msk.f32.mxu0 %vm371_vm0, %v12204_v61  ;;  %v8435_v61 = vld [vmem:[%s11163_s25 + $0x1a0] sm:$0xff] }
 0x10c   : > { %v1912_v59 = vld [vmem:[%s11163_s25 + $0x2] sm:$0xff] }
 0x10d   : > { %9570 = vmatmul.mubr.msk.f32.gmra.mrb[60].mxu1 %vm371_vm0, %v12215_v63  ;;  %v13269_v63 = vld [vmem:[#allocation11_spill] sm:$0xff] }
 0x10e   : > { %10012 = vmatmul.mubr.msk.f32.gmra.mrb[28].mxu0 %vm371_vm0, %v12218_v56  ;;  %9572 = vmatprep.mubr.msk.f32.mxu1 %vm371_vm0, %v12221_v55  ;;  %v1913_v56 = vld [vmem:[%s11163_s25 + $0xa] sm:$0xff]  ;;  %v13270_v55 = vld [vmem:[#allocation13_spill] sm:$0xff] }
 0x10f   : > { %10014 = vmatprep.mubr.msk.f32.mxu0 %vm371_vm0, %v8434_v60  ;;  %v13271_v60 = vld [vmem:[#allocation7_spill] sm:$0xff] }
 0x111   : > { %9573 = vmatmul.mubr.msk.f32.gmra.mrb[62].mxu1 %vm371_vm0, %v12232_v62 }
 0x112   : > { %10015 = vmatmul.mubr.msk.f32.gmra.mrb[30].mxu0 %vm371_vm0, %v8435_v61  ;;  %9577 = vmatprep.mubr.msk.f32.mxu1 %vm371_vm0, %v1912_v59  ;;  %v13273_v61 = vld [vmem:[#allocation2_spill] sm:$0xff]  ;;  %v13274_v59 = vld [vmem:[#allocation8_spill] sm:$0xff] }
 0x113   : > { %10017 = vmatprep.mubr.msk.f32.mxu0 %vm371_vm0, %v13269_v63  ;;  %v13275_v63 = vld [vmem:[#allocation17_spill] sm:$0xff] }
 0x115   : > { %9578 = vmatmul.mubr.msk.f32.vlgmr.msra.gmra.mrb[0].mxu1 %vm371_vm0, %v1913_v56  ;;  %v13276_v56 = vld [vmem:[#allocation9_spill] sm:$0xff] }
 0x116   : > { %10018 = vmatmul.mubr.msk.f32.gmra.mrb[32].mxu0 %vm371_vm0, %v13270_v55  ;;  %9674 = vmatpush3.msra.mxu1 %v11805_v1  ;;  %v13277_v55 = vld [vmem:[#allocation19_spill] sm:$0xff]  ;;  %v13278_v1 = vld [vmem:[#allocation10_spill] sm:$0xff] }
 0x117   : > { %9580 = vmatprep.mubr.msk.f32.mxu1 %vm371_vm0, %v13271_v60  ;;  %10020 = vmatprep.mubr.msk.f32.mxu0 %vm371_vm0, %v13272_v57  ;;  %v13279_v60 = vld [vmem:[#allocation21_spill] sm:$0xff]  ;;  %v13280_v57 = vld [vmem:[#allocation12_spill] sm:$0xff] }
 0x118   : > { %10261 = vmatprep.subr.mxu1 %v13273_v61  ;;  %v13281_v61 = vld [vmem:[#allocation23_spill] sm:$0xff] }
 0x119   : > { %9581 = vmatmul.mubr.msk.f32.gmra.mrb[2].mxu1 %vm371_vm0, %v13274_v59  ;;  %v13282_v59 = vld [vmem:[#allocation14_spill] sm:$0xff] }
 0x11a   : > { %10021 = vmatmul.mubr.msk.f32.gmra.mrb[34].mxu0 %vm371_vm0, %v13275_v63  ;;  %9583 = vmatprep.mubr.msk.f32.mxu1 %vm371_vm0, %v13276_v56  ;;  %v13283_v63 = vld [vmem:[#allocation25_spill] sm:$0xff]  ;;  %v13284_v56 = vld [vmem:[#allocation16_spill] sm:$0xff] }
 0x11b   : > { %10023 = vmatprep.mubr.msk.f32.mxu0 %vm371_vm0, %v13277_v55  ;;  %v13285_v55 = vld [vmem:[#allocation27_spill] sm:$0xff] }
 0x11d   : > { %9584 = vmatmul.mubr.msk.f32.gmra.mrb[4].mxu1 %vm371_vm0, %v13278_v1  ;;  %v13286_v1 = vld [vmem:[#allocation18_spill] sm:$0xff] }
 0x11e   : > { %10024 = vmatmul.mubr.msk.f32.gmra.mrb[36].mxu0 %vm371_vm0, %v13279_v60  ;;  %9586 = vmatprep.mubr.msk.f32.mxu1 %vm371_vm0, %v13280_v57  ;;  %v13287_v60 = vld [vmem:[#allocation29_spill] sm:$0xff]  ;;  %v13288_v57 = vld [vmem:[#allocation20_spill] sm:$0xff] }
 0x11f   : > { %10026 = vmatprep.mubr.msk.f32.mxu0 %vm371_vm0, %v13281_v61  ;;  %v13289_v61 = vld [vmem:[#allocation31_spill] sm:$0xff] }
 0x121   : > { %9587 = vmatmul.mubr.msk.f32.gmra.mrb[6].mxu1 %vm371_vm0, %v13282_v59  ;;  %v13290_v59 = vld [vmem:[#allocation22_spill] sm:$0xff] }
 0x122   : > { %10027 = vmatmul.mubr.msk.f32.gmra.mrb[38].mxu0 %vm371_vm0, %v13283_v63  ;;  %9589 = vmatprep.mubr.msk.f32.mxu1 %vm371_vm0, %v13284_v56  ;;  %v13291_v63 = vld [vmem:[#allocation33_spill] sm:$0xff]  ;;  %v13292_v56 = vld [vmem:[#allocation24_spill] sm:$0xff] }
 0x123   : > { %10029 = vmatprep.mubr.msk.f32.mxu0 %vm371_vm0, %v13285_v55  ;;  %v13293_v55 = vld [vmem:[#allocation35_spill] sm:$0xff] }
 0x125   : > { %9590 = vmatmul.mubr.msk.f32.gmra.mrb[8].mxu1 %vm371_vm0, %v13286_v1  ;;  %v13294_v1 = vld [vmem:[#allocation26_spill] sm:$0xff] }
 0x126   : > { %10030 = vmatmul.mubr.msk.f32.gmra.mrb[40].mxu0 %vm371_vm0, %v13287_v60  ;;  %9592 = vmatprep.mubr.msk.f32.mxu1 %vm371_vm0, %v13288_v57  ;;  %v13295_v60 = vld [vmem:[#allocation37_spill] sm:$0xff]  ;;  %v13296_v57 = vld [vmem:[#allocation28_spill] sm:$0xff] }
 0x127   : > { %10032 = vmatprep.mubr.msk.f32.mxu0 %vm371_vm0, %v13289_v61  ;;  %v13297_v61 = vld [vmem:[#allocation39_spill] sm:$0xff] }
 0x129   : > { %9593 = vmatmul.mubr.msk.f32.gmra.mrb[10].mxu1 %vm371_vm0, %v13290_v59  ;;  %v13298_v59 = vld [vmem:[#allocation30_spill] sm:$0xff] }
 0x12a   : > { %10033 = vmatmul.mubr.msk.f32.gmra.mrb[42].mxu0 %vm371_vm0, %v13291_v63  ;;  %9595 = vmatprep.mubr.msk.f32.mxu1 %vm371_vm0, %v13292_v56  ;;  %v13299_v63 = vld [vmem:[#allocation41_spill] sm:$0xff]  ;;  %v13300_v56 = vld [vmem:[#allocation32_spill] sm:$0xff] }
 0x12b   : > { %10035 = vmatprep.mubr.msk.f32.mxu0 %vm371_vm0, %v13293_v55  ;;  %v13301_v55 = vld [vmem:[#allocation43_spill] sm:$0xff] }
 0x12d   : > { %9596 = vmatmul.mubr.msk.f32.gmra.mrb[12].mxu1 %vm371_vm0, %v13294_v1  ;;  %v13302_v1 = vld [vmem:[#allocation34_spill] sm:$0xff] }
 0x12e   : > { %10036 = vmatmul.mubr.msk.f32.gmra.mrb[44].mxu0 %vm371_vm0, %v13295_v60  ;;  %9598 = vmatprep.mubr.msk.f32.mxu1 %vm371_vm0, %v13296_v57  ;;  %v13303_v60 = vld [vmem:[#allocation45_spill] sm:$0xff]  ;;  %v13304_v57 = vld [vmem:[#allocation36_spill] sm:$0xff] }
 0x12f   : > { %10038 = vmatprep.mubr.msk.f32.mxu0 %vm371_vm0, %v13297_v61  ;;  %v13305_v61 = vld [vmem:[#allocation47_spill] sm:$0xff] }
 0x131   : > { %9599 = vmatmul.mubr.msk.f32.gmra.mrb[14].mxu1 %vm371_vm0, %v13298_v59  ;;  %v13306_v59 = vld [vmem:[#allocation38_spill] sm:$0xff] }
 0x132   : > { %10039 = vmatmul.mubr.msk.f32.gmra.mrb[46].mxu0 %vm371_vm0, %v13299_v63  ;;  %9601 = vmatprep.mubr.msk.f32.mxu1 %vm371_vm0, %v13300_v56  ;;  %v13307_v63 = vld [vmem:[#allocation49_spill] sm:$0xff]  ;;  %v13308_v56 = vld [vmem:[#allocation40_spill] sm:$0xff] }
 0x133   : > { %10041 = vmatprep.mubr.msk.f32.mxu0 %vm371_vm0, %v13301_v55  ;;  %v13309_v55 = vld [vmem:[#allocation51_spill] sm:$0xff] }
 0x135   : > { %9602 = vmatmul.mubr.msk.f32.gmra.mrb[16].mxu1 %vm371_vm0, %v13302_v1  ;;  %v13310_v1 = vld [vmem:[#allocation42_spill] sm:$0xff] }
 0x136   : > { %10042 = vmatmul.mubr.msk.f32.gmra.mrb[48].mxu0 %vm371_vm0, %v13303_v60  ;;  %9604 = vmatprep.mubr.msk.f32.mxu1 %vm371_vm0, %v13304_v57  ;;  %v13311_v60 = vld [vmem:[#allocation53_spill] sm:$0xff]  ;;  %v13312_v57 = vld [vmem:[#allocation44_spill] sm:$0xff] }
 0x137   : > { %10044 = vmatprep.mubr.msk.f32.mxu0 %vm371_vm0, %v13305_v61  ;;  %v13313_v61 = vld [vmem:[#allocation55_spill] sm:$0xff] }
 0x139   : > { %9605 = vmatmul.mubr.msk.f32.gmra.mrb[18].mxu1 %vm371_vm0, %v13306_v59  ;;  %v13314_v59 = vld [vmem:[#allocation46_spill] sm:$0xff] }
 0x13a   : > { %10045 = vmatmul.mubr.msk.f32.gmra.mrb[50].mxu0 %vm371_vm0, %v13307_v63  ;;  %9607 = vmatprep.mubr.msk.f32.mxu1 %vm371_vm0, %v13308_v56  ;;  %v13315_v63 = vld [vmem:[#allocation57_spill] sm:$0xff]  ;;  %v13316_v56 = vld [vmem:[#allocation48_spill] sm:$0xff] }
 0x13b   : > { %10047 = vmatprep.mubr.msk.f32.mxu0 %vm371_vm0, %v13309_v55  ;;  %v13317_v55 = vld [vmem:[#allocation59_spill] sm:$0xff] }
 0x13d   : > { %9608 = vmatmul.mubr.msk.f32.gmra.mrb[20].mxu1 %vm371_vm0, %v13310_v1  ;;  %v13318_v1 = vld [vmem:[#allocation50_spill] sm:$0xff] }
 0x13e   : > { %10048 = vmatmul.mubr.msk.f32.gmra.mrb[52].mxu0 %vm371_vm0, %v13311_v60  ;;  %9610 = vmatprep.mubr.msk.f32.mxu1 %vm371_vm0, %v13312_v57  ;;  %v13319_v60 = vld [vmem:[#allocation61_spill] sm:$0xff]  ;;  %v13320_v57 = vld [vmem:[#allocation52_spill] sm:$0xff] }
 0x13f   : > { %10050 = vmatprep.mubr.msk.f32.mxu0 %vm371_vm0, %v13313_v61  ;;  %v13321_v61 = vld [vmem:[#allocation63_spill] sm:$0xff] }
 0x141   : > { %9611 = vmatmul.mubr.msk.f32.gmra.mrb[22].mxu1 %vm371_vm0, %v13314_v59  ;;  %v12349_v59 = vld [vmem:[%s11163_s25 + $0x330] sm:$0xff] }
 0x142   : > { %10051 = vmatmul.mubr.msk.f32.gmra.mrb[54].mxu0 %vm371_vm0, %v13315_v63  ;;  %9613 = vmatprep.mubr.msk.f32.mxu1 %vm371_vm0, %v13316_v56  ;;  %v13322_v63 = vld [vmem:[#allocation54_spill] sm:$0xff]  ;;  %v13323_v56 = vld [vmem:[#allocation56_spill] sm:$0xff] }
 0x143   : > { %10053 = vmatprep.mubr.msk.f32.mxu0 %vm371_vm0, %v13317_v55  ;;  %v12360_v55 = vld [vmem:[%s11163_s25 + $0x338] sm:$0xff] }
 0x144   : > { %13324 = vst [vmem:[#allocation11_spill] sm:$0xff] %v12360_v55 }
 0x145   : > { %9614 = vmatmul.mubr.msk.f32.gmra.mrb[24].mxu1 %vm371_vm0, %v13318_v1  ;;  %v8466_v1 = vld [vmem:[%s11163_s25 + $0x348] sm:$0xff] }
 0x146   : > { %10054 = vmatmul.mubr.msk.f32.gmra.mrb[56].mxu0 %vm371_vm0, %v13319_v60  ;;  %9616 = vmatprep.mubr.msk.f32.mxu1 %vm371_vm0, %v13320_v57  ;;  %v13325_v60 = vld [vmem:[#allocation58_spill] sm:$0xff]  ;;  %v13326_v57 = vld [vmem:[#allocation60_spill] sm:$0xff] }
 0x147   : > { %10056 = vmatprep.mubr.msk.f32.mxu0 %vm371_vm0, %v13321_v61  ;;  %v1944_v61 = vld [vmem:[%s11163_s25 + $0x1b2] sm:$0xff] }
 0x149   : > { %9617 = vmatmul.mubr.msk.f32.gmra.mrb[26].mxu1 %vm371_vm0, %v13322_v63  ;;  %v8533_v63 = vld [vmem:[%s11163_s25 + $0x31] sm:$0xff] }
 0x14a   : > { %10057 = vmatmul.mubr.msk.f32.gmra.mrb[58].mxu0 %vm371_vm0, %v11782_v6  ;;  %9619 = vmatprep.mubr.msk.f32.mxu1 %vm371_vm0, %v13323_v56  ;;  %v8467_v6 = vld [vmem:[%s11163_s25 + $0x350] sm:$0xff]  ;;  %v13327_v56 = vld [vmem:[#allocation62_spill] sm:$0xff] }
 0x14b   : > { %10059 = vmatprep.mubr.msk.f32.mxu0 %vm371_vm0, %v12349_v59 }
 0x14d   : > { %9620 = vmatmul.mubr.msk.f32.gmra.mrb[28].mxu1 %vm371_vm0, %v13325_v60  ;;  %v1945_v60 = vld [vmem:[%s11163_s25 + $0x1ba] sm:$0xff] }
 0x14e   : > { %10060 = vmatmul.mubr.msk.f32.gmra.mrb[60].mxu0 %vm371_vm0, %v12360_v55  ;;  %9622 = vmatprep.mubr.msk.f32.mxu1 %vm371_vm0, %v13326_v57  ;;  %v8534_v57 = vld [vmem:[%s11163_s25 + $0x39] sm:$0xff]  ;;  %v8535_v55 = vld [vmem:[%s11163_s25 + $0x49] sm:$0xff] }
 0x14f   : > { %10062 = vmatprep.mubr.msk.f32.mxu0 %vm371_vm0, %v8466_v1  ;;  %v8536_v1 = vld [vmem:[%s11163_s25 + $0x51] sm:$0xff] }
 0x151   : > { %9623 = vmatmul.mubr.msk.f32.gmra.mrb[30].mxu1 %vm371_vm0, %v13327_v56  ;;  %v8043_v56 = vld [vmem:[%s11163_s25 + $0x150] sm:$0xff] }
 0x152   : > { %10063 = vmatmul.mubr.msk.f32.gmra.mrb[62].mxu0 %vm371_vm0, %v8467_v6  ;;  %9625 = vmatprep.mubr.msk.f32.mxu1 %vm371_vm0, %v1944_v61  ;;  %v8537_v6 = vld [vmem:[%s11163_s25 + $0x61] sm:$0xff]  ;;  %v8539_v61 = vld [vmem:[%s11163_s25 + $0x79] sm:$0xff] }
 0x153   : > { %10067 = vmatprep.mubr.msk.f32.mxu0 %vm371_vm0, %v8533_v63  ;;  %v13329_v63 = vld [vmem:[#allocation4_spill] sm:$0xff] }
 0x155   : > { %9626 = vmatmul.mubr.msk.f32.gmra.mrb[32].mxu1 %vm371_vm0, %v1945_v60  ;;  %v13331_v60 = vld [vmem:[#allocation65_spill] sm:$0xff] }
 0x156   : > { %10068 = vmatmul.mubr.msk.f32.vlgmr.msra.gmra.mrb[0].mxu0 %vm371_vm0, %v8534_v57  ;;  %9628 = vmatprep.mubr.msk.f32.mxu1 %vm371_vm0, %v11787_v4  ;;  %v8538_v4 = vld [vmem:[%s11163_s25 + $0x69] sm:$0xff]  ;;  %v8044_v57 = vld [vmem:[%s11163_s25 + $0x158] sm:$0xff] }
 0x157   : > { %10070 = vmatprep.mubr.msk.f32.mxu0 %vm371_vm0, %v8535_v55  ;;  %10164 = vmatpush3.msra.mxu0 %v12050_v18  ;;  %v8541_v18 = vld [vmem:[%s11163_s25 + $0x91] sm:$0xff]  ;;  %v8023_v55 = vld [vmem:[%s11163_s25 + $0x60] sm:$0xff] }
 0x159   : > { %9629 = vmatmul.mubr.msk.f32.gmra.mrb[34].mxu1 %vm371_vm0, %v11797_v10  ;;  %v8540_v10 = vld [vmem:[%s11163_s25 + $0x81] sm:$0xff] }
 0x15a   : > { %10071 = vmatmul.mubr.msk.f32.gmra.mrb[2].mxu0 %vm371_vm0, %v8536_v1  ;;  %9631 = vmatprep.mubr.msk.f32.mxu1 %vm371_vm0, %v11800_v0  ;;  %v8542_v0 = vld [vmem:[%s11163_s25 + $0x99] sm:$0xff]  ;;  %v8045_v1 = vld [vmem:[%s11163_s25 + $0x168] sm:$0xff] }
 0x15b   : > { %10073 = vmatprep.mubr.msk.f32.mxu0 %vm371_vm0, %v8537_v6  ;;  %v12617_v6 = vld [vmem:[%s11163_s25 + $0x331] sm:$0xff] }
 0x15d   : > { %9632 = vmatmul.mubr.msk.f32.gmra.mrb[36].mxu1 %vm371_vm0, %v11814_v3  ;;  %v8543_v3 = vld [vmem:[%s11163_s25 + $0xa9] sm:$0xff] }
 0x15e   : > { %10074 = vmatmul.mubr.msk.f32.gmra.mrb[4].mxu0 %vm371_vm0, %v8538_v4  ;;  %9634 = vmatprep.mubr.msk.f32.mxu1 %vm371_vm0, %v11819_v12  ;;  %v8544_v12 = vld [vmem:[%s11163_s25 + $0xb1] sm:$0xff] }
 0x15f   : > { %10076 = vmatprep.mubr.msk.f32.mxu0 %vm371_vm0, %v8539_v61  ;;  %v8046_v4 = vld [vmem:[%s11163_s25 + $0x170] sm:$0xff]  ;;  %v12627_v61 = vld [vmem:[%s11163_s25 + $0x339] sm:$0xff] }
 0x161   : > { %9635 = vmatmul.mubr.msk.f32.gmra.mrb[38].mxu1 %vm371_vm0, %v11831_v5  ;;  %v8545_v5 = vld [vmem:[%s11163_s25 + $0xc1] sm:$0xff] }
 0x162   : > { %10077 = vmatmul.mubr.msk.f32.gmra.mrb[6].mxu0 %vm371_vm0, %v8540_v10  ;;  %9637 = vmatprep.mubr.msk.f32.mxu1 %vm371_vm0, %v11834_v11  ;;  %v8546_v11 = vld [vmem:[%s11163_s25 + $0xc9] sm:$0xff] }
 0x163   : > { %10079 = vmatprep.mubr.msk.f32.mxu0 %vm371_vm0, %v8541_v18  ;;  %v8595_v10 = vld [vmem:[%s11163_s25 + $0x349] sm:$0xff]  ;;  %v13332_v18 = vld [vmem:[#allocation5_spill] sm:$0xff] }
 0x165   : > { %9638 = vmatmul.mubr.msk.f32.gmra.mrb[40].mxu1 %vm371_vm0, %v11845_v7  ;;  %v8547_v7 = vld [vmem:[%s11163_s25 + $0xd9] sm:$0xff] }
 0x166   : > { %10080 = vmatmul.mubr.msk.f32.gmra.mrb[8].mxu0 %vm371_vm0, %v8542_v0  ;;  %9640 = vmatprep.mubr.msk.f32.mxu1 %vm371_vm0, %v11848_v9  ;;  %v8548_v9 = vld [vmem:[%s11163_s25 + $0xe1] sm:$0xff] }
 0x167   : > { %10082 = vmatprep.mubr.msk.f32.mxu0 %vm371_vm0, %v8543_v3  ;;  %v8049_v0 = vld [vmem:[%s11163_s25 + $0x1c8] sm:$0xff]  ;;  %v8662_v3 = vld [vmem:[%s11163_s25 + $0x32] sm:$0xff] }
 0x169   : > { %9641 = vmatmul.mubr.msk.f32.gmra.mrb[42].mxu1 %vm371_vm0, %v11859_v13  ;;  %v8549_v13 = vld [vmem:[%s11163_s25 + $0xf1] sm:$0xff] }
 0x16a   : > { %10083 = vmatmul.mubr.msk.f32.gmra.mrb[10].mxu0 %vm371_vm0, %v8544_v12  ;;  %9643 = vmatprep.mubr.msk.f32.mxu1 %vm371_vm0, %v11862_v15  ;;  %v8550_v15 = vld [vmem:[%s11163_s25 + $0xf9] sm:$0xff]  ;;  %v13333_v12 = vld [vmem:[#allocation64_spill] sm:$0xff] }
 0x16b   : > { %10085 = vmatprep.mubr.msk.f32.mxu0 %vm371_vm0, %v8545_v5  ;;  %v8050_v5 = vld [vmem:[%s11163_s25 + $0x1d0] sm:$0xff] }
 0x16d   : > { %9644 = vmatmul.mubr.msk.f32.gmra.mrb[44].mxu1 %vm371_vm0, %v11873_v17  ;;  %v8551_v17 = vld [vmem:[%s11163_s25 + $0x109] sm:$0xff] }
 0x16e   : > { %10086 = vmatmul.mubr.msk.f32.gmra.mrb[12].mxu0 %vm371_vm0, %v8546_v11  ;;  %9646 = vmatprep.mubr.msk.f32.mxu1 %vm371_vm0, %v11876_v19  ;;  %v8552_v19 = vld [vmem:[%s11163_s25 + $0x111] sm:$0xff]  ;;  %v8663_v11 = vld [vmem:[%s11163_s25 + $0x3a] sm:$0xff] }
 0x16f   : > { %10088 = vmatprep.mubr.msk.f32.mxu0 %vm371_vm0, %v8547_v7  ;;  %v12655_v7 = vld [vmem:[%s13126_s2] ss:$0 sm:$0xff] }
 0x170   : > { %228 = vst [vmem:[%s12650_s16 + $0x190] sm:$0xff] %v12655_v7  ;;  %230 = vst [vmem:[%s12650_s16 + $0x1a0] sm:$0xff] %v12655_v7 }
 0x171   : > { %9647 = vmatmul.mubr.msk.f32.gmra.mrb[46].mxu1 %vm371_vm0, %v11887_v21  ;;  %v8553_v21 = vld [vmem:[%s11163_s25 + $0x121] sm:$0xff]  ;;  %231 = vst [vmem:[%s12650_s16 + $0x1a8] sm:$0xff] %v12655_v7  ;;  %232 = vst [vmem:[%s12650_s16 + $0x1b0] sm:$0xff] %v12655_v7 }
 0x172   : > { %10089 = vmatmul.mubr.msk.f32.gmra.mrb[14].mxu0 %vm371_vm0, %v8548_v9  ;;  %9649 = vmatprep.mubr.msk.f32.mxu1 %vm371_vm0, %v11890_v23  ;;  %v8554_v23 = vld [vmem:[%s11163_s25 + $0x129] sm:$0xff]  ;;  %v8051_v9 = vld [vmem:[%s11163_s25 + $0x1e0] sm:$0xff]  ;;  %233 = vst [vmem:[%s12650_s16 + $0x1b8] sm:$0xff] %v12655_v7  ;;  %234 = vst [vmem:[%s12650_s16 + $0x1c0] sm:$0xff] %v12655_v7 }
 0x173   : > { %10091 = vmatprep.mubr.msk.f32.mxu0 %vm371_vm0, %v8549_v13  ;;  %v8664_v13 = vld [vmem:[%s11163_s25 + $0x4a] sm:$0xff]  ;;  %235 = vst [vmem:[%s12650_s16 + $0x1c8] sm:$0xff] %v12655_v7  ;;  %236 = vst [vmem:[%s12650_s16 + $0x1d0] sm:$0xff] %v12655_v7 }
 0x174   : > { %237 = vst [vmem:[%s12650_s16 + $0x1d8] sm:$0xff] %v12655_v7  ;;  %238 = vst [vmem:[%s12650_s16 + $0x1e0] sm:$0xff] %v12655_v7 }
 0x175   : > { %9650 = vmatmul.mubr.msk.f32.gmra.mrb[48].mxu1 %vm371_vm0, %v11901_v25  ;;  %v8555_v25 = vld [vmem:[%s11163_s25 + $0x139] sm:$0xff]  ;;  %239 = vst [vmem:[%s12650_s16 + $0x1e8] sm:$0xff] %v12655_v7  ;;  %240 = vst [vmem:[%s12650_s16 + $0x1f0] sm:$0xff] %v12655_v7 }
 0x176   : > { %10092 = vmatmul.mubr.msk.f32.gmra.mrb[16].mxu0 %vm371_vm0, %v8550_v15  ;;  %9652 = vmatprep.mubr.msk.f32.mxu1 %vm371_vm0, %v11904_v27  ;;  %v8556_v27 = vld [vmem:[%s11163_s25 + $0x141] sm:$0xff]  ;;  %241 = vst [vmem:[%s12650_s16 + $0x1f8] sm:$0xff] %v12655_v7 }
 0x177   : > { %10094 = vmatprep.mubr.msk.f32.mxu0 %vm371_vm0, %v8551_v17  ;;  %v8052_v15 = vld [vmem:[%s11163_s25 + $0x1e8] sm:$0xff]  ;;  %v8665_v17 = vld [vmem:[%s11163_s25 + $0x52] sm:$0xff] }
 0x179   : > { %9653 = vmatmul.mubr.msk.f32.gmra.mrb[50].mxu1 %vm371_vm0, %v11915_v29  ;;  %v8557_v29 = vld [vmem:[%s11163_s25 + $0x151] sm:$0xff] }
 0x17a   : > { %10095 = vmatmul.mubr.msk.f32.gmra.mrb[18].mxu0 %vm371_vm0, %v8552_v19  ;;  %9655 = vmatprep.mubr.msk.f32.mxu1 %vm371_vm0, %v11918_v31  ;;  %v8558_v31 = vld [vmem:[%s11163_s25 + $0x159] sm:$0xff] }
 0x17b   : > { %10097 = vmatprep.mubr.msk.f32.mxu0 %vm371_vm0, %v8553_v21  ;;  %v8053_v19 = vld [vmem:[%s11163_s25 + $0x1f8] sm:$0xff]  ;;  %v8666_v21 = vld [vmem:[%s11163_s25 + $0x62] sm:$0xff] }
 0x17d   : > { %9656 = vmatmul.mubr.msk.f32.gmra.mrb[52].mxu1 %vm371_vm0, %v11929_v33  ;;  %v8559_v33 = vld [vmem:[%s11163_s25 + $0x169] sm:$0xff] }
 0x17e   : > { %10098 = vmatmul.mubr.msk.f32.gmra.mrb[20].mxu0 %vm371_vm0, %v8554_v23  ;;  %9658 = vmatprep.mubr.msk.f32.mxu1 %vm371_vm0, %v11932_v35  ;;  %v8560_v35 = vld [vmem:[%s11163_s25 + $0x171] sm:$0xff]  ;;  %v8054_v23 = vld [vmem:[%s11163_s25 + $0x200] sm:$0xff] }
 0x17f   : > { %10100 = vmatprep.mubr.msk.f32.mxu0 %vm371_vm0, %v8555_v25  ;;  %v8667_v25 = vld [vmem:[%s11163_s25 + $0x6a] sm:$0xff] }
 0x181   : > { %9659 = vmatmul.mubr.msk.f32.gmra.mrb[54].mxu1 %vm371_vm0, %v11943_v37  ;;  %v8561_v37 = vld [vmem:[%s11163_s25 + $0x181] sm:$0xff] }
 0x182   : > { %10101 = vmatmul.mubr.msk.f32.gmra.mrb[22].mxu0 %vm371_vm0, %v8556_v27  ;;  %9661 = vmatprep.mubr.msk.f32.mxu1 %vm371_vm0, %v11946_v39  ;;  %v8562_v39 = vld [vmem:[%s11163_s25 + $0x189] sm:$0xff] }
 0x183   : > { %10103 = vmatprep.mubr.msk.f32.mxu0 %vm371_vm0, %v8557_v29  ;;  %v8055_v27 = vld [vmem:[%s11163_s25 + $0x210] sm:$0xff]  ;;  %v8668_v29 = vld [vmem:[%s11163_s25 + $0x7a] sm:$0xff] }
 0x185   : > { %9662 = vmatmul.mubr.msk.f32.gmra.mrb[56].mxu1 %vm371_vm0, %v11957_v41  ;;  %v8563_v41 = vld [vmem:[%s11163_s25 + $0x199] sm:$0xff] }
 0x186   : > { %10104 = vmatmul.mubr.msk.f32.gmra.mrb[24].mxu0 %vm371_vm0, %v8558_v31  ;;  %9664 = vmatprep.mubr.msk.f32.mxu1 %vm371_vm0, %v11960_v43  ;;  %v8564_v43 = vld [vmem:[%s11163_s25 + $0x1a1] sm:$0xff]  ;;  %v8056_v31 = vld [vmem:[%s11163_s25 + $0x218] sm:$0xff] }
 0x187   : > { %10106 = vmatprep.mubr.msk.f32.mxu0 %vm371_vm0, %v8559_v33  ;;  %v8669_v33 = vld [vmem:[%s11163_s25 + $0x82] sm:$0xff] }
 0x189   : > { %9665 = vmatmul.mubr.msk.f32.gmra.mrb[58].mxu1 %vm371_vm0, %v11971_v45  ;;  %v8017_v45 = vld [vmem:[%s11163_s25 + $0x18] sm:$0xff] }
 0x18a   : > { %10107 = vmatmul.mubr.msk.f32.gmra.mrb[26].mxu0 %vm371_vm0, %v8560_v35  ;;  %9667 = vmatprep.mubr.msk.f32.mxu1 %vm371_vm0, %v11974_v47  ;;  %v8018_v47 = vld [vmem:[%s11163_s25 + $0x20] sm:$0xff]  ;;  %v8057_v35 = vld [vmem:[%s11163_s25 + $0x228] sm:$0xff] }
 0x18b   : > { %10109 = vmatprep.mubr.msk.f32.mxu0 %vm371_vm0, %v8561_v37  ;;  %v8670_v37 = vld [vmem:[%s11163_s25 + $0x92] sm:$0xff] }
 0x18d   : > { %9668 = vmatmul.mubr.msk.f32.gmra.mrb[60].mxu1 %vm371_vm0, %v11985_v49  ;;  %v8019_v49 = vld [vmem:[%s11163_s25 + $0x30] sm:$0xff] }
 0x18e   : > { %10110 = vmatmul.mubr.msk.f32.gmra.mrb[28].mxu0 %vm371_vm0, %v8562_v39  ;;  %9670 = vmatprep.mubr.msk.f32.mxu1 %vm371_vm0, %v11988_v51  ;;  %v11104_v51 = vld [vmem:[%s13125_s1 + $0x20] sm:$0xff]  ;;  %v8058_v39 = vld [vmem:[%s11163_s25 + $0x230] sm:$0xff] }
 0x18f   : > { %10112 = vmatprep.mubr.msk.f32.mxu0 %vm371_vm0, %v8563_v41  ;;  %v8671_v41 = vld [vmem:[%s11163_s25 + $0x9a] sm:$0xff] }
 0x191   : > { %9671 = vmatmul.mubr.msk.f32.gmra.mrb[62].mxu1 %vm371_vm0, %v11999_v53  ;;  %v8020_v53 = vld [vmem:[%s11163_s25 + $0x38] sm:$0xff] }
 0x192   : > { %10113 = vmatmul.mubr.msk.f32.gmra.mrb[30].mxu0 %vm371_vm0, %v8564_v43  ;;  %9675 = vmatprep.mubr.msk.f32.mxu1 %vm371_vm0, %v8017_v45  ;;  %v8059_v43 = vld [vmem:[%s11163_s25 + $0x240] sm:$0xff]  ;;  %v8672_v45 = vld [vmem:[%s11163_s25 + $0xaa] sm:$0xff] }
 0x193   : > { %10115 = vmatprep.mubr.msk.f32.mxu0 %vm371_vm0, %v12027_v2  ;;  %v8021_v2 = vld [vmem:[%s11163_s25 + $0x48] sm:$0xff] }
 0x195   : > { %9676 = vmatmul.mubr.msk.f32.vlgmr.msra.gmra.mrb[0].mxu1 %vm371_vm0, %v8018_v47  ;;  %v8060_v47 = vld [vmem:[%s11163_s25 + $0x248] sm:$0xff] }
 0x196   : > { %10116 = vmatmul.mubr.msk.f32.gmra.mrb[32].mxu0 %vm371_vm0, %v12038_v14  ;;  %10262 = vmatpush3.msra.mxu1 %v11104_v51  ;;  %v8022_v14 = vld [vmem:[%s11163_s25 + $0x50] sm:$0xff]  ;;  %v8061_v51 = vld [vmem:[%s11163_s25 + $0x258] sm:$0xff] }
 0x197   : > { %9678 = vmatprep.mubr.msk.f32.mxu1 %vm371_vm0, %v8019_v49  ;;  %10118 = vmatprep.mubr.msk.f32.mxu0 %vm371_vm0, %v12041_v16  ;;  %v8024_v16 = vld [vmem:[%s11163_s25 + $0x68] sm:$0xff]  ;;  %v8673_v49 = vld [vmem:[%s11163_s25 + $0xb2] sm:$0xff] }
 0x199   : > { %9679 = vmatmul.mubr.msk.f32.gmra.mrb[2].mxu1 %vm371_vm0, %v8020_v53  ;;  %v8674_v53 = vld [vmem:[%s11163_s25 + $0xc2] sm:$0xff] }
 0x19a   : > { %10119 = vmatmul.mubr.msk.f32.gmra.mrb[34].mxu0 %vm371_vm0, %v12057_v20  ;;  %9681 = vmatprep.mubr.msk.f32.mxu1 %vm371_vm0, %v8021_v2  ;;  %v8025_v20 = vld [vmem:[%s11163_s25 + $0x78] sm:$0xff]  ;;  %v8062_v2 = vld [vmem:[%s11163_s25 + $0x260] sm:$0xff] }
 0x19b   : > { %10121 = vmatprep.mubr.msk.f32.mxu0 %vm371_vm0, %v12060_v22  ;;  %v8026_v22 = vld [vmem:[%s11163_s25 + $0x80] sm:$0xff] }
 0x19d   : > { %9682 = vmatmul.mubr.msk.f32.gmra.mrb[4].mxu1 %vm371_vm0, %v8022_v14  ;;  %v8675_v14 = vld [vmem:[%s11163_s25 + $0xca] sm:$0xff] }
 0x19e   : > { %10122 = vmatmul.mubr.msk.f32.gmra.mrb[36].mxu0 %vm371_vm0, %v12072_v24  ;;  %9684 = vmatprep.mubr.msk.f32.mxu1 %vm371_vm0, %v8023_v55  ;;  %v8027_v24 = vld [vmem:[%s11163_s25 + $0x90] sm:$0xff] }
 0x19f   : > { %10124 = vmatprep.mubr.msk.f32.mxu0 %vm371_vm0, %v12075_v26  ;;  %v8028_v26 = vld [vmem:[%s11163_s25 + $0x98] sm:$0xff]  ;;  %v8063_v55 = vld [vmem:[%s11163_s25 + $0x270] sm:$0xff] }
 0x1a1   : > { %9685 = vmatmul.mubr.msk.f32.gmra.mrb[6].mxu1 %vm371_vm0, %v8024_v16  ;;  %v8676_v16 = vld [vmem:[%s11163_s25 + $0xda] sm:$0xff] }
 0x1a2   : > { %10125 = vmatmul.mubr.msk.f32.gmra.mrb[38].mxu0 %vm371_vm0, %v12086_v28  ;;  %9687 = vmatprep.mubr.msk.f32.mxu1 %vm371_vm0, %v8025_v20  ;;  %v8029_v28 = vld [vmem:[%s11163_s25 + $0xa8] sm:$0xff]  ;;  %v8064_v20 = vld [vmem:[%s11163_s25 + $0x278] sm:$0xff] }
 0x1a3   : > { %10127 = vmatprep.mubr.msk.f32.mxu0 %vm371_vm0, %v12089_v30  ;;  %v8030_v30 = vld [vmem:[%s11163_s25 + $0xb0] sm:$0xff] }
 0x1a5   : > { %9688 = vmatmul.mubr.msk.f32.gmra.mrb[8].mxu1 %vm371_vm0, %v8026_v22  ;;  %v8677_v22 = vld [vmem:[%s11163_s25 + $0xe2] sm:$0xff] }
 0x1a6   : > { %10128 = vmatmul.mubr.msk.f32.gmra.mrb[40].mxu0 %vm371_vm0, %v12100_v32  ;;  %9690 = vmatprep.mubr.msk.f32.mxu1 %vm371_vm0, %v8027_v24  ;;  %v8031_v32 = vld [vmem:[%s11163_s25 + $0xc0] sm:$0xff]  ;;  %v8065_v24 = vld [vmem:[%s11163_s25 + $0x288] sm:$0xff] }
 0x1a7   : > { %10130 = vmatprep.mubr.msk.f32.mxu0 %vm371_vm0, %v12103_v34  ;;  %v8032_v34 = vld [vmem:[%s11163_s25 + $0xc8] sm:$0xff] }
 0x1a9   : > { %9691 = vmatmul.mubr.msk.f32.gmra.mrb[10].mxu1 %vm371_vm0, %v8028_v26  ;;  %v8678_v26 = vld [vmem:[%s11163_s25 + $0xf2] sm:$0xff] }
 0x1aa   : > { %10131 = vmatmul.mubr.msk.f32.gmra.mrb[42].mxu0 %vm371_vm0, %v12114_v36  ;;  %9693 = vmatprep.mubr.msk.f32.mxu1 %vm371_vm0, %v8029_v28  ;;  %v8033_v36 = vld [vmem:[%s11163_s25 + $0xd8] sm:$0xff]  ;;  %v8066_v28 = vld [vmem:[%s11163_s25 + $0x290] sm:$0xff] }
 0x1ab   : > { %10133 = vmatprep.mubr.msk.f32.mxu0 %vm371_vm0, %v12117_v38  ;;  %v8034_v38 = vld [vmem:[%s11163_s25 + $0xe0] sm:$0xff] }
 0x1ad   : > { %9694 = vmatmul.mubr.msk.f32.gmra.mrb[12].mxu1 %vm371_vm0, %v8030_v30  ;;  %v8679_v30 = vld [vmem:[%s11163_s25 + $0xfa] sm:$0xff] }
 0x1ae   : > { %10134 = vmatmul.mubr.msk.f32.gmra.mrb[44].mxu0 %vm371_vm0, %v12128_v40  ;;  %9696 = vmatprep.mubr.msk.f32.mxu1 %vm371_vm0, %v8031_v32  ;;  %v8035_v40 = vld [vmem:[%s11163_s25 + $0xf0] sm:$0xff]  ;;  %v8067_v32 = vld [vmem:[%s11163_s25 + $0x2a0] sm:$0xff] }
 0x1af   : > { %10136 = vmatprep.mubr.msk.f32.mxu0 %vm371_vm0, %v12131_v42  ;;  %v8036_v42 = vld [vmem:[%s11163_s25 + $0xf8] sm:$0xff] }
 0x1b1   : > { %9697 = vmatmul.mubr.msk.f32.gmra.mrb[14].mxu1 %vm371_vm0, %v8032_v34  ;;  %v8680_v34 = vld [vmem:[%s11163_s25 + $0x10a] sm:$0xff] }
 0x1b2   : > { %10137 = vmatmul.mubr.msk.f32.gmra.mrb[46].mxu0 %vm371_vm0, %v12142_v44  ;;  %9699 = vmatprep.mubr.msk.f32.mxu1 %vm371_vm0, %v8033_v36  ;;  %v8037_v44 = vld [vmem:[%s11163_s25 + $0x108] sm:$0xff] }
 0x1b3   : > { %10139 = vmatprep.mubr.msk.f32.mxu0 %vm371_vm0, %v12145_v46  ;;  %v8038_v46 = vld [vmem:[%s11163_s25 + $0x110] sm:$0xff]  ;;  %v8068_v36 = vld [vmem:[%s11163_s25 + $0x2a8] sm:$0xff] }
 0x1b5   : > { %9700 = vmatmul.mubr.msk.f32.gmra.mrb[16].mxu1 %vm371_vm0, %v8034_v38  ;;  %v8681_v38 = vld [vmem:[%s11163_s25 + $0x112] sm:$0xff] }
 0x1b6   : > { %10140 = vmatmul.mubr.msk.f32.gmra.mrb[48].mxu0 %vm371_vm0, %v12156_v48  ;;  %9702 = vmatprep.mubr.msk.f32.mxu1 %vm371_vm0, %v8035_v40  ;;  %v8039_v48 = vld [vmem:[%s11163_s25 + $0x120] sm:$0xff]  ;;  %v8069_v40 = vld [vmem:[%s11163_s25 + $0x2b8] sm:$0xff] }
 0x1b7   : > { %10142 = vmatprep.mubr.msk.f32.mxu0 %vm371_vm0, %v12159_v50  ;;  %v8040_v50 = vld [vmem:[%s11163_s25 + $0x128] sm:$0xff] }
 0x1b9   : > { %9703 = vmatmul.mubr.msk.f32.gmra.mrb[18].mxu1 %vm371_vm0, %v8036_v42  ;;  %v8682_v42 = vld [vmem:[%s11163_s25 + $0x122] sm:$0xff] }
 0x1ba   : > { %10143 = vmatmul.mubr.msk.f32.gmra.mrb[50].mxu0 %vm371_vm0, %v12170_v52  ;;  %9705 = vmatprep.mubr.msk.f32.mxu1 %vm371_vm0, %v8037_v44  ;;  %v8041_v52 = vld [vmem:[%s11163_s25 + $0x138] sm:$0xff]  ;;  %v8070_v44 = vld [vmem:[%s11163_s25 + $0x2c0] sm:$0xff] }
 0x1bb   : > { %10145 = vmatprep.mubr.msk.f32.mxu0 %vm371_vm0, %v12173_v54  ;;  %v13328_v54 = vld [vmem:[#allocation3_spill] sm:$0xff] }
 0x1bd   : > { %9706 = vmatmul.mubr.msk.f32.gmra.mrb[20].mxu1 %vm371_vm0, %v8038_v46  ;;  %v8683_v46 = vld [vmem:[%s11163_s25 + $0x12a] sm:$0xff] }
 0x1be   : > { %10146 = vmatmul.mubr.msk.f32.gmra.mrb[52].mxu0 %vm371_vm0, %v12184_v58  ;;  %9708 = vmatprep.mubr.msk.f32.mxu1 %vm371_vm0, %v8039_v48  ;;  %v8042_v58 = vld [vmem:[%s11163_s25 + $0x140] sm:$0xff]  ;;  %v8071_v48 = vld [vmem:[%s11163_s25 + $0x2d0] sm:$0xff] }
 0x1bf   : > { %10148 = vmatprep.mubr.msk.f32.mxu0 %vm371_vm0, %v12187_v8  ;;  %v13330_v8 = vld [vmem:[#allocation6_spill] sm:$0xff] }
 0x1c1   : > { %9709 = vmatmul.mubr.msk.f32.gmra.mrb[22].mxu1 %vm371_vm0, %v8040_v50  ;;  %v8684_v50 = vld [vmem:[%s11163_s25 + $0x13a] sm:$0xff] }
 0x1c2   : > { %10149 = vmatmul.mubr.msk.f32.gmra.mrb[54].mxu0 %vm371_vm0, %v13328_v54  ;;  %9711 = vmatprep.mubr.msk.f32.mxu1 %vm371_vm0, %v8041_v52  ;;  %v8072_v52 = vld [vmem:[%s11163_s25 + $0x2d8] sm:$0xff]  ;;  %v8685_v54 = vld [vmem:[%s11163_s25 + $0x142] sm:$0xff] }
 0x1c3   : > { %10151 = vmatprep.mubr.msk.f32.mxu0 %vm371_vm0, %v13329_v63  ;;  %v8073_v63 = vld [vmem:[%s11163_s25 + $0x2e8] sm:$0xff] }
 0x1c5   : > { %9712 = vmatmul.mubr.msk.f32.gmra.mrb[24].mxu1 %vm371_vm0, %v8042_v58  ;;  %v8686_v58 = vld [vmem:[%s11163_s25 + $0x152] sm:$0xff] }
 0x1c6   : > { %10152 = vmatmul.mubr.msk.f32.gmra.mrb[56].mxu0 %vm371_vm0, %v13330_v8  ;;  %9714 = vmatprep.mubr.msk.f32.mxu1 %vm371_vm0, %v8043_v56  ;;  %v8074_v56 = vld [vmem:[%s11163_s25 + $0x2f0] sm:$0xff]  ;;  %v8687_v8 = vld [vmem:[%s11163_s25 + $0x15a] sm:$0xff] }
 0x1c7   : > { %10154 = vmatprep.mubr.msk.f32.mxu0 %vm371_vm0, %v13331_v60  ;;  %v8075_v60 = vld [vmem:[%s11163_s25 + $0x300] sm:$0xff] }
 0x1c9   : > { %9715 = vmatmul.mubr.msk.f32.gmra.mrb[26].mxu1 %vm371_vm0, %v8044_v57  ;;  %v8688_v57 = vld [vmem:[%s11163_s25 + $0x16a] sm:$0xff] }
 0x1ca   : > { %10155 = vmatmul.mubr.msk.f32.gmra.mrb[58].mxu0 %vm371_vm0, %v12232_v62  ;;  %9717 = vmatprep.mubr.msk.f32.mxu1 %vm371_vm0, %v8045_v1  ;;  %v8596_v62 = vld [vmem:[%s11163_s25 + $0x351] sm:$0xff]  ;;  %v8076_v1 = vld [vmem:[%s11163_s25 + $0x308] sm:$0xff] }
 0x1cb   : > { %10157 = vmatprep.mubr.msk.f32.mxu0 %vm371_vm0, %v12617_v6 }
 0x1cd   : > { %9718 = vmatmul.mubr.msk.f32.gmra.mrb[28].mxu1 %vm371_vm0, %v8046_v4  ;;  %v8689_v4 = vld [vmem:[%s11163_s25 + $0x172] sm:$0xff] }
 0x1ce   : > { %10158 = vmatmul.mubr.msk.f32.gmra.mrb[60].mxu0 %vm371_vm0, %v12627_v61  ;;  %9720 = vmatprep.mubr.msk.f32.mxu1 %vm371_vm0, %v13332_v18  ;;  %v8690_v18 = vld [vmem:[%s11163_s25 + $0x182] sm:$0xff] }
 0x1cf   : > { %10160 = vmatprep.mubr.msk.f32.mxu0 %vm371_vm0, %v8595_v10  ;;  %v8077_v10 = vld [vmem:[%s11163_s25 + $0x318] sm:$0xff] }
 0x1d1   : > { %9721 = vmatmul.mubr.msk.f32.gmra.mrb[30].mxu1 %vm371_vm0, %v13333_v12  ;;  %v8693_v12 = vld [vmem:[%s11163_s25 + $0x1a2] sm:$0xff] }
 0x1d2   : > { %10161 = vmatmul.mubr.msk.f32.gmra.mrb[62].mxu0 %vm371_vm0, %v8596_v62  ;;  %9723 = vmatprep.mubr.msk.f32.mxu1 %vm371_vm0, %v8049_v0  ;;  %v8078_v62 = vld [vmem:[%s11163_s25 + $0x320] sm:$0xff]  ;;  %v8691_v0 = vld [vmem:[%s11163_s25 + $0x18a] sm:$0xff] }
 0x1d3   : > { %10165 = vmatprep.mubr.msk.f32.mxu0 %vm371_vm0, %v8662_v3  ;;  %v8692_v3 = vld [vmem:[%s11163_s25 + $0x19a] sm:$0xff] }
 0x1d5   : > { %9724 = vmatmul.mubr.msk.f32.gmra.mrb[32].mxu1 %vm371_vm0, %v8050_v5  ;;  %v8178_v5 = vld [vmem:[%s11163_s25 + $0x1c9] sm:$0xff] }
 0x1d6   : > { %10166 = vmatmul.mubr.msk.f32.vlgmr.msra.gmra.mrb[0].mxu0 %vm371_vm0, %v8663_v11  ;;  %9726 = vmatprep.mubr.msk.f32.mxu1 %vm371_vm0, %v8051_v9  ;;  %v8694_v11 = vld [vmem:[%s11163_s25 + $0x1e2] sm:$0xff] }
 0x1d7   : > { %10168 = vmatprep.mubr.msk.f32.mxu0 %vm371_vm0, %v8664_v13  ;;  %v13334_v9 = vld [vmem:[#allocation11_spill] sm:$0xff]  ;;  %v8179_v13 = vld [vmem:[%s11163_s25 + $0x1d1] sm:$0xff] }
 0x1d9   : > { %9727 = vmatmul.mubr.msk.f32.gmra.mrb[34].mxu1 %vm371_vm0, %v8052_v15  ;;  %v8180_v15 = vld [vmem:[%s11163_s25 + $0x1e1] sm:$0xff] }
 0x1da   : > { %10169 = vmatmul.mubr.msk.f32.gmra.mrb[2].mxu0 %vm371_vm0, %v8665_v17  ;;  %9729 = vmatprep.mubr.msk.f32.mxu1 %vm371_vm0, %v8053_v19  ;;  %v8696_v17 = vld [vmem:[%s11163_s25 + $0x1fa] sm:$0xff]  ;;  %v8181_v19 = vld [vmem:[%s11163_s25 + $0x1e9] sm:$0xff] }
 0x1db   : > { %10171 = vmatprep.mubr.msk.f32.mxu0 %vm371_vm0, %v8666_v21  ;;  %v8697_v21 = vld [vmem:[%s11163_s25 + $0x202] sm:$0xff] }
 0x1dd   : > { %9730 = vmatmul.mubr.msk.f32.gmra.mrb[36].mxu1 %vm371_vm0, %v8054_v23  ;;  %v8182_v23 = vld [vmem:[%s11163_s25 + $0x1f9] sm:$0xff] }
 0x1de   : > { %10172 = vmatmul.mubr.msk.f32.gmra.mrb[4].mxu0 %vm371_vm0, %v8667_v25  ;;  %9732 = vmatprep.mubr.msk.f32.mxu1 %vm371_vm0, %v8055_v27  ;;  %v8698_v25 = vld [vmem:[%s11163_s25 + $0x212] sm:$0xff]  ;;  %v8183_v27 = vld [vmem:[%s11163_s25 + $0x201] sm:$0xff] }
 0x1df   : > { %10174 = vmatprep.mubr.msk.f32.mxu0 %vm371_vm0, %v8668_v29  ;;  %v8699_v29 = vld [vmem:[%s11163_s25 + $0x21a] sm:$0xff] }
 0x1e1   : > { %9733 = vmatmul.mubr.msk.f32.gmra.mrb[38].mxu1 %vm371_vm0, %v8056_v31  ;;  %v8184_v31 = vld [vmem:[%s11163_s25 + $0x211] sm:$0xff] }
 0x1e2   : > { %10175 = vmatmul.mubr.msk.f32.gmra.mrb[6].mxu0 %vm371_vm0, %v8669_v33  ;;  %9735 = vmatprep.mubr.msk.f32.mxu1 %vm371_vm0, %v8057_v35  ;;  %v8700_v33 = vld [vmem:[%s11163_s25 + $0x22a] sm:$0xff]  ;;  %v8185_v35 = vld [vmem:[%s11163_s25 + $0x219] sm:$0xff] }
 0x1e3   : > { %10177 = vmatprep.mubr.msk.f32.mxu0 %vm371_vm0, %v8670_v37  ;;  %v8701_v37 = vld [vmem:[%s11163_s25 + $0x232] sm:$0xff] }
 0x1e5   : > { %9736 = vmatmul.mubr.msk.f32.gmra.mrb[40].mxu1 %vm371_vm0, %v8058_v39  ;;  %v8186_v39 = vld [vmem:[%s11163_s25 + $0x229] sm:$0xff] }
 0x1e6   : > { %10178 = vmatmul.mubr.msk.f32.gmra.mrb[8].mxu0 %vm371_vm0, %v8671_v41  ;;  %9738 = vmatprep.mubr.msk.f32.mxu1 %vm371_vm0, %v8059_v43  ;;  %v8702_v41 = vld [vmem:[%s11163_s25 + $0x242] sm:$0xff]  ;;  %v8187_v43 = vld [vmem:[%s11163_s25 + $0x231] sm:$0xff] }
 0x1e7   : > { %10180 = vmatprep.mubr.msk.f32.mxu0 %vm371_vm0, %v8672_v45  ;;  %v8703_v45 = vld [vmem:[%s11163_s25 + $0x24a] sm:$0xff] }
 0x1e9   : > { %9739 = vmatmul.mubr.msk.f32.gmra.mrb[42].mxu1 %vm371_vm0, %v8060_v47  ;;  %v8188_v47 = vld [vmem:[%s11163_s25 + $0x241] sm:$0xff] }
 0x1ea   : > { %10181 = vmatmul.mubr.msk.f32.gmra.mrb[10].mxu0 %vm371_vm0, %v8673_v49  ;;  %9741 = vmatprep.mubr.msk.f32.mxu1 %vm371_vm0, %v8061_v51  ;;  %v8704_v49 = vld [vmem:[%s11163_s25 + $0x25a] sm:$0xff]  ;;  %v8189_v51 = vld [vmem:[%s11163_s25 + $0x249] sm:$0xff] }
 0x1eb   : > { %10183 = vmatprep.mubr.msk.f32.mxu0 %vm371_vm0, %v8674_v53  ;;  %v8705_v53 = vld [vmem:[%s11163_s25 + $0x262] sm:$0xff] }
 0x1ed   : > { %9742 = vmatmul.mubr.msk.f32.gmra.mrb[44].mxu1 %vm371_vm0, %v8062_v2  ;;  %v8190_v2 = vld [vmem:[%s11163_s25 + $0x259] sm:$0xff] }
 0x1ee   : > { %10184 = vmatmul.mubr.msk.f32.gmra.mrb[12].mxu0 %vm371_vm0, %v8675_v14  ;;  %9744 = vmatprep.mubr.msk.f32.mxu1 %vm371_vm0, %v8063_v55  ;;  %v8706_v14 = vld [vmem:[%s11163_s25 + $0x272] sm:$0xff]  ;;  %v8191_v55 = vld [vmem:[%s11163_s25 + $0x261] sm:$0xff] }
 0x1ef   : > { %10186 = vmatprep.mubr.msk.f32.mxu0 %vm371_vm0, %v8676_v16  ;;  %v8707_v16 = vld [vmem:[%s11163_s25 + $0x27a] sm:$0xff] }
 0x1f1   : > { %9745 = vmatmul.mubr.msk.f32.gmra.mrb[46].mxu1 %vm371_vm0, %v8064_v20  ;;  %v8192_v20 = vld [vmem:[%s11163_s25 + $0x271] sm:$0xff] }
 0x1f2   : > { %10187 = vmatmul.mubr.msk.f32.gmra.mrb[14].mxu0 %vm371_vm0, %v8677_v22  ;;  %9747 = vmatprep.mubr.msk.f32.mxu1 %vm371_vm0, %v8065_v24  ;;  %v8708_v22 = vld [vmem:[%s11163_s25 + $0x28a] sm:$0xff]  ;;  %v8193_v24 = vld [vmem:[%s11163_s25 + $0x279] sm:$0xff] }
 0x1f3   : > { %10189 = vmatprep.mubr.msk.f32.mxu0 %vm371_vm0, %v8678_v26  ;;  %v8709_v26 = vld [vmem:[%s11163_s25 + $0x292] sm:$0xff] }
 0x1f5   : > { %9748 = vmatmul.mubr.msk.f32.gmra.mrb[48].mxu1 %vm371_vm0, %v8066_v28  ;;  %v8194_v28 = vld [vmem:[%s11163_s25 + $0x289] sm:$0xff] }
 0x1f6   : > { %10190 = vmatmul.mubr.msk.f32.gmra.mrb[16].mxu0 %vm371_vm0, %v8679_v30  ;;  %9750 = vmatprep.mubr.msk.f32.mxu1 %vm371_vm0, %v8067_v32  ;;  %v8710_v30 = vld [vmem:[%s11163_s25 + $0x2a2] sm:$0xff]  ;;  %v8195_v32 = vld [vmem:[%s11163_s25 + $0x291] sm:$0xff] }
 0x1f7   : > { %10192 = vmatprep.mubr.msk.f32.mxu0 %vm371_vm0, %v8680_v34  ;;  %v8711_v34 = vld [vmem:[%s11163_s25 + $0x2aa] sm:$0xff] }
 0x1f9   : > { %9751 = vmatmul.mubr.msk.f32.gmra.mrb[50].mxu1 %vm371_vm0, %v8068_v36  ;;  %v8196_v36 = vld [vmem:[%s11163_s25 + $0x2a1] sm:$0xff] }
 0x1fa   : > { %10193 = vmatmul.mubr.msk.f32.gmra.mrb[18].mxu0 %vm371_vm0, %v8681_v38  ;;  %9753 = vmatprep.mubr.msk.f32.mxu1 %vm371_vm0, %v8069_v40  ;;  %v8712_v38 = vld [vmem:[%s11163_s25 + $0x2ba] sm:$0xff]  ;;  %v8197_v40 = vld [vmem:[%s11163_s25 + $0x2a9] sm:$0xff] }
 0x1fb   : > { %10195 = vmatprep.mubr.msk.f32.mxu0 %vm371_vm0, %v8682_v42  ;;  %v8713_v42 = vld [vmem:[%s11163_s25 + $0x2c2] sm:$0xff] }
 0x1fd   : > { %9754 = vmatmul.mubr.msk.f32.gmra.mrb[52].mxu1 %vm371_vm0, %v8070_v44  ;;  %v8198_v44 = vld [vmem:[%s11163_s25 + $0x2b9] sm:$0xff] }
 0x1fe   : > { %10196 = vmatmul.mubr.msk.f32.gmra.mrb[20].mxu0 %vm371_vm0, %v8683_v46  ;;  %9756 = vmatprep.mubr.msk.f32.mxu1 %vm371_vm0, %v8071_v48  ;;  %v8714_v46 = vld [vmem:[%s11163_s25 + $0x2d2] sm:$0xff]  ;;  %v8199_v48 = vld [vmem:[%s11163_s25 + $0x2c1] sm:$0xff] }
 0x1ff   : > { %10198 = vmatprep.mubr.msk.f32.mxu0 %vm371_vm0, %v8684_v50  ;;  %v8715_v50 = vld [vmem:[%s11163_s25 + $0x2da] sm:$0xff] }
 0x201   : > { %9757 = vmatmul.mubr.msk.f32.gmra.mrb[54].mxu1 %vm371_vm0, %v8072_v52  ;;  %v8200_v52 = vld [vmem:[%s11163_s25 + $0x2d1] sm:$0xff] }
 0x202   : > { %10199 = vmatmul.mubr.msk.f32.gmra.mrb[22].mxu0 %vm371_vm0, %v8685_v54  ;;  %9759 = vmatprep.mubr.msk.f32.mxu1 %vm371_vm0, %v8073_v63  ;;  %v8716_v54 = vld [vmem:[%s11163_s25 + $0x2ea] sm:$0xff]  ;;  %v8201_v63 = vld [vmem:[%s11163_s25 + $0x2d9] sm:$0xff] }
 0x203   : > { %10201 = vmatprep.mubr.msk.f32.mxu0 %vm371_vm0, %v8686_v58  ;;  %v8717_v58 = vld [vmem:[%s11163_s25 + $0x2f2] sm:$0xff] }
 0x205   : > { %9760 = vmatmul.mubr.msk.f32.gmra.mrb[56].mxu1 %vm371_vm0, %v8074_v56  ;;  %v8202_v56 = vld [vmem:[%s11163_s25 + $0x2e9] sm:$0xff] }
 0x206   : > { %10202 = vmatmul.mubr.msk.f32.gmra.mrb[24].mxu0 %vm371_vm0, %v8687_v8  ;;  %9762 = vmatprep.mubr.msk.f32.mxu1 %vm371_vm0, %v8075_v60  ;;  %v8718_v8 = vld [vmem:[%s11163_s25 + $0x302] sm:$0xff]  ;;  %v8203_v60 = vld [vmem:[%s11163_s25 + $0x2f1] sm:$0xff] }
 0x207   : > { %10204 = vmatprep.mubr.msk.f32.mxu0 %vm371_vm0, %v8688_v57  ;;  %v8719_v57 = vld [vmem:[%s11163_s25 + $0x30a] sm:$0xff] }
 0x209   : > { %9763 = vmatmul.mubr.msk.f32.gmra.mrb[58].mxu1 %vm371_vm0, %v8076_v1  ;;  %v8204_v1 = vld [vmem:[%s11163_s25 + $0x301] sm:$0xff] }
 0x20a   : > { %10205 = vmatmul.mubr.msk.f32.gmra.mrb[26].mxu0 %vm371_vm0, %v8689_v4  ;;  %9765 = vmatprep.mubr.msk.f32.mxu1 %vm371_vm0, %v8077_v10  ;;  %v8720_v4 = vld [vmem:[%s11163_s25 + $0x31a] sm:$0xff]  ;;  %v8205_v10 = vld [vmem:[%s11163_s25 + $0x309] sm:$0xff] }
 0x20b   : > { %10207 = vmatprep.mubr.msk.f32.mxu0 %vm371_vm0, %v8690_v18  ;;  %v8721_v18 = vld [vmem:[%s11163_s25 + $0x322] sm:$0xff] }
 0x20d   : > { %9766 = vmatmul.mubr.msk.f32.gmra.mrb[60].mxu1 %vm371_vm0, %v8078_v62  ;;  %v8206_v62 = vld [vmem:[%s11163_s25 + $0x319] sm:$0xff] }
 0x20e   : > { %10208 = vmatmul.mubr.msk.f32.gmra.mrb[28].mxu0 %vm371_vm0, %v8691_v0  ;;  %9768 = vmatprep.mubr.msk.f32.mxu1 %vm371_vm0, %v12349_v59  ;;  %v8695_v59 = vld [vmem:[%s11163_s25 + $0x1ea] sm:$0xff]  ;;  %v8722_v0 = vld [vmem:[%s11163_s25 + $0x332] sm:$0xff] }
 0x20f   : > { %10210 = vmatprep.mubr.msk.f32.mxu0 %vm371_vm0, %v8692_v3  ;;  %v8207_v3 = vld [vmem:[%s11163_s25 + $0x321] sm:$0xff] }
 0x211   : > { %9769 = vmatmul.mubr.msk.f32.gmra.mrb[62].mxu1 %vm371_vm0, %v13334_v9 }
 0x212   : > { %10211 = vmatmul.mubr.msk.f32.gmra.mrb[30].mxu0 %vm371_vm0, %v8693_v12  ;;  %9821 = vmatprep.mubr.msk.f32.mxu1 %vm371_vm0, %v8178_v5  ;;  %v8723_v12 = vld [vmem:[%s11163_s25 + $0x33a] sm:$0xff]  ;;  %v8724_v5 = vld [vmem:[%s11163_s25 + $0x34a] sm:$0xff] }
 0x213   : > { %10213 = vmatprep.mubr.msk.f32.mxu0 %vm371_vm0, %v8694_v11  ;;  %v8725_v11 = vld [vmem:[%s11163_s25 + $0x352] sm:$0xff] }
 0x215   : > { %9822 = vmatmul.mubr.msk.f32.vlgmr.msra.gmra.mrb[32].mxu1 %vm371_vm0, %v8179_v13 }
 0x216   : > { %10214 = vmatmul.mubr.msk.f32.gmra.mrb[32].mxu0 %vm371_vm0, %v8695_v59  ;;  %9824 = vmatprep.mubr.msk.f32.mxu1 %vm371_vm0, %v8180_v15 }
 0x217   : > { %10216 = vmatprep.mubr.msk.f32.mxu0 %vm371_vm0, %v8696_v17 }
 0x219   : > { %9825 = vmatmul.mubr.msk.f32.gmra.mrb[34].mxu1 %vm371_vm0, %v8181_v19 }
 0x21a   : > { %10217 = vmatmul.mubr.msk.f32.gmra.mrb[34].mxu0 %vm371_vm0, %v8697_v21  ;;  %9827 = vmatprep.mubr.msk.f32.mxu1 %vm371_vm0, %v8182_v23 }
 0x21b   : > { %10219 = vmatprep.mubr.msk.f32.mxu0 %vm371_vm0, %v8698_v25 }
 0x21d   : > { %9828 = vmatmul.mubr.msk.f32.gmra.mrb[36].mxu1 %vm371_vm0, %v8183_v27 }
 0x21e   : > { %10220 = vmatmul.mubr.msk.f32.gmra.mrb[36].mxu0 %vm371_vm0, %v8699_v29  ;;  %9830 = vmatprep.mubr.msk.f32.mxu1 %vm371_vm0, %v8184_v31 }
 0x21f   : > { %10222 = vmatprep.mubr.msk.f32.mxu0 %vm371_vm0, %v8700_v33 }
 0x221   : > { %9831 = vmatmul.mubr.msk.f32.gmra.mrb[38].mxu1 %vm371_vm0, %v8185_v35 }
 0x222   : > { %10223 = vmatmul.mubr.msk.f32.gmra.mrb[38].mxu0 %vm371_vm0, %v8701_v37  ;;  %9833 = vmatprep.mubr.msk.f32.mxu1 %vm371_vm0, %v8186_v39 }
 0x223   : > { %10225 = vmatprep.mubr.msk.f32.mxu0 %vm371_vm0, %v8702_v41 }
 0x225   : > { %9834 = vmatmul.mubr.msk.f32.gmra.mrb[40].mxu1 %vm371_vm0, %v8187_v43 }
 0x226   : > { %10226 = vmatmul.mubr.msk.f32.gmra.mrb[40].mxu0 %vm371_vm0, %v8703_v45  ;;  %9836 = vmatprep.mubr.msk.f32.mxu1 %vm371_vm0, %v8188_v47 }
 0x227   : > { %10228 = vmatprep.mubr.msk.f32.mxu0 %vm371_vm0, %v8704_v49 }
 0x229   : > { %9837 = vmatmul.mubr.msk.f32.gmra.mrb[42].mxu1 %vm371_vm0, %v8189_v51 }
 0x22a   : > { %10229 = vmatmul.mubr.msk.f32.gmra.mrb[42].mxu0 %vm371_vm0, %v8705_v53  ;;  %9839 = vmatprep.mubr.msk.f32.mxu1 %vm371_vm0, %v8190_v2 }
 0x22b   : > { %10231 = vmatprep.mubr.msk.f32.mxu0 %vm371_vm0, %v8706_v14 }
 0x22d   : > { %9840 = vmatmul.mubr.msk.f32.gmra.mrb[44].mxu1 %vm371_vm0, %v8191_v55 }
 0x22e   : > { %10232 = vmatmul.mubr.msk.f32.gmra.mrb[44].mxu0 %vm371_vm0, %v8707_v16  ;;  %9842 = vmatprep.mubr.msk.f32.mxu1 %vm371_vm0, %v8192_v20 }
 0x22f   : > { %10234 = vmatprep.mubr.msk.f32.mxu0 %vm371_vm0, %v8708_v22 }
 0x231   : > { %9843 = vmatmul.mubr.msk.f32.gmra.mrb[46].mxu1 %vm371_vm0, %v8193_v24 }
 0x232   : > { %10235 = vmatmul.mubr.msk.f32.gmra.mrb[46].mxu0 %vm371_vm0, %v8709_v26  ;;  %9845 = vmatprep.mubr.msk.f32.mxu1 %vm371_vm0, %v8194_v28 }
 0x233   : > { %10237 = vmatprep.mubr.msk.f32.mxu0 %vm371_vm0, %v8710_v30 }
 0x235   : > { %9846 = vmatmul.mubr.msk.f32.gmra.mrb[48].mxu1 %vm371_vm0, %v8195_v32 }
 0x236   : > { %10238 = vmatmul.mubr.msk.f32.gmra.mrb[48].mxu0 %vm371_vm0, %v8711_v34  ;;  %9848 = vmatprep.mubr.msk.f32.mxu1 %vm371_vm0, %v8196_v36 }
 0x237   : > { %10240 = vmatprep.mubr.msk.f32.mxu0 %vm371_vm0, %v8712_v38 }
 0x239   : > { %9849 = vmatmul.mubr.msk.f32.gmra.mrb[50].mxu1 %vm371_vm0, %v8197_v40 }
 0x23a   : > { %10241 = vmatmul.mubr.msk.f32.gmra.mrb[50].mxu0 %vm371_vm0, %v8713_v42  ;;  %9851 = vmatprep.mubr.msk.f32.mxu1 %vm371_vm0, %v8198_v44 }
 0x23b   : > { %10243 = vmatprep.mubr.msk.f32.mxu0 %vm371_vm0, %v8714_v46 }
 0x23d   : > { %9852 = vmatmul.mubr.msk.f32.gmra.mrb[52].mxu1 %vm371_vm0, %v8199_v48 }
 0x23e   : > { %10244 = vmatmul.mubr.msk.f32.gmra.mrb[52].mxu0 %vm371_vm0, %v8715_v50  ;;  %9854 = vmatprep.mubr.msk.f32.mxu1 %vm371_vm0, %v8200_v52 }
 0x23f   : > { %10246 = vmatprep.mubr.msk.f32.mxu0 %vm371_vm0, %v8716_v54 }
 0x241   : > { %9855 = vmatmul.mubr.msk.f32.gmra.mrb[54].mxu1 %vm371_vm0, %v8201_v63 }
 0x242   : > { %10247 = vmatmul.mubr.msk.f32.gmra.mrb[54].mxu0 %vm371_vm0, %v8717_v58  ;;  %9857 = vmatprep.mubr.msk.f32.mxu1 %vm371_vm0, %v8202_v56 }
 0x243   : > { %10249 = vmatprep.mubr.msk.f32.mxu0 %vm371_vm0, %v8718_v8 }
 0x245   : > { %9858 = vmatmul.mubr.msk.f32.gmra.mrb[56].mxu1 %vm371_vm0, %v8203_v60 }
 0x246   : > { %10250 = vmatmul.mubr.msk.f32.gmra.mrb[56].mxu0 %vm371_vm0, %v8719_v57  ;;  %9860 = vmatprep.mubr.msk.f32.mxu1 %vm371_vm0, %v8204_v1 }
 0x247   : > { %10252 = vmatprep.mubr.msk.f32.mxu0 %vm371_vm0, %v8720_v4 }
 0x249   : > { %9861 = vmatmul.mubr.msk.f32.gmra.mrb[58].mxu1 %vm371_vm0, %v8205_v10 }
 0x24a   : > { %10253 = vmatmul.mubr.msk.f32.gmra.mrb[58].mxu0 %vm371_vm0, %v8721_v18  ;;  %9863 = vmatprep.mubr.msk.f32.mxu1 %vm371_vm0, %v8206_v62 }
 0x24b   : > { %10255 = vmatprep.mubr.msk.f32.mxu0 %vm371_vm0, %v8722_v0 }
 0x24d   : > { %9864 = vmatmul.mubr.msk.f32.gmra.mrb[60].mxu1 %vm371_vm0, %v8207_v3 }
 0x24e   : > { %10256 = vmatmul.mubr.msk.f32.gmra.mrb[60].mxu0 %vm371_vm0, %v8723_v12  ;;  %9866 = vmatprep.mubr.msk.f32.mxu1 %vm371_vm0, %v12617_v6 }
 0x24f   : > { %10258 = vmatprep.mubr.msk.f32.mxu0 %vm371_vm0, %v8724_v5 }
 0x251   : > { %9867 = vmatmul.mubr.msk.f32.gmra.mrb[62].mxu1 %vm371_vm0, %v12627_v61 }
 0x252   : > { %10259 = vmatmul.mubr.msk.f32.gmra.mrb[62].mxu0 %vm371_vm0, %v8725_v11 }
 0x268   : > { %v9677_v9 = vpop.f32.mrb[0].mxu1 }
 0x269   : > { %v3136_v13 = vpop.f32.mrb[1].mxu1  ;;  %v10265_v26 = vadd.f32 %v9677_v9, %v12655_v7 }
 0x26a   : > { %v10271_v28 = vadd.f32 %v12655_v7, %v3136_v13 }
 0x26c   : > { %v9680_v59 = vpop.f32.mrb[2].mxu1 }
 0x26d   : > { %v3146_v15 = vpop.f32.mrb[3].mxu1  ;;  %v10277_v38 = vadd.f32 %v9680_v59, %v12655_v7 }
 0x26e   : > { %v10283_v40 = vadd.f32 %v12655_v7, %v3146_v15 }
 0x270   : > { %v9683_v17 = vpop.f32.mrb[4].mxu1 }
 0x271   : > { %v3156_v19 = vpop.f32.mrb[5].mxu1  ;;  %v10289_v50 = vadd.f32 %v9683_v17, %v12655_v7 }
 0x272   : > { %v10295_v52 = vadd.f32 %v12655_v7, %v3156_v19 }
 0x274   : > { %v9686_v21 = vpop.f32.mrb[6].mxu1 }
 0x275   : > { %v3166_v23 = vpop.f32.mrb[7].mxu1  ;;  %v10301_v8 = vadd.f32 %v9686_v21, %v12655_v7 }
 0x276   : > { %v10307_v60 = vadd.f32 %v12655_v7, %v3166_v23 }
 0x278   : > { %v9689_v25 = vpop.f32.mrb[8].mxu1 }
 0x279   : > { %v3176_v27 = vpop.f32.mrb[9].mxu1  ;;  %v10313_v18 = vadd.f32 %v9689_v25, %v12655_v7 }
 0x27a   : > { %v10319_v62 = vadd.f32 %v12655_v7, %v3176_v27 }
 0x27c   : > { %v9692_v29 = vpop.f32.mrb[10].mxu1 }
 0x27d   : > { %v3186_v6 = vpop.f32.mrb[11].mxu1  ;;  %v10325_v11 = vadd.f32 %v9692_v29, %v12655_v7 }
 0x27e   : > { %v10331_v9 = vadd.f32 %v12655_v7, %v3186_v6 }
 0x280   : > { %v12933_v31 = vpop.f32.mrb[12].mxu1 }
 0x281   : > { %v12935_v33 = vpop.f32.mrb[13].mxu1  ;;  %v10337_v19 = vadd.f32 %v12933_v31, %v12655_v7 }
 0x282   : > { %v10343_v21 = vadd.f32 %v12655_v7, %v12935_v33 }
 0x284   : > { %v12937_v35 = vpop.f32.mrb[14].mxu1 }
 0x285   : > { %v12939_v61 = vpop.f32.mrb[15].mxu1  ;;  %v10349_v6 = vadd.f32 %v12937_v35, %v12655_v7 }
 0x288   : > { %v12941_v37 = vpop.f32.mrb[16].mxu1 }
 0x289   : > { %v12943_v39 = vpop.f32.mrb[17].mxu1 }
 0x28c   : > { %v12945_v41 = vpop.f32.mrb[18].mxu1 }
 0x28d   : > { %v12947_v43 = vpop.f32.mrb[19].mxu1 }
 0x290   : > { %v12949_v45 = vpop.f32.mrb[20].mxu1 }
 0x291   : > { %v12951_v47 = vpop.f32.mrb[21].mxu1 }
 0x294   : > { %v12953_v49 = vpop.f32.mrb[22].mxu1 }
 0x295   : > { %v12955_v51 = vpop.f32.mrb[23].mxu1 }
 0x298   : > { %v12957_v53 = vpop.f32.mrb[24].mxu1 }
 0x299   : > { %v12959_v2 = vpop.f32.mrb[25].mxu1 }
 0x29c   : > { %v12961_v14 = vpop.f32.mrb[26].mxu1 }
 0x29d   : > { %v12963_v55 = vpop.f32.mrb[27].mxu1 }
 0x2a0   : > { %v12965_v16 = vpop.f32.mrb[28].mxu1 }
 0x2a1   : > { %v12967_v20 = vpop.f32.mrb[29].mxu1 }
 0x2a4   : > { %v12969_v22 = vpop.f32.mrb[30].mxu1 }
 0x2a5   : > { %v12971_v24 = vpop.f32.mrb[31].mxu1 }
 0x2a9   : > { %v10167_v30 = vpop.f32.mrb[0].mxu0 }
 0x2aa   : > { %v10268_v32 = vadd.f32 %v10265_v26, %v10167_v30  ;;  %v7312_v34 = vpop.f32.mrb[1].mxu0  ;;  %v10355_v26 = vadd.f32 %v12655_v7, %v12939_v61 }
 0x2ab   : > { %v10274_v36 = vadd.f32 %v10271_v28, %v7312_v34  ;;  %v10367_v34 = vadd.f32 %v12655_v7, %v12943_v39 }
 0x2ac   : > { %7696 = vst [vmem:[%s12650_s16 + $0x8] sm:$0xff] %v10268_v32  ;;  %v10361_v32 = vadd.f32 %v12941_v37, %v12655_v7 }
 0x2ad   : > { %7695 = vst [vmem:[%s12650_s16] sm:$0xff] %v10274_v36  ;;  %v10170_v42 = vpop.f32.mrb[2].mxu0 }
 0x2ae   : > { %v10280_v44 = vadd.f32 %v10277_v38, %v10170_v42  ;;  %v7322_v46 = vpop.f32.mrb[3].mxu0  ;;  %v10379_v42 = vadd.f32 %v12655_v7, %v12947_v43 }
 0x2af   : > { %v10286_v48 = vadd.f32 %v10283_v40, %v7322_v46  ;;  %v10373_v40 = vadd.f32 %v12945_v41, %v12655_v7 }
 0x2b0   : > { %7698 = vst [vmem:[%s12650_s16 + $0x18] sm:$0xff] %v10280_v44 }
 0x2b1   : > { %7697 = vst [vmem:[%s12650_s16 + $0x10] sm:$0xff] %v10286_v48  ;;  %v10173_v54 = vpop.f32.mrb[4].mxu0  ;;  %v10385_v48 = vadd.f32 %v12949_v45, %v12655_v7 }
 0x2b2   : > { %v10292_v63 = vadd.f32 %v10289_v50, %v10173_v54  ;;  %v7332_v58 = vpop.f32.mrb[5].mxu0  ;;  %v10391_v50 = vadd.f32 %v12655_v7, %v12951_v47 }
 0x2b3   : > { %v10298_v56 = vadd.f32 %v10295_v52, %v7332_v58  ;;  %v10403_v58 = vadd.f32 %v12655_v7, %v12955_v51 }
 0x2b4   : > { %7700 = vst [vmem:[%s12650_s16 + $0x28] sm:$0xff] %v10292_v63  ;;  %v10397_v63 = vadd.f32 %v12953_v49, %v12655_v7 }
 0x2b5   : > { %7699 = vst [vmem:[%s12650_s16 + $0x20] sm:$0xff] %v10298_v56  ;;  %v10176_v57 = vpop.f32.mrb[6].mxu0 }
 0x2b6   : > { %v10304_v1 = vadd.f32 %v10301_v8, %v10176_v57  ;;  %v7342_v4 = vpop.f32.mrb[7].mxu0  ;;  %v10415_v57 = vadd.f32 %v12655_v7, %v12959_v2 }
 0x2b7   : > { %v10310_v10 = vadd.f32 %v10307_v60, %v7342_v4  ;;  %v10409_v60 = vadd.f32 %v12957_v53, %v12655_v7 }
 0x2b8   : > { %7702 = vst [vmem:[%s12650_s16 + $0x38] sm:$0xff] %v10304_v1 }
 0x2b9   : > { %7701 = vst [vmem:[%s12650_s16 + $0x30] sm:$0xff] %v10310_v10  ;;  %v10179_v0 = vpop.f32.mrb[8].mxu0  ;;  %v10421_v10 = vadd.f32 %v12961_v14, %v12655_v7  ;;  %v10439_v14 = vadd.f32 %v12655_v7, %v12967_v20 }
 0x2ba   : > { %v10316_v3 = vadd.f32 %v10313_v18, %v10179_v0  ;;  %v7352_v12 = vpop.f32.mrb[9].mxu0  ;;  %v10427_v18 = vadd.f32 %v12655_v7, %v12963_v55 }
 0x2bb   : > { %v10322_v5 = vadd.f32 %v10319_v62, %v7352_v12 }
 0x2bc   : > { %7704 = vst [vmem:[%s12650_s16 + $0x48] sm:$0xff] %v10316_v3  ;;  %v10433_v3 = vadd.f32 %v12965_v16, %v12655_v7 }
 0x2bd   : > { %7703 = vst [vmem:[%s12650_s16 + $0x40] sm:$0xff] %v10322_v5  ;;  %v10182_v13 = vpop.f32.mrb[10].mxu0 }
 0x2be   : > { %v10328_v59 = vadd.f32 %v10325_v11, %v10182_v13  ;;  %v7362_v15 = vpop.f32.mrb[11].mxu0  ;;  %v10451_v13 = vadd.f32 %v12655_v7, %v12971_v24 }
 0x2bf   : > { %v10334_v17 = vadd.f32 %v10331_v9, %v7362_v15  ;;  %v10445_v9 = vadd.f32 %v12969_v22, %v12655_v7 }
 0x2c0   : > { %7706 = vst [vmem:[%s12650_s16 + $0x58] sm:$0xff] %v10328_v59 }
 0x2c1   : > { %7705 = vst [vmem:[%s12650_s16 + $0x50] sm:$0xff] %v10334_v17  ;;  %v10185_v23 = vpop.f32.mrb[12].mxu0 }
 0x2c2   : > { %v10340_v25 = vadd.f32 %v10337_v19, %v10185_v23  ;;  %v7372_v27 = vpop.f32.mrb[13].mxu0 }
 0x2c3   : > { %v10346_v29 = vadd.f32 %v10343_v21, %v7372_v27 }
 0x2c4   : > { %7708 = vst [vmem:[%s12650_s16 + $0x68] sm:$0xff] %v10340_v25 }
 0x2c5   : > { %7707 = vst [vmem:[%s12650_s16 + $0x60] sm:$0xff] %v10346_v29  ;;  %v10188_v31 = vpop.f32.mrb[14].mxu0 }
 0x2c6   : > { %v10352_v28 = vadd.f32 %v10349_v6, %v10188_v31  ;;  %v7382_v30 = vpop.f32.mrb[15].mxu0 }
 0x2c7   : > { %v10358_v33 = vadd.f32 %v10355_v26, %v7382_v30 }
 0x2c8   : > { %7710 = vst [vmem:[%s12650_s16 + $0x78] sm:$0xff] %v10352_v28 }
 0x2c9   : > { %7709 = vst [vmem:[%s12650_s16 + $0x70] sm:$0xff] %v10358_v33  ;;  %v10191_v35 = vpop.f32.mrb[16].mxu0 }
 0x2ca   : > { %v10364_v36 = vadd.f32 %v10361_v32, %v10191_v35  ;;  %v7392_v38 = vpop.f32.mrb[17].mxu0 }
 0x2cb   : > { %v10370_v61 = vadd.f32 %v10367_v34, %v7392_v38 }
 0x2cc   : > { %7712 = vst [vmem:[%s12650_s16 + $0x88] sm:$0xff] %v10364_v36 }
 0x2cd   : > { %7711 = vst [vmem:[%s12650_s16 + $0x80] sm:$0xff] %v10370_v61  ;;  %v10194_v37 = vpop.f32.mrb[18].mxu0 }
 0x2ce   : > { %v10376_v44 = vadd.f32 %v10373_v40, %v10194_v37  ;;  %v7402_v46 = vpop.f32.mrb[19].mxu0 }
 0x2cf   : > { %v10382_v39 = vadd.f32 %v10379_v42, %v7402_v46 }
 0x2d0   : > { %7714 = vst [vmem:[%s12650_s16 + $0x98] sm:$0xff] %v10376_v44 }
 0x2d1   : > { %7713 = vst [vmem:[%s12650_s16 + $0x90] sm:$0xff] %v10382_v39  ;;  %v10197_v41 = vpop.f32.mrb[20].mxu0 }
 0x2d2   : > { %v10388_v52 = vadd.f32 %v10385_v48, %v10197_v41  ;;  %v7412_v54 = vpop.f32.mrb[21].mxu0 }
 0x2d3   : > { %v10394_v43 = vadd.f32 %v10391_v50, %v7412_v54 }
 0x2d4   : > { %7716 = vst [vmem:[%s12650_s16 + $0xa8] sm:$0xff] %v10388_v52 }
 0x2d5   : > { %7715 = vst [vmem:[%s12650_s16 + $0xa0] sm:$0xff] %v10394_v43  ;;  %v10200_v45 = vpop.f32.mrb[22].mxu0 }
 0x2d6   : > { %v10400_v56 = vadd.f32 %v10397_v63, %v10200_v45  ;;  %v7422_v8 = vpop.f32.mrb[23].mxu0 }
 0x2d7   : > { %v10406_v47 = vadd.f32 %v10403_v58, %v7422_v8 }
 0x2d8   : > { %7718 = vst [vmem:[%s12650_s16 + $0xb8] sm:$0xff] %v10400_v56 }
 0x2d9   : > { %7717 = vst [vmem:[%s12650_s16 + $0xb0] sm:$0xff] %v10406_v47  ;;  %v10203_v49 = vpop.f32.mrb[24].mxu0 }
 0x2da   : > { %v10412_v1 = vadd.f32 %v10409_v60, %v10203_v49  ;;  %v7432_v4 = vpop.f32.mrb[25].mxu0 }
 0x2db   : > { %v10418_v51 = vadd.f32 %v10415_v57, %v7432_v4 }
 0x2dc   : > { %7720 = vst [vmem:[%s12650_s16 + $0xc8] sm:$0xff] %v10412_v1 }
 0x2dd   : > { %7719 = vst [vmem:[%s12650_s16 + $0xc0] sm:$0xff] %v10418_v51  ;;  %v10206_v53 = vpop.f32.mrb[26].mxu0 }
 0x2de   : > { %v10424_v62 = vadd.f32 %v10421_v10, %v10206_v53  ;;  %v7442_v0 = vpop.f32.mrb[27].mxu0 }
 0x2df   : > { %v10430_v2 = vadd.f32 %v10427_v18, %v7442_v0 }
 0x2e0   : > { %7722 = vst [vmem:[%s12650_s16 + $0xd8] sm:$0xff] %v10424_v62 }
 0x2e1   : > { %7721 = vst [vmem:[%s12650_s16 + $0xd0] sm:$0xff] %v10430_v2  ;;  %v10209_v12 = vpop.f32.mrb[28].mxu0 }
 0x2e2   : > { %v10436_v5 = vadd.f32 %v10433_v3, %v10209_v12  ;;  %v7452_v11 = vpop.f32.mrb[29].mxu0 }
 0x2e3   : > { %v10442_v55 = vadd.f32 %v10439_v14, %v7452_v11 }
 0x2e4   : > { %7724 = vst [vmem:[%s12650_s16 + $0xe8] sm:$0xff] %v10436_v5 }
 0x2e5   : > { %7723 = vst [vmem:[%s12650_s16 + $0xe0] sm:$0xff] %v10442_v55  ;;  %v10212_v16 = vpop.f32.mrb[30].mxu0 }
 0x2e6   : > { %v10448_v59 = vadd.f32 %v10445_v9, %v10212_v16  ;;  %v7462_v15 = vpop.f32.mrb[31].mxu0 }
 0x2e7   : > { %v10454_v17 = vadd.f32 %v10451_v13, %v7462_v15 }
 0x2e8   : > { %7726 = vst [vmem:[%s12650_s16 + $0xf8] sm:$0xff] %v10448_v59  ;;  %v9823_v20 = vpop.f32.mrb[32].mxu1 }
 0x2e9   : > { %7725 = vst [vmem:[%s12650_s16 + $0xf0] sm:$0xff] %v10454_v17  ;;  %v10215_v19 = vpop.f32.mrb[32].mxu0  ;;  %v10457_v21 = vadd.f32 %v9823_v20, %v12655_v7  ;;  %v4131_v23 = vpop.f32.mrb[33].mxu1 }
 0x2ea   : > { %v7472_v25 = vpop.f32.mrb[33].mxu0  ;;  %v10463_v22 = vadd.f32 %v12655_v7, %v4131_v23 }
 0x2eb   : > { %v10460_v27 = vadd.f32 %v10457_v21, %v10215_v19 }
 0x2ec   : > { %v10466_v24 = vadd.f32 %v10463_v22, %v7472_v25  ;;  %v9826_v29 = vpop.f32.mrb[34].mxu1 }
 0x2ed   : > { %v10218_v6 = vpop.f32.mrb[34].mxu0  ;;  %7728 = vst [vmem:[%s12650_s16 + $0x108] sm:$0xff] %v10460_v27  ;;  %v10469_v26 = vadd.f32 %v9826_v29, %v12655_v7  ;;  %v4141_v31 = vpop.f32.mrb[35].mxu1  ;;  %v356_v29 = vld [vmem:[%s12650_s16 + $0x190] sm:$0xff] }
 0x2ee   : > { %v7482_v28 = vpop.f32.mrb[35].mxu0  ;;  %7727 = vst [vmem:[%s12650_s16 + $0x100] sm:$0xff] %v10466_v24  ;;  %v10475_v30 = vadd.f32 %v12655_v7, %v4141_v31 }
 0x2ef   : > { %v10472_v33 = vadd.f32 %v10469_v26, %v10218_v6 }
 0x2f0   : > { %v10478_v32 = vadd.f32 %v10475_v30, %v7482_v28  ;;  %v9829_v34 = vpop.f32.mrb[36].mxu1 }
 0x2f1   : > { %v10221_v35 = vpop.f32.mrb[36].mxu0  ;;  %7730 = vst [vmem:[%s12650_s16 + $0x118] sm:$0xff] %v10472_v33  ;;  %v10481_v36 = vadd.f32 %v9829_v34, %v12655_v7  ;;  %v4151_v38 = vpop.f32.mrb[37].mxu1  ;;  %v359_v34 = vld [vmem:[%s12650_s16 + $0x1a8] sm:$0xff] }
 0x2f2   : > { %v7492_v61 = vpop.f32.mrb[37].mxu0  ;;  %7729 = vst [vmem:[%s12650_s16 + $0x110] sm:$0xff] %v10478_v32  ;;  %v10487_v40 = vadd.f32 %v12655_v7, %v4151_v38 }
 0x2f3   : > { %v10484_v42 = vadd.f32 %v10481_v36, %v10221_v35  ;;  %v358_v36 = vld [vmem:[%s12650_s16 + $0x1a0] sm:$0xff] }
 0x2f4   : > { %v10490_v37 = vadd.f32 %v10487_v40, %v7492_v61  ;;  %v9832_v44 = vpop.f32.mrb[38].mxu1 }
 0x2f5   : > { %v10224_v46 = vpop.f32.mrb[38].mxu0  ;;  %7732 = vst [vmem:[%s12650_s16 + $0x128] sm:$0xff] %v10484_v42  ;;  %v10493_v39 = vadd.f32 %v9832_v44, %v12655_v7  ;;  %v4161_v48 = vpop.f32.mrb[39].mxu1 }
 0x2f6   : > { %v7502_v50 = vpop.f32.mrb[39].mxu0  ;;  %7731 = vst [vmem:[%s12650_s16 + $0x120] sm:$0xff] %v10490_v37  ;;  %v10499_v41 = vadd.f32 %v12655_v7, %v4161_v48  ;;  %v360_v48 = vld [vmem:[%s12650_s16 + $0x1b0] sm:$0xff] }
 0x2f7   : > { %v10496_v52 = vadd.f32 %v10493_v39, %v10224_v46  ;;  %v361_v46 = vld [vmem:[%s12650_s16 + $0x1b8] sm:$0xff] }
 0x2f8   : > { %v10502_v54 = vadd.f32 %v10499_v41, %v7502_v50  ;;  %v9835_v43 = vpop.f32.mrb[40].mxu1 }
 0x2f9   : > { %v10227_v63 = vpop.f32.mrb[40].mxu0  ;;  %7734 = vst [vmem:[%s12650_s16 + $0x138] sm:$0xff] %v10496_v52  ;;  %v10505_v58 = vadd.f32 %v9835_v43, %v12655_v7  ;;  %v4171_v45 = vpop.f32.mrb[41].mxu1 }
 0x2fa   : > { %v7512_v56 = vpop.f32.mrb[41].mxu0  ;;  %7733 = vst [vmem:[%s12650_s16 + $0x130] sm:$0xff] %v10502_v54  ;;  %v10511_v8 = vadd.f32 %v12655_v7, %v4171_v45  ;;  %v363_v45 = vld [vmem:[%s12650_s16 + $0x1c8] sm:$0xff] }
 0x2fb   : > { %v10508_v47 = vadd.f32 %v10505_v58, %v10227_v63 }
 0x2fc   : > { %v10514_v60 = vadd.f32 %v10511_v8, %v7512_v56  ;;  %v9838_v57 = vpop.f32.mrb[42].mxu1  ;;  %v362_v8 = vld [vmem:[%s12650_s16 + $0x1c0] sm:$0xff] }
 0x2fd   : > { %v10230_v49 = vpop.f32.mrb[42].mxu0  ;;  %7736 = vst [vmem:[%s12650_s16 + $0x148] sm:$0xff] %v10508_v47  ;;  %v10517_v1 = vadd.f32 %v9838_v57, %v12655_v7  ;;  %v4181_v4 = vpop.f32.mrb[43].mxu1 }
 0x2fe   : > { %v7522_v51 = vpop.f32.mrb[43].mxu0  ;;  %7735 = vst [vmem:[%s12650_s16 + $0x140] sm:$0xff] %v10514_v60  ;;  %v10523_v10 = vadd.f32 %v12655_v7, %v4181_v4 }
 0x2ff   : > { %v10520_v18 = vadd.f32 %v10517_v1, %v10230_v49 }
 0x300   : > { %v10526_v53 = vadd.f32 %v10523_v10, %v7522_v51  ;;  %v9841_v62 = vpop.f32.mrb[44].mxu1  ;;  %v365_v10 = vld [vmem:[%s12650_s16 + $0x1d8] sm:$0xff] }
 0x301   : > { %v10233_v0 = vpop.f32.mrb[44].mxu0  ;;  %7738 = vst [vmem:[%s12650_s16 + $0x158] sm:$0xff] %v10520_v18  ;;  %v10529_v2 = vadd.f32 %v9841_v62, %v12655_v7  ;;  %v4191_v3 = vpop.f32.mrb[45].mxu1 }
 0x302   : > { %v7532_v14 = vpop.f32.mrb[45].mxu0  ;;  %7737 = vst [vmem:[%s12650_s16 + $0x150] sm:$0xff] %v10526_v53  ;;  %v10535_v12 = vadd.f32 %v12655_v7, %v4191_v3  ;;  %v364_v53 = vld [vmem:[%s12650_s16 + $0x1d0] sm:$0xff] }
 0x303   : > { %v10532_v5 = vadd.f32 %v10529_v2, %v10233_v0 }
 0x304   : > { %v10538_v11 = vadd.f32 %v10535_v12, %v7532_v14  ;;  %v9844_v55 = vpop.f32.mrb[46].mxu1 }
 0x305   : > { %v10236_v9 = vpop.f32.mrb[46].mxu0  ;;  %7740 = vst [vmem:[%s12650_s16 + $0x168] sm:$0xff] %v10532_v5  ;;  %v10541_v13 = vadd.f32 %v9844_v55, %v12655_v7  ;;  %v4201_v16 = vpop.f32.mrb[47].mxu1 }
 0x306   : > { %v7542_v59 = vpop.f32.mrb[47].mxu0  ;;  %7739 = vst [vmem:[%s12650_s16 + $0x160] sm:$0xff] %v10538_v11  ;;  %v10547_v15 = vadd.f32 %v12655_v7, %v4201_v16  ;;  %v367_v11 = vld [vmem:[%s12650_s16 + $0x1e8] sm:$0xff] }
 0x307   : > { %v10544_v17 = vadd.f32 %v10541_v13, %v10236_v9  ;;  %v366_v9 = vld [vmem:[%s12650_s16 + $0x1e0] sm:$0xff] }
 0x308   : > { %v10550_v20 = vadd.f32 %v10547_v15, %v7542_v59  ;;  %v9847_v19 = vpop.f32.mrb[48].mxu1 }
 0x309   : > { %v10239_v21 = vpop.f32.mrb[48].mxu0  ;;  %7742 = vst [vmem:[%s12650_s16 + $0x178] sm:$0xff] %v10544_v17  ;;  %v10553_v23 = vadd.f32 %v9847_v19, %v12655_v7  ;;  %v4211_v25 = vpop.f32.mrb[49].mxu1 }
 0x30a   : > { %v7552_v22 = vpop.f32.mrb[49].mxu0  ;;  %7741 = vst [vmem:[%s12650_s16 + $0x170] sm:$0xff] %v10550_v20  ;;  %v10559_v27 = vadd.f32 %v12655_v7, %v4211_v25  ;;  %v368_v25 = vld [vmem:[%s12650_s16 + $0x1f0] sm:$0xff] }
 0x30b   : > { %v10556_v24 = vadd.f32 %v10553_v23, %v10239_v21  ;;  %v369_v21 = vld [vmem:[%s12650_s16 + $0x1f8] sm:$0xff] }
 0x30c   : > { %v10562_v6 = vadd.f32 %v10559_v27, %v7552_v22  ;;  %v9850_v26 = vpop.f32.mrb[50].mxu1 }
 0x30d   : > { %v10242_v31 = vpop.f32.mrb[50].mxu0  ;;  %7744 = vst [vmem:[%s12650_s16 + $0x188] sm:$0xff] %v10556_v24  ;;  %v10565_v28 = vadd.f32 %v9850_v26, %v12655_v7  ;;  %v4221_v30 = vpop.f32.mrb[51].mxu1 }
 0x30e   : > { %v7562_v33 = vpop.f32.mrb[51].mxu0  ;;  %7743 = vst [vmem:[%s12650_s16 + $0x180] sm:$0xff] %v10562_v6  ;;  %v10571_v32 = vadd.f32 %v4221_v30, %v356_v29 }
 0x30f   : > { %v10568_v35 = vadd.f32 %v10565_v28, %v10242_v31 }
 0x310   : > { %v10574_v38 = vadd.f32 %v10571_v32, %v7562_v33  ;;  %v9853_v61 = vpop.f32.mrb[52].mxu1 }
 0x311   : > { %v10245_v40 = vpop.f32.mrb[52].mxu0  ;;  %7746 = vst [vmem:[%s12650_s16 + $0x198] sm:$0xff] %v10568_v35  ;;  %v10577_v42 = vadd.f32 %v9853_v61, %v359_v34  ;;  %v4231_v37 = vpop.f32.mrb[53].mxu1 }
 0x312   : > { %v7572_v44 = vpop.f32.mrb[53].mxu0  ;;  %7745 = vst [vmem:[%s12650_s16 + $0x190] sm:$0xff] %v10574_v38  ;;  %v10583_v7 = vadd.f32 %v4231_v37, %v358_v36 }
 0x313   : > { %v10580_v39 = vadd.f32 %v10577_v42, %v10245_v40 }
 0x314   : > { %v10586_v50 = vadd.f32 %v10583_v7, %v7572_v44  ;;  %v9856_v41 = vpop.f32.mrb[54].mxu1 }
 0x315   : > { %v10248_v52 = vpop.f32.mrb[54].mxu0  ;;  %7748 = vst [vmem:[%s12650_s16 + $0x1a8] sm:$0xff] %v10580_v39  ;;  %v10589_v54 = vadd.f32 %v9856_v41, %v361_v46  ;;  %v4241_v43 = vpop.f32.mrb[55].mxu1 }
 0x316   : > { %v7582_v63 = vpop.f32.mrb[55].mxu0  ;;  %7747 = vst [vmem:[%s12650_s16 + $0x1a0] sm:$0xff] %v10586_v50  ;;  %v10595_v58 = vadd.f32 %v4241_v43, %v360_v48 }
 0x317   : > { %v10592_v56 = vadd.f32 %v10589_v54, %v10248_v52 }
 0x318   : > { %v10598_v47 = vadd.f32 %v10595_v58, %v7582_v63  ;;  %v9859_v60 = vpop.f32.mrb[56].mxu1 }
 0x319   : > { %v10251_v57 = vpop.f32.mrb[56].mxu0  ;;  %7750 = vst [vmem:[%s12650_s16 + $0x1b8] sm:$0xff] %v10592_v56  ;;  %v10601_v49 = vadd.f32 %v9859_v60, %v363_v45  ;;  %v4251_v1 = vpop.f32.mrb[57].mxu1 }
 0x31a   : > { %v7592_v4 = vpop.f32.mrb[57].mxu0  ;;  %7749 = vst [vmem:[%s12650_s16 + $0x1b0] sm:$0xff] %v10598_v47  ;;  %v10607_v51 = vadd.f32 %v4251_v1, %v362_v8 }
 0x31b   : > { %v10604_v18 = vadd.f32 %v10601_v49, %v10251_v57 }
 0x31c   : > { %v10610_v62 = vadd.f32 %v10607_v51, %v7592_v4  ;;  %v9862_v0 = vpop.f32.mrb[58].mxu1 }
 0x31d   : > { %v10254_v2 = vpop.f32.mrb[58].mxu0  ;;  %7752 = vst [vmem:[%s12650_s16 + $0x1c8] sm:$0xff] %v10604_v18  ;;  %v10613_v3 = vadd.f32 %v9862_v0, %v365_v10  ;;  %v4261_v14 = vpop.f32.mrb[59].mxu1 }
 0x31e   : > { %v7602_v12 = vpop.f32.mrb[59].mxu0  ;;  %7751 = vst [vmem:[%s12650_s16 + $0x1c0] sm:$0xff] %v10610_v62  ;;  %v10619_v5 = vadd.f32 %v4261_v14, %v364_v53 }
 0x31f   : > { %v10616_v55 = vadd.f32 %v10613_v3, %v10254_v2 }
 0x320   : > { %v10622_v13 = vadd.f32 %v10619_v5, %v7602_v12  ;;  %v9865_v16 = vpop.f32.mrb[60].mxu1 }
 0x321   : > { %v10257_v59 = vpop.f32.mrb[60].mxu0  ;;  %7754 = vst [vmem:[%s12650_s16 + $0x1d8] sm:$0xff] %v10616_v55  ;;  %v10625_v15 = vadd.f32 %v9865_v16, %v367_v11  ;;  %v4271_v17 = vpop.f32.mrb[61].mxu1 }
 0x322   : > { %v7612_v20 = vpop.f32.mrb[61].mxu0  ;;  %7753 = vst [vmem:[%s12650_s16 + $0x1d0] sm:$0xff] %v10622_v13  ;;  %v10631_v19 = vadd.f32 %v4271_v17, %v366_v9 }
 0x323   : > { %v10628_v23 = vadd.f32 %v10625_v15, %v10257_v59 }
 0x324   : > { %v10634_v22 = vadd.f32 %v10631_v19, %v7612_v20  ;;  %v9868_v27 = vpop.f32.mrb[62].mxu1 }
 0x325   : > { %v10260_v24 = vpop.f32.mrb[62].mxu0  ;;  %7756 = vst [vmem:[%s12650_s16 + $0x1e8] sm:$0xff] %v10628_v23  ;;  %v10637_v29 = vadd.f32 %v9868_v27, %v369_v21  ;;  %v4281_v6 = vpop.f32.mrb[63].mxu1 }
 0x326   : > { %v7622_v26 = vpop.f32.mrb[63].mxu0  ;;  %7755 = vst [vmem:[%s12650_s16 + $0x1e0] sm:$0xff] %v10634_v22  ;;  %v10643_v31 = vadd.f32 %v4281_v6, %v368_v25 }
 0x327   : > { %v10640_v28 = vadd.f32 %v10637_v29, %v10260_v24 }
 0x328   : > { %v10646_v30 = vadd.f32 %v10643_v31, %v7622_v26 }
 0x329   : > { %7758 = vst [vmem:[%s12650_s16 + $0x1f8] sm:$0xff] %v10640_v28 }
 0x32a   : > { %7757 = vst [vmem:[%s12650_s16 + $0x1f0] sm:$0xff] %v10646_v30 }
 0x32b PF: > { %s13_s12 = sadd.s32 1, %s11111_s12  }
 0x32c   : > { %p10_p4 = scmp.ge.s32.totalorder %s13_s12, 10  }
 0x32e   :  { %12 = sbr.rel (!%p10_p4) target bundleno = 1 (0x1), region = 72 }

// kernel: convlstm_forward.6
= control target key start
LH: loop header
LB: loop body
LE: loop exit
PB: predicated region body
PF: predicated region fallthrough
CT: control target
= control target key end

     0   :  { %s11338_s12 = smov 0   ;;  %s13414_s0 = inlined_call_operand.vmem [shape: f32[8,2,18,18,32], index: 0, kind: input, shape index: {}]   ;;  %s13415_s1 = inlined_call_operand.vmem [shape: f32[9,32,128], index: 1, kind: input, shape index: {}]   ;;  %s13416_s2 = inlined_call_operand.vmem [shape: f32[1,128], index: 2, kind: input, shape index: {}]   ;;  %s13417_s3 = inlined_call_operand.vmem [shape: f32[8,512,128], index: 3, kind: output, shape index: {}]  }
   0x1 LB: > { %s7841_s13 = sadd.s32 4294967295, %s11316_s12   ;;  %p7845_p0 = scmp.ge.s32.totalorder %s11316_s12, 1  ;;  %s11316_s12 = sphi %s11338_s12, %s13_s12  }
   0x2   : > { %p137_p1 = scmp.lt.s32.totalorder %s11316_s12, 9 }
   0x4   : > { %p138_p2 = pnand %p7845_p0, %p137_p1 }
   0x6   : > { %141 = sbr.rel (%p138_p2) target bundleno = 814 (0x32e), region = 32 }
   0xd   : > { %v370_v0 = vld [vmem:[%s13415_s1] sm:$0xff]  ;;  %v371_v1 = vld [vmem:[%s13415_s1 + $0x8] sm:$0xff]  ;;  %p161_p3 = scmp.lt.s32.totalorder %s7841_s13, 7  ;;  %v372_v5 = vld [vmem:[%s13415_s1 + $0x10] sm:$0xff]  ;;  %vm374_vm0 = vcmask 261120  }
   0xe   : > { %v8246_v2 = vld [vmem:[%s13415_s1 + $0x80] sm:$0xff]  ;;  %v10393_v3 = vpack.c.bf16 %v371_v1, %v370_v0  ;;  %v8247_v4 = vld [vmem:[%s13415_s1 + $0x88] sm:$0xff]  ;;  %v373_v6 = vld [vmem:[%s13415_s1 + $0x18] sm:$0xff] }
   0xf   : > { %v11364_v7 = vpack.c.bf16 %v8247_v4, %v8246_v2  ;;  %v10397_v8 = vpack.c.bf16 %v373_v6, %v372_v5  ;;  %v8248_v9 = vld [vmem:[%s13415_s1 + $0x90] sm:$0xff]  ;;  %v8249_v10 = vld [vmem:[%s13415_s1 + $0x98] sm:$0xff]  ;;  %s13646_s13 = smov (!%p161_p3, %s7841_s13), 7  ;;  %v7914_v11 = vld [vmem:[%s13415_s1 + $0x20] sm:$0xff] }
  0x10   : > { %10394 = vmatprep.subr.bf16.mxu1 %v10393_v3  ;;  %v11377_v12 = vpack.c.bf16 %v8249_v10, %v8248_v9  ;;  %v7915_v13 = vld [vmem:[%s13415_s1 + $0x28] sm:$0xff]  ;;  %v8378_v14 = vld [vmem:[%s13415_s1 + $0xa0] sm:$0xff]  ;;  %s11301_s11 = smul.u32 864, %s13646_s13  ;;  %v7916_v18 = vld [vmem:[%s13415_s1 + $0x30] sm:$0xff]  ;;  %s8844_s17 = sshll.u32 %s13646_s13, 9 }
  0x11   : > { %13495 = vst [vmem:[#allocation2_spill] sm:$0xff] %v11364_v7  ;;  %v8379_v15 = vld [vmem:[%s13415_s1 + $0xa8] sm:$0xff]  ;;  %10426 = vmatprep.subr.bf16.mxu0 %v11364_v7  ;;  %10396 = vmatpush3.bf16.msra.mxu1 %v10393_v3  ;;  %v10401_v16 = vpack.c.bf16 %v7915_v13, %v7914_v11  ;;  %v7917_v21 = vld [vmem:[%s13415_s1 + $0x38] sm:$0xff]  ;;  %v8380_v23 = vld [vmem:[%s13415_s1 + $0xb0] sm:$0xff]  ;;  %s12941_s20 = scalar_lea.vmem %s13417_s3, %s8844_s17 }
  0x12   : > { %13496 = vst [vmem:[#allocation3_spill] sm:$0xff] %v11377_v12  ;;  %10428 = vmatpush3.bf16.msra.mxu0 %v11364_v7  ;;  %10398 = vmatprep.subr.bf16.mxu1 %v10397_v8  ;;  %s11395_s16 = scalar_lea.vmem %s13414_s0, %s11301_s11  ;;  %v10433_v17 = vpack.c.bf16 %v8379_v15, %v8378_v14  ;;  %v8381_v24 = vld [vmem:[%s13415_s1 + $0xb8] sm:$0xff]  ;;  %v10405_v28 = vpack.c.bf16 %v7917_v21, %v7916_v18  ;;  %v8510_v31 = vld [vmem:[%s13415_s1 + $0xc0] sm:$0xff]  ;;  %v8511_v32 = vld [vmem:[%s13415_s1 + $0xc8] sm:$0xff] }
  0x13   : > { %10430 = vmatprep.subr.bf16.mxu0 %v11377_v12  ;;  %v242_v19 = vld [vmem:[%s11395_s16] sm:$0xff]  ;;  %v243_v22 = vld [vmem:[%s11395_s16 + $0x8] sm:$0xff]  ;;  %v244_v26 = vld [vmem:[%s11395_s16 + $0x18] sm:$0xff]  ;;  %v10437_v29 = vpack.c.bf16 %v8381_v24, %v8380_v23  ;;  %v11448_v36 = vpack.c.bf16 %v8511_v32, %v8510_v31 }
  0x14   : > { %v11402_v20 = vld [vmem:[%s11395_s16 + $0x19] sm:$0xff]  ;;  %9465 = vmatprep.mubr.msk.f32.mxu1 %vm374_vm0, %v242_v19  ;;  %v11419_v25 = vld [vmem:[%s11395_s16 + $0x21] sm:$0xff]  ;;  %v11423_v27 = vld [vmem:[%s11395_s16 + $0x31] sm:$0xff] }
  0x15   : > { %10400 = vmatpush3.bf16.msra.mxu1 %v10397_v8  ;;  %9881 = vmatprep.mubr.msk.f32.mxu0 %vm374_vm0, %v11402_v20  ;;  %v245_v30 = vld [vmem:[%s11395_s16 + $0x20] sm:$0xff]  ;;  %v11442_v34 = vld [vmem:[%s11395_s16 + $0x30] sm:$0xff]  ;;  %v11455_v37 = vld [vmem:[%s11395_s16 + $0x38] sm:$0xff] }
  0x16   : > { %10432 = vmatpush3.bf16.msra.mxu0 %v11377_v12  ;;  %10402 = vmatprep.subr.bf16.mxu1 %v10401_v16  ;;  %v11439_v33 = vld [vmem:[%s11395_s16 + $0x39] sm:$0xff]  ;;  %v11445_v35 = vld [vmem:[%s11395_s16 + $0x49] sm:$0xff]  ;;  %v11460_v38 = vld [vmem:[%s11395_s16 + $0x51] sm:$0xff] }
  0x17   : > { %10434 = vmatprep.subr.bf16.mxu0 %v10433_v17  ;;  %v11463_v39 = vld [vmem:[%s11395_s16 + $0x48] sm:$0xff]  ;;  %v11476_v41 = vld [vmem:[%s11395_s16 + $0x50] sm:$0xff]  ;;  %v11484_v43 = vld [vmem:[%s11395_s16 + $0x60] sm:$0xff] }
  0x18   : > { %9466 = vmatmul.mubr.msk.f32.vlgmr.msra.gmra.mrb[0].mxu1 %vm374_vm0, %v243_v22  ;;  %v11466_v40 = vld [vmem:[%s11395_s16 + $0x61] sm:$0xff]  ;;  %v11481_v42 = vld [vmem:[%s11395_s16 + $0x69] sm:$0xff]  ;;  %v11487_v44 = vld [vmem:[%s11395_s16 + $0x79] sm:$0xff] }
  0x19   : > { %9882 = vmatmul.mubr.msk.f32.vlgmr.msra.gmra.mrb[0].mxu0 %vm374_vm0, %v11419_v25  ;;  %10404 = vmatpush3.bf16.msra.mxu1 %v10401_v16  ;;  %v11496_v45 = vld [vmem:[%s11395_s16 + $0x68] sm:$0xff]  ;;  %v11504_v47 = vld [vmem:[%s11395_s16 + $0x78] sm:$0xff]  ;;  %v11516_v49 = vld [vmem:[%s11395_s16 + $0x80] sm:$0xff] }
  0x1a   : > { %9468 = vmatprep.mubr.msk.f32.mxu1 %vm374_vm0, %v244_v26  ;;  %9884 = vmatprep.mubr.msk.f32.mxu0 %vm374_vm0, %v11423_v27  ;;  %v11501_v46 = vld [vmem:[%s11395_s16 + $0x81] sm:$0xff]  ;;  %v11507_v48 = vld [vmem:[%s11395_s16 + $0x91] sm:$0xff]  ;;  %v11521_v50 = vld [vmem:[%s11395_s16 + $0x99] sm:$0xff] }
  0x1b   : > { %10436 = vmatpush3.bf16.msra.mxu0 %v10433_v17  ;;  %10406 = vmatprep.subr.bf16.mxu1 %v10405_v28  ;;  %v11524_v51 = vld [vmem:[%s11395_s16 + $0x90] sm:$0xff]  ;;  %v11536_v53 = vld [vmem:[%s11395_s16 + $0x98] sm:$0xff]  ;;  %v11544_v55 = vld [vmem:[%s11395_s16 + $0xa8] sm:$0xff] }
  0x1c   : > { %9469 = vmatmul.mubr.msk.f32.gmra.mrb[2].mxu1 %vm374_vm0, %v245_v30  ;;  %10438 = vmatprep.subr.bf16.mxu0 %v10437_v29  ;;  %v11527_v52 = vld [vmem:[%s11395_s16 + $0xa9] sm:$0xff]  ;;  %v11541_v54 = vld [vmem:[%s11395_s16 + $0xb1] sm:$0xff]  ;;  %v11547_v56 = vld [vmem:[%s11395_s16 + $0xc1] sm:$0xff] }
  0x1d   : > { %9885 = vmatmul.mubr.msk.f32.gmra.mrb[2].mxu0 %vm374_vm0, %v11439_v33  ;;  %9471 = vmatprep.mubr.msk.f32.mxu1 %vm374_vm0, %v11442_v34  ;;  %v11556_v57 = vld [vmem:[%s11395_s16 + $0xb0] sm:$0xff]  ;;  %v11564_v59 = vld [vmem:[%s11395_s16 + $0xc0] sm:$0xff]  ;;  %v11576_v61 = vld [vmem:[%s11395_s16 + $0xc8] sm:$0xff] }
  0x1e   : > { %9887 = vmatprep.mubr.msk.f32.mxu0 %vm374_vm0, %v11445_v35  ;;  %10408 = vmatpush3.bf16.msra.mxu1 %v10405_v28  ;;  %v11561_v58 = vld [vmem:[%s11395_s16 + $0xc9] sm:$0xff]  ;;  %v11567_v60 = vld [vmem:[%s11395_s16 + $0xd9] sm:$0xff]  ;;  %v11581_v62 = vld [vmem:[%s11395_s16 + $0xe1] sm:$0xff] }
  0x1f   : > { %10440 = vmatpush3.bf16.msra.mxu0 %v10437_v29  ;;  %v11584_v63 = vld [vmem:[%s11395_s16 + $0xd8] sm:$0xff]  ;;  %v11596_v1 = vld [vmem:[%s11395_s16 + $0xe0] sm:$0xff]  ;;  %v11604_v3 = vld [vmem:[%s11395_s16 + $0xf0] sm:$0xff] }
  0x20   : > { %9472 = vmatmul.mubr.msk.f32.gmra.mrb[4].mxu1 %vm374_vm0, %v11455_v37  ;;  %10442 = vmatprep.subr.bf16.mxu0 %v11448_v36  ;;  %v11587_v0 = vld [vmem:[%s11395_s16 + $0xf1] sm:$0xff]  ;;  %v11601_v2 = vld [vmem:[%s11395_s16 + $0xf9] sm:$0xff]  ;;  %v11607_v4 = vld [vmem:[%s11395_s16 + $0x109] sm:$0xff] }
  0x21   : > { %9888 = vmatmul.mubr.msk.f32.gmra.mrb[4].mxu0 %vm374_vm0, %v11460_v38  ;;  %9474 = vmatprep.mubr.msk.f32.mxu1 %vm374_vm0, %v11463_v39  ;;  %v11616_v5 = vld [vmem:[%s11395_s16 + $0xf8] sm:$0xff]  ;;  %v11624_v8 = vld [vmem:[%s11395_s16 + $0x108] sm:$0xff]  ;;  %v7982_v10 = vld [vmem:[%s13415_s1 + $0x40] sm:$0xff] }
  0x22   : > { %9890 = vmatprep.mubr.msk.f32.mxu0 %vm374_vm0, %v11466_v40  ;;  %v11621_v6 = vld [vmem:[%s11395_s16 + $0x111] sm:$0xff]  ;;  %v11627_v9 = vld [vmem:[%s11395_s16 + $0x121] sm:$0xff]  ;;  %v11649_v15 = vld [vmem:[%s11395_s16 + $0x129] sm:$0xff] }
  0x23   : > { %v7983_v11 = vld [vmem:[%s13415_s1 + $0x48] sm:$0xff]  ;;  %v11642_v13 = vld [vmem:[%s11395_s16 + $0x110] sm:$0xff]  ;;  %v11652_v16 = vld [vmem:[%s11395_s16 + $0x120] sm:$0xff] }
  0x24   : > { %9475 = vmatmul.mubr.msk.f32.gmra.mrb[6].mxu1 %vm374_vm0, %v11476_v41  ;;  %v11644_v14 = vpack.c.bf16 %v7983_v11, %v7982_v10  ;;  %v11655_v17 = vld [vmem:[%s11395_s16 + $0x139] sm:$0xff]  ;;  %v11665_v18 = vld [vmem:[%s11395_s16 + $0x128] sm:$0xff]  ;;  %v11676_v22 = vld [vmem:[%s11395_s16 + $0x151] sm:$0xff] }
  0x25   : > { %9891 = vmatmul.mubr.msk.f32.gmra.mrb[6].mxu0 %vm374_vm0, %v11481_v42  ;;  %9477 = vmatprep.mubr.msk.f32.mxu1 %vm374_vm0, %v11484_v43  ;;  %v11670_v19 = vld [vmem:[%s11395_s16 + $0x141] sm:$0xff]  ;;  %v11673_v21 = vld [vmem:[%s11395_s16 + $0x138] sm:$0xff]  ;;  %v11693_v26 = vld [vmem:[%s11395_s16 + $0x150] sm:$0xff] }
  0x26   : > { %9893 = vmatprep.mubr.msk.f32.mxu0 %vm374_vm0, %v11487_v44  ;;  %10410 = vmatprep.subr.bf16.mxu1 %v11644_v14  ;;  %13497 = vst [vmem:[#allocation4_spill] sm:$0xff] %v11673_v21  ;;  %v11685_v23 = vld [vmem:[%s11395_s16 + $0x140] sm:$0xff]  ;;  %13499 = vst [vmem:[#allocation6_spill] sm:$0xff] %v11693_v26  ;;  %v11696_v28 = vld [vmem:[%s11395_s16 + $0x169] sm:$0xff] }
  0x27   : > { %13498 = vst [vmem:[#allocation5_spill] sm:$0xff] %v11685_v23  ;;  %v11690_v24 = vld [vmem:[%s11395_s16 + $0x159] sm:$0xff]  ;;  %v11710_v30 = vld [vmem:[%s11395_s16 + $0x171] sm:$0xff]  ;;  %v11713_v31 = vld [vmem:[%s11395_s16 + $0x168] sm:$0xff] }
  0x28   : > { %9478 = vmatmul.mubr.msk.f32.gmra.mrb[8].mxu1 %vm374_vm0, %v11496_v45  ;;  %v11705_v29 = vld [vmem:[%s11395_s16 + $0x158] sm:$0xff]  ;;  %13501 = vst [vmem:[#allocation8_spill] sm:$0xff] %v11713_v31  ;;  %v8212_v32 = vld [vmem:[%s11395_s16 + $0x181] sm:$0xff]  ;;  %v11723_v10 = vld [vmem:[%s11395_s16 + $0x170] sm:$0xff] }
  0x29   : > { %9894 = vmatmul.mubr.msk.f32.gmra.mrb[8].mxu0 %vm374_vm0, %v11501_v46  ;;  %9480 = vmatprep.mubr.msk.f32.mxu1 %vm374_vm0, %v11504_v47  ;;  %13500 = vst [vmem:[#allocation7_spill] sm:$0xff] %v11705_v29  ;;  %13502 = vst [vmem:[#allocation9_spill] sm:$0xff] %v11723_v10  ;;  %v8213_v11 = vld [vmem:[%s11395_s16 + $0x189] sm:$0xff]  ;;  %v11729_v7 = vld [vmem:[%s11395_s16 + $0x1a] sm:$0xff] }
  0x2a   : > { %9896 = vmatprep.mubr.msk.f32.mxu0 %vm374_vm0, %v11507_v48  ;;  %v274_v12 = vld [vmem:[%s11395_s16 + $0x1b0] sm:$0xff]  ;;  %13503 = vst [vmem:[#allocation10_spill] sm:$0xff] %v11729_v7 }
  0x2c   : > { %9481 = vmatmul.mubr.msk.f32.gmra.mrb[10].mxu1 %vm374_vm0, %v11516_v49 }
  0x2d   : > { %9897 = vmatmul.mubr.msk.f32.gmra.mrb[10].mxu0 %vm374_vm0, %v11521_v50  ;;  %9483 = vmatprep.mubr.msk.f32.mxu1 %vm374_vm0, %v11524_v51 }
  0x2e   : > { %9899 = vmatprep.mubr.msk.f32.mxu0 %vm374_vm0, %v11527_v52 }
  0x30   : > { %9484 = vmatmul.mubr.msk.f32.gmra.mrb[12].mxu1 %vm374_vm0, %v11536_v53 }
  0x31   : > { %9900 = vmatmul.mubr.msk.f32.gmra.mrb[12].mxu0 %vm374_vm0, %v11541_v54  ;;  %9486 = vmatprep.mubr.msk.f32.mxu1 %vm374_vm0, %v11544_v55 }
  0x32   : > { %9902 = vmatprep.mubr.msk.f32.mxu0 %vm374_vm0, %v11547_v56 }
  0x34   : > { %9487 = vmatmul.mubr.msk.f32.gmra.mrb[14].mxu1 %vm374_vm0, %v11556_v57 }
  0x35   : > { %9903 = vmatmul.mubr.msk.f32.gmra.mrb[14].mxu0 %vm374_vm0, %v11561_v58  ;;  %9489 = vmatprep.mubr.msk.f32.mxu1 %vm374_vm0, %v11564_v59 }
  0x36   : > { %9905 = vmatprep.mubr.msk.f32.mxu0 %vm374_vm0, %v11567_v60 }
  0x38   : > { %9490 = vmatmul.mubr.msk.f32.gmra.mrb[16].mxu1 %vm374_vm0, %v11576_v61 }
  0x39   : > { %9906 = vmatmul.mubr.msk.f32.gmra.mrb[16].mxu0 %vm374_vm0, %v11581_v62  ;;  %9492 = vmatprep.mubr.msk.f32.mxu1 %vm374_vm0, %v11584_v63 }
  0x3a   : > { %9908 = vmatprep.mubr.msk.f32.mxu0 %vm374_vm0, %v11587_v0 }
  0x3c   : > { %9493 = vmatmul.mubr.msk.f32.gmra.mrb[18].mxu1 %vm374_vm0, %v11596_v1 }
  0x3d   : > { %9909 = vmatmul.mubr.msk.f32.gmra.mrb[18].mxu0 %vm374_vm0, %v11601_v2  ;;  %9495 = vmatprep.mubr.msk.f32.mxu1 %vm374_vm0, %v11604_v3 }
  0x3e   : > { %9911 = vmatprep.mubr.msk.f32.mxu0 %vm374_vm0, %v11607_v4 }
  0x40   : > { %9496 = vmatmul.mubr.msk.f32.gmra.mrb[20].mxu1 %vm374_vm0, %v11616_v5 }
  0x41   : > { %9912 = vmatmul.mubr.msk.f32.gmra.mrb[20].mxu0 %vm374_vm0, %v11621_v6  ;;  %9498 = vmatprep.mubr.msk.f32.mxu1 %vm374_vm0, %v11624_v8 }
  0x42   : > { %9914 = vmatprep.mubr.msk.f32.mxu0 %vm374_vm0, %v11627_v9 }
  0x44   : > { %9499 = vmatmul.mubr.msk.f32.gmra.mrb[22].mxu1 %vm374_vm0, %v11642_v13 }
  0x45   : > { %9915 = vmatmul.mubr.msk.f32.gmra.mrb[22].mxu0 %vm374_vm0, %v11649_v15  ;;  %9501 = vmatprep.mubr.msk.f32.mxu1 %vm374_vm0, %v11652_v16 }
  0x46   : > { %9917 = vmatprep.mubr.msk.f32.mxu0 %vm374_vm0, %v11655_v17 }
  0x48   : > { %9502 = vmatmul.mubr.msk.f32.gmra.mrb[24].mxu1 %vm374_vm0, %v11665_v18 }
  0x49   : > { %9918 = vmatmul.mubr.msk.f32.gmra.mrb[24].mxu0 %vm374_vm0, %v11670_v19  ;;  %9504 = vmatprep.mubr.msk.f32.mxu1 %vm374_vm0, %v11673_v21 }
  0x4a   : > { %9920 = vmatprep.mubr.msk.f32.mxu0 %vm374_vm0, %v11676_v22 }
  0x4c   : > { %9505 = vmatmul.mubr.msk.f32.gmra.mrb[26].mxu1 %vm374_vm0, %v11685_v23  ;;  %v11749_v23 = vld [vmem:[%s11395_s16 + $0x32] sm:$0xff] }
  0x4d   : > { %9921 = vmatmul.mubr.msk.f32.gmra.mrb[26].mxu0 %vm374_vm0, %v11690_v24  ;;  %9507 = vmatprep.mubr.msk.f32.mxu1 %vm374_vm0, %v11693_v26  ;;  %v276_v26 = vld [vmem:[%s11395_s16 + $0x1c8] sm:$0xff]  ;;  %13505 = vst [vmem:[#allocation12_spill] sm:$0xff] %v11749_v23 }
  0x4e   : > { %9923 = vmatprep.mubr.msk.f32.mxu0 %vm374_vm0, %v11696_v28 }
  0x50   : > { %9508 = vmatmul.mubr.msk.f32.gmra.mrb[28].mxu1 %vm374_vm0, %v11705_v29  ;;  %v8512_v29 = vld [vmem:[%s13415_s1 + $0xd0] sm:$0xff] }
  0x51   : > { %9924 = vmatmul.mubr.msk.f32.gmra.mrb[28].mxu0 %vm374_vm0, %v11710_v30  ;;  %9510 = vmatprep.mubr.msk.f32.mxu1 %vm374_vm0, %v11713_v31  ;;  %v8513_v31 = vld [vmem:[%s13415_s1 + $0xd8] sm:$0xff] }
  0x52   : > { %9926 = vmatprep.mubr.msk.f32.mxu0 %vm374_vm0, %v8212_v32  ;;  %v275_v32 = vld [vmem:[%s11395_s16 + $0x1b8] sm:$0xff]  ;;  %v10445_v21 = vpack.c.bf16 %v8513_v31, %v8512_v29  ;;  %v11766_v29 = vld [vmem:[%s11395_s16 + $0x4a] sm:$0xff] }
  0x53   : > { %13508 = vst [vmem:[#allocation15_spill] sm:$0xff] %v11766_v29  ;;  %v11782_v31 = vld [vmem:[%s11395_s16 + $0x1f8] sm:$0xff] }
  0x54   : > { %9511 = vmatmul.mubr.msk.f32.gmra.mrb[30].mxu1 %vm374_vm0, %v11723_v10  ;;  %v11745_v10 = vld [vmem:[%s11395_s16 + $0x22] sm:$0xff]  ;;  %13511 = vst [vmem:[#allocation18_spill] sm:$0xff] %v11782_v31 }
  0x55   : > { %9927 = vmatmul.mubr.msk.f32.gmra.mrb[30].mxu0 %vm374_vm0, %v8213_v11  ;;  %9513 = vmatprep.mubr.msk.f32.mxu1 %vm374_vm0, %v274_v12  ;;  %13504 = vst [vmem:[#allocation11_spill] sm:$0xff] %v11745_v10  ;;  %v277_v12 = vld [vmem:[%s11395_s16 + $0x1d0] sm:$0xff]  ;;  %v11759_v11 = vld [vmem:[%s11395_s16 + $0x3a] sm:$0xff] }
  0x56   : > { %9985 = vmatprep.mubr.msk.f32.mxu0 %vm374_vm0, %v11729_v7  ;;  %13506 = vst [vmem:[#allocation13_spill] sm:$0xff] %v11759_v11  ;;  %v11762_v7 = vld [vmem:[%s11395_s16 + $0x1e0] sm:$0xff] }
  0x57   : > { %13507 = vst [vmem:[#allocation14_spill] sm:$0xff] %v11762_v7 }
  0x58   : > { %9514 = vmatmul.mubr.msk.f32.gmra.mrb[32].mxu1 %vm374_vm0, %v275_v32  ;;  %v11785_v32 = vld [vmem:[%s11395_s16 + $0x62] sm:$0xff] }
  0x59   : > { %9986 = vmatmul.mubr.msk.f32.vlgmr.msra.gmra.mrb[0].mxu0 %vm374_vm0, %v11745_v10  ;;  %9516 = vmatprep.mubr.msk.f32.mxu1 %vm374_vm0, %v276_v26  ;;  %v11774_v26 = vld [vmem:[%s11395_s16 + $0x1e8] sm:$0xff]  ;;  %13512 = vst [vmem:[#allocation19_spill] sm:$0xff] %v11785_v32  ;;  %v11813_v10 = vld [vmem:[%s11395_s16 + $0x7a] sm:$0xff] }
  0x5a   : > { %9988 = vmatprep.mubr.msk.f32.mxu0 %vm374_vm0, %v11749_v23  ;;  %10444 = vmatpush3.bf16.msra.mxu0 %v11448_v36  ;;  %13509 = vst [vmem:[#allocation16_spill] sm:$0xff] %v11774_v26  ;;  %v11779_v36 = vld [vmem:[%s11395_s16 + $0x52] sm:$0xff]  ;;  %13516 = vst [vmem:[#allocation23_spill] sm:$0xff] %v11813_v10 }
  0x5b   : > { %10446 = vmatprep.subr.bf16.mxu0 %v10445_v21  ;;  %13510 = vst [vmem:[#allocation17_spill] sm:$0xff] %v11779_v36 }
  0x5c   : > { %9517 = vmatmul.mubr.msk.f32.gmra.mrb[34].mxu1 %vm374_vm0, %v277_v12  ;;  %v11794_v12 = vld [vmem:[%s11395_s16 + $0x200] sm:$0xff] }
  0x5d   : > { %9989 = vmatmul.mubr.msk.f32.gmra.mrb[2].mxu0 %vm374_vm0, %v11759_v11  ;;  %9519 = vmatprep.mubr.msk.f32.mxu1 %vm374_vm0, %v11762_v7  ;;  %13513 = vst [vmem:[#allocation20_spill] sm:$0xff] %v11794_v12  ;;  %v11808_v11 = vld [vmem:[%s11395_s16 + $0x210] sm:$0xff]  ;;  %v8114_v7 = vld [vmem:[%s13415_s1 + $0x60] sm:$0xff] }
  0x5e   : > { %9991 = vmatprep.mubr.msk.f32.mxu0 %vm374_vm0, %v11766_v29  ;;  %10448 = vmatpush3.bf16.msra.mxu0 %v10445_v21  ;;  %v8642_v21 = vld [vmem:[%s13415_s1 + $0xe0] sm:$0xff]  ;;  %v8643_v29 = vld [vmem:[%s13415_s1 + $0xe8] sm:$0xff]  ;;  %13515 = vst [vmem:[#allocation22_spill] sm:$0xff] %v11808_v11 }
  0x5f   : > { %v11810_v23 = vpack.c.bf16 %v8643_v29, %v8642_v21  ;;  %v11828_v29 = vld [vmem:[%s11395_s16 + $0x82] sm:$0xff] }
  0x60   : > { %9520 = vmatmul.mubr.msk.f32.gmra.mrb[36].mxu1 %vm374_vm0, %v11774_v26  ;;  %13518 = vst [vmem:[#allocation25_spill] sm:$0xff] %v11828_v29  ;;  %v11831_v21 = vld [vmem:[%s11395_s16 + $0x228] sm:$0xff] }
  0x61   : > { %9992 = vmatmul.mubr.msk.f32.gmra.mrb[4].mxu0 %vm374_vm0, %v11779_v36  ;;  %9522 = vmatprep.mubr.msk.f32.mxu1 %vm374_vm0, %v11782_v31  ;;  %v11805_v36 = vld [vmem:[%s11395_s16 + $0x6a] sm:$0xff]  ;;  %13519 = vst [vmem:[#allocation26_spill] sm:$0xff] %v11831_v21 }
  0x62   : > { %9994 = vmatprep.mubr.msk.f32.mxu0 %vm374_vm0, %v11785_v32  ;;  %13514 = vst [vmem:[#allocation21_spill] sm:$0xff] %v11805_v36  ;;  %10450 = vmatprep.subr.bf16.mxu0 %v11810_v23  ;;  %v11823_v32 = vld [vmem:[%s11395_s16 + $0x218] sm:$0xff]  ;;  %v11854_v31 = vld [vmem:[%s11395_s16 + $0xaa] sm:$0xff] }
  0x63   : > { %13517 = vst [vmem:[#allocation24_spill] sm:$0xff] %v11823_v32  ;;  %13524 = vst [vmem:[#allocation31_spill] sm:$0xff] %v11854_v31 }
  0x64   : > { %9523 = vmatmul.mubr.msk.f32.gmra.mrb[38].mxu1 %vm374_vm0, %v11794_v12  ;;  %v11834_v12 = vld [vmem:[%s11395_s16 + $0x92] sm:$0xff] }
  0x65   : > { %9995 = vmatmul.mubr.msk.f32.gmra.mrb[6].mxu0 %vm374_vm0, %v11805_v36  ;;  %9525 = vmatprep.mubr.msk.f32.mxu1 %vm374_vm0, %v11808_v11  ;;  %13520 = vst [vmem:[#allocation27_spill] sm:$0xff] %v11834_v12  ;;  %v11843_v36 = vld [vmem:[%s11395_s16 + $0x230] sm:$0xff]  ;;  %v11851_v11 = vld [vmem:[%s11395_s16 + $0x240] sm:$0xff] }
  0x66   : > { %9997 = vmatprep.mubr.msk.f32.mxu0 %vm374_vm0, %v11813_v10  ;;  %13521 = vst [vmem:[#allocation28_spill] sm:$0xff] %v11843_v36  ;;  %v11848_v10 = vld [vmem:[%s11395_s16 + $0x9a] sm:$0xff]  ;;  %13523 = vst [vmem:[#allocation30_spill] sm:$0xff] %v11851_v11 }
  0x67   : > { %13522 = vst [vmem:[#allocation29_spill] sm:$0xff] %v11848_v10 }
  0x68   : > { %9526 = vmatmul.mubr.msk.f32.gmra.mrb[40].mxu1 %vm374_vm0, %v11823_v32  ;;  %v11874_v32 = vld [vmem:[%s11395_s16 + $0xc2] sm:$0xff] }
  0x69   : > { %9998 = vmatmul.mubr.msk.f32.gmra.mrb[8].mxu0 %vm374_vm0, %v11828_v29  ;;  %9528 = vmatprep.mubr.msk.f32.mxu1 %vm374_vm0, %v11831_v21  ;;  %v11863_v29 = vld [vmem:[%s11395_s16 + $0x248] sm:$0xff]  ;;  %v11871_v21 = vld [vmem:[%s11395_s16 + $0x258] sm:$0xff]  ;;  %13528 = vst [vmem:[#allocation35_spill] sm:$0xff] %v11874_v32 }
  0x6a   : > { %10000 = vmatprep.mubr.msk.f32.mxu0 %vm374_vm0, %v11834_v12  ;;  %13525 = vst [vmem:[#allocation32_spill] sm:$0xff] %v11863_v29  ;;  %v11868_v12 = vld [vmem:[%s11395_s16 + $0xb2] sm:$0xff]  ;;  %13527 = vst [vmem:[#allocation34_spill] sm:$0xff] %v11871_v21 }
  0x6b   : > { %13526 = vst [vmem:[#allocation33_spill] sm:$0xff] %v11868_v12 }
  0x6c   : > { %9529 = vmatmul.mubr.msk.f32.gmra.mrb[42].mxu1 %vm374_vm0, %v11843_v36  ;;  %v11894_v36 = vld [vmem:[%s11395_s16 + $0xda] sm:$0xff] }
  0x6d   : > { %10001 = vmatmul.mubr.msk.f32.gmra.mrb[10].mxu0 %vm374_vm0, %v11848_v10  ;;  %9531 = vmatprep.mubr.msk.f32.mxu1 %vm374_vm0, %v11851_v11  ;;  %v11883_v10 = vld [vmem:[%s11395_s16 + $0x260] sm:$0xff]  ;;  %v11891_v11 = vld [vmem:[%s11395_s16 + $0x270] sm:$0xff]  ;;  %13532 = vst [vmem:[#allocation39_spill] sm:$0xff] %v11894_v36 }
  0x6e   : > { %10003 = vmatprep.mubr.msk.f32.mxu0 %vm374_vm0, %v11854_v31  ;;  %13529 = vst [vmem:[#allocation36_spill] sm:$0xff] %v11883_v10  ;;  %v11888_v31 = vld [vmem:[%s11395_s16 + $0xca] sm:$0xff]  ;;  %13531 = vst [vmem:[#allocation38_spill] sm:$0xff] %v11891_v11 }
  0x6f   : > { %13530 = vst [vmem:[#allocation37_spill] sm:$0xff] %v11888_v31 }
  0x70   : > { %9532 = vmatmul.mubr.msk.f32.gmra.mrb[44].mxu1 %vm374_vm0, %v11863_v29  ;;  %v11914_v29 = vld [vmem:[%s11395_s16 + $0xf2] sm:$0xff] }
  0x71   : > { %10004 = vmatmul.mubr.msk.f32.gmra.mrb[12].mxu0 %vm374_vm0, %v11868_v12  ;;  %9534 = vmatprep.mubr.msk.f32.mxu1 %vm374_vm0, %v11871_v21  ;;  %v11903_v12 = vld [vmem:[%s11395_s16 + $0x278] sm:$0xff]  ;;  %v11911_v21 = vld [vmem:[%s11395_s16 + $0x288] sm:$0xff]  ;;  %13536 = vst [vmem:[#allocation43_spill] sm:$0xff] %v11914_v29 }
  0x72   : > { %10006 = vmatprep.mubr.msk.f32.mxu0 %vm374_vm0, %v11874_v32  ;;  %13533 = vst [vmem:[#allocation40_spill] sm:$0xff] %v11903_v12  ;;  %v11908_v32 = vld [vmem:[%s11395_s16 + $0xe2] sm:$0xff]  ;;  %13535 = vst [vmem:[#allocation42_spill] sm:$0xff] %v11911_v21 }
  0x73   : > { %13534 = vst [vmem:[#allocation41_spill] sm:$0xff] %v11908_v32 }
  0x74   : > { %9535 = vmatmul.mubr.msk.f32.gmra.mrb[46].mxu1 %vm374_vm0, %v11883_v10  ;;  %v11934_v10 = vld [vmem:[%s11395_s16 + $0x10a] sm:$0xff] }
  0x75   : > { %10007 = vmatmul.mubr.msk.f32.gmra.mrb[14].mxu0 %vm374_vm0, %v11888_v31  ;;  %9537 = vmatprep.mubr.msk.f32.mxu1 %vm374_vm0, %v11891_v11  ;;  %v11923_v31 = vld [vmem:[%s11395_s16 + $0x290] sm:$0xff]  ;;  %v11931_v11 = vld [vmem:[%s11395_s16 + $0x2a0] sm:$0xff]  ;;  %13540 = vst [vmem:[#allocation47_spill] sm:$0xff] %v11934_v10 }
  0x76   : > { %10009 = vmatprep.mubr.msk.f32.mxu0 %vm374_vm0, %v11894_v36  ;;  %13537 = vst [vmem:[#allocation44_spill] sm:$0xff] %v11923_v31  ;;  %v11928_v36 = vld [vmem:[%s11395_s16 + $0xfa] sm:$0xff]  ;;  %13539 = vst [vmem:[#allocation46_spill] sm:$0xff] %v11931_v11 }
  0x77   : > { %13538 = vst [vmem:[#allocation45_spill] sm:$0xff] %v11928_v36 }
  0x78   : > { %9538 = vmatmul.mubr.msk.f32.gmra.mrb[48].mxu1 %vm374_vm0, %v11903_v12  ;;  %v11954_v12 = vld [vmem:[%s11395_s16 + $0x122] sm:$0xff] }
  0x79   : > { %10010 = vmatmul.mubr.msk.f32.gmra.mrb[16].mxu0 %vm374_vm0, %v11908_v32  ;;  %9540 = vmatprep.mubr.msk.f32.mxu1 %vm374_vm0, %v11911_v21  ;;  %v11943_v32 = vld [vmem:[%s11395_s16 + $0x2a8] sm:$0xff]  ;;  %v11951_v21 = vld [vmem:[%s11395_s16 + $0x2b8] sm:$0xff]  ;;  %13544 = vst [vmem:[#allocation51_spill] sm:$0xff] %v11954_v12 }
  0x7a   : > { %10012 = vmatprep.mubr.msk.f32.mxu0 %vm374_vm0, %v11914_v29  ;;  %13541 = vst [vmem:[#allocation48_spill] sm:$0xff] %v11943_v32  ;;  %v11948_v29 = vld [vmem:[%s11395_s16 + $0x112] sm:$0xff]  ;;  %13543 = vst [vmem:[#allocation50_spill] sm:$0xff] %v11951_v21 }
  0x7b   : > { %13542 = vst [vmem:[#allocation49_spill] sm:$0xff] %v11948_v29 }
  0x7c   : > { %9541 = vmatmul.mubr.msk.f32.gmra.mrb[50].mxu1 %vm374_vm0, %v11923_v31  ;;  %v11974_v31 = vld [vmem:[%s11395_s16 + $0x13a] sm:$0xff] }
  0x7d   : > { %10013 = vmatmul.mubr.msk.f32.gmra.mrb[18].mxu0 %vm374_vm0, %v11928_v36  ;;  %9543 = vmatprep.mubr.msk.f32.mxu1 %vm374_vm0, %v11931_v11  ;;  %v11963_v36 = vld [vmem:[%s11395_s16 + $0x2c0] sm:$0xff]  ;;  %v11971_v11 = vld [vmem:[%s11395_s16 + $0x2d0] sm:$0xff]  ;;  %13548 = vst [vmem:[#allocation55_spill] sm:$0xff] %v11974_v31 }
  0x7e   : > { %10015 = vmatprep.mubr.msk.f32.mxu0 %vm374_vm0, %v11934_v10  ;;  %13545 = vst [vmem:[#allocation52_spill] sm:$0xff] %v11963_v36  ;;  %v11968_v10 = vld [vmem:[%s11395_s16 + $0x12a] sm:$0xff]  ;;  %13547 = vst [vmem:[#allocation54_spill] sm:$0xff] %v11971_v11 }
  0x7f   : > { %13546 = vst [vmem:[#allocation53_spill] sm:$0xff] %v11968_v10 }
  0x80   : > { %9544 = vmatmul.mubr.msk.f32.gmra.mrb[52].mxu1 %vm374_vm0, %v11943_v32  ;;  %v11994_v32 = vld [vmem:[%s11395_s16 + $0x152] sm:$0xff] }
  0x81   : > { %10016 = vmatmul.mubr.msk.f32.gmra.mrb[20].mxu0 %vm374_vm0, %v11948_v29  ;;  %9546 = vmatprep.mubr.msk.f32.mxu1 %vm374_vm0, %v11951_v21  ;;  %v11983_v29 = vld [vmem:[%s11395_s16 + $0x2d8] sm:$0xff]  ;;  %v11991_v21 = vld [vmem:[%s11395_s16 + $0x2e8] sm:$0xff]  ;;  %13552 = vst [vmem:[#allocation59_spill] sm:$0xff] %v11994_v32 }
  0x82   : > { %10018 = vmatprep.mubr.msk.f32.mxu0 %vm374_vm0, %v11954_v12  ;;  %13549 = vst [vmem:[#allocation56_spill] sm:$0xff] %v11983_v29  ;;  %v11988_v12 = vld [vmem:[%s11395_s16 + $0x142] sm:$0xff]  ;;  %13551 = vst [vmem:[#allocation58_spill] sm:$0xff] %v11991_v21 }
  0x83   : > { %13550 = vst [vmem:[#allocation57_spill] sm:$0xff] %v11988_v12 }
  0x84   : > { %9547 = vmatmul.mubr.msk.f32.gmra.mrb[54].mxu1 %vm374_vm0, %v11963_v36  ;;  %v12014_v36 = vld [vmem:[%s11395_s16 + $0x16a] sm:$0xff] }
  0x85   : > { %10019 = vmatmul.mubr.msk.f32.gmra.mrb[22].mxu0 %vm374_vm0, %v11968_v10  ;;  %9549 = vmatprep.mubr.msk.f32.mxu1 %vm374_vm0, %v11971_v11  ;;  %v12003_v10 = vld [vmem:[%s11395_s16 + $0x2f0] sm:$0xff]  ;;  %v12011_v11 = vld [vmem:[%s11395_s16 + $0x300] sm:$0xff]  ;;  %13556 = vst [vmem:[#allocation63_spill] sm:$0xff] %v12014_v36 }
  0x86   : > { %10021 = vmatprep.mubr.msk.f32.mxu0 %vm374_vm0, %v11974_v31  ;;  %13553 = vst [vmem:[#allocation60_spill] sm:$0xff] %v12003_v10  ;;  %v12008_v31 = vld [vmem:[%s11395_s16 + $0x15a] sm:$0xff]  ;;  %13555 = vst [vmem:[#allocation62_spill] sm:$0xff] %v12011_v11 }
  0x87   : > { %13554 = vst [vmem:[#allocation61_spill] sm:$0xff] %v12008_v31 }
  0x88   : > { %9550 = vmatmul.mubr.msk.f32.gmra.mrb[56].mxu1 %vm374_vm0, %v11983_v29  ;;  %v8344_v29 = vld [vmem:[%s11395_s16 + $0x182] sm:$0xff] }
  0x89   : > { %10022 = vmatmul.mubr.msk.f32.gmra.mrb[24].mxu0 %vm374_vm0, %v11988_v12  ;;  %9552 = vmatprep.mubr.msk.f32.mxu1 %vm374_vm0, %v11991_v21  ;;  %v12023_v12 = vld [vmem:[%s11395_s16 + $0x308] sm:$0xff]  ;;  %v12031_v21 = vld [vmem:[%s11395_s16 + $0x318] sm:$0xff] }
  0x8a   : > { %10024 = vmatprep.mubr.msk.f32.mxu0 %vm374_vm0, %v11994_v32  ;;  %13557 = vst [vmem:[#allocation64_spill] sm:$0xff] %v12023_v12  ;;  %v12028_v32 = vld [vmem:[%s11395_s16 + $0x172] sm:$0xff]  ;;  %13559 = vst [vmem:[#allocation66_spill] sm:$0xff] %v12031_v21 }
  0x8b   : > { %13558 = vst [vmem:[#allocation65_spill] sm:$0xff] %v12028_v32 }
  0x8c   : > { %9553 = vmatmul.mubr.msk.f32.gmra.mrb[58].mxu1 %vm374_vm0, %v12003_v10  ;;  %v12047_v10 = vld [vmem:[%s11395_s16 + $0x1ca] sm:$0xff] }
  0x8d   : > { %10025 = vmatmul.mubr.msk.f32.gmra.mrb[26].mxu0 %vm374_vm0, %v12008_v31  ;;  %9555 = vmatprep.mubr.msk.f32.mxu1 %vm374_vm0, %v12011_v11  ;;  %v12041_v31 = vld [vmem:[%s11395_s16 + $0x320] sm:$0xff] }
  0x8e   : > { %10027 = vmatprep.mubr.msk.f32.mxu0 %vm374_vm0, %v12014_v36  ;;  %13560 = vst [vmem:[#allocation67_spill] sm:$0xff] %v12041_v31  ;;  %v8345_v36 = vld [vmem:[%s11395_s16 + $0x18a] sm:$0xff]  ;;  %v1080_v11 = vld [vmem:[%s11395_s16 + $0x1] sm:$0xff] }
  0x90   : > { %9556 = vmatmul.mubr.msk.f32.gmra.mrb[60].mxu1 %vm374_vm0, %v12023_v12  ;;  %v7984_v12 = vld [vmem:[%s13415_s1 + $0x50] sm:$0xff] }
  0x91   : > { %10028 = vmatmul.mubr.msk.f32.gmra.mrb[28].mxu0 %vm374_vm0, %v12028_v32  ;;  %9558 = vmatprep.mubr.msk.f32.mxu1 %vm374_vm0, %v12031_v21  ;;  %v7985_v32 = vld [vmem:[%s13415_s1 + $0x58] sm:$0xff] }
  0x92   : > { %10030 = vmatprep.mubr.msk.f32.mxu0 %vm374_vm0, %v8344_v29  ;;  %v1081_v29 = vld [vmem:[%s11395_s16 + $0x9] sm:$0xff]  ;;  %v12063_v21 = vld [vmem:[%s11395_s16 + $0x1d2] sm:$0xff]  ;;  %v10413_v26 = vpack.c.bf16 %v7985_v32, %v7984_v12  ;;  %v12086_v32 = vld [vmem:[%s11395_s16 + $0x1fa] sm:$0xff] }
  0x94   : > { %9559 = vmatmul.mubr.msk.f32.gmra.mrb[62].mxu1 %vm374_vm0, %v12041_v31  ;;  %v12066_v31 = vld [vmem:[%s11395_s16 + $0x1e2] sm:$0xff] }
  0x95   : > { %10031 = vmatmul.mubr.msk.f32.gmra.mrb[30].mxu0 %vm374_vm0, %v8345_v36  ;;  %9569 = vmatprep.mubr.msk.f32.mxu1 %vm374_vm0, %v1080_v11  ;;  %v8115_v11 = vld [vmem:[%s13415_s1 + $0x68] sm:$0xff] }
  0x96   : > { %10033 = vmatprep.mubr.msk.f32.mxu0 %vm374_vm0, %v12047_v10  ;;  %v12083_v36 = vld [vmem:[%s11395_s16 + $0x1ea] sm:$0xff]  ;;  %v12088_v12 = vpack.c.bf16 %v8115_v11, %v8114_v7  ;;  %v12114_v7 = vld [vmem:[%s11395_s16 + $0x21a] sm:$0xff] }
  0x97   : > { %v12302_v11 = vld [vmem:[%s11395_s16 + $0x1e1] sm:$0xff] }
  0x98   : > { %9570 = vmatmul.mubr.msk.f32.vlgmr.msra.gmra.mrb[0].mxu1 %vm374_vm0, %v1081_v29  ;;  %v1115_v29 = vld [vmem:[%s11395_s16 + $0x1d1] sm:$0xff] }
  0x99   : > { %10034 = vmatmul.mubr.msk.f32.gmra.mrb[32].mxu0 %vm374_vm0, %v12063_v21  ;;  %10412 = vmatpush3.bf16.msra.mxu1 %v11644_v14  ;;  %v12102_v14 = vld [vmem:[%s11395_s16 + $0x212] sm:$0xff] }
  0x9a   : > { %9572 = vmatprep.mubr.msk.f32.mxu1 %vm374_vm0, %v11402_v20  ;;  %10036 = vmatprep.mubr.msk.f32.mxu0 %vm374_vm0, %v12066_v31  ;;  %v12099_v20 = vld [vmem:[%s11395_s16 + $0x202] sm:$0xff] }
  0x9b   : > { %10414 = vmatprep.subr.bf16.mxu1 %v10413_v26 }
  0x9c   : > { %9573 = vmatmul.mubr.msk.f32.gmra.mrb[2].mxu1 %vm374_vm0, %v11419_v25  ;;  %v12117_v25 = vld [vmem:[%s11395_s16 + $0x22a] sm:$0xff] }
  0x9d   : > { %10037 = vmatmul.mubr.msk.f32.gmra.mrb[34].mxu0 %vm374_vm0, %v12083_v36  ;;  %9575 = vmatprep.mubr.msk.f32.mxu1 %vm374_vm0, %v11423_v27  ;;  %v12128_v27 = vld [vmem:[%s11395_s16 + $0x232] sm:$0xff] }
  0x9e   : > { %10039 = vmatprep.mubr.msk.f32.mxu0 %vm374_vm0, %v12086_v32  ;;  %10416 = vmatpush3.bf16.msra.mxu1 %v10413_v26  ;;  %v1114_v26 = vld [vmem:[%s11395_s16 + $0x1c9] sm:$0xff] }
  0x9f   : > { %10418 = vmatprep.subr.bf16.mxu1 %v12088_v12 }
  0xa0   : > { %9576 = vmatmul.mubr.msk.f32.gmra.mrb[4].mxu1 %vm374_vm0, %v11439_v33  ;;  %v12131_v33 = vld [vmem:[%s11395_s16 + $0x242] sm:$0xff] }
  0xa1   : > { %10040 = vmatmul.mubr.msk.f32.gmra.mrb[36].mxu0 %vm374_vm0, %v12099_v20  ;;  %9578 = vmatprep.mubr.msk.f32.mxu1 %vm374_vm0, %v11445_v35  ;;  %v12142_v35 = vld [vmem:[%s11395_s16 + $0x24a] sm:$0xff] }
  0xa2   : > { %10042 = vmatprep.mubr.msk.f32.mxu0 %vm374_vm0, %v12102_v14 }
  0xa4   : > { %9579 = vmatmul.mubr.msk.f32.gmra.mrb[6].mxu1 %vm374_vm0, %v11460_v38  ;;  %v12145_v38 = vld [vmem:[%s11395_s16 + $0x25a] sm:$0xff] }
  0xa5   : > { %10043 = vmatmul.mubr.msk.f32.gmra.mrb[38].mxu0 %vm374_vm0, %v12114_v7  ;;  %9581 = vmatprep.mubr.msk.f32.mxu1 %vm374_vm0, %v11466_v40  ;;  %v12156_v40 = vld [vmem:[%s11395_s16 + $0x262] sm:$0xff] }
  0xa6   : > { %10045 = vmatprep.mubr.msk.f32.mxu0 %vm374_vm0, %v12117_v25 }
  0xa8   : > { %9582 = vmatmul.mubr.msk.f32.gmra.mrb[8].mxu1 %vm374_vm0, %v11481_v42  ;;  %v12159_v42 = vld [vmem:[%s11395_s16 + $0x272] sm:$0xff] }
  0xa9   : > { %10046 = vmatmul.mubr.msk.f32.gmra.mrb[40].mxu0 %vm374_vm0, %v12128_v27  ;;  %9584 = vmatprep.mubr.msk.f32.mxu1 %vm374_vm0, %v11487_v44  ;;  %v12170_v44 = vld [vmem:[%s11395_s16 + $0x27a] sm:$0xff] }
  0xaa   : > { %10048 = vmatprep.mubr.msk.f32.mxu0 %vm374_vm0, %v12131_v33 }
  0xac   : > { %9585 = vmatmul.mubr.msk.f32.gmra.mrb[10].mxu1 %vm374_vm0, %v11501_v46  ;;  %v12173_v46 = vld [vmem:[%s11395_s16 + $0x28a] sm:$0xff] }
  0xad   : > { %10049 = vmatmul.mubr.msk.f32.gmra.mrb[42].mxu0 %vm374_vm0, %v12142_v35  ;;  %9587 = vmatprep.mubr.msk.f32.mxu1 %vm374_vm0, %v11507_v48  ;;  %v12184_v48 = vld [vmem:[%s11395_s16 + $0x292] sm:$0xff] }
  0xae   : > { %10051 = vmatprep.mubr.msk.f32.mxu0 %vm374_vm0, %v12145_v38 }
  0xb0   : > { %9588 = vmatmul.mubr.msk.f32.gmra.mrb[12].mxu1 %vm374_vm0, %v11521_v50  ;;  %v12187_v50 = vld [vmem:[%s11395_s16 + $0x2a2] sm:$0xff] }
  0xb1   : > { %10052 = vmatmul.mubr.msk.f32.gmra.mrb[44].mxu0 %vm374_vm0, %v12156_v40  ;;  %9590 = vmatprep.mubr.msk.f32.mxu1 %vm374_vm0, %v11527_v52  ;;  %v12198_v52 = vld [vmem:[%s11395_s16 + $0x2aa] sm:$0xff] }
  0xb2   : > { %10054 = vmatprep.mubr.msk.f32.mxu0 %vm374_vm0, %v12159_v42 }
  0xb4   : > { %9591 = vmatmul.mubr.msk.f32.gmra.mrb[14].mxu1 %vm374_vm0, %v11541_v54  ;;  %v12201_v54 = vld [vmem:[%s11395_s16 + $0x2ba] sm:$0xff] }
  0xb5   : > { %10055 = vmatmul.mubr.msk.f32.gmra.mrb[46].mxu0 %vm374_vm0, %v12170_v44  ;;  %9593 = vmatprep.mubr.msk.f32.mxu1 %vm374_vm0, %v11547_v56  ;;  %v12212_v56 = vld [vmem:[%s11395_s16 + $0x2c2] sm:$0xff] }
  0xb6   : > { %10057 = vmatprep.mubr.msk.f32.mxu0 %vm374_vm0, %v12173_v46 }
  0xb8   : > { %9594 = vmatmul.mubr.msk.f32.gmra.mrb[16].mxu1 %vm374_vm0, %v11561_v58  ;;  %v12215_v58 = vld [vmem:[%s11395_s16 + $0x2d2] sm:$0xff] }
  0xb9   : > { %10058 = vmatmul.mubr.msk.f32.gmra.mrb[48].mxu0 %vm374_vm0, %v12184_v48  ;;  %9596 = vmatprep.mubr.msk.f32.mxu1 %vm374_vm0, %v11567_v60  ;;  %v12226_v60 = vld [vmem:[%s11395_s16 + $0x2da] sm:$0xff] }
  0xba   : > { %10060 = vmatprep.mubr.msk.f32.mxu0 %vm374_vm0, %v12187_v50 }
  0xbc   : > { %9597 = vmatmul.mubr.msk.f32.gmra.mrb[18].mxu1 %vm374_vm0, %v11581_v62  ;;  %v12229_v62 = vld [vmem:[%s11395_s16 + $0x2ea] sm:$0xff] }
  0xbd   : > { %10061 = vmatmul.mubr.msk.f32.gmra.mrb[50].mxu0 %vm374_vm0, %v12198_v52  ;;  %9599 = vmatprep.mubr.msk.f32.mxu1 %vm374_vm0, %v11587_v0  ;;  %v12240_v0 = vld [vmem:[%s11395_s16 + $0x2f2] sm:$0xff] }
  0xbe   : > { %10063 = vmatprep.mubr.msk.f32.mxu0 %vm374_vm0, %v12201_v54 }
  0xc0   : > { %9600 = vmatmul.mubr.msk.f32.gmra.mrb[20].mxu1 %vm374_vm0, %v11601_v2  ;;  %v12243_v2 = vld [vmem:[%s11395_s16 + $0x302] sm:$0xff] }
  0xc1   : > { %10064 = vmatmul.mubr.msk.f32.gmra.mrb[52].mxu0 %vm374_vm0, %v12212_v56  ;;  %9602 = vmatprep.mubr.msk.f32.mxu1 %vm374_vm0, %v11607_v4  ;;  %v12254_v4 = vld [vmem:[%s11395_s16 + $0x30a] sm:$0xff] }
  0xc2   : > { %10066 = vmatprep.mubr.msk.f32.mxu0 %vm374_vm0, %v12215_v58 }
  0xc4   : > { %9603 = vmatmul.mubr.msk.f32.gmra.mrb[22].mxu1 %vm374_vm0, %v11621_v6  ;;  %v12257_v6 = vld [vmem:[%s11395_s16 + $0x31a] sm:$0xff] }
  0xc5   : > { %10067 = vmatmul.mubr.msk.f32.gmra.mrb[54].mxu0 %vm374_vm0, %v12226_v60  ;;  %9605 = vmatprep.mubr.msk.f32.mxu1 %vm374_vm0, %v11627_v9  ;;  %v12268_v9 = vld [vmem:[%s11395_s16 + $0x322] sm:$0xff] }
  0xc6   : > { %10069 = vmatprep.mubr.msk.f32.mxu0 %vm374_vm0, %v12229_v62 }
  0xc8   : > { %9606 = vmatmul.mubr.msk.f32.gmra.mrb[24].mxu1 %vm374_vm0, %v11649_v15  ;;  %v8376_v15 = vld [vmem:[%s11395_s16 + $0x332] sm:$0xff] }
  0xc9   : > { %10070 = vmatmul.mubr.msk.f32.gmra.mrb[56].mxu0 %vm374_vm0, %v12240_v0  ;;  %9608 = vmatprep.mubr.msk.f32.mxu1 %vm374_vm0, %v11655_v17  ;;  %v8377_v17 = vld [vmem:[%s11395_s16 + $0x33a] sm:$0xff] }
  0xca   : > { %10072 = vmatprep.mubr.msk.f32.mxu0 %vm374_vm0, %v12243_v2 }
  0xcc   : > { %9609 = vmatmul.mubr.msk.f32.gmra.mrb[26].mxu1 %vm374_vm0, %v11670_v19  ;;  %v1112_v19 = vld [vmem:[%s11395_s16 + $0x1b1] sm:$0xff] }
  0xcd   : > { %10073 = vmatmul.mubr.msk.f32.gmra.mrb[58].mxu0 %vm374_vm0, %v12254_v4  ;;  %9611 = vmatprep.mubr.msk.f32.mxu1 %vm374_vm0, %v11676_v22  ;;  %v8644_v22 = vld [vmem:[%s13415_s1 + $0xf0] sm:$0xff] }
  0xce   : > { %10075 = vmatprep.mubr.msk.f32.mxu0 %vm374_vm0, %v12257_v6 }
  0xd0   : > { %9612 = vmatmul.mubr.msk.f32.gmra.mrb[28].mxu1 %vm374_vm0, %v11690_v24  ;;  %v8645_v24 = vld [vmem:[%s13415_s1 + $0xf8] sm:$0xff] }
  0xd1   : > { %10076 = vmatmul.mubr.msk.f32.gmra.mrb[60].mxu0 %vm374_vm0, %v12268_v9  ;;  %9614 = vmatprep.mubr.msk.f32.mxu1 %vm374_vm0, %v11696_v28  ;;  %v1113_v28 = vld [vmem:[%s11395_s16 + $0x1b9] sm:$0xff] }
  0xd2   : > { %10078 = vmatprep.mubr.msk.f32.mxu0 %vm374_vm0, %v8376_v15  ;;  %v12348_v15 = vld [vmem:[%s11395_s16 + $0x219] sm:$0xff] }
  0xd4   : > { %9615 = vmatmul.mubr.msk.f32.gmra.mrb[30].mxu1 %vm374_vm0, %v11710_v30  ;;  %v10453_v30 = vpack.c.bf16 %v8645_v24, %v8644_v22  ;;  %v13563_v22 = vld [vmem:[#allocation6_spill] sm:$0xff]  ;;  %v12465_v24 = vld [vmem:[%s11395_s16 + $0x2e9] sm:$0xff] }
  0xd5   : > { %10079 = vmatmul.mubr.msk.f32.gmra.mrb[62].mxu0 %vm374_vm0, %v8377_v17  ;;  %9617 = vmatprep.mubr.msk.f32.mxu1 %vm374_vm0, %v1112_v19  ;;  %v12367_v17 = vld [vmem:[%s11395_s16 + $0x241] sm:$0xff]  ;;  %v13562_v19 = vld [vmem:[#allocation5_spill] sm:$0xff] }
  0xd6   : > { %10089 = vmatprep.mubr.msk.f32.mxu0 %vm374_vm0, %v11442_v34  ;;  %v12311_v34 = vld [vmem:[%s11395_s16 + $0x1e9] sm:$0xff] }
  0xd8   : > { %9618 = vmatmul.mubr.msk.f32.gmra.mrb[32].mxu1 %vm374_vm0, %v1113_v28  ;;  %v13565_v28 = vld [vmem:[#allocation7_spill] sm:$0xff] }
  0xd9   : > { %10090 = vmatmul.mubr.msk.f32.vlgmr.msra.gmra.mrb[0].mxu0 %vm374_vm0, %v11455_v37  ;;  %9620 = vmatprep.mubr.msk.f32.mxu1 %vm374_vm0, %v1114_v26  ;;  %v12316_v37 = vld [vmem:[%s11395_s16 + $0x1f9] sm:$0xff]  ;;  %v12474_v26 = vld [vmem:[%s11395_s16 + $0x2f1] sm:$0xff] }
  0xda   : > { %10092 = vmatprep.mubr.msk.f32.mxu0 %vm374_vm0, %v11463_v39  ;;  %10452 = vmatpush3.bf16.msra.mxu0 %v11810_v23  ;;  %v12325_v39 = vld [vmem:[%s11395_s16 + $0x201] sm:$0xff]  ;;  %v12336_v23 = vld [vmem:[%s11395_s16 + $0x211] sm:$0xff]  ;;  %13566 = vst [vmem:[#allocation5_spill] sm:$0xff] %v12474_v26 }
  0xdb   : > { %10454 = vmatprep.subr.bf16.mxu0 %v10453_v30 }
  0xdc   : > { %9621 = vmatmul.mubr.msk.f32.gmra.mrb[34].mxu1 %vm374_vm0, %v1115_v29  ;;  %v12479_v29 = vld [vmem:[%s11395_s16 + $0x301] sm:$0xff] }
  0xdd   : > { %10093 = vmatmul.mubr.msk.f32.gmra.mrb[2].mxu0 %vm374_vm0, %v11476_v41  ;;  %9623 = vmatprep.mubr.msk.f32.mxu1 %vm374_vm0, %v12302_v11  ;;  %v8774_v41 = vld [vmem:[%s13415_s1 + $0x100] sm:$0xff]  ;;  %13568 = vst [vmem:[#allocation6_spill] sm:$0xff] %v12479_v29 }
  0xde   : > { %10095 = vmatprep.mubr.msk.f32.mxu0 %vm374_vm0, %v11484_v43  ;;  %10456 = vmatpush3.bf16.msra.mxu0 %v10453_v30  ;;  %v8775_v43 = vld [vmem:[%s13415_s1 + $0x108] sm:$0xff]  ;;  %v13567_v30 = vld [vmem:[#allocation8_spill] sm:$0xff] }
  0xe0   : > { %9624 = vmatmul.mubr.msk.f32.gmra.mrb[36].mxu1 %vm374_vm0, %v12311_v34 }
  0xe1   : > { %10096 = vmatmul.mubr.msk.f32.gmra.mrb[4].mxu0 %vm374_vm0, %v11496_v45  ;;  %9626 = vmatprep.mubr.msk.f32.mxu1 %vm374_vm0, %v12316_v37  ;;  %v12338_v45 = vpack.c.bf16 %v8775_v43, %v8774_v41  ;;  %v12482_v41 = vld [vmem:[%s11395_s16 + $0x180] sm:$0xff]  ;;  %v13570_v43 = vld [vmem:[#allocation9_spill] sm:$0xff] }
  0xe2   : > { %10098 = vmatprep.mubr.msk.f32.mxu0 %vm374_vm0, %v11504_v47  ;;  %v12353_v47 = vld [vmem:[%s11395_s16 + $0x229] sm:$0xff]  ;;  %13569 = vst [vmem:[#allocation7_spill] sm:$0xff] %v12482_v41 }
  0xe3   : > { %10458 = vmatprep.subr.bf16.mxu0 %v12338_v45 }
  0xe4   : > { %9627 = vmatmul.mubr.msk.f32.gmra.mrb[38].mxu1 %vm374_vm0, %v12325_v39 }
  0xe5   : > { %10099 = vmatmul.mubr.msk.f32.gmra.mrb[6].mxu0 %vm374_vm0, %v11516_v49  ;;  %9629 = vmatprep.mubr.msk.f32.mxu1 %vm374_vm0, %v12336_v23  ;;  %v12362_v49 = vld [vmem:[%s11395_s16 + $0x231] sm:$0xff] }
  0xe6   : > { %10101 = vmatprep.mubr.msk.f32.mxu0 %vm374_vm0, %v11524_v51  ;;  %v12376_v51 = vld [vmem:[%s11395_s16 + $0x249] sm:$0xff] }
  0xe8   : > { %9630 = vmatmul.mubr.msk.f32.gmra.mrb[40].mxu1 %vm374_vm0, %v12348_v15 }
  0xe9   : > { %10102 = vmatmul.mubr.msk.f32.gmra.mrb[8].mxu0 %vm374_vm0, %v11536_v53  ;;  %9632 = vmatprep.mubr.msk.f32.mxu1 %vm374_vm0, %v12353_v47  ;;  %v12381_v53 = vld [vmem:[%s11395_s16 + $0x259] sm:$0xff] }
  0xea   : > { %10104 = vmatprep.mubr.msk.f32.mxu0 %vm374_vm0, %v11544_v55  ;;  %v12390_v55 = vld [vmem:[%s11395_s16 + $0x261] sm:$0xff] }
  0xec   : > { %9633 = vmatmul.mubr.msk.f32.gmra.mrb[42].mxu1 %vm374_vm0, %v12362_v49 }
  0xed   : > { %10105 = vmatmul.mubr.msk.f32.gmra.mrb[10].mxu0 %vm374_vm0, %v11556_v57  ;;  %9635 = vmatprep.mubr.msk.f32.mxu1 %vm374_vm0, %v12367_v17  ;;  %v12395_v57 = vld [vmem:[%s11395_s16 + $0x271] sm:$0xff] }
  0xee   : > { %10107 = vmatprep.mubr.msk.f32.mxu0 %vm374_vm0, %v11564_v59  ;;  %v12404_v59 = vld [vmem:[%s11395_s16 + $0x279] sm:$0xff] }
  0xf0   : > { %9636 = vmatmul.mubr.msk.f32.gmra.mrb[44].mxu1 %vm374_vm0, %v12376_v51 }
  0xf1   : > { %10108 = vmatmul.mubr.msk.f32.gmra.mrb[12].mxu0 %vm374_vm0, %v11576_v61  ;;  %9638 = vmatprep.mubr.msk.f32.mxu1 %vm374_vm0, %v12381_v53  ;;  %v12409_v61 = vld [vmem:[%s11395_s16 + $0x289] sm:$0xff] }
  0xf2   : > { %10110 = vmatprep.mubr.msk.f32.mxu0 %vm374_vm0, %v11584_v63  ;;  %v12418_v63 = vld [vmem:[%s11395_s16 + $0x291] sm:$0xff] }
  0xf4   : > { %9639 = vmatmul.mubr.msk.f32.gmra.mrb[46].mxu1 %vm374_vm0, %v12390_v55 }
  0xf5   : > { %10111 = vmatmul.mubr.msk.f32.gmra.mrb[14].mxu0 %vm374_vm0, %v11596_v1  ;;  %9641 = vmatprep.mubr.msk.f32.mxu1 %vm374_vm0, %v12395_v57  ;;  %v12423_v1 = vld [vmem:[%s11395_s16 + $0x2a1] sm:$0xff] }
  0xf6   : > { %10113 = vmatprep.mubr.msk.f32.mxu0 %vm374_vm0, %v11604_v3  ;;  %v12432_v3 = vld [vmem:[%s11395_s16 + $0x2a9] sm:$0xff] }
  0xf8   : > { %9642 = vmatmul.mubr.msk.f32.gmra.mrb[48].mxu1 %vm374_vm0, %v12404_v59 }
  0xf9   : > { %10114 = vmatmul.mubr.msk.f32.gmra.mrb[16].mxu0 %vm374_vm0, %v11616_v5  ;;  %9644 = vmatprep.mubr.msk.f32.mxu1 %vm374_vm0, %v12409_v61  ;;  %v12437_v5 = vld [vmem:[%s11395_s16 + $0x2b9] sm:$0xff] }
  0xfa   : > { %10116 = vmatprep.mubr.msk.f32.mxu0 %vm374_vm0, %v11624_v8  ;;  %v12446_v8 = vld [vmem:[%s11395_s16 + $0x2c1] sm:$0xff] }
  0xfc   : > { %9645 = vmatmul.mubr.msk.f32.gmra.mrb[50].mxu1 %vm374_vm0, %v12418_v63 }
  0xfd   : > { %10117 = vmatmul.mubr.msk.f32.gmra.mrb[18].mxu0 %vm374_vm0, %v11642_v13  ;;  %9647 = vmatprep.mubr.msk.f32.mxu1 %vm374_vm0, %v12423_v1  ;;  %v13561_v13 = vld [vmem:[#allocation4_spill] sm:$0xff] }
  0xfe   : > { %10119 = vmatprep.mubr.msk.f32.mxu0 %vm374_vm0, %v11652_v16  ;;  %v12451_v16 = vld [vmem:[%s11395_s16 + $0x2d1] sm:$0xff]  ;;  %13564 = vst [vmem:[#allocation4_spill] sm:$0xff] %v12465_v24 }
 0x100   : > { %9648 = vmatmul.mubr.msk.f32.gmra.mrb[52].mxu1 %vm374_vm0, %v12432_v3 }
 0x101   : > { %10120 = vmatmul.mubr.msk.f32.gmra.mrb[20].mxu0 %vm374_vm0, %v11665_v18  ;;  %9650 = vmatprep.mubr.msk.f32.mxu1 %vm374_vm0, %v12437_v5  ;;  %v12460_v18 = vld [vmem:[%s11395_s16 + $0x2d9] sm:$0xff] }
 0x102   : > { %10122 = vmatprep.mubr.msk.f32.mxu0 %vm374_vm0, %v13561_v13  ;;  %v12491_v13 = vld [vmem:[%s11395_s16 + $0x309] sm:$0xff] }
 0x103   : > { %13571 = vst [vmem:[#allocation8_spill] sm:$0xff] %v12491_v13 }
 0x104   : > { %9651 = vmatmul.mubr.msk.f32.gmra.mrb[54].mxu1 %vm374_vm0, %v12446_v8 }
 0x105   : > { %10123 = vmatmul.mubr.msk.f32.gmra.mrb[22].mxu0 %vm374_vm0, %v13562_v19  ;;  %9653 = vmatprep.mubr.msk.f32.mxu1 %vm374_vm0, %v12451_v16  ;;  %v12496_v19 = vld [vmem:[%s11395_s16 + $0x188] sm:$0xff] }
 0x106   : > { %10125 = vmatprep.mubr.msk.f32.mxu0 %vm374_vm0, %v13563_v22  ;;  %13572 = vst [vmem:[#allocation9_spill] sm:$0xff] %v12496_v19  ;;  %v12499_v22 = vld [vmem:[%s11395_s16 + $0x319] sm:$0xff] }
 0x107   : > { %13573 = vst [vmem:[#allocation68_spill] sm:$0xff] %v12499_v22 }
 0x108   : > { %9654 = vmatmul.mubr.msk.f32.gmra.mrb[56].mxu1 %vm374_vm0, %v12460_v18 }
 0x109   : > { %10126 = vmatmul.mubr.msk.f32.gmra.mrb[24].mxu0 %vm374_vm0, %v13565_v28  ;;  %9656 = vmatprep.mubr.msk.f32.mxu1 %vm374_vm0, %v12465_v24  ;;  %v8476_v28 = vld [vmem:[%s11395_s16 + $0x198] sm:$0xff]  ;;  %v13578_v24 = vld [vmem:[#allocation18_spill] sm:$0xff] }
 0x10a   : > { %10128 = vmatprep.mubr.msk.f32.mxu0 %vm374_vm0, %v13567_v30  ;;  %v12509_v30 = vld [vmem:[%s11395_s16 + $0x321] sm:$0xff] }
 0x10b   : > { %13574 = vst [vmem:[#allocation69_spill] sm:$0xff] %v12509_v30 }
 0x10c   : > { %9657 = vmatmul.mubr.msk.f32.gmra.mrb[58].mxu1 %vm374_vm0, %v12474_v26  ;;  %v13577_v26 = vld [vmem:[#allocation10_spill] sm:$0xff] }
 0x10d   : > { %10129 = vmatmul.mubr.msk.f32.gmra.mrb[26].mxu0 %vm374_vm0, %v13570_v43  ;;  %9659 = vmatprep.mubr.msk.f32.mxu1 %vm374_vm0, %v12479_v29  ;;  %v8477_v43 = vld [vmem:[%s11395_s16 + $0x1a0] sm:$0xff]  ;;  %v8116_v29 = vld [vmem:[%s13415_s1 + $0x70] sm:$0xff] }
 0x10e   : > { %10131 = vmatprep.mubr.msk.f32.mxu0 %vm374_vm0, %v12482_v41  ;;  %v1918_v41 = vld [vmem:[%s11395_s16 + $0x2] sm:$0xff] }
 0x110   : > { %9660 = vmatmul.mubr.msk.f32.gmra.mrb[60].mxu1 %vm374_vm0, %v12491_v13  ;;  %v13575_v13 = vld [vmem:[#allocation14_spill] sm:$0xff] }
 0x111   : > { %10132 = vmatmul.mubr.msk.f32.gmra.mrb[28].mxu0 %vm374_vm0, %v12496_v19  ;;  %9662 = vmatprep.mubr.msk.f32.mxu1 %vm374_vm0, %v12499_v22  ;;  %v8117_v19 = vld [vmem:[%s13415_s1 + $0x78] sm:$0xff]  ;;  %v1919_v22 = vld [vmem:[%s11395_s16 + $0xa] sm:$0xff] }
 0x112   : > { %10134 = vmatprep.mubr.msk.f32.mxu0 %vm374_vm0, %v8476_v28  ;;  %v10421_v28 = vpack.c.bf16 %v8117_v19, %v8116_v29  ;;  %v13581_v29 = vld [vmem:[#allocation12_spill] sm:$0xff]  ;;  %v13586_v19 = vld [vmem:[#allocation15_spill] sm:$0xff] }
 0x114   : > { %9663 = vmatmul.mubr.msk.f32.gmra.mrb[62].mxu1 %vm374_vm0, %v12509_v30  ;;  %v13576_v30 = vld [vmem:[#allocation16_spill] sm:$0xff] }
 0x115   : > { %10135 = vmatmul.mubr.msk.f32.gmra.mrb[30].mxu0 %vm374_vm0, %v8477_v43  ;;  %9673 = vmatprep.mubr.msk.f32.mxu1 %vm374_vm0, %v1918_v41  ;;  %v13579_v41 = vld [vmem:[#allocation11_spill] sm:$0xff]  ;;  %v13580_v43 = vld [vmem:[#allocation20_spill] sm:$0xff] }
 0x116   : > { %10137 = vmatprep.mubr.msk.f32.mxu0 %vm374_vm0, %v13575_v13  ;;  %v13582_v13 = vld [vmem:[#allocation22_spill] sm:$0xff] }
 0x118   : > { %9674 = vmatmul.mubr.msk.f32.vlgmr.msra.gmra.mrb[0].mxu1 %vm374_vm0, %v1919_v22  ;;  %v13587_v22 = vld [vmem:[#allocation26_spill] sm:$0xff] }
 0x119   : > { %10138 = vmatmul.mubr.msk.f32.gmra.mrb[32].mxu0 %vm374_vm0, %v13576_v30  ;;  %10420 = vmatpush3.bf16.msra.mxu1 %v12088_v12  ;;  %v13583_v12 = vld [vmem:[#allocation2_spill] sm:$0xff]  ;;  %v13588_v30 = vld [vmem:[#allocation17_spill] sm:$0xff] }
 0x11a   : > { %9676 = vmatprep.mubr.msk.f32.mxu1 %vm374_vm0, %v13577_v26  ;;  %10140 = vmatprep.mubr.msk.f32.mxu0 %vm374_vm0, %v13578_v24  ;;  %v13584_v26 = vld [vmem:[#allocation13_spill] sm:$0xff]  ;;  %v13585_v24 = vld [vmem:[#allocation24_spill] sm:$0xff] }
 0x11b   : > { %10422 = vmatprep.subr.bf16.mxu1 %v10421_v28 }
 0x11c   : > { %9677 = vmatmul.mubr.msk.f32.gmra.mrb[2].mxu1 %vm374_vm0, %v13579_v41  ;;  %v13589_v41 = vld [vmem:[#allocation28_spill] sm:$0xff] }
 0x11d   : > { %10141 = vmatmul.mubr.msk.f32.gmra.mrb[34].mxu0 %vm374_vm0, %v13580_v43  ;;  %9679 = vmatprep.mubr.msk.f32.mxu1 %vm374_vm0, %v13581_v29  ;;  %v13591_v43 = vld [vmem:[#allocation30_spill] sm:$0xff]  ;;  %v13592_v29 = vld [vmem:[#allocation21_spill] sm:$0xff] }
 0x11e   : > { %10143 = vmatprep.mubr.msk.f32.mxu0 %vm374_vm0, %v13582_v13  ;;  %10424 = vmatpush3.bf16.msra.mxu1 %v10421_v28  ;;  %v13590_v28 = vld [vmem:[#allocation19_spill] sm:$0xff]  ;;  %v13593_v13 = vld [vmem:[#allocation32_spill] sm:$0xff] }
 0x11f   : > { %10465 = vmatprep.subr.bf16.mxu1 %v13583_v12 }
 0x120   : > { %9680 = vmatmul.mubr.msk.f32.gmra.mrb[4].mxu1 %vm374_vm0, %v13584_v26  ;;  %v13594_v26 = vld [vmem:[#allocation23_spill] sm:$0xff] }
 0x121   : > { %10144 = vmatmul.mubr.msk.f32.gmra.mrb[36].mxu0 %vm374_vm0, %v13585_v24  ;;  %9682 = vmatprep.mubr.msk.f32.mxu1 %vm374_vm0, %v13586_v19  ;;  %v13595_v24 = vld [vmem:[#allocation34_spill] sm:$0xff]  ;;  %v13596_v19 = vld [vmem:[#allocation25_spill] sm:$0xff] }
 0x122   : > { %10146 = vmatprep.mubr.msk.f32.mxu0 %vm374_vm0, %v13587_v22  ;;  %v13597_v22 = vld [vmem:[#allocation36_spill] sm:$0xff] }
 0x124   : > { %9683 = vmatmul.mubr.msk.f32.gmra.mrb[6].mxu1 %vm374_vm0, %v13588_v30  ;;  %v13598_v30 = vld [vmem:[#allocation27_spill] sm:$0xff] }
 0x125   : > { %10147 = vmatmul.mubr.msk.f32.gmra.mrb[38].mxu0 %vm374_vm0, %v13589_v41  ;;  %9685 = vmatprep.mubr.msk.f32.mxu1 %vm374_vm0, %v13590_v28  ;;  %v13599_v41 = vld [vmem:[#allocation38_spill] sm:$0xff]  ;;  %v13600_v28 = vld [vmem:[#allocation29_spill] sm:$0xff] }
 0x126   : > { %10149 = vmatprep.mubr.msk.f32.mxu0 %vm374_vm0, %v13591_v43  ;;  %v13601_v43 = vld [vmem:[#allocation40_spill] sm:$0xff] }
 0x128   : > { %9686 = vmatmul.mubr.msk.f32.gmra.mrb[8].mxu1 %vm374_vm0, %v13592_v29  ;;  %v13602_v29 = vld [vmem:[#allocation31_spill] sm:$0xff] }
 0x129   : > { %10150 = vmatmul.mubr.msk.f32.gmra.mrb[40].mxu0 %vm374_vm0, %v13593_v13  ;;  %9688 = vmatprep.mubr.msk.f32.mxu1 %vm374_vm0, %v13594_v26  ;;  %v13603_v13 = vld [vmem:[#allocation42_spill] sm:$0xff]  ;;  %v13604_v26 = vld [vmem:[#allocation33_spill] sm:$0xff] }
 0x12a   : > { %10152 = vmatprep.mubr.msk.f32.mxu0 %vm374_vm0, %v13595_v24  ;;  %v13605_v24 = vld [vmem:[#allocation44_spill] sm:$0xff] }
 0x12c   : > { %9689 = vmatmul.mubr.msk.f32.gmra.mrb[10].mxu1 %vm374_vm0, %v13596_v19  ;;  %v13606_v19 = vld [vmem:[#allocation35_spill] sm:$0xff] }
 0x12d   : > { %10153 = vmatmul.mubr.msk.f32.gmra.mrb[42].mxu0 %vm374_vm0, %v13597_v22  ;;  %9691 = vmatprep.mubr.msk.f32.mxu1 %vm374_vm0, %v13598_v30  ;;  %v13607_v22 = vld [vmem:[#allocation46_spill] sm:$0xff]  ;;  %v13608_v30 = vld [vmem:[#allocation37_spill] sm:$0xff] }
 0x12e   : > { %10155 = vmatprep.mubr.msk.f32.mxu0 %vm374_vm0, %v13599_v41  ;;  %v13609_v41 = vld [vmem:[#allocation48_spill] sm:$0xff] }
 0x130   : > { %9692 = vmatmul.mubr.msk.f32.gmra.mrb[12].mxu1 %vm374_vm0, %v13600_v28  ;;  %v13610_v28 = vld [vmem:[#allocation39_spill] sm:$0xff] }
 0x131   : > { %10156 = vmatmul.mubr.msk.f32.gmra.mrb[44].mxu0 %vm374_vm0, %v13601_v43  ;;  %9694 = vmatprep.mubr.msk.f32.mxu1 %vm374_vm0, %v13602_v29  ;;  %v13611_v43 = vld [vmem:[#allocation50_spill] sm:$0xff]  ;;  %v13612_v29 = vld [vmem:[#allocation41_spill] sm:$0xff] }
 0x132   : > { %10158 = vmatprep.mubr.msk.f32.mxu0 %vm374_vm0, %v13603_v13  ;;  %v13613_v13 = vld [vmem:[#allocation52_spill] sm:$0xff] }
 0x134   : > { %9695 = vmatmul.mubr.msk.f32.gmra.mrb[14].mxu1 %vm374_vm0, %v13604_v26  ;;  %v13614_v26 = vld [vmem:[#allocation43_spill] sm:$0xff] }
 0x135   : > { %10159 = vmatmul.mubr.msk.f32.gmra.mrb[46].mxu0 %vm374_vm0, %v13605_v24  ;;  %9697 = vmatprep.mubr.msk.f32.mxu1 %vm374_vm0, %v13606_v19  ;;  %v13615_v24 = vld [vmem:[#allocation54_spill] sm:$0xff]  ;;  %v13616_v19 = vld [vmem:[#allocation45_spill] sm:$0xff] }
 0x136   : > { %10161 = vmatprep.mubr.msk.f32.mxu0 %vm374_vm0, %v13607_v22  ;;  %v13617_v22 = vld [vmem:[#allocation56_spill] sm:$0xff] }
 0x138   : > { %9698 = vmatmul.mubr.msk.f32.gmra.mrb[16].mxu1 %vm374_vm0, %v13608_v30  ;;  %v13618_v30 = vld [vmem:[#allocation47_spill] sm:$0xff] }
 0x139   : > { %10162 = vmatmul.mubr.msk.f32.gmra.mrb[48].mxu0 %vm374_vm0, %v13609_v41  ;;  %9700 = vmatprep.mubr.msk.f32.mxu1 %vm374_vm0, %v13610_v28  ;;  %v13619_v41 = vld [vmem:[#allocation58_spill] sm:$0xff]  ;;  %v13620_v28 = vld [vmem:[#allocation49_spill] sm:$0xff] }
 0x13a   : > { %10164 = vmatprep.mubr.msk.f32.mxu0 %vm374_vm0, %v13611_v43  ;;  %v13621_v43 = vld [vmem:[#allocation60_spill] sm:$0xff] }
 0x13c   : > { %9701 = vmatmul.mubr.msk.f32.gmra.mrb[18].mxu1 %vm374_vm0, %v13612_v29  ;;  %v13622_v29 = vld [vmem:[#allocation51_spill] sm:$0xff] }
 0x13d   : > { %10165 = vmatmul.mubr.msk.f32.gmra.mrb[50].mxu0 %vm374_vm0, %v13613_v13  ;;  %9703 = vmatprep.mubr.msk.f32.mxu1 %vm374_vm0, %v13614_v26  ;;  %v13623_v13 = vld [vmem:[#allocation62_spill] sm:$0xff]  ;;  %v13624_v26 = vld [vmem:[#allocation53_spill] sm:$0xff] }
 0x13e   : > { %10167 = vmatprep.mubr.msk.f32.mxu0 %vm374_vm0, %v13615_v24  ;;  %v13625_v24 = vld [vmem:[#allocation64_spill] sm:$0xff] }
 0x140   : > { %9704 = vmatmul.mubr.msk.f32.gmra.mrb[20].mxu1 %vm374_vm0, %v13616_v19  ;;  %v13626_v19 = vld [vmem:[#allocation55_spill] sm:$0xff] }
 0x141   : > { %10168 = vmatmul.mubr.msk.f32.gmra.mrb[52].mxu0 %vm374_vm0, %v13617_v22  ;;  %9706 = vmatprep.mubr.msk.f32.mxu1 %vm374_vm0, %v13618_v30  ;;  %v13627_v22 = vld [vmem:[#allocation66_spill] sm:$0xff]  ;;  %v12633_v30 = vld [vmem:[%s11395_s16 + $0x330] sm:$0xff] }
 0x142   : > { %10170 = vmatprep.mubr.msk.f32.mxu0 %vm374_vm0, %v13619_v41  ;;  %v13628_v41 = vld [vmem:[#allocation57_spill] sm:$0xff] }
 0x144   : > { %9707 = vmatmul.mubr.msk.f32.gmra.mrb[22].mxu1 %vm374_vm0, %v13620_v28  ;;  %v13629_v28 = vld [vmem:[#allocation67_spill] sm:$0xff] }
 0x145   : > { %10171 = vmatmul.mubr.msk.f32.gmra.mrb[54].mxu0 %vm374_vm0, %v13621_v43  ;;  %9709 = vmatprep.mubr.msk.f32.mxu1 %vm374_vm0, %v13622_v29  ;;  %v13630_v43 = vld [vmem:[#allocation59_spill] sm:$0xff]  ;;  %v12644_v29 = vld [vmem:[%s11395_s16 + $0x338] sm:$0xff] }
 0x146   : > { %10173 = vmatprep.mubr.msk.f32.mxu0 %vm374_vm0, %v13623_v13  ;;  %13631 = vst [vmem:[#allocation14_spill] sm:$0xff] %v12644_v29  ;;  %v8508_v13 = vld [vmem:[%s11395_s16 + $0x348] sm:$0xff] }
 0x148   : > { %9710 = vmatmul.mubr.msk.f32.gmra.mrb[24].mxu1 %vm374_vm0, %v13624_v26  ;;  %v13632_v26 = vld [vmem:[#allocation61_spill] sm:$0xff] }
 0x149   : > { %10174 = vmatmul.mubr.msk.f32.gmra.mrb[56].mxu0 %vm374_vm0, %v13625_v24  ;;  %9712 = vmatprep.mubr.msk.f32.mxu1 %vm374_vm0, %v13626_v19  ;;  %v13633_v24 = vld [vmem:[#allocation63_spill] sm:$0xff]  ;;  %v8509_v19 = vld [vmem:[%s11395_s16 + $0x350] sm:$0xff] }
 0x14a   : > { %10176 = vmatprep.mubr.msk.f32.mxu0 %vm374_vm0, %v13627_v22  ;;  %v1950_v22 = vld [vmem:[%s11395_s16 + $0x1b2] sm:$0xff] }
 0x14c   : > { %9713 = vmatmul.mubr.msk.f32.gmra.mrb[26].mxu1 %vm374_vm0, %v13628_v41  ;;  %v8578_v41 = vld [vmem:[%s11395_s16 + $0x31] sm:$0xff] }
 0x14d   : > { %10177 = vmatmul.mubr.msk.f32.gmra.mrb[58].mxu0 %vm374_vm0, %v13629_v28  ;;  %9715 = vmatprep.mubr.msk.f32.mxu1 %vm374_vm0, %v13630_v43  ;;  %v13634_v28 = vld [vmem:[#allocation65_spill] sm:$0xff]  ;;  %v8776_v43 = vld [vmem:[%s13415_s1 + $0x110] sm:$0xff] }
 0x14e   : > { %10179 = vmatprep.mubr.msk.f32.mxu0 %vm374_vm0, %v12633_v30 }
 0x150   : > { %9716 = vmatmul.mubr.msk.f32.gmra.mrb[28].mxu1 %vm374_vm0, %v13632_v26  ;;  %v8777_v26 = vld [vmem:[%s13415_s1 + $0x118] sm:$0xff] }
 0x151   : > { %10180 = vmatmul.mubr.msk.f32.gmra.mrb[60].mxu0 %vm374_vm0, %v12644_v29  ;;  %9718 = vmatprep.mubr.msk.f32.mxu1 %vm374_vm0, %v13633_v24  ;;  %v8579_v24 = vld [vmem:[%s11395_s16 + $0x39] sm:$0xff]  ;;  %v8580_v29 = vld [vmem:[%s11395_s16 + $0x49] sm:$0xff] }
 0x152   : > { %10182 = vmatprep.mubr.msk.f32.mxu0 %vm374_vm0, %v8508_v13  ;;  %v1951_v13 = vld [vmem:[%s11395_s16 + $0x1ba] sm:$0xff] }
 0x154   : > { %9719 = vmatmul.mubr.msk.f32.gmra.mrb[30].mxu1 %vm374_vm0, %v13634_v28  ;;  %v10461_v28 = vpack.c.bf16 %v8777_v26, %v8776_v43  ;;  %v13637_v43 = vld [vmem:[#allocation5_spill] sm:$0xff]  ;;  %v8076_v26 = vld [vmem:[%s11395_s16 + $0x150] sm:$0xff] }
 0x155   : > { %10183 = vmatmul.mubr.msk.f32.gmra.mrb[62].mxu0 %vm374_vm0, %v8509_v19  ;;  %9721 = vmatprep.mubr.msk.f32.mxu1 %vm374_vm0, %v1950_v22  ;;  %v8581_v19 = vld [vmem:[%s11395_s16 + $0x51] sm:$0xff]  ;;  %v8582_v22 = vld [vmem:[%s11395_s16 + $0x61] sm:$0xff] }
 0x156   : > { %10193 = vmatprep.mubr.msk.f32.mxu0 %vm374_vm0, %v8578_v41  ;;  %v13635_v41 = vld [vmem:[#allocation3_spill] sm:$0xff] }
 0x158   : > { %9722 = vmatmul.mubr.msk.f32.gmra.mrb[32].mxu1 %vm374_vm0, %v1951_v13  ;;  %v13639_v13 = vld [vmem:[#allocation8_spill] sm:$0xff] }
 0x159   : > { %10194 = vmatmul.mubr.msk.f32.vlgmr.msra.gmra.mrb[0].mxu0 %vm374_vm0, %v8579_v24  ;;  %9724 = vmatprep.mubr.msk.f32.mxu1 %vm374_vm0, %v12047_v10  ;;  %v8583_v10 = vld [vmem:[%s11395_s16 + $0x69] sm:$0xff]  ;;  %v8077_v24 = vld [vmem:[%s11395_s16 + $0x158] sm:$0xff] }
 0x15a   : > { %10196 = vmatprep.mubr.msk.f32.mxu0 %vm374_vm0, %v8580_v29  ;;  %10460 = vmatpush3.bf16.msra.mxu0 %v12338_v45  ;;  %v8584_v29 = vld [vmem:[%s11395_s16 + $0x79] sm:$0xff]  ;;  %v8588_v45 = vld [vmem:[%s11395_s16 + $0xa9] sm:$0xff] }
 0x15b   : > { %10462 = vmatprep.subr.bf16.mxu0 %v10461_v28 }
 0x15c   : > { %9725 = vmatmul.mubr.msk.f32.gmra.mrb[34].mxu1 %vm374_vm0, %v12063_v21  ;;  %v8585_v21 = vld [vmem:[%s11395_s16 + $0x81] sm:$0xff] }
 0x15d   : > { %10197 = vmatmul.mubr.msk.f32.gmra.mrb[2].mxu0 %vm374_vm0, %v8581_v19  ;;  %9727 = vmatprep.mubr.msk.f32.mxu1 %vm374_vm0, %v12066_v31  ;;  %v8586_v31 = vld [vmem:[%s11395_s16 + $0x91] sm:$0xff]  ;;  %v8078_v19 = vld [vmem:[%s11395_s16 + $0x168] sm:$0xff] }
 0x15e   : > { %10199 = vmatprep.mubr.msk.f32.mxu0 %vm374_vm0, %v8582_v22  ;;  %10464 = vmatpush3.bf16.msra.mxu0 %v10461_v28  ;;  %v13640_v28 = vld [vmem:[#allocation68_spill] sm:$0xff] }
 0x15f   : > { %v12907_v22 = vld [vmem:[%s11395_s16 + $0x331] sm:$0xff] }
 0x160   : > { %9728 = vmatmul.mubr.msk.f32.gmra.mrb[36].mxu1 %vm374_vm0, %v12083_v36  ;;  %v8587_v36 = vld [vmem:[%s11395_s16 + $0x99] sm:$0xff] }
 0x161   : > { %10200 = vmatmul.mubr.msk.f32.gmra.mrb[4].mxu0 %vm374_vm0, %v8583_v10  ;;  %9730 = vmatprep.mubr.msk.f32.mxu1 %vm374_vm0, %v12086_v32  ;;  %v8589_v32 = vld [vmem:[%s11395_s16 + $0xb1] sm:$0xff] }
 0x162   : > { %10202 = vmatprep.mubr.msk.f32.mxu0 %vm374_vm0, %v8584_v29  ;;  %v13641_v10 = vld [vmem:[#allocation69_spill] sm:$0xff]  ;;  %v8079_v29 = vld [vmem:[%s11395_s16 + $0x170] sm:$0xff] }
 0x164   : > { %9731 = vmatmul.mubr.msk.f32.gmra.mrb[38].mxu1 %vm374_vm0, %v12099_v20  ;;  %v8590_v20 = vld [vmem:[%s11395_s16 + $0xc1] sm:$0xff] }
 0x165   : > { %10203 = vmatmul.mubr.msk.f32.gmra.mrb[6].mxu0 %vm374_vm0, %v8585_v21  ;;  %9733 = vmatprep.mubr.msk.f32.mxu1 %vm374_vm0, %v12102_v14  ;;  %v8591_v14 = vld [vmem:[%s11395_s16 + $0xc9] sm:$0xff]  ;;  %v12917_v21 = vld [vmem:[%s11395_s16 + $0x339] sm:$0xff] }
 0x166   : > { %10205 = vmatprep.mubr.msk.f32.mxu0 %vm374_vm0, %v8586_v31  ;;  %v8640_v31 = vld [vmem:[%s11395_s16 + $0x349] sm:$0xff] }
 0x168   : > { %9734 = vmatmul.mubr.msk.f32.gmra.mrb[40].mxu1 %vm374_vm0, %v12114_v7  ;;  %v8592_v7 = vld [vmem:[%s11395_s16 + $0xd9] sm:$0xff] }
 0x169   : > { %10206 = vmatmul.mubr.msk.f32.gmra.mrb[8].mxu0 %vm374_vm0, %v8587_v36  ;;  %9736 = vmatprep.mubr.msk.f32.mxu1 %vm374_vm0, %v12117_v25  ;;  %v8593_v25 = vld [vmem:[%s11395_s16 + $0xe1] sm:$0xff] }
 0x16a   : > { %10208 = vmatprep.mubr.msk.f32.mxu0 %vm374_vm0, %v8588_v45  ;;  %v13642_v36 = vld [vmem:[#allocation7_spill] sm:$0xff]  ;;  %v8641_v45 = vld [vmem:[%s11395_s16 + $0x351] sm:$0xff] }
 0x16c   : > { %9737 = vmatmul.mubr.msk.f32.gmra.mrb[42].mxu1 %vm374_vm0, %v12128_v27  ;;  %v8594_v27 = vld [vmem:[%s11395_s16 + $0xf1] sm:$0xff] }
 0x16d   : > { %10209 = vmatmul.mubr.msk.f32.gmra.mrb[10].mxu0 %vm374_vm0, %v8589_v32  ;;  %9739 = vmatprep.mubr.msk.f32.mxu1 %vm374_vm0, %v12131_v33  ;;  %v8595_v33 = vld [vmem:[%s11395_s16 + $0xf9] sm:$0xff]  ;;  %v8082_v32 = vld [vmem:[%s11395_s16 + $0x1c8] sm:$0xff] }
 0x16e   : > { %10211 = vmatprep.mubr.msk.f32.mxu0 %vm374_vm0, %v8590_v20  ;;  %v8710_v20 = vld [vmem:[%s11395_s16 + $0x32] sm:$0xff] }
 0x170   : > { %9740 = vmatmul.mubr.msk.f32.gmra.mrb[44].mxu1 %vm374_vm0, %v12142_v35  ;;  %v8596_v35 = vld [vmem:[%s11395_s16 + $0x109] sm:$0xff] }
 0x171   : > { %10212 = vmatmul.mubr.msk.f32.gmra.mrb[12].mxu0 %vm374_vm0, %v8591_v14  ;;  %9742 = vmatprep.mubr.msk.f32.mxu1 %vm374_vm0, %v12145_v38  ;;  %v8597_v38 = vld [vmem:[%s11395_s16 + $0x111] sm:$0xff] }
 0x172   : > { %10214 = vmatprep.mubr.msk.f32.mxu0 %vm374_vm0, %v8592_v7  ;;  %v13643_v14 = vld [vmem:[#allocation9_spill] sm:$0xff]  ;;  %v8083_v7 = vld [vmem:[%s11395_s16 + $0x1d0] sm:$0xff] }
 0x174   : > { %9743 = vmatmul.mubr.msk.f32.gmra.mrb[46].mxu1 %vm374_vm0, %v12156_v40  ;;  %v8598_v40 = vld [vmem:[%s11395_s16 + $0x121] sm:$0xff] }
 0x175   : > { %10215 = vmatmul.mubr.msk.f32.gmra.mrb[14].mxu0 %vm374_vm0, %v8593_v25  ;;  %9745 = vmatprep.mubr.msk.f32.mxu1 %vm374_vm0, %v12159_v42  ;;  %v8599_v42 = vld [vmem:[%s11395_s16 + $0x129] sm:$0xff]  ;;  %v8711_v25 = vld [vmem:[%s11395_s16 + $0x3a] sm:$0xff] }
 0x176   : > { %10217 = vmatprep.mubr.msk.f32.mxu0 %vm374_vm0, %v8594_v27  ;;  %v8084_v27 = vld [vmem:[%s11395_s16 + $0x1e0] sm:$0xff] }
 0x178   : > { %9746 = vmatmul.mubr.msk.f32.gmra.mrb[48].mxu1 %vm374_vm0, %v12170_v44  ;;  %v8600_v44 = vld [vmem:[%s11395_s16 + $0x139] sm:$0xff] }
 0x179   : > { %10218 = vmatmul.mubr.msk.f32.gmra.mrb[16].mxu0 %vm374_vm0, %v8595_v33  ;;  %9748 = vmatprep.mubr.msk.f32.mxu1 %vm374_vm0, %v12173_v46  ;;  %v8601_v46 = vld [vmem:[%s11395_s16 + $0x141] sm:$0xff]  ;;  %v12946_v33 = vld [vmem:[%s13416_s2] ss:$0 sm:$0xff] }
 0x17a   : > { %10220 = vmatprep.mubr.msk.f32.mxu0 %vm374_vm0, %v8596_v35  ;;  %v8712_v35 = vld [vmem:[%s11395_s16 + $0x4a] sm:$0xff]  ;;  %228 = vst [vmem:[%s12941_s20 + $0x190] sm:$0xff] %v12946_v33  ;;  %230 = vst [vmem:[%s12941_s20 + $0x1a0] sm:$0xff] %v12946_v33 }
 0x17b   : > { %231 = vst [vmem:[%s12941_s20 + $0x1a8] sm:$0xff] %v12946_v33  ;;  %232 = vst [vmem:[%s12941_s20 + $0x1b0] sm:$0xff] %v12946_v33 }
 0x17c   : > { %9749 = vmatmul.mubr.msk.f32.gmra.mrb[50].mxu1 %vm374_vm0, %v12184_v48  ;;  %v8602_v48 = vld [vmem:[%s11395_s16 + $0x151] sm:$0xff]  ;;  %233 = vst [vmem:[%s12941_s20 + $0x1b8] sm:$0xff] %v12946_v33  ;;  %234 = vst [vmem:[%s12941_s20 + $0x1c0] sm:$0xff] %v12946_v33 }
 0x17d   : > { %10221 = vmatmul.mubr.msk.f32.gmra.mrb[18].mxu0 %vm374_vm0, %v8597_v38  ;;  %9751 = vmatprep.mubr.msk.f32.mxu1 %vm374_vm0, %v12187_v50  ;;  %v8603_v50 = vld [vmem:[%s11395_s16 + $0x159] sm:$0xff]  ;;  %235 = vst [vmem:[%s12941_s20 + $0x1c8] sm:$0xff] %v12946_v33  ;;  %236 = vst [vmem:[%s12941_s20 + $0x1d0] sm:$0xff] %v12946_v33  ;;  %v8085_v38 = vld [vmem:[%s11395_s16 + $0x1e8] sm:$0xff] }
 0x17e   : > { %10223 = vmatprep.mubr.msk.f32.mxu0 %vm374_vm0, %v8598_v40  ;;  %237 = vst [vmem:[%s12941_s20 + $0x1d8] sm:$0xff] %v12946_v33  ;;  %238 = vst [vmem:[%s12941_s20 + $0x1e0] sm:$0xff] %v12946_v33  ;;  %v8713_v40 = vld [vmem:[%s11395_s16 + $0x52] sm:$0xff] }
 0x17f   : > { %239 = vst [vmem:[%s12941_s20 + $0x1e8] sm:$0xff] %v12946_v33  ;;  %240 = vst [vmem:[%s12941_s20 + $0x1f0] sm:$0xff] %v12946_v33 }
 0x180   : > { %9752 = vmatmul.mubr.msk.f32.gmra.mrb[52].mxu1 %vm374_vm0, %v12198_v52  ;;  %v8604_v52 = vld [vmem:[%s11395_s16 + $0x169] sm:$0xff]  ;;  %241 = vst [vmem:[%s12941_s20 + $0x1f8] sm:$0xff] %v12946_v33 }
 0x181   : > { %10224 = vmatmul.mubr.msk.f32.gmra.mrb[20].mxu0 %vm374_vm0, %v8599_v42  ;;  %9754 = vmatprep.mubr.msk.f32.mxu1 %vm374_vm0, %v12201_v54  ;;  %v8605_v54 = vld [vmem:[%s11395_s16 + $0x171] sm:$0xff] }
 0x182   : > { %10226 = vmatprep.mubr.msk.f32.mxu0 %vm374_vm0, %v8600_v44  ;;  %v8086_v42 = vld [vmem:[%s11395_s16 + $0x1f8] sm:$0xff]  ;;  %v8714_v44 = vld [vmem:[%s11395_s16 + $0x62] sm:$0xff] }
 0x184   : > { %9755 = vmatmul.mubr.msk.f32.gmra.mrb[54].mxu1 %vm374_vm0, %v12212_v56  ;;  %v8606_v56 = vld [vmem:[%s11395_s16 + $0x181] sm:$0xff] }
 0x185   : > { %10227 = vmatmul.mubr.msk.f32.gmra.mrb[22].mxu0 %vm374_vm0, %v8601_v46  ;;  %9757 = vmatprep.mubr.msk.f32.mxu1 %vm374_vm0, %v12215_v58  ;;  %v8607_v58 = vld [vmem:[%s11395_s16 + $0x189] sm:$0xff]  ;;  %v8087_v46 = vld [vmem:[%s11395_s16 + $0x200] sm:$0xff] }
 0x186   : > { %10229 = vmatprep.mubr.msk.f32.mxu0 %vm374_vm0, %v8602_v48  ;;  %v8715_v48 = vld [vmem:[%s11395_s16 + $0x6a] sm:$0xff] }
 0x188   : > { %9758 = vmatmul.mubr.msk.f32.gmra.mrb[56].mxu1 %vm374_vm0, %v12226_v60  ;;  %v8608_v60 = vld [vmem:[%s11395_s16 + $0x199] sm:$0xff] }
 0x189   : > { %10230 = vmatmul.mubr.msk.f32.gmra.mrb[24].mxu0 %vm374_vm0, %v8603_v50  ;;  %9760 = vmatprep.mubr.msk.f32.mxu1 %vm374_vm0, %v12229_v62  ;;  %v8609_v62 = vld [vmem:[%s11395_s16 + $0x1a1] sm:$0xff]  ;;  %v8088_v50 = vld [vmem:[%s11395_s16 + $0x210] sm:$0xff] }
 0x18a   : > { %10232 = vmatprep.mubr.msk.f32.mxu0 %vm374_vm0, %v8604_v52  ;;  %v8716_v52 = vld [vmem:[%s11395_s16 + $0x7a] sm:$0xff] }
 0x18c   : > { %9761 = vmatmul.mubr.msk.f32.gmra.mrb[58].mxu1 %vm374_vm0, %v12240_v0  ;;  %v8050_v0 = vld [vmem:[%s11395_s16 + $0x18] sm:$0xff] }
 0x18d   : > { %10233 = vmatmul.mubr.msk.f32.gmra.mrb[26].mxu0 %vm374_vm0, %v8605_v54  ;;  %9763 = vmatprep.mubr.msk.f32.mxu1 %vm374_vm0, %v12243_v2  ;;  %v8051_v2 = vld [vmem:[%s11395_s16 + $0x20] sm:$0xff]  ;;  %v8089_v54 = vld [vmem:[%s11395_s16 + $0x218] sm:$0xff] }
 0x18e   : > { %10235 = vmatprep.mubr.msk.f32.mxu0 %vm374_vm0, %v8606_v56  ;;  %v8717_v56 = vld [vmem:[%s11395_s16 + $0x82] sm:$0xff] }
 0x190   : > { %9764 = vmatmul.mubr.msk.f32.gmra.mrb[60].mxu1 %vm374_vm0, %v12254_v4  ;;  %v8052_v4 = vld [vmem:[%s11395_s16 + $0x30] sm:$0xff] }
 0x191   : > { %10236 = vmatmul.mubr.msk.f32.gmra.mrb[28].mxu0 %vm374_vm0, %v8607_v58  ;;  %9766 = vmatprep.mubr.msk.f32.mxu1 %vm374_vm0, %v12257_v6  ;;  %v8053_v6 = vld [vmem:[%s11395_s16 + $0x38] sm:$0xff]  ;;  %v8090_v58 = vld [vmem:[%s11395_s16 + $0x228] sm:$0xff] }
 0x192   : > { %10238 = vmatprep.mubr.msk.f32.mxu0 %vm374_vm0, %v8608_v60  ;;  %v8718_v60 = vld [vmem:[%s11395_s16 + $0x92] sm:$0xff] }
 0x194   : > { %9767 = vmatmul.mubr.msk.f32.gmra.mrb[62].mxu1 %vm374_vm0, %v12268_v9  ;;  %v8054_v9 = vld [vmem:[%s11395_s16 + $0x48] sm:$0xff] }
 0x195   : > { %10239 = vmatmul.mubr.msk.f32.gmra.mrb[30].mxu0 %vm374_vm0, %v8609_v62  ;;  %9777 = vmatprep.mubr.msk.f32.mxu1 %vm374_vm0, %v8050_v0  ;;  %v8091_v62 = vld [vmem:[%s11395_s16 + $0x230] sm:$0xff]  ;;  %v8719_v0 = vld [vmem:[%s11395_s16 + $0x9a] sm:$0xff] }
 0x196   : > { %10241 = vmatprep.mubr.msk.f32.mxu0 %vm374_vm0, %v12302_v11  ;;  %v8055_v11 = vld [vmem:[%s11395_s16 + $0x50] sm:$0xff] }
 0x198   : > { %9778 = vmatmul.mubr.msk.f32.vlgmr.msra.gmra.mrb[0].mxu1 %vm374_vm0, %v8051_v2  ;;  %v8092_v2 = vld [vmem:[%s11395_s16 + $0x240] sm:$0xff] }
 0x199   : > { %10242 = vmatmul.mubr.msk.f32.gmra.mrb[32].mxu0 %vm374_vm0, %v12311_v34  ;;  %10467 = vmatpush3.bf16.msra.mxu1 %v13583_v12  ;;  %v8056_v34 = vld [vmem:[%s11395_s16 + $0x60] sm:$0xff]  ;;  %v8074_v12 = vld [vmem:[%s11395_s16 + $0x138] sm:$0xff] }
 0x19a   : > { %9780 = vmatprep.mubr.msk.f32.mxu1 %vm374_vm0, %v8052_v4  ;;  %10244 = vmatprep.mubr.msk.f32.mxu0 %vm374_vm0, %v12316_v37  ;;  %v8057_v37 = vld [vmem:[%s11395_s16 + $0x68] sm:$0xff] }
 0x19b   : > { %10466 = vmatprep.subr.bf16.mxu1 %v13635_v41  ;;  %v8720_v4 = vld [vmem:[%s11395_s16 + $0xaa] sm:$0xff] }
 0x19c   : > { %9781 = vmatmul.mubr.msk.f32.gmra.mrb[2].mxu1 %vm374_vm0, %v8053_v6  ;;  %v8093_v6 = vld [vmem:[%s11395_s16 + $0x248] sm:$0xff] }
 0x19d   : > { %10245 = vmatmul.mubr.msk.f32.gmra.mrb[34].mxu0 %vm374_vm0, %v12325_v39  ;;  %9783 = vmatprep.mubr.msk.f32.mxu1 %vm374_vm0, %v8054_v9  ;;  %v8058_v39 = vld [vmem:[%s11395_s16 + $0x78] sm:$0xff] }
 0x19e   : > { %10247 = vmatprep.mubr.msk.f32.mxu0 %vm374_vm0, %v12336_v23  ;;  %10468 = vmatpush3.bf16.msra.mxu1 %v13635_v41  ;;  %v8059_v23 = vld [vmem:[%s11395_s16 + $0x80] sm:$0xff]  ;;  %v8721_v9 = vld [vmem:[%s11395_s16 + $0xb2] sm:$0xff] }
 0x19f   : > { %v8094_v41 = vld [vmem:[%s11395_s16 + $0x258] sm:$0xff] }
 0x1a0   : > { %9784 = vmatmul.mubr.msk.f32.gmra.mrb[4].mxu1 %vm374_vm0, %v8055_v11  ;;  %v8722_v11 = vld [vmem:[%s11395_s16 + $0xc2] sm:$0xff] }
 0x1a1   : > { %10248 = vmatmul.mubr.msk.f32.gmra.mrb[36].mxu0 %vm374_vm0, %v12348_v15  ;;  %9786 = vmatprep.mubr.msk.f32.mxu1 %vm374_vm0, %v8056_v34  ;;  %v8060_v15 = vld [vmem:[%s11395_s16 + $0x90] sm:$0xff]  ;;  %v8095_v34 = vld [vmem:[%s11395_s16 + $0x260] sm:$0xff] }
 0x1a2   : > { %10250 = vmatprep.mubr.msk.f32.mxu0 %vm374_vm0, %v12353_v47  ;;  %v8061_v47 = vld [vmem:[%s11395_s16 + $0x98] sm:$0xff] }
 0x1a4   : > { %9787 = vmatmul.mubr.msk.f32.gmra.mrb[6].mxu1 %vm374_vm0, %v8057_v37  ;;  %v8723_v37 = vld [vmem:[%s11395_s16 + $0xca] sm:$0xff] }
 0x1a5   : > { %10251 = vmatmul.mubr.msk.f32.gmra.mrb[38].mxu0 %vm374_vm0, %v12362_v49  ;;  %9789 = vmatprep.mubr.msk.f32.mxu1 %vm374_vm0, %v8058_v39  ;;  %v8062_v49 = vld [vmem:[%s11395_s16 + $0xa8] sm:$0xff]  ;;  %v8096_v39 = vld [vmem:[%s11395_s16 + $0x270] sm:$0xff] }
 0x1a6   : > { %10253 = vmatprep.mubr.msk.f32.mxu0 %vm374_vm0, %v12367_v17  ;;  %v8063_v17 = vld [vmem:[%s11395_s16 + $0xb0] sm:$0xff] }
 0x1a8   : > { %9790 = vmatmul.mubr.msk.f32.gmra.mrb[8].mxu1 %vm374_vm0, %v8059_v23  ;;  %v8724_v23 = vld [vmem:[%s11395_s16 + $0xda] sm:$0xff] }
 0x1a9   : > { %10254 = vmatmul.mubr.msk.f32.gmra.mrb[40].mxu0 %vm374_vm0, %v12376_v51  ;;  %9792 = vmatprep.mubr.msk.f32.mxu1 %vm374_vm0, %v8060_v15  ;;  %v8064_v51 = vld [vmem:[%s11395_s16 + $0xc0] sm:$0xff]  ;;  %v8097_v15 = vld [vmem:[%s11395_s16 + $0x278] sm:$0xff] }
 0x1aa   : > { %10256 = vmatprep.mubr.msk.f32.mxu0 %vm374_vm0, %v12381_v53  ;;  %v8065_v53 = vld [vmem:[%s11395_s16 + $0xc8] sm:$0xff] }
 0x1ac   : > { %9793 = vmatmul.mubr.msk.f32.gmra.mrb[10].mxu1 %vm374_vm0, %v8061_v47  ;;  %v8725_v47 = vld [vmem:[%s11395_s16 + $0xe2] sm:$0xff] }
 0x1ad   : > { %10257 = vmatmul.mubr.msk.f32.gmra.mrb[42].mxu0 %vm374_vm0, %v12390_v55  ;;  %9795 = vmatprep.mubr.msk.f32.mxu1 %vm374_vm0, %v8062_v49  ;;  %v8066_v55 = vld [vmem:[%s11395_s16 + $0xd8] sm:$0xff]  ;;  %v8098_v49 = vld [vmem:[%s11395_s16 + $0x288] sm:$0xff] }
 0x1ae   : > { %10259 = vmatprep.mubr.msk.f32.mxu0 %vm374_vm0, %v12395_v57  ;;  %v8067_v57 = vld [vmem:[%s11395_s16 + $0xe0] sm:$0xff] }
 0x1b0   : > { %9796 = vmatmul.mubr.msk.f32.gmra.mrb[12].mxu1 %vm374_vm0, %v8063_v17  ;;  %v8726_v17 = vld [vmem:[%s11395_s16 + $0xf2] sm:$0xff] }
 0x1b1   : > { %10260 = vmatmul.mubr.msk.f32.gmra.mrb[44].mxu0 %vm374_vm0, %v12404_v59  ;;  %9798 = vmatprep.mubr.msk.f32.mxu1 %vm374_vm0, %v8064_v51  ;;  %v8068_v59 = vld [vmem:[%s11395_s16 + $0xf0] sm:$0xff] }
 0x1b2   : > { %10262 = vmatprep.mubr.msk.f32.mxu0 %vm374_vm0, %v12409_v61  ;;  %v8069_v61 = vld [vmem:[%s11395_s16 + $0xf8] sm:$0xff]  ;;  %v8099_v51 = vld [vmem:[%s11395_s16 + $0x290] sm:$0xff] }
 0x1b4   : > { %9799 = vmatmul.mubr.msk.f32.gmra.mrb[14].mxu1 %vm374_vm0, %v8065_v53  ;;  %v8727_v53 = vld [vmem:[%s11395_s16 + $0xfa] sm:$0xff] }
 0x1b5   : > { %10263 = vmatmul.mubr.msk.f32.gmra.mrb[46].mxu0 %vm374_vm0, %v12418_v63  ;;  %9801 = vmatprep.mubr.msk.f32.mxu1 %vm374_vm0, %v8066_v55  ;;  %v8070_v63 = vld [vmem:[%s11395_s16 + $0x108] sm:$0xff]  ;;  %v8100_v55 = vld [vmem:[%s11395_s16 + $0x2a0] sm:$0xff] }
 0x1b6   : > { %10265 = vmatprep.mubr.msk.f32.mxu0 %vm374_vm0, %v12423_v1  ;;  %v8071_v1 = vld [vmem:[%s11395_s16 + $0x110] sm:$0xff] }
 0x1b8   : > { %9802 = vmatmul.mubr.msk.f32.gmra.mrb[16].mxu1 %vm374_vm0, %v8067_v57  ;;  %v8728_v57 = vld [vmem:[%s11395_s16 + $0x10a] sm:$0xff] }
 0x1b9   : > { %10266 = vmatmul.mubr.msk.f32.gmra.mrb[48].mxu0 %vm374_vm0, %v12432_v3  ;;  %9804 = vmatprep.mubr.msk.f32.mxu1 %vm374_vm0, %v8068_v59  ;;  %v8072_v3 = vld [vmem:[%s11395_s16 + $0x120] sm:$0xff]  ;;  %v8101_v59 = vld [vmem:[%s11395_s16 + $0x2a8] sm:$0xff] }
 0x1ba   : > { %10268 = vmatprep.mubr.msk.f32.mxu0 %vm374_vm0, %v12437_v5  ;;  %v8073_v5 = vld [vmem:[%s11395_s16 + $0x128] sm:$0xff] }
 0x1bc   : > { %9805 = vmatmul.mubr.msk.f32.gmra.mrb[18].mxu1 %vm374_vm0, %v8069_v61  ;;  %v8729_v61 = vld [vmem:[%s11395_s16 + $0x112] sm:$0xff] }
 0x1bd   : > { %10269 = vmatmul.mubr.msk.f32.gmra.mrb[50].mxu0 %vm374_vm0, %v12446_v8  ;;  %9807 = vmatprep.mubr.msk.f32.mxu1 %vm374_vm0, %v8070_v63  ;;  %v13636_v8 = vld [vmem:[#allocation4_spill] sm:$0xff]  ;;  %v8102_v63 = vld [vmem:[%s11395_s16 + $0x2b8] sm:$0xff] }
 0x1be   : > { %10271 = vmatprep.mubr.msk.f32.mxu0 %vm374_vm0, %v12451_v16  ;;  %v8075_v16 = vld [vmem:[%s11395_s16 + $0x140] sm:$0xff] }
 0x1c0   : > { %9808 = vmatmul.mubr.msk.f32.gmra.mrb[20].mxu1 %vm374_vm0, %v8071_v1  ;;  %v8730_v1 = vld [vmem:[%s11395_s16 + $0x122] sm:$0xff] }
 0x1c1   : > { %10272 = vmatmul.mubr.msk.f32.gmra.mrb[52].mxu0 %vm374_vm0, %v12460_v18  ;;  %9810 = vmatprep.mubr.msk.f32.mxu1 %vm374_vm0, %v8072_v3  ;;  %v13638_v18 = vld [vmem:[#allocation6_spill] sm:$0xff] }
 0x1c2   : > { %10274 = vmatprep.mubr.msk.f32.mxu0 %vm374_vm0, %v13636_v8  ;;  %v8103_v3 = vld [vmem:[%s11395_s16 + $0x2c0] sm:$0xff]  ;;  %v8104_v8 = vld [vmem:[%s11395_s16 + $0x2d0] sm:$0xff] }
 0x1c4   : > { %9811 = vmatmul.mubr.msk.f32.gmra.mrb[22].mxu1 %vm374_vm0, %v8073_v5  ;;  %v8731_v5 = vld [vmem:[%s11395_s16 + $0x12a] sm:$0xff] }
 0x1c5   : > { %10275 = vmatmul.mubr.msk.f32.gmra.mrb[54].mxu0 %vm374_vm0, %v13637_v43  ;;  %9813 = vmatprep.mubr.msk.f32.mxu1 %vm374_vm0, %v8074_v12  ;;  %v8732_v12 = vld [vmem:[%s11395_s16 + $0x13a] sm:$0xff] }
 0x1c6   : > { %10277 = vmatprep.mubr.msk.f32.mxu0 %vm374_vm0, %v13638_v18  ;;  %v8105_v43 = vld [vmem:[%s11395_s16 + $0x2d8] sm:$0xff]  ;;  %v8106_v18 = vld [vmem:[%s11395_s16 + $0x2e8] sm:$0xff] }
 0x1c8   : > { %9814 = vmatmul.mubr.msk.f32.gmra.mrb[24].mxu1 %vm374_vm0, %v8075_v16  ;;  %v8733_v16 = vld [vmem:[%s11395_s16 + $0x142] sm:$0xff] }
 0x1c9   : > { %10278 = vmatmul.mubr.msk.f32.gmra.mrb[56].mxu0 %vm374_vm0, %v13639_v13  ;;  %9816 = vmatprep.mubr.msk.f32.mxu1 %vm374_vm0, %v8076_v26  ;;  %v8734_v26 = vld [vmem:[%s11395_s16 + $0x152] sm:$0xff] }
 0x1ca   : > { %10280 = vmatprep.mubr.msk.f32.mxu0 %vm374_vm0, %v13640_v28  ;;  %v8107_v13 = vld [vmem:[%s11395_s16 + $0x2f0] sm:$0xff]  ;;  %v8108_v28 = vld [vmem:[%s11395_s16 + $0x300] sm:$0xff] }
 0x1cc   : > { %9817 = vmatmul.mubr.msk.f32.gmra.mrb[26].mxu1 %vm374_vm0, %v8077_v24  ;;  %v8735_v24 = vld [vmem:[%s11395_s16 + $0x15a] sm:$0xff] }
 0x1cd   : > { %10281 = vmatmul.mubr.msk.f32.gmra.mrb[58].mxu0 %vm374_vm0, %v13641_v10  ;;  %9819 = vmatprep.mubr.msk.f32.mxu1 %vm374_vm0, %v8078_v19  ;;  %v8736_v19 = vld [vmem:[%s11395_s16 + $0x16a] sm:$0xff] }
 0x1ce   : > { %10283 = vmatprep.mubr.msk.f32.mxu0 %vm374_vm0, %v12907_v22  ;;  %v8109_v10 = vld [vmem:[%s11395_s16 + $0x308] sm:$0xff] }
 0x1d0   : > { %9820 = vmatmul.mubr.msk.f32.gmra.mrb[28].mxu1 %vm374_vm0, %v8079_v29  ;;  %v8737_v29 = vld [vmem:[%s11395_s16 + $0x172] sm:$0xff] }
 0x1d1   : > { %10284 = vmatmul.mubr.msk.f32.gmra.mrb[60].mxu0 %vm374_vm0, %v12917_v21  ;;  %9822 = vmatprep.mubr.msk.f32.mxu1 %vm374_vm0, %v13642_v36  ;;  %v8738_v36 = vld [vmem:[%s11395_s16 + $0x182] sm:$0xff] }
 0x1d2   : > { %10286 = vmatprep.mubr.msk.f32.mxu0 %vm374_vm0, %v8640_v31  ;;  %v8110_v31 = vld [vmem:[%s11395_s16 + $0x318] sm:$0xff] }
 0x1d4   : > { %9823 = vmatmul.mubr.msk.f32.gmra.mrb[30].mxu1 %vm374_vm0, %v13643_v14  ;;  %v8741_v14 = vld [vmem:[%s11395_s16 + $0x1a2] sm:$0xff] }
 0x1d5   : > { %10287 = vmatmul.mubr.msk.f32.gmra.mrb[62].mxu0 %vm374_vm0, %v8641_v45  ;;  %9825 = vmatprep.mubr.msk.f32.mxu1 %vm374_vm0, %v8082_v32  ;;  %v8111_v45 = vld [vmem:[%s11395_s16 + $0x320] sm:$0xff]  ;;  %v8739_v32 = vld [vmem:[%s11395_s16 + $0x18a] sm:$0xff] }
 0x1d6   : > { %10297 = vmatprep.mubr.msk.f32.mxu0 %vm374_vm0, %v8710_v20  ;;  %v8740_v20 = vld [vmem:[%s11395_s16 + $0x19a] sm:$0xff] }
 0x1d8   : > { %9826 = vmatmul.mubr.msk.f32.gmra.mrb[32].mxu1 %vm374_vm0, %v8083_v7  ;;  %v8214_v7 = vld [vmem:[%s11395_s16 + $0x1c9] sm:$0xff] }
 0x1d9   : > { %10298 = vmatmul.mubr.msk.f32.vlgmr.msra.gmra.mrb[0].mxu0 %vm374_vm0, %v8711_v25  ;;  %9828 = vmatprep.mubr.msk.f32.mxu1 %vm374_vm0, %v8084_v27  ;;  %v8742_v25 = vld [vmem:[%s11395_s16 + $0x1e2] sm:$0xff] }
 0x1da   : > { %10300 = vmatprep.mubr.msk.f32.mxu0 %vm374_vm0, %v8712_v35  ;;  %v13644_v27 = vld [vmem:[#allocation14_spill] sm:$0xff]  ;;  %v8215_v35 = vld [vmem:[%s11395_s16 + $0x1d1] sm:$0xff] }
 0x1dc   : > { %9829 = vmatmul.mubr.msk.f32.gmra.mrb[34].mxu1 %vm374_vm0, %v8085_v38  ;;  %v8216_v38 = vld [vmem:[%s11395_s16 + $0x1e1] sm:$0xff] }
 0x1dd   : > { %10301 = vmatmul.mubr.msk.f32.gmra.mrb[2].mxu0 %vm374_vm0, %v8713_v40  ;;  %9831 = vmatprep.mubr.msk.f32.mxu1 %vm374_vm0, %v8086_v42  ;;  %v8744_v40 = vld [vmem:[%s11395_s16 + $0x1fa] sm:$0xff]  ;;  %v8217_v42 = vld [vmem:[%s11395_s16 + $0x1e9] sm:$0xff] }
 0x1de   : > { %10303 = vmatprep.mubr.msk.f32.mxu0 %vm374_vm0, %v8714_v44  ;;  %v8745_v44 = vld [vmem:[%s11395_s16 + $0x202] sm:$0xff] }
 0x1e0   : > { %9832 = vmatmul.mubr.msk.f32.gmra.mrb[36].mxu1 %vm374_vm0, %v8087_v46  ;;  %v8218_v46 = vld [vmem:[%s11395_s16 + $0x1f9] sm:$0xff] }
 0x1e1   : > { %10304 = vmatmul.mubr.msk.f32.gmra.mrb[4].mxu0 %vm374_vm0, %v8715_v48  ;;  %9834 = vmatprep.mubr.msk.f32.mxu1 %vm374_vm0, %v8088_v50  ;;  %v8746_v48 = vld [vmem:[%s11395_s16 + $0x212] sm:$0xff]  ;;  %v8219_v50 = vld [vmem:[%s11395_s16 + $0x201] sm:$0xff] }
 0x1e2   : > { %10306 = vmatprep.mubr.msk.f32.mxu0 %vm374_vm0, %v8716_v52  ;;  %v8747_v52 = vld [vmem:[%s11395_s16 + $0x21a] sm:$0xff] }
 0x1e4   : > { %9835 = vmatmul.mubr.msk.f32.gmra.mrb[38].mxu1 %vm374_vm0, %v8089_v54  ;;  %v8220_v54 = vld [vmem:[%s11395_s16 + $0x211] sm:$0xff] }
 0x1e5   : > { %10307 = vmatmul.mubr.msk.f32.gmra.mrb[6].mxu0 %vm374_vm0, %v8717_v56  ;;  %9837 = vmatprep.mubr.msk.f32.mxu1 %vm374_vm0, %v8090_v58  ;;  %v8748_v56 = vld [vmem:[%s11395_s16 + $0x22a] sm:$0xff]  ;;  %v8221_v58 = vld [vmem:[%s11395_s16 + $0x219] sm:$0xff] }
 0x1e6   : > { %10309 = vmatprep.mubr.msk.f32.mxu0 %vm374_vm0, %v8718_v60  ;;  %v8749_v60 = vld [vmem:[%s11395_s16 + $0x232] sm:$0xff] }
 0x1e8   : > { %9838 = vmatmul.mubr.msk.f32.gmra.mrb[40].mxu1 %vm374_vm0, %v8091_v62  ;;  %v8222_v62 = vld [vmem:[%s11395_s16 + $0x229] sm:$0xff] }
 0x1e9   : > { %10310 = vmatmul.mubr.msk.f32.gmra.mrb[8].mxu0 %vm374_vm0, %v8719_v0  ;;  %9840 = vmatprep.mubr.msk.f32.mxu1 %vm374_vm0, %v8092_v2  ;;  %v8750_v0 = vld [vmem:[%s11395_s16 + $0x242] sm:$0xff]  ;;  %v8223_v2 = vld [vmem:[%s11395_s16 + $0x231] sm:$0xff] }
 0x1ea   : > { %10312 = vmatprep.mubr.msk.f32.mxu0 %vm374_vm0, %v8720_v4  ;;  %v8751_v4 = vld [vmem:[%s11395_s16 + $0x24a] sm:$0xff] }
 0x1ec   : > { %9841 = vmatmul.mubr.msk.f32.gmra.mrb[42].mxu1 %vm374_vm0, %v8093_v6  ;;  %v8224_v6 = vld [vmem:[%s11395_s16 + $0x241] sm:$0xff] }
 0x1ed   : > { %10313 = vmatmul.mubr.msk.f32.gmra.mrb[10].mxu0 %vm374_vm0, %v8721_v9  ;;  %9843 = vmatprep.mubr.msk.f32.mxu1 %vm374_vm0, %v8094_v41  ;;  %v8752_v9 = vld [vmem:[%s11395_s16 + $0x25a] sm:$0xff]  ;;  %v8225_v41 = vld [vmem:[%s11395_s16 + $0x249] sm:$0xff] }
 0x1ee   : > { %10315 = vmatprep.mubr.msk.f32.mxu0 %vm374_vm0, %v8722_v11  ;;  %v8753_v11 = vld [vmem:[%s11395_s16 + $0x262] sm:$0xff] }
 0x1f0   : > { %9844 = vmatmul.mubr.msk.f32.gmra.mrb[44].mxu1 %vm374_vm0, %v8095_v34  ;;  %v8226_v34 = vld [vmem:[%s11395_s16 + $0x259] sm:$0xff] }
 0x1f1   : > { %10316 = vmatmul.mubr.msk.f32.gmra.mrb[12].mxu0 %vm374_vm0, %v8723_v37  ;;  %9846 = vmatprep.mubr.msk.f32.mxu1 %vm374_vm0, %v8096_v39  ;;  %v8754_v37 = vld [vmem:[%s11395_s16 + $0x272] sm:$0xff]  ;;  %v8227_v39 = vld [vmem:[%s11395_s16 + $0x261] sm:$0xff] }
 0x1f2   : > { %10318 = vmatprep.mubr.msk.f32.mxu0 %vm374_vm0, %v8724_v23  ;;  %v8755_v23 = vld [vmem:[%s11395_s16 + $0x27a] sm:$0xff] }
 0x1f4   : > { %9847 = vmatmul.mubr.msk.f32.gmra.mrb[46].mxu1 %vm374_vm0, %v8097_v15  ;;  %v8228_v15 = vld [vmem:[%s11395_s16 + $0x271] sm:$0xff] }
 0x1f5   : > { %10319 = vmatmul.mubr.msk.f32.gmra.mrb[14].mxu0 %vm374_vm0, %v8725_v47  ;;  %9849 = vmatprep.mubr.msk.f32.mxu1 %vm374_vm0, %v8098_v49  ;;  %v8756_v47 = vld [vmem:[%s11395_s16 + $0x28a] sm:$0xff]  ;;  %v8229_v49 = vld [vmem:[%s11395_s16 + $0x279] sm:$0xff] }
 0x1f6   : > { %10321 = vmatprep.mubr.msk.f32.mxu0 %vm374_vm0, %v8726_v17  ;;  %v8757_v17 = vld [vmem:[%s11395_s16 + $0x292] sm:$0xff] }
 0x1f8   : > { %9850 = vmatmul.mubr.msk.f32.gmra.mrb[48].mxu1 %vm374_vm0, %v8099_v51  ;;  %v8230_v51 = vld [vmem:[%s11395_s16 + $0x289] sm:$0xff] }
 0x1f9   : > { %10322 = vmatmul.mubr.msk.f32.gmra.mrb[16].mxu0 %vm374_vm0, %v8727_v53  ;;  %9852 = vmatprep.mubr.msk.f32.mxu1 %vm374_vm0, %v8100_v55  ;;  %v8758_v53 = vld [vmem:[%s11395_s16 + $0x2a2] sm:$0xff]  ;;  %v8231_v55 = vld [vmem:[%s11395_s16 + $0x291] sm:$0xff] }
 0x1fa   : > { %10324 = vmatprep.mubr.msk.f32.mxu0 %vm374_vm0, %v8728_v57  ;;  %v8759_v57 = vld [vmem:[%s11395_s16 + $0x2aa] sm:$0xff] }
 0x1fc   : > { %9853 = vmatmul.mubr.msk.f32.gmra.mrb[50].mxu1 %vm374_vm0, %v8101_v59  ;;  %v8232_v59 = vld [vmem:[%s11395_s16 + $0x2a1] sm:$0xff] }
 0x1fd   : > { %10325 = vmatmul.mubr.msk.f32.gmra.mrb[18].mxu0 %vm374_vm0, %v8729_v61  ;;  %9855 = vmatprep.mubr.msk.f32.mxu1 %vm374_vm0, %v8102_v63  ;;  %v8760_v61 = vld [vmem:[%s11395_s16 + $0x2ba] sm:$0xff]  ;;  %v8233_v63 = vld [vmem:[%s11395_s16 + $0x2a9] sm:$0xff] }
 0x1fe   : > { %10327 = vmatprep.mubr.msk.f32.mxu0 %vm374_vm0, %v8730_v1  ;;  %v8761_v1 = vld [vmem:[%s11395_s16 + $0x2c2] sm:$0xff] }
 0x200   : > { %9856 = vmatmul.mubr.msk.f32.gmra.mrb[52].mxu1 %vm374_vm0, %v8103_v3  ;;  %v8234_v3 = vld [vmem:[%s11395_s16 + $0x2b9] sm:$0xff] }
 0x201   : > { %10328 = vmatmul.mubr.msk.f32.gmra.mrb[20].mxu0 %vm374_vm0, %v8731_v5  ;;  %9858 = vmatprep.mubr.msk.f32.mxu1 %vm374_vm0, %v8104_v8  ;;  %v8762_v5 = vld [vmem:[%s11395_s16 + $0x2d2] sm:$0xff]  ;;  %v8235_v8 = vld [vmem:[%s11395_s16 + $0x2c1] sm:$0xff] }
 0x202   : > { %10330 = vmatprep.mubr.msk.f32.mxu0 %vm374_vm0, %v8732_v12  ;;  %v8763_v12 = vld [vmem:[%s11395_s16 + $0x2da] sm:$0xff] }
 0x204   : > { %9859 = vmatmul.mubr.msk.f32.gmra.mrb[54].mxu1 %vm374_vm0, %v8105_v43  ;;  %v8236_v43 = vld [vmem:[%s11395_s16 + $0x2d1] sm:$0xff] }
 0x205   : > { %10331 = vmatmul.mubr.msk.f32.gmra.mrb[22].mxu0 %vm374_vm0, %v8733_v16  ;;  %9861 = vmatprep.mubr.msk.f32.mxu1 %vm374_vm0, %v8106_v18  ;;  %v8764_v16 = vld [vmem:[%s11395_s16 + $0x2ea] sm:$0xff]  ;;  %v8237_v18 = vld [vmem:[%s11395_s16 + $0x2d9] sm:$0xff] }
 0x206   : > { %10333 = vmatprep.mubr.msk.f32.mxu0 %vm374_vm0, %v8734_v26  ;;  %v8765_v26 = vld [vmem:[%s11395_s16 + $0x2f2] sm:$0xff] }
 0x208   : > { %9862 = vmatmul.mubr.msk.f32.gmra.mrb[56].mxu1 %vm374_vm0, %v8107_v13  ;;  %v8238_v13 = vld [vmem:[%s11395_s16 + $0x2e9] sm:$0xff] }
 0x209   : > { %10334 = vmatmul.mubr.msk.f32.gmra.mrb[24].mxu0 %vm374_vm0, %v8735_v24  ;;  %9864 = vmatprep.mubr.msk.f32.mxu1 %vm374_vm0, %v8108_v28  ;;  %v8766_v24 = vld [vmem:[%s11395_s16 + $0x302] sm:$0xff]  ;;  %v8239_v28 = vld [vmem:[%s11395_s16 + $0x2f1] sm:$0xff] }
 0x20a   : > { %10336 = vmatprep.mubr.msk.f32.mxu0 %vm374_vm0, %v8736_v19  ;;  %v8767_v19 = vld [vmem:[%s11395_s16 + $0x30a] sm:$0xff] }
 0x20c   : > { %9865 = vmatmul.mubr.msk.f32.gmra.mrb[58].mxu1 %vm374_vm0, %v8109_v10  ;;  %v8240_v10 = vld [vmem:[%s11395_s16 + $0x301] sm:$0xff] }
 0x20d   : > { %10337 = vmatmul.mubr.msk.f32.gmra.mrb[26].mxu0 %vm374_vm0, %v8737_v29  ;;  %9867 = vmatprep.mubr.msk.f32.mxu1 %vm374_vm0, %v8110_v31  ;;  %v8768_v29 = vld [vmem:[%s11395_s16 + $0x31a] sm:$0xff]  ;;  %v8241_v31 = vld [vmem:[%s11395_s16 + $0x309] sm:$0xff] }
 0x20e   : > { %10339 = vmatprep.mubr.msk.f32.mxu0 %vm374_vm0, %v8738_v36  ;;  %v8769_v36 = vld [vmem:[%s11395_s16 + $0x322] sm:$0xff] }
 0x210   : > { %9868 = vmatmul.mubr.msk.f32.gmra.mrb[60].mxu1 %vm374_vm0, %v8111_v45  ;;  %v8242_v45 = vld [vmem:[%s11395_s16 + $0x319] sm:$0xff] }
 0x211   : > { %10340 = vmatmul.mubr.msk.f32.gmra.mrb[28].mxu0 %vm374_vm0, %v8739_v32  ;;  %9870 = vmatprep.mubr.msk.f32.mxu1 %vm374_vm0, %v12633_v30  ;;  %v8743_v30 = vld [vmem:[%s11395_s16 + $0x1ea] sm:$0xff]  ;;  %v8770_v32 = vld [vmem:[%s11395_s16 + $0x332] sm:$0xff] }
 0x212   : > { %10342 = vmatprep.mubr.msk.f32.mxu0 %vm374_vm0, %v8740_v20  ;;  %v8243_v20 = vld [vmem:[%s11395_s16 + $0x321] sm:$0xff] }
 0x214   : > { %9871 = vmatmul.mubr.msk.f32.gmra.mrb[62].mxu1 %vm374_vm0, %v13644_v27 }
 0x215   : > { %10343 = vmatmul.mubr.msk.f32.gmra.mrb[30].mxu0 %vm374_vm0, %v8741_v14  ;;  %9929 = vmatprep.mubr.msk.f32.mxu1 %vm374_vm0, %v8214_v7  ;;  %v8771_v14 = vld [vmem:[%s11395_s16 + $0x33a] sm:$0xff]  ;;  %v8772_v7 = vld [vmem:[%s11395_s16 + $0x34a] sm:$0xff] }
 0x216   : > { %10345 = vmatprep.mubr.msk.f32.mxu0 %vm374_vm0, %v8742_v25  ;;  %v8773_v25 = vld [vmem:[%s11395_s16 + $0x352] sm:$0xff] }
 0x218   : > { %9930 = vmatmul.mubr.msk.f32.vlgmr.msra.gmra.mrb[32].mxu1 %vm374_vm0, %v8215_v35 }
 0x219   : > { %10346 = vmatmul.mubr.msk.f32.gmra.mrb[32].mxu0 %vm374_vm0, %v8743_v30  ;;  %9932 = vmatprep.mubr.msk.f32.mxu1 %vm374_vm0, %v8216_v38 }
 0x21a   : > { %10348 = vmatprep.mubr.msk.f32.mxu0 %vm374_vm0, %v8744_v40 }
 0x21c   : > { %9933 = vmatmul.mubr.msk.f32.gmra.mrb[34].mxu1 %vm374_vm0, %v8217_v42 }
 0x21d   : > { %10349 = vmatmul.mubr.msk.f32.gmra.mrb[34].mxu0 %vm374_vm0, %v8745_v44  ;;  %9935 = vmatprep.mubr.msk.f32.mxu1 %vm374_vm0, %v8218_v46 }
 0x21e   : > { %10351 = vmatprep.mubr.msk.f32.mxu0 %vm374_vm0, %v8746_v48 }
 0x220   : > { %9936 = vmatmul.mubr.msk.f32.gmra.mrb[36].mxu1 %vm374_vm0, %v8219_v50 }
 0x221   : > { %10352 = vmatmul.mubr.msk.f32.gmra.mrb[36].mxu0 %vm374_vm0, %v8747_v52  ;;  %9938 = vmatprep.mubr.msk.f32.mxu1 %vm374_vm0, %v8220_v54 }
 0x222   : > { %10354 = vmatprep.mubr.msk.f32.mxu0 %vm374_vm0, %v8748_v56 }
 0x224   : > { %9939 = vmatmul.mubr.msk.f32.gmra.mrb[38].mxu1 %vm374_vm0, %v8221_v58 }
 0x225   : > { %10355 = vmatmul.mubr.msk.f32.gmra.mrb[38].mxu0 %vm374_vm0, %v8749_v60  ;;  %9941 = vmatprep.mubr.msk.f32.mxu1 %vm374_vm0, %v8222_v62 }
 0x226   : > { %10357 = vmatprep.mubr.msk.f32.mxu0 %vm374_vm0, %v8750_v0 }
 0x228   : > { %9942 = vmatmul.mubr.msk.f32.gmra.mrb[40].mxu1 %vm374_vm0, %v8223_v2 }
 0x229   : > { %10358 = vmatmul.mubr.msk.f32.gmra.mrb[40].mxu0 %vm374_vm0, %v8751_v4  ;;  %9944 = vmatprep.mubr.msk.f32.mxu1 %vm374_vm0, %v8224_v6 }
 0x22a   : > { %10360 = vmatprep.mubr.msk.f32.mxu0 %vm374_vm0, %v8752_v9 }
 0x22c   : > { %9945 = vmatmul.mubr.msk.f32.gmra.mrb[42].mxu1 %vm374_vm0, %v8225_v41 }
 0x22d   : > { %10361 = vmatmul.mubr.msk.f32.gmra.mrb[42].mxu0 %vm374_vm0, %v8753_v11  ;;  %9947 = vmatprep.mubr.msk.f32.mxu1 %vm374_vm0, %v8226_v34 }
 0x22e   : > { %10363 = vmatprep.mubr.msk.f32.mxu0 %vm374_vm0, %v8754_v37 }
 0x230   : > { %9948 = vmatmul.mubr.msk.f32.gmra.mrb[44].mxu1 %vm374_vm0, %v8227_v39 }
 0x231   : > { %10364 = vmatmul.mubr.msk.f32.gmra.mrb[44].mxu0 %vm374_vm0, %v8755_v23  ;;  %9950 = vmatprep.mubr.msk.f32.mxu1 %vm374_vm0, %v8228_v15 }
 0x232   : > { %10366 = vmatprep.mubr.msk.f32.mxu0 %vm374_vm0, %v8756_v47 }
 0x234   : > { %9951 = vmatmul.mubr.msk.f32.gmra.mrb[46].mxu1 %vm374_vm0, %v8229_v49 }
 0x235   : > { %10367 = vmatmul.mubr.msk.f32.gmra.mrb[46].mxu0 %vm374_vm0, %v8757_v17  ;;  %9953 = vmatprep.mubr.msk.f32.mxu1 %vm374_vm0, %v8230_v51 }
 0x236   : > { %10369 = vmatprep.mubr.msk.f32.mxu0 %vm374_vm0, %v8758_v53 }
 0x238   : > { %9954 = vmatmul.mubr.msk.f32.gmra.mrb[48].mxu1 %vm374_vm0, %v8231_v55 }
 0x239   : > { %10370 = vmatmul.mubr.msk.f32.gmra.mrb[48].mxu0 %vm374_vm0, %v8759_v57  ;;  %9956 = vmatprep.mubr.msk.f32.mxu1 %vm374_vm0, %v8232_v59 }
 0x23a   : > { %10372 = vmatprep.mubr.msk.f32.mxu0 %vm374_vm0, %v8760_v61 }
 0x23c   : > { %9957 = vmatmul.mubr.msk.f32.gmra.mrb[50].mxu1 %vm374_vm0, %v8233_v63 }
 0x23d   : > { %10373 = vmatmul.mubr.msk.f32.gmra.mrb[50].mxu0 %vm374_vm0, %v8761_v1  ;;  %9959 = vmatprep.mubr.msk.f32.mxu1 %vm374_vm0, %v8234_v3 }
 0x23e   : > { %10375 = vmatprep.mubr.msk.f32.mxu0 %vm374_vm0, %v8762_v5 }
 0x240   : > { %9960 = vmatmul.mubr.msk.f32.gmra.mrb[52].mxu1 %vm374_vm0, %v8235_v8 }
 0x241   : > { %10376 = vmatmul.mubr.msk.f32.gmra.mrb[52].mxu0 %vm374_vm0, %v8763_v12  ;;  %9962 = vmatprep.mubr.msk.f32.mxu1 %vm374_vm0, %v8236_v43 }
 0x242   : > { %10378 = vmatprep.mubr.msk.f32.mxu0 %vm374_vm0, %v8764_v16 }
 0x244   : > { %9963 = vmatmul.mubr.msk.f32.gmra.mrb[54].mxu1 %vm374_vm0, %v8237_v18 }
 0x245   : > { %10379 = vmatmul.mubr.msk.f32.gmra.mrb[54].mxu0 %vm374_vm0, %v8765_v26  ;;  %9965 = vmatprep.mubr.msk.f32.mxu1 %vm374_vm0, %v8238_v13 }
 0x246   : > { %10381 = vmatprep.mubr.msk.f32.mxu0 %vm374_vm0, %v8766_v24 }
 0x248   : > { %9966 = vmatmul.mubr.msk.f32.gmra.mrb[56].mxu1 %vm374_vm0, %v8239_v28 }
 0x249   : > { %10382 = vmatmul.mubr.msk.f32.gmra.mrb[56].mxu0 %vm374_vm0, %v8767_v19  ;;  %9968 = vmatprep.mubr.msk.f32.mxu1 %vm374_vm0, %v8240_v10 }
 0x24a   : > { %10384 = vmatprep.mubr.msk.f32.mxu0 %vm374_vm0, %v8768_v29 }
 0x24c   : > { %9969 = vmatmul.mubr.msk.f32.gmra.mrb[58].mxu1 %vm374_vm0, %v8241_v31 }
 0x24d   : > { %10385 = vmatmul.mubr.msk.f32.gmra.mrb[58].mxu0 %vm374_vm0, %v8769_v36  ;;  %9971 = vmatprep.mubr.msk.f32.mxu1 %vm374_vm0, %v8242_v45 }
 0x24e   : > { %10387 = vmatprep.mubr.msk.f32.mxu0 %vm374_vm0, %v8770_v32 }
 0x250   : > { %9972 = vmatmul.mubr.msk.f32.gmra.mrb[60].mxu1 %vm374_vm0, %v8243_v20 }
 0x251   : > { %10388 = vmatmul.mubr.msk.f32.gmra.mrb[60].mxu0 %vm374_vm0, %v8771_v14  ;;  %9974 = vmatprep.mubr.msk.f32.mxu1 %vm374_vm0, %v12907_v22 }
 0x252   : > { %10390 = vmatprep.mubr.msk.f32.mxu0 %vm374_vm0, %v8772_v7 }
 0x254   : > { %9975 = vmatmul.mubr.msk.f32.gmra.mrb[62].mxu1 %vm374_vm0, %v12917_v21 }
 0x255   : > { %10391 = vmatmul.mubr.msk.f32.gmra.mrb[62].mxu0 %vm374_vm0, %v8773_v25 }
 0x26b   : > { %v9779_v27 = vpop.f32.mrb[0].mxu1 }
 0x26c   : > { %v3148_v35 = vpop.f32.mrb[1].mxu1  ;;  %v10471_v17 = vadd.f32 %v9779_v27, %v12946_v33 }
 0x26d   : > { %v10477_v51 = vadd.f32 %v12946_v33, %v3148_v35 }
 0x26f   : > { %v9782_v30 = vpop.f32.mrb[2].mxu1 }
 0x270   : > { %v3158_v38 = vpop.f32.mrb[3].mxu1  ;;  %v10483_v61 = vadd.f32 %v9782_v30, %v12946_v33 }
 0x271   : > { %v10489_v63 = vadd.f32 %v12946_v33, %v3158_v38 }
 0x273   : > { %v9785_v40 = vpop.f32.mrb[4].mxu1 }
 0x274   : > { %v3168_v42 = vpop.f32.mrb[5].mxu1  ;;  %v10495_v12 = vadd.f32 %v9785_v40, %v12946_v33 }
 0x275   : > { %v10501_v43 = vadd.f32 %v12946_v33, %v3168_v42 }
 0x277   : > { %v9788_v44 = vpop.f32.mrb[6].mxu1 }
 0x278   : > { %v3178_v46 = vpop.f32.mrb[7].mxu1  ;;  %v10507_v24 = vadd.f32 %v9788_v44, %v12946_v33 }
 0x279   : > { %v10513_v28 = vadd.f32 %v12946_v33, %v3178_v46 }
 0x27b   : > { %v9791_v48 = vpop.f32.mrb[8].mxu1 }
 0x27c   : > { %v3188_v50 = vpop.f32.mrb[9].mxu1  ;;  %v10519_v36 = vadd.f32 %v9791_v48, %v12946_v33 }
 0x27d   : > { %v10525_v45 = vadd.f32 %v12946_v33, %v3188_v50 }
 0x27f   : > { %v9794_v52 = vpop.f32.mrb[10].mxu1 }
 0x280   : > { %v3198_v22 = vpop.f32.mrb[11].mxu1  ;;  %v10531_v25 = vadd.f32 %v9794_v52, %v12946_v33 }
 0x281   : > { %v10537_v27 = vadd.f32 %v12946_v33, %v3198_v22 }
 0x283   : > { %v13223_v54 = vpop.f32.mrb[12].mxu1 }
 0x284   : > { %v13225_v56 = vpop.f32.mrb[13].mxu1  ;;  %v10543_v42 = vadd.f32 %v13223_v54, %v12946_v33 }
 0x285   : > { %v10549_v44 = vadd.f32 %v12946_v33, %v13225_v56 }
 0x287   : > { %v13227_v58 = vpop.f32.mrb[14].mxu1 }
 0x288   : > { %v13229_v21 = vpop.f32.mrb[15].mxu1  ;;  %v10555_v22 = vadd.f32 %v13227_v58, %v12946_v33 }
 0x28b   : > { %v13231_v60 = vpop.f32.mrb[16].mxu1 }
 0x28c   : > { %v13233_v62 = vpop.f32.mrb[17].mxu1 }
 0x28f   : > { %v13235_v0 = vpop.f32.mrb[18].mxu1 }
 0x290   : > { %v13237_v2 = vpop.f32.mrb[19].mxu1 }
 0x293   : > { %v13239_v4 = vpop.f32.mrb[20].mxu1 }
 0x294   : > { %v13241_v6 = vpop.f32.mrb[21].mxu1 }
 0x297   : > { %v13243_v9 = vpop.f32.mrb[22].mxu1 }
 0x298   : > { %v13245_v41 = vpop.f32.mrb[23].mxu1 }
 0x29b   : > { %v13247_v11 = vpop.f32.mrb[24].mxu1 }
 0x29c   : > { %v13249_v34 = vpop.f32.mrb[25].mxu1 }
 0x29f   : > { %v13251_v37 = vpop.f32.mrb[26].mxu1 }
 0x2a0   : > { %v13253_v39 = vpop.f32.mrb[27].mxu1 }
 0x2a3   : > { %v13255_v23 = vpop.f32.mrb[28].mxu1 }
 0x2a4   : > { %v13257_v15 = vpop.f32.mrb[29].mxu1 }
 0x2a7   : > { %v13259_v47 = vpop.f32.mrb[30].mxu1 }
 0x2a8   : > { %v13261_v49 = vpop.f32.mrb[31].mxu1 }
 0x2ac   : > { %v10299_v53 = vpop.f32.mrb[0].mxu0 }
 0x2ad   : > { %v10474_v55 = vadd.f32 %v10471_v17, %v10299_v53  ;;  %v7339_v57 = vpop.f32.mrb[1].mxu0  ;;  %v10561_v17 = vadd.f32 %v12946_v33, %v13229_v21 }
 0x2ae   : > { %v10480_v59 = vadd.f32 %v10477_v51, %v7339_v57  ;;  %v10573_v57 = vadd.f32 %v12946_v33, %v13233_v62 }
 0x2af   : > { %7723 = vst [vmem:[%s12941_s20 + $0x8] sm:$0xff] %v10474_v55  ;;  %v10567_v55 = vadd.f32 %v13231_v60, %v12946_v33 }
 0x2b0   : > { %7722 = vst [vmem:[%s12941_s20] sm:$0xff] %v10480_v59  ;;  %v10302_v1 = vpop.f32.mrb[2].mxu0 }
 0x2b1   : > { %v10486_v3 = vadd.f32 %v10483_v61, %v10302_v1  ;;  %v7349_v5 = vpop.f32.mrb[3].mxu0  ;;  %v10585_v1 = vadd.f32 %v12946_v33, %v13237_v2 }
 0x2b2   : > { %v10492_v8 = vadd.f32 %v10489_v63, %v7349_v5  ;;  %v10579_v63 = vadd.f32 %v13235_v0, %v12946_v33 }
 0x2b3   : > { %7725 = vst [vmem:[%s12941_s20 + $0x18] sm:$0xff] %v10486_v3 }
 0x2b4   : > { %7724 = vst [vmem:[%s12941_s20 + $0x10] sm:$0xff] %v10492_v8  ;;  %v10305_v16 = vpop.f32.mrb[4].mxu0  ;;  %v10591_v8 = vadd.f32 %v13239_v4, %v12946_v33 }
 0x2b5   : > { %v10498_v18 = vadd.f32 %v10495_v12, %v10305_v16  ;;  %v7359_v26 = vpop.f32.mrb[5].mxu0  ;;  %v10597_v12 = vadd.f32 %v12946_v33, %v13241_v6 }
 0x2b6   : > { %v10504_v13 = vadd.f32 %v10501_v43, %v7359_v26  ;;  %v10609_v26 = vadd.f32 %v12946_v33, %v13245_v41 }
 0x2b7   : > { %7727 = vst [vmem:[%s12941_s20 + $0x28] sm:$0xff] %v10498_v18  ;;  %v10603_v18 = vadd.f32 %v13243_v9, %v12946_v33 }
 0x2b8   : > { %7726 = vst [vmem:[%s12941_s20 + $0x20] sm:$0xff] %v10504_v13  ;;  %v10308_v19 = vpop.f32.mrb[6].mxu0 }
 0x2b9   : > { %v10510_v10 = vadd.f32 %v10507_v24, %v10308_v19  ;;  %v7369_v29 = vpop.f32.mrb[7].mxu0  ;;  %v10621_v19 = vadd.f32 %v12946_v33, %v13249_v34 }
 0x2ba   : > { %v10516_v31 = vadd.f32 %v10513_v28, %v7369_v29  ;;  %v10615_v28 = vadd.f32 %v13247_v11, %v12946_v33 }
 0x2bb   : > { %7729 = vst [vmem:[%s12941_s20 + $0x38] sm:$0xff] %v10510_v10 }
 0x2bc   : > { %7728 = vst [vmem:[%s12941_s20 + $0x30] sm:$0xff] %v10516_v31  ;;  %v10311_v32 = vpop.f32.mrb[8].mxu0  ;;  %v10627_v31 = vadd.f32 %v13251_v37, %v12946_v33 }
 0x2bd   : > { %v10522_v20 = vadd.f32 %v10519_v36, %v10311_v32  ;;  %v7379_v14 = vpop.f32.mrb[9].mxu0  ;;  %v10633_v36 = vadd.f32 %v12946_v33, %v13253_v39 }
 0x2be   : > { %v10528_v7 = vadd.f32 %v10525_v45, %v7379_v14  ;;  %v10645_v14 = vadd.f32 %v12946_v33, %v13257_v15 }
 0x2bf   : > { %7731 = vst [vmem:[%s12941_s20 + $0x48] sm:$0xff] %v10522_v20  ;;  %v10639_v20 = vadd.f32 %v13255_v23, %v12946_v33 }
 0x2c0   : > { %7730 = vst [vmem:[%s12941_s20 + $0x40] sm:$0xff] %v10528_v7  ;;  %v10314_v35 = vpop.f32.mrb[10].mxu0 }
 0x2c1   : > { %v10534_v30 = vadd.f32 %v10531_v25, %v10314_v35  ;;  %v7389_v38 = vpop.f32.mrb[11].mxu0  ;;  %v10657_v35 = vadd.f32 %v12946_v33, %v13261_v49 }
 0x2c2   : > { %v10540_v40 = vadd.f32 %v10537_v27, %v7389_v38  ;;  %v10651_v27 = vadd.f32 %v13259_v47, %v12946_v33 }
 0x2c3   : > { %7733 = vst [vmem:[%s12941_s20 + $0x58] sm:$0xff] %v10534_v30 }
 0x2c4   : > { %7732 = vst [vmem:[%s12941_s20 + $0x50] sm:$0xff] %v10540_v40  ;;  %v10317_v46 = vpop.f32.mrb[12].mxu0 }
 0x2c5   : > { %v10546_v48 = vadd.f32 %v10543_v42, %v10317_v46  ;;  %v7399_v50 = vpop.f32.mrb[13].mxu0 }
 0x2c6   : > { %v10552_v52 = vadd.f32 %v10549_v44, %v7399_v50 }
 0x2c7   : > { %7735 = vst [vmem:[%s12941_s20 + $0x68] sm:$0xff] %v10546_v48 }
 0x2c8   : > { %7734 = vst [vmem:[%s12941_s20 + $0x60] sm:$0xff] %v10552_v52  ;;  %v10320_v54 = vpop.f32.mrb[14].mxu0 }
 0x2c9   : > { %v10558_v51 = vadd.f32 %v10555_v22, %v10320_v54  ;;  %v7409_v53 = vpop.f32.mrb[15].mxu0 }
 0x2ca   : > { %v10564_v56 = vadd.f32 %v10561_v17, %v7409_v53 }
 0x2cb   : > { %7737 = vst [vmem:[%s12941_s20 + $0x78] sm:$0xff] %v10558_v51 }
 0x2cc   : > { %7736 = vst [vmem:[%s12941_s20 + $0x70] sm:$0xff] %v10564_v56  ;;  %v10323_v58 = vpop.f32.mrb[16].mxu0 }
 0x2cd   : > { %v10570_v59 = vadd.f32 %v10567_v55, %v10323_v58  ;;  %v7419_v61 = vpop.f32.mrb[17].mxu0 }
 0x2ce   : > { %v10576_v21 = vadd.f32 %v10573_v57, %v7419_v61 }
 0x2cf   : > { %7739 = vst [vmem:[%s12941_s20 + $0x88] sm:$0xff] %v10570_v59 }
 0x2d0   : > { %7738 = vst [vmem:[%s12941_s20 + $0x80] sm:$0xff] %v10576_v21  ;;  %v10326_v60 = vpop.f32.mrb[18].mxu0 }
 0x2d1   : > { %v10582_v3 = vadd.f32 %v10579_v63, %v10326_v60  ;;  %v7429_v5 = vpop.f32.mrb[19].mxu0 }
 0x2d2   : > { %v10588_v62 = vadd.f32 %v10585_v1, %v7429_v5 }
 0x2d3   : > { %7741 = vst [vmem:[%s12941_s20 + $0x98] sm:$0xff] %v10582_v3 }
 0x2d4   : > { %7740 = vst [vmem:[%s12941_s20 + $0x90] sm:$0xff] %v10588_v62  ;;  %v10329_v0 = vpop.f32.mrb[20].mxu0 }
 0x2d5   : > { %v10594_v43 = vadd.f32 %v10591_v8, %v10329_v0  ;;  %v7439_v16 = vpop.f32.mrb[21].mxu0 }
 0x2d6   : > { %v10600_v2 = vadd.f32 %v10597_v12, %v7439_v16 }
 0x2d7   : > { %7743 = vst [vmem:[%s12941_s20 + $0xa8] sm:$0xff] %v10594_v43 }
 0x2d8   : > { %7742 = vst [vmem:[%s12941_s20 + $0xa0] sm:$0xff] %v10600_v2  ;;  %v10332_v4 = vpop.f32.mrb[22].mxu0 }
 0x2d9   : > { %v10606_v13 = vadd.f32 %v10603_v18, %v10332_v4  ;;  %v7449_v24 = vpop.f32.mrb[23].mxu0 }
 0x2da   : > { %v10612_v6 = vadd.f32 %v10609_v26, %v7449_v24 }
 0x2db   : > { %7745 = vst [vmem:[%s12941_s20 + $0xb8] sm:$0xff] %v10606_v13 }
 0x2dc   : > { %7744 = vst [vmem:[%s12941_s20 + $0xb0] sm:$0xff] %v10612_v6  ;;  %v10335_v9 = vpop.f32.mrb[24].mxu0 }
 0x2dd   : > { %v10618_v10 = vadd.f32 %v10615_v28, %v10335_v9  ;;  %v7459_v29 = vpop.f32.mrb[25].mxu0 }
 0x2de   : > { %v10624_v41 = vadd.f32 %v10621_v19, %v7459_v29 }
 0x2df   : > { %7747 = vst [vmem:[%s12941_s20 + $0xc8] sm:$0xff] %v10618_v10 }
 0x2e0   : > { %7746 = vst [vmem:[%s12941_s20 + $0xc0] sm:$0xff] %v10624_v41  ;;  %v10338_v11 = vpop.f32.mrb[26].mxu0 }
 0x2e1   : > { %v10630_v45 = vadd.f32 %v10627_v31, %v10338_v11  ;;  %v7469_v32 = vpop.f32.mrb[27].mxu0 }
 0x2e2   : > { %v10636_v34 = vadd.f32 %v10633_v36, %v7469_v32 }
 0x2e3   : > { %7749 = vst [vmem:[%s12941_s20 + $0xd8] sm:$0xff] %v10630_v45 }
 0x2e4   : > { %7748 = vst [vmem:[%s12941_s20 + $0xd0] sm:$0xff] %v10636_v34  ;;  %v10341_v37 = vpop.f32.mrb[28].mxu0 }
 0x2e5   : > { %v10642_v7 = vadd.f32 %v10639_v20, %v10341_v37  ;;  %v7479_v25 = vpop.f32.mrb[29].mxu0 }
 0x2e6   : > { %v10648_v39 = vadd.f32 %v10645_v14, %v7479_v25 }
 0x2e7   : > { %7751 = vst [vmem:[%s12941_s20 + $0xe8] sm:$0xff] %v10642_v7 }
 0x2e8   : > { %7750 = vst [vmem:[%s12941_s20 + $0xe0] sm:$0xff] %v10648_v39  ;;  %v10344_v23 = vpop.f32.mrb[30].mxu0 }
 0x2e9   : > { %v10654_v30 = vadd.f32 %v10651_v27, %v10344_v23  ;;  %v7489_v38 = vpop.f32.mrb[31].mxu0 }
 0x2ea   : > { %v10660_v40 = vadd.f32 %v10657_v35, %v7489_v38 }
 0x2eb   : > { %7753 = vst [vmem:[%s12941_s20 + $0xf8] sm:$0xff] %v10654_v30  ;;  %v9931_v15 = vpop.f32.mrb[32].mxu1 }
 0x2ec   : > { %7752 = vst [vmem:[%s12941_s20 + $0xf0] sm:$0xff] %v10660_v40  ;;  %v10663_v42 = vadd.f32 %v9931_v15, %v12946_v33  ;;  %v10347_v44 = vpop.f32.mrb[32].mxu0  ;;  %v4146_v46 = vpop.f32.mrb[33].mxu1 }
 0x2ed   : > { %v10669_v47 = vadd.f32 %v12946_v33, %v4146_v46  ;;  %v7499_v48 = vpop.f32.mrb[33].mxu0 }
 0x2ee   : > { %v10666_v50 = vadd.f32 %v10663_v42, %v10347_v44 }
 0x2ef   : > { %v10672_v49 = vadd.f32 %v10669_v47, %v7499_v48  ;;  %v9934_v52 = vpop.f32.mrb[34].mxu1 }
 0x2f0   : > { %7755 = vst [vmem:[%s12941_s20 + $0x108] sm:$0xff] %v10666_v50  ;;  %v10675_v22 = vadd.f32 %v9934_v52, %v12946_v33  ;;  %v10350_v17 = vpop.f32.mrb[34].mxu0  ;;  %v4156_v54 = vpop.f32.mrb[35].mxu1  ;;  %v356_v52 = vld [vmem:[%s12941_s20 + $0x190] sm:$0xff] }
 0x2f1   : > { %7754 = vst [vmem:[%s12941_s20 + $0x100] sm:$0xff] %v10672_v49  ;;  %v10681_v51 = vadd.f32 %v12946_v33, %v4156_v54  ;;  %v7509_v53 = vpop.f32.mrb[35].mxu0 }
 0x2f2   : > { %v10678_v56 = vadd.f32 %v10675_v22, %v10350_v17 }
 0x2f3   : > { %v10684_v55 = vadd.f32 %v10681_v51, %v7509_v53  ;;  %v9937_v57 = vpop.f32.mrb[36].mxu1 }
 0x2f4   : > { %7757 = vst [vmem:[%s12941_s20 + $0x118] sm:$0xff] %v10678_v56  ;;  %v10687_v58 = vadd.f32 %v9937_v57, %v12946_v33  ;;  %v10353_v59 = vpop.f32.mrb[36].mxu0  ;;  %v4166_v61 = vpop.f32.mrb[37].mxu1  ;;  %v359_v57 = vld [vmem:[%s12941_s20 + $0x1a8] sm:$0xff] }
 0x2f5   : > { %7756 = vst [vmem:[%s12941_s20 + $0x110] sm:$0xff] %v10684_v55  ;;  %v10693_v21 = vadd.f32 %v12946_v33, %v4166_v61  ;;  %v7519_v63 = vpop.f32.mrb[37].mxu0 }
 0x2f6   : > { %v10690_v1 = vadd.f32 %v10687_v58, %v10353_v59  ;;  %v358_v59 = vld [vmem:[%s12941_s20 + $0x1a0] sm:$0xff] }
 0x2f7   : > { %v10696_v60 = vadd.f32 %v10693_v21, %v7519_v63  ;;  %v9940_v3 = vpop.f32.mrb[38].mxu1 }
 0x2f8   : > { %7759 = vst [vmem:[%s12941_s20 + $0x128] sm:$0xff] %v10690_v1  ;;  %v10699_v5 = vadd.f32 %v9940_v3, %v12946_v33  ;;  %v10356_v62 = vpop.f32.mrb[38].mxu0  ;;  %v4176_v8 = vpop.f32.mrb[39].mxu1 }
 0x2f9   : > { %7758 = vst [vmem:[%s12941_s20 + $0x120] sm:$0xff] %v10696_v60  ;;  %v10705_v12 = vadd.f32 %v12946_v33, %v4176_v8  ;;  %v7529_v0 = vpop.f32.mrb[39].mxu0  ;;  %v360_v8 = vld [vmem:[%s12941_s20 + $0x1b0] sm:$0xff] }
 0x2fa   : > { %v10702_v43 = vadd.f32 %v10699_v5, %v10356_v62  ;;  %v361_v5 = vld [vmem:[%s12941_s20 + $0x1b8] sm:$0xff] }
 0x2fb   : > { %v10708_v16 = vadd.f32 %v10705_v12, %v7529_v0  ;;  %v9943_v2 = vpop.f32.mrb[40].mxu1 }
 0x2fc   : > { %7761 = vst [vmem:[%s12941_s20 + $0x138] sm:$0xff] %v10702_v43  ;;  %v10711_v18 = vadd.f32 %v9943_v2, %v12946_v33  ;;  %v10359_v26 = vpop.f32.mrb[40].mxu0  ;;  %v4186_v4 = vpop.f32.mrb[41].mxu1 }
 0x2fd   : > { %7760 = vst [vmem:[%s12941_s20 + $0x130] sm:$0xff] %v10708_v16  ;;  %v10717_v13 = vadd.f32 %v12946_v33, %v4186_v4  ;;  %v7539_v24 = vpop.f32.mrb[41].mxu0  ;;  %v363_v4 = vld [vmem:[%s12941_s20 + $0x1c8] sm:$0xff] }
 0x2fe   : > { %v10714_v6 = vadd.f32 %v10711_v18, %v10359_v26 }
 0x2ff   : > { %v10720_v28 = vadd.f32 %v10717_v13, %v7539_v24  ;;  %v9946_v19 = vpop.f32.mrb[42].mxu1  ;;  %v362_v24 = vld [vmem:[%s12941_s20 + $0x1c0] sm:$0xff] }
 0x300   : > { %7763 = vst [vmem:[%s12941_s20 + $0x148] sm:$0xff] %v10714_v6  ;;  %v10723_v9 = vadd.f32 %v9946_v19, %v12946_v33  ;;  %v10362_v10 = vpop.f32.mrb[42].mxu0  ;;  %v4196_v29 = vpop.f32.mrb[43].mxu1 }
 0x301   : > { %7762 = vst [vmem:[%s12941_s20 + $0x140] sm:$0xff] %v10720_v28  ;;  %v10729_v41 = vadd.f32 %v12946_v33, %v4196_v29  ;;  %v7549_v31 = vpop.f32.mrb[43].mxu0 }
 0x302   : > { %v10726_v36 = vadd.f32 %v10723_v9, %v10362_v10 }
 0x303   : > { %v10732_v11 = vadd.f32 %v10729_v41, %v7549_v31  ;;  %v9949_v45 = vpop.f32.mrb[44].mxu1  ;;  %v365_v31 = vld [vmem:[%s12941_s20 + $0x1d8] sm:$0xff] }
 0x304   : > { %7765 = vst [vmem:[%s12941_s20 + $0x158] sm:$0xff] %v10726_v36  ;;  %v10735_v32 = vadd.f32 %v9949_v45, %v12946_v33  ;;  %v10365_v34 = vpop.f32.mrb[44].mxu0  ;;  %v4206_v20 = vpop.f32.mrb[45].mxu1 }
 0x305   : > { %7764 = vst [vmem:[%s12941_s20 + $0x150] sm:$0xff] %v10732_v11  ;;  %v10741_v14 = vadd.f32 %v12946_v33, %v4206_v20  ;;  %v7559_v37 = vpop.f32.mrb[45].mxu0  ;;  %v364_v11 = vld [vmem:[%s12941_s20 + $0x1d0] sm:$0xff] }
 0x306   : > { %v10738_v7 = vadd.f32 %v10735_v32, %v10365_v34 }
 0x307   : > { %v10744_v25 = vadd.f32 %v10741_v14, %v7559_v37  ;;  %v9952_v39 = vpop.f32.mrb[46].mxu1 }
 0x308   : > { %7767 = vst [vmem:[%s12941_s20 + $0x168] sm:$0xff] %v10738_v7  ;;  %v10747_v27 = vadd.f32 %v9952_v39, %v12946_v33  ;;  %v10368_v35 = vpop.f32.mrb[46].mxu0  ;;  %v4216_v23 = vpop.f32.mrb[47].mxu1 }
 0x309   : > { %7766 = vst [vmem:[%s12941_s20 + $0x160] sm:$0xff] %v10744_v25  ;;  %v10753_v30 = vadd.f32 %v12946_v33, %v4216_v23  ;;  %v7569_v38 = vpop.f32.mrb[47].mxu0  ;;  %v367_v25 = vld [vmem:[%s12941_s20 + $0x1e8] sm:$0xff] }
 0x30a   : > { %v10750_v40 = vadd.f32 %v10747_v27, %v10368_v35  ;;  %v366_v27 = vld [vmem:[%s12941_s20 + $0x1e0] sm:$0xff] }
 0x30b   : > { %v10756_v15 = vadd.f32 %v10753_v30, %v7569_v38  ;;  %v9955_v42 = vpop.f32.mrb[48].mxu1 }
 0x30c   : > { %7769 = vst [vmem:[%s12941_s20 + $0x178] sm:$0xff] %v10750_v40  ;;  %v10759_v44 = vadd.f32 %v9955_v42, %v12946_v33  ;;  %v10371_v46 = vpop.f32.mrb[48].mxu0  ;;  %v4226_v47 = vpop.f32.mrb[49].mxu1 }
 0x30d   : > { %7768 = vst [vmem:[%s12941_s20 + $0x170] sm:$0xff] %v10756_v15  ;;  %v10765_v48 = vadd.f32 %v12946_v33, %v4226_v47  ;;  %v7579_v50 = vpop.f32.mrb[49].mxu0  ;;  %v368_v47 = vld [vmem:[%s12941_s20 + $0x1f0] sm:$0xff] }
 0x30e   : > { %v10762_v49 = vadd.f32 %v10759_v44, %v10371_v46  ;;  %v369_v44 = vld [vmem:[%s12941_s20 + $0x1f8] sm:$0xff] }
 0x30f   : > { %v10768_v22 = vadd.f32 %v10765_v48, %v7579_v50  ;;  %v9958_v17 = vpop.f32.mrb[50].mxu1 }
 0x310   : > { %7771 = vst [vmem:[%s12941_s20 + $0x188] sm:$0xff] %v10762_v49  ;;  %v10771_v54 = vadd.f32 %v9958_v17, %v12946_v33  ;;  %v10374_v51 = vpop.f32.mrb[50].mxu0  ;;  %v4236_v53 = vpop.f32.mrb[51].mxu1 }
 0x311   : > { %7770 = vst [vmem:[%s12941_s20 + $0x180] sm:$0xff] %v10768_v22  ;;  %v10777_v56 = vadd.f32 %v4236_v53, %v356_v52  ;;  %v7589_v55 = vpop.f32.mrb[51].mxu0 }
 0x312   : > { %v10774_v58 = vadd.f32 %v10771_v54, %v10374_v51 }
 0x313   : > { %v10780_v61 = vadd.f32 %v10777_v56, %v7589_v55  ;;  %v9961_v21 = vpop.f32.mrb[52].mxu1 }
 0x314   : > { %7773 = vst [vmem:[%s12941_s20 + $0x198] sm:$0xff] %v10774_v58  ;;  %v10783_v63 = vadd.f32 %v9961_v21, %v359_v57  ;;  %v10377_v1 = vpop.f32.mrb[52].mxu0  ;;  %v4246_v60 = vpop.f32.mrb[53].mxu1 }
 0x315   : > { %7772 = vst [vmem:[%s12941_s20 + $0x190] sm:$0xff] %v10780_v61  ;;  %v10789_v33 = vadd.f32 %v4246_v60, %v358_v59  ;;  %v7599_v3 = vpop.f32.mrb[53].mxu0 }
 0x316   : > { %v10786_v62 = vadd.f32 %v10783_v63, %v10377_v1 }
 0x317   : > { %v10792_v12 = vadd.f32 %v10789_v33, %v7599_v3  ;;  %v9964_v0 = vpop.f32.mrb[54].mxu1 }
 0x318   : > { %7775 = vst [vmem:[%s12941_s20 + $0x1a8] sm:$0xff] %v10786_v62  ;;  %v10795_v43 = vadd.f32 %v9964_v0, %v361_v5  ;;  %v10380_v16 = vpop.f32.mrb[54].mxu0  ;;  %v4256_v2 = vpop.f32.mrb[55].mxu1 }
 0x319   : > { %7774 = vst [vmem:[%s12941_s20 + $0x1a0] sm:$0xff] %v10792_v12  ;;  %v10801_v18 = vadd.f32 %v4256_v2, %v360_v8  ;;  %v7609_v26 = vpop.f32.mrb[55].mxu0 }
 0x31a   : > { %v10798_v13 = vadd.f32 %v10795_v43, %v10380_v16 }
 0x31b   : > { %v10804_v6 = vadd.f32 %v10801_v18, %v7609_v26  ;;  %v9967_v28 = vpop.f32.mrb[56].mxu1 }
 0x31c   : > { %7777 = vst [vmem:[%s12941_s20 + $0x1b8] sm:$0xff] %v10798_v13  ;;  %v10807_v19 = vadd.f32 %v9967_v28, %v363_v4  ;;  %v10383_v9 = vpop.f32.mrb[56].mxu0  ;;  %v4266_v10 = vpop.f32.mrb[57].mxu1 }
 0x31d   : > { %7776 = vst [vmem:[%s12941_s20 + $0x1b0] sm:$0xff] %v10804_v6  ;;  %v10813_v29 = vadd.f32 %v4266_v10, %v362_v24  ;;  %v7619_v41 = vpop.f32.mrb[57].mxu0 }
 0x31e   : > { %v10810_v36 = vadd.f32 %v10807_v19, %v10383_v9 }
 0x31f   : > { %v10816_v45 = vadd.f32 %v10813_v29, %v7619_v41  ;;  %v9970_v32 = vpop.f32.mrb[58].mxu1 }
 0x320   : > { %7779 = vst [vmem:[%s12941_s20 + $0x1c8] sm:$0xff] %v10810_v36  ;;  %v10819_v34 = vadd.f32 %v9970_v32, %v365_v31  ;;  %v10386_v20 = vpop.f32.mrb[58].mxu0  ;;  %v4276_v14 = vpop.f32.mrb[59].mxu1 }
 0x321   : > { %7778 = vst [vmem:[%s12941_s20 + $0x1c0] sm:$0xff] %v10816_v45  ;;  %v10825_v37 = vadd.f32 %v4276_v14, %v364_v11  ;;  %v7629_v7 = vpop.f32.mrb[59].mxu0 }
 0x322   : > { %v10822_v39 = vadd.f32 %v10819_v34, %v10386_v20 }
 0x323   : > { %v10828_v35 = vadd.f32 %v10825_v37, %v7629_v7  ;;  %v9973_v23 = vpop.f32.mrb[60].mxu1 }
 0x324   : > { %7781 = vst [vmem:[%s12941_s20 + $0x1d8] sm:$0xff] %v10822_v39  ;;  %v10831_v30 = vadd.f32 %v9973_v23, %v367_v25  ;;  %v10389_v38 = vpop.f32.mrb[60].mxu0  ;;  %v4286_v40 = vpop.f32.mrb[61].mxu1 }
 0x325   : > { %7780 = vst [vmem:[%s12941_s20 + $0x1d0] sm:$0xff] %v10828_v35  ;;  %v10837_v15 = vadd.f32 %v4286_v40, %v366_v27  ;;  %v7639_v42 = vpop.f32.mrb[61].mxu0 }
 0x326   : > { %v10834_v46 = vadd.f32 %v10831_v30, %v10389_v38 }
 0x327   : > { %v10840_v48 = vadd.f32 %v10837_v15, %v7639_v42  ;;  %v9976_v50 = vpop.f32.mrb[62].mxu1 }
 0x328   : > { %7783 = vst [vmem:[%s12941_s20 + $0x1e8] sm:$0xff] %v10834_v46  ;;  %v10843_v49 = vadd.f32 %v9976_v50, %v369_v44  ;;  %v10392_v52 = vpop.f32.mrb[62].mxu0  ;;  %v4296_v22 = vpop.f32.mrb[63].mxu1 }
 0x329   : > { %7782 = vst [vmem:[%s12941_s20 + $0x1e0] sm:$0xff] %v10840_v48  ;;  %v10849_v17 = vadd.f32 %v4296_v22, %v368_v47  ;;  %v7649_v54 = vpop.f32.mrb[63].mxu0 }
 0x32a   : > { %v10846_v51 = vadd.f32 %v10843_v49, %v10392_v52 }
 0x32b   : > { %v10852_v53 = vadd.f32 %v10849_v17, %v7649_v54 }
 0x32c   : > { %7785 = vst [vmem:[%s12941_s20 + $0x1f8] sm:$0xff] %v10846_v51 }
 0x32d   : > { %7784 = vst [vmem:[%s12941_s20 + $0x1f0] sm:$0xff] %v10852_v53 }
 0x32e PF: > { %s13_s12 = sadd.s32 1, %s11316_s12  }
 0x32f   : > { %p10_p4 = scmp.ge.s32.totalorder %s13_s12, 10  }
 0x331   :  { %12 = sbr.rel (!%p10_p4) target bundleno = 1 (0x1), region = 72 }

</bundles_post_ra>
